<compile_context>
chip_gen: v7x
topology: tpu7x:2x2x1
jax: 0.10.0
libtpu: 0.0.40
codegen_flags: <defaults>
</compile_context>

<pallas_src>
import jax
import jax.numpy as jnp
from jax import lax
from jax.experimental import pallas as pl
from jax.experimental.pallas import tpu as pltpu

block_size = 64
n_embd = 384
num_heads = 6
head_size = n_embd // num_heads  # 64


def _mha_kernel(x_ref, wqkv_ref, wp_ref, bp_ref, o_ref, qkv_ref, cat_ref):
    Bt, T, C = x_ref.shape
    M = Bt * T
    HH = num_heads * head_size  # 384
    PW = 2 * head_size          # 128 — one lane-aligned head pair

    # Flatten the Bt batch rows into a single fat slab for the big matmuls.
    xb = x_ref[...].reshape(M, C)  # (M, C) bf16 (cast in wrapper)

    # One fused, lane-dense QKV matmul for all heads & all Bt rows.
    qkv_ref[...] = jnp.dot(
        xb, wqkv_ref[...], preferred_element_type=jnp.float32
    ).astype(qkv_ref.dtype)

    # Causal mask, computed once per grid step (broadcast over the Bt rows).
    # NOTE: the 1/sqrt(C) (C = n_embd, matching the PyTorch reference) scale is
    # folded into the Q weights in the wrapper.
    row = lax.broadcasted_iota(jnp.int32, (T, T), 0)
    col = lax.broadcasted_iota(jnp.int32, (T, T), 1)
    causal = (col <= row)[None, :, :]  # (1, T, T)

    for pair in range(num_heads // 2):  # statically unrolled, 3 head pairs
        lo = pair * PW                  # multiple of 128 -> aligned slices
        hi = lo + PW

        # One aligned (M, 128) read per tensor per pair, viewed as (Bt, T, 128).
        q_slab = qkv_ref[:, lo:hi].reshape(Bt, T, PW)
        k_slab = qkv_ref[:, HH + lo:HH + hi].reshape(Bt, T, PW)
        v_slab = qkv_ref[:, 2 * HH + lo:2 * HH + hi].reshape(Bt, T, PW)

        outs = []
        for hh in range(2):  # the two heads inside the aligned pair
            a = hh * head_size
            b = a + head_size
            q = q_slab[:, :, a:b]   # (Bt, T, hs) bf16 (vreg-level slice)
            k = k_slab[:, :, a:b]
            v = v_slab[:, :, a:b]

            # scores = q @ k^T per batch row, no explicit transpose in memory.
            s = jnp.einsum('bqd,bkd->bqk', q, k,
                           preferred_element_type=jnp.float32)  # (Bt, T, T)
            s = jnp.where(causal, s, -jnp.inf)

            # numerically stable softmax (f32); divide goes to the EUP.
            m = jnp.max(s, axis=-1, keepdims=True)
            p = jnp.exp(s - m)
            wei = p * pl.reciprocal(jnp.sum(p, axis=-1, keepdims=True),
                                    approx=True)

            outs.append(jnp.einsum('bqk,bkd->bqd',
                                   wei.astype(jnp.bfloat16), v,
                                   preferred_element_type=jnp.float32))

        # One aligned (M, 128) store for the whole head pair.
        pair_out = jnp.concatenate(outs, axis=-1)           # (Bt, T, 128) f32
        cat_ref[:, lo:hi] = pair_out.reshape(M, PW).astype(cat_ref.dtype)

    # Single full-K output projection (+ bias) over the concatenated heads.
    out = jnp.dot(cat_ref[...], wp_ref[...], preferred_element_type=jnp.float32)
    out = out + bp_ref[...]
    o_ref[...] = out.reshape(Bt, T, C).astype(o_ref.dtype)


def _pick_bt(B):
    """Batch rows folded per grid step: fatten M, keep >= 2 steps for v7x."""
    if B <= 1:
        return 1
    for bt in (8, 4, 2, 1):
        if B % bt == 0 and B // bt >= 2:
            return bt
    return 1


def multi_head_attention(x, wq, wk, wv, w_proj, b_proj):
    """x: (B, T, C); wq/wk/wv: (H, C, hs); w_proj: (C, C); b_proj: (C,)."""
    B, T, C = x.shape
    H, _, hs = wq.shape
    HH = H * hs
    Bt = _pick_bt(B)
    out_dtype = x.dtype

    # Cast activations once in the wrapper (halves the per-step input DMA).
    x_bf = x.astype(jnp.bfloat16)

    # Fused QKV weight, layout [Q_all | K_all | V_all], 1/sqrt(C) folded into Q,
    # cast once to bf16 (stays VMEM-resident via constant index_map).
    scale = jnp.float32(C) ** jnp.float32(-0.5)
    w_qkv = jnp.concatenate(
        [
            wq.transpose(1, 0, 2).reshape(C, HH) * scale,
            wk.transpose(1, 0, 2).reshape(C, HH),
            wv.transpose(1, 0, 2).reshape(C, HH),
        ],
        axis=1,
    ).astype(jnp.bfloat16)                        # (C, 3*H*hs)
    w_proj_b = w_proj.astype(jnp.bfloat16)        # (C, C)
    b_proj2 = b_proj.reshape(1, C)                # (1, C) f32

    grid_spec = pltpu.PrefetchScalarGridSpec(
        num_scalar_prefetch=0,
        grid=(B // Bt,),
        in_specs=[
            pl.BlockSpec((Bt, T, C), lambda b: (b, 0, 0)),     # x (bf16)
            pl.BlockSpec((C, 3 * HH), lambda b: (0, 0)),       # fused QKV weight (resident)
            pl.BlockSpec((C, C), lambda b: (0, 0)),            # proj weight (resident)
            pl.BlockSpec((1, C), lambda b: (0, 0)),            # proj bias
        ],
        out_specs=pl.BlockSpec((Bt, T, C), lambda b: (b, 0, 0)),
        scratch_shapes=[
            pltpu.VMEM((Bt * T, 3 * HH), jnp.bfloat16),  # fused QKV activations
            pltpu.VMEM((Bt * T, HH), jnp.bfloat16),      # concatenated head outputs
        ],
    )

    return pl.pallas_call(
        _mha_kernel,
        out_shape=jax.ShapeDtypeStruct((B, T, C), out_dtype),
        grid_spec=grid_spec,
        compiler_params=pltpu.CompilerParams(
            dimension_semantics=("parallel",)),
    )(x_bf, w_qkv, w_proj_b, b_proj2)


def _reference(x, wq, wk, wv, w_proj, b_proj):
    """Plain-JAX (f32) reference mirroring the PyTorch forward (eval mode)."""
    B, T, C = x.shape
    outs = []
    for h in range(wq.shape[0]):
        q = x @ wq[h]
        k = x @ wk[h]
        v = x @ wv[h]
        s = jnp.einsum("btd,bsd->bts", q, k) * (C ** -0.5)
        mask = jnp.tril(jnp.ones((T, T), bool))
        s = jnp.where(mask, s, -jnp.inf)
        wei = jax.nn.softmax(s, axis=-1)
        outs.append(jnp.einsum("bts,bsd->btd", wei, v))
    cat = jnp.concatenate(outs, axis=-1)
    return cat @ w_proj + b_proj


if __name__ == "__main__":
    key = jax.random.PRNGKey(0)
    k_x, k_q, k_k, k_v, k_p, k_b = jax.random.split(key, 6)

    B, T = 4, block_size  # (4, 64, 384) -> Bt=2, grid=(2,)

    x = jax.random.normal(k_x, (B, T, n_embd), dtype=jnp.float32)

    # deterministic "Linear" weights (Kaiming-uniform-like scale, bias=False for QKV)
    lim = 1.0 / (n_embd ** 0.5)
    wq = jax.random.uniform(k_q, (num_heads, n_embd, head_size),
                            minval=-lim, maxval=lim, dtype=jnp.float32)
    wk = jax.random.uniform(k_k, (num_heads, n_embd, head_size),
                            minval=-lim, maxval=lim, dtype=jnp.float32)
    wv = jax.random.uniform(k_v, (num_heads, n_embd, head_size),
                            minval=-lim, maxval=lim, dtype=jnp.float32)
    w_proj = jax.random.uniform(k_p, (n_embd, n_embd),
                                minval=-lim, maxval=lim, dtype=jnp.float32)
    b_proj = jax.random.uniform(k_b, (n_embd,),
                                minval=-lim, maxval=lim, dtype=jnp.float32)

    out = multi_head_attention(x, wq, wk, wv, w_proj, b_proj)
    out = jax.block_until_ready(out)

    ref = _reference(x, wq, wk, wv, w_proj, b_proj)
    assert out.shape == (B, T, n_embd)
    # bf16 activations + bf16 MXU matmuls (f32 accumulate) -> relaxed tolerance.
    assert jnp.allclose(out, ref, atol=3e-2, rtol=3e-2), "mismatch vs reference"

    print("KERNEL_OK")
</pallas_src>

<mosaic_0001>
module attributes {stable_mosaic.version = 11 : i64} {
  func.func @_mha_kernel(%arg0: i32, %arg1: memref<2x64x384xbf16, #tpu.memory_space<vmem>>, %arg2: memref<384x1152xbf16, #tpu.memory_space<vmem>>, %arg3: memref<384x384xbf16, #tpu.memory_space<vmem>>, %arg4: memref<1x384xf32, #tpu.memory_space<vmem>>, %arg5: memref<2x64x384xf32, #tpu.memory_space<vmem>>, %arg6: memref<128x1152xbf16, #tpu.memory_space<vmem>>, %arg7: memref<128x384xbf16, #tpu.memory_space<vmem>>) attributes {dimension_semantics = [#tpu.dimension_semantics<parallel>], iteration_bounds = array<i64: 2>, scalar_prefetch = 0 : i64, scratch_operands = 2 : i64, tpu.core_type = #tpu.core_type<tc>, window_params = [{transform_indices = @transform_0, window_bounds = array<i64: 2, 64, 384>}, {pipeline_mode = #tpu.pipeline_mode<synchronous>, transform_indices = @transform_1, window_bounds = array<i64: 384, 1152>}, {pipeline_mode = #tpu.pipeline_mode<synchronous>, transform_indices = @transform_2, window_bounds = array<i64: 384, 384>}, {pipeline_mode = #tpu.pipeline_mode<synchronous>, transform_indices = @transform_3, window_bounds = array<i64: 1, 384>}, {transform_indices = @transform_4, window_bounds = array<i64: 2, 64, 384>}]} {
    %c0 = arith.constant 0 : index
    %c0_0 = arith.constant 0 : index
    %c0_1 = arith.constant 0 : index
    %0 = vector.load %arg1[%c0, %c0_0, %c0_1] : memref<2x64x384xbf16, #tpu.memory_space<vmem>>, vector<2x64x384xbf16>
    %1 = vector.shape_cast %0 : vector<2x64x384xbf16> to vector<128x384xbf16>
    %c0_2 = arith.constant 0 : index
    %c0_3 = arith.constant 0 : index
    %2 = vector.load %arg2[%c0_2, %c0_3] : memref<384x1152xbf16, #tpu.memory_space<vmem>>, vector<384x1152xbf16>
    %cst = arith.constant dense<0.000000e+00> : vector<128x1152xf32>
    %3 = tpu.matmul %1, %2, %cst {dimension_numbers = #tpu.dot_dimension_numbers<[1], [0], [0], [1], [0, 0, 1, 1], [], []>} : vector<128x384xbf16>, vector<384x1152xbf16>, vector<128x1152xf32> -> vector<128x1152xf32>
    %4 = arith.truncf %3 : vector<128x1152xf32> to vector<128x1152xbf16>
    %c0_4 = arith.constant 0 : index
    %c0_5 = arith.constant 0 : index
    %5 = vector.load %arg6[%c0_4, %c0_5] : memref<128x1152xbf16, #tpu.memory_space<vmem>>, vector<128x1152xbf16>
    tpu.vector_store %arg6[%c0_4, %c0_5], %4 {strides = array<i32>} : memref<128x1152xbf16, #tpu.memory_space<vmem>>, vector<128x1152xbf16>,
    %6 = tpu.iota {dimensions = array<i32: 0>} : vector<64x64xi32>
    %7 = tpu.iota {dimensions = array<i32: 1>} : vector<64x64xi32>
    %8 = arith.cmpi sle, %7, %6 : vector<64x64xi32>
    %9 = vector.shape_cast %8 : vector<64x64xi1> to vector<1x64x64xi1>
    %c0_6 = arith.constant 0 : index
    %c0_7 = arith.constant 0 : index
    %10 = vector.load %arg6[%c0_6, %c0_7] : memref<128x1152xbf16, #tpu.memory_space<vmem>>, vector<128x128xbf16>
    %11 = vector.shape_cast %10 : vector<128x128xbf16> to vector<2x64x128xbf16>
    %c0_8 = arith.constant 0 : index
    %c384 = arith.constant 384 : index
    %12 = vector.load %arg6[%c0_8, %c384] : memref<128x1152xbf16, #tpu.memory_space<vmem>>, vector<128x128xbf16>
    %13 = vector.shape_cast %12 : vector<128x128xbf16> to vector<2x64x128xbf16>
    %c0_9 = arith.constant 0 : index
    %c768 = arith.constant 768 : index
    %14 = vector.load %arg6[%c0_9, %c768] : memref<128x1152xbf16, #tpu.memory_space<vmem>>, vector<128x128xbf16>
    %15 = vector.shape_cast %14 : vector<128x128xbf16> to vector<2x64x128xbf16>
    %16 = vector.extract_strided_slice %11 {offsets = [0, 0, 0], sizes = [2, 64, 64], strides = [1, 1, 1]} : vector<2x64x128xbf16> to vector<2x64x64xbf16>
    %17 = vector.extract_strided_slice %13 {offsets = [0, 0, 0], sizes = [2, 64, 64], strides = [1, 1, 1]} : vector<2x64x128xbf16> to vector<2x64x64xbf16>
    %18 = vector.extract_strided_slice %15 {offsets = [0, 0, 0], sizes = [2, 64, 64], strides = [1, 1, 1]} : vector<2x64x128xbf16> to vector<2x64x64xbf16>
    "tpu.trace_start"() <{level = 10 : i32, message = "bqd,bkd->bqk"}> : () -> ()
    %cst_10 = arith.constant dense<0.000000e+00> : vector<2x64x64xf32>
    %19 = tpu.matmul %16, %17, %cst_10 {dimension_numbers = #tpu.dot_dimension_numbers<[2], [2], [1], [1], [0, 0, 0, 1, 1, 1], [0], [0]>} : vector<2x64x64xbf16>, vector<2x64x64xbf16>, vector<2x64x64xf32> -> vector<2x64x64xf32>
    %cst_11 = arith.constant 0xFF800000 : f32
    "tpu.trace_stop"() : () -> ()
    %20 = vector.shape_cast %9 : vector<1x64x64xi1> to vector<1x64x64xi1>
    %21 = vector.broadcast %20 : vector<1x64x64xi1> to vector<2x64x64xi1>
    %22 = vector.broadcast %cst_11 : f32 to vector<2x64x64xf32>
    %23 = arith.select %21, %19, %22 : vector<2x64x64xi1>, vector<2x64x64xf32>
    %cst_12 = arith.constant dense<0xFF800000> : vector<2x64xf32>
    %24 = vector.multi_reduction <maximumf>, %23, %cst_12 [2] : vector<2x64x64xf32> to vector<2x64xf32>
    %25 = vector.shape_cast %24 : vector<2x64xf32> to vector<2x64x1xf32>
    %26 = vector.broadcast %25 : vector<2x64x1xf32> to vector<2x64x64xf32>
    %27 = arith.subf %23, %26 : vector<2x64x64xf32>
    %28 = math.exp %27 : vector<2x64x64xf32>
    %cst_13 = arith.constant dense<0.000000e+00> : vector<2x64xf32>
    %29 = vector.multi_reduction <add>, %28, %cst_13 [2] : vector<2x64x64xf32> to vector<2x64xf32>
    %30 = vector.shape_cast %29 : vector<2x64xf32> to vector<2x64x1xf32>
    %31 = tpu.reciprocal %30 {approx = true} : vector<2x64x1xf32> -> vector<2x64x1xf32>
    %32 = vector.broadcast %31 : vector<2x64x1xf32> to vector<2x64x64xf32>
    %33 = arith.mulf %28, %32 : vector<2x64x64xf32>
    %34 = arith.truncf %33 : vector<2x64x64xf32> to vector<2x64x64xbf16>
    "tpu.trace_start"() <{level = 10 : i32, message = "bqk,bkd->bqd"}> : () -> ()
    %cst_14 = arith.constant dense<0.000000e+00> : vector<2x64x64xf32>
    %35 = tpu.matmul %34, %18, %cst_14 {dimension_numbers = #tpu.dot_dimension_numbers<[2], [1], [1], [2], [0, 0, 0, 1, 1, 2], [0], [0]>} : vector<2x64x64xbf16>, vector<2x64x64xbf16>, vector<2x64x64xf32> -> vector<2x64x64xf32>
    "tpu.trace_stop"() : () -> ()
    %36 = vector.extract_strided_slice %11 {offsets = [0, 0, 64], sizes = [2, 64, 64], strides = [1, 1, 1]} : vector<2x64x128xbf16> to vector<2x64x64xbf16>
    %37 = vector.extract_strided_slice %13 {offsets = [0, 0, 64], sizes = [2, 64, 64], strides = [1, 1, 1]} : vector<2x64x128xbf16> to vector<2x64x64xbf16>
    %38 = vector.extract_strided_slice %15 {offsets = [0, 0, 64], sizes = [2, 64, 64], strides = [1, 1, 1]} : vector<2x64x128xbf16> to vector<2x64x64xbf16>
    "tpu.trace_start"() <{level = 10 : i32, message = "bqd,bkd->bqk"}> : () -> ()
    %cst_15 = arith.constant dense<0.000000e+00> : vector<2x64x64xf32>
    %39 = tpu.matmul %36, %37, %cst_15 {dimension_numbers = #tpu.dot_dimension_numbers<[2], [2], [1], [1], [0, 0, 0, 1, 1, 1], [0], [0]>} : vector<2x64x64xbf16>, vector<2x64x64xbf16>, vector<2x64x64xf32> -> vector<2x64x64xf32>
    %cst_16 = arith.constant 0xFF800000 : f32
    "tpu.trace_stop"() : () -> ()
    %40 = vector.shape_cast %9 : vector<1x64x64xi1> to vector<1x64x64xi1>
    %41 = vector.broadcast %40 : vector<1x64x64xi1> to vector<2x64x64xi1>
    %42 = vector.broadcast %cst_16 : f32 to vector<2x64x64xf32>
    %43 = arith.select %41, %39, %42 : vector<2x64x64xi1>, vector<2x64x64xf32>
    %cst_17 = arith.constant dense<0xFF800000> : vector<2x64xf32>
    %44 = vector.multi_reduction <maximumf>, %43, %cst_17 [2] : vector<2x64x64xf32> to vector<2x64xf32>
    %45 = vector.shape_cast %44 : vector<2x64xf32> to vector<2x64x1xf32>
    %46 = vector.broadcast %45 : vector<2x64x1xf32> to vector<2x64x64xf32>
    %47 = arith.subf %43, %46 : vector<2x64x64xf32>
    %48 = math.exp %47 : vector<2x64x64xf32>
    %cst_18 = arith.constant dense<0.000000e+00> : vector<2x64xf32>
    %49 = vector.multi_reduction <add>, %48, %cst_18 [2] : vector<2x64x64xf32> to vector<2x64xf32>
    %50 = vector.shape_cast %49 : vector<2x64xf32> to vector<2x64x1xf32>
    %51 = tpu.reciprocal %50 {approx = true} : vector<2x64x1xf32> -> vector<2x64x1xf32>
    %52 = vector.broadcast %51 : vector<2x64x1xf32> to vector<2x64x64xf32>
    %53 = arith.mulf %48, %52 : vector<2x64x64xf32>
    %54 = arith.truncf %53 : vector<2x64x64xf32> to vector<2x64x64xbf16>
    "tpu.trace_start"() <{level = 10 : i32, message = "bqk,bkd->bqd"}> : () -> ()
    %cst_19 = arith.constant dense<0.000000e+00> : vector<2x64x64xf32>
    %55 = tpu.matmul %54, %38, %cst_19 {dimension_numbers = #tpu.dot_dimension_numbers<[2], [1], [1], [2], [0, 0, 0, 1, 1, 2], [0], [0]>} : vector<2x64x64xbf16>, vector<2x64x64xbf16>, vector<2x64x64xf32> -> vector<2x64x64xf32>
    "tpu.trace_stop"() : () -> ()
    %56 = tpu.concatenate %35, %55 in 2 : vector<2x64x64xf32>, vector<2x64x64xf32> -> vector<2x64x128xf32>
    %57 = vector.shape_cast %56 : vector<2x64x128xf32> to vector<128x128xf32>
    %58 = arith.truncf %57 : vector<128x128xf32> to vector<128x128xbf16>
    %c0_20 = arith.constant 0 : index
    %c0_21 = arith.constant 0 : index
    %59 = vector.load %arg7[%c0_20, %c0_21] : memref<128x384xbf16, #tpu.memory_space<vmem>>, vector<128x128xbf16>
    tpu.vector_store %arg7[%c0_20, %c0_21], %58 {strides = array<i32>} : memref<128x384xbf16, #tpu.memory_space<vmem>>, vector<128x128xbf16>,
    %c0_22 = arith.constant 0 : index
    %c128 = arith.constant 128 : index
    %60 = vector.load %arg6[%c0_22, %c128] : memref<128x1152xbf16, #tpu.memory_space<vmem>>, vector<128x128xbf16>
    %61 = vector.shape_cast %60 : vector<128x128xbf16> to vector<2x64x128xbf16>
    %c0_23 = arith.constant 0 : index
    %c512 = arith.constant 512 : index
    %62 = vector.load %arg6[%c0_23, %c512] : memref<128x1152xbf16, #tpu.memory_space<vmem>>, vector<128x128xbf16>
    %63 = vector.shape_cast %62 : vector<128x128xbf16> to vector<2x64x128xbf16>
    %c0_24 = arith.constant 0 : index
    %c896 = arith.constant 896 : index
    %64 = vector.load %arg6[%c0_24, %c896] : memref<128x1152xbf16, #tpu.memory_space<vmem>>, vector<128x128xbf16>
    %65 = vector.shape_cast %64 : vector<128x128xbf16> to vector<2x64x128xbf16>
    %66 = vector.extract_strided_slice %61 {offsets = [0, 0, 0], sizes = [2, 64, 64], strides = [1, 1, 1]} : vector<2x64x128xbf16> to vector<2x64x64xbf16>
    %67 = vector.extract_strided_slice %63 {offsets = [0, 0, 0], sizes = [2, 64, 64], strides = [1, 1, 1]} : vector<2x64x128xbf16> to vector<2x64x64xbf16>
    %68 = vector.extract_strided_slice %65 {offsets = [0, 0, 0], sizes = [2, 64, 64], strides = [1, 1, 1]} : vector<2x64x128xbf16> to vector<2x64x64xbf16>
    "tpu.trace_start"() <{level = 10 : i32, message = "bqd,bkd->bqk"}> : () -> ()
    %cst_25 = arith.constant dense<0.000000e+00> : vector<2x64x64xf32>
    %69 = tpu.matmul %66, %67, %cst_25 {dimension_numbers = #tpu.dot_dimension_numbers<[2], [2], [1], [1], [0, 0, 0, 1, 1, 1], [0], [0]>} : vector<2x64x64xbf16>, vector<2x64x64xbf16>, vector<2x64x64xf32> -> vector<2x64x64xf32>
    %cst_26 = arith.constant 0xFF800000 : f32
    "tpu.trace_stop"() : () -> ()
    %70 = vector.shape_cast %9 : vector<1x64x64xi1> to vector<1x64x64xi1>
    %71 = vector.broadcast %70 : vector<1x64x64xi1> to vector<2x64x64xi1>
    %72 = vector.broadcast %cst_26 : f32 to vector<2x64x64xf32>
    %73 = arith.select %71, %69, %72 : vector<2x64x64xi1>, vector<2x64x64xf32>
    %cst_27 = arith.constant dense<0xFF800000> : vector<2x64xf32>
    %74 = vector.multi_reduction <maximumf>, %73, %cst_27 [2] : vector<2x64x64xf32> to vector<2x64xf32>
    %75 = vector.shape_cast %74 : vector<2x64xf32> to vector<2x64x1xf32>
    %76 = vector.broadcast %75 : vector<2x64x1xf32> to vector<2x64x64xf32>
    %77 = arith.subf %73, %76 : vector<2x64x64xf32>
    %78 = math.exp %77 : vector<2x64x64xf32>
    %cst_28 = arith.constant dense<0.000000e+00> : vector<2x64xf32>
    %79 = vector.multi_reduction <add>, %78, %cst_28 [2] : vector<2x64x64xf32> to vector<2x64xf32>
    %80 = vector.shape_cast %79 : vector<2x64xf32> to vector<2x64x1xf32>
    %81 = tpu.reciprocal %80 {approx = true} : vector<2x64x1xf32> -> vector<2x64x1xf32>
    %82 = vector.broadcast %81 : vector<2x64x1xf32> to vector<2x64x64xf32>
    %83 = arith.mulf %78, %82 : vector<2x64x64xf32>
    %84 = arith.truncf %83 : vector<2x64x64xf32> to vector<2x64x64xbf16>
    "tpu.trace_start"() <{level = 10 : i32, message = "bqk,bkd->bqd"}> : () -> ()
    %cst_29 = arith.constant dense<0.000000e+00> : vector<2x64x64xf32>
    %85 = tpu.matmul %84, %68, %cst_29 {dimension_numbers = #tpu.dot_dimension_numbers<[2], [1], [1], [2], [0, 0, 0, 1, 1, 2], [0], [0]>} : vector<2x64x64xbf16>, vector<2x64x64xbf16>, vector<2x64x64xf32> -> vector<2x64x64xf32>
    "tpu.trace_stop"() : () -> ()
    %86 = vector.extract_strided_slice %61 {offsets = [0, 0, 64], sizes = [2, 64, 64], strides = [1, 1, 1]} : vector<2x64x128xbf16> to vector<2x64x64xbf16>
    %87 = vector.extract_strided_slice %63 {offsets = [0, 0, 64], sizes = [2, 64, 64], strides = [1, 1, 1]} : vector<2x64x128xbf16> to vector<2x64x64xbf16>
    %88 = vector.extract_strided_slice %65 {offsets = [0, 0, 64], sizes = [2, 64, 64], strides = [1, 1, 1]} : vector<2x64x128xbf16> to vector<2x64x64xbf16>
    "tpu.trace_start"() <{level = 10 : i32, message = "bqd,bkd->bqk"}> : () -> ()
    %cst_30 = arith.constant dense<0.000000e+00> : vector<2x64x64xf32>
    %89 = tpu.matmul %86, %87, %cst_30 {dimension_numbers = #tpu.dot_dimension_numbers<[2], [2], [1], [1], [0, 0, 0, 1, 1, 1], [0], [0]>} : vector<2x64x64xbf16>, vector<2x64x64xbf16>, vector<2x64x64xf32> -> vector<2x64x64xf32>
    %cst_31 = arith.constant 0xFF800000 : f32
    "tpu.trace_stop"() : () -> ()
    %90 = vector.shape_cast %9 : vector<1x64x64xi1> to vector<1x64x64xi1>
    %91 = vector.broadcast %90 : vector<1x64x64xi1> to vector<2x64x64xi1>
    %92 = vector.broadcast %cst_31 : f32 to vector<2x64x64xf32>
    %93 = arith.select %91, %89, %92 : vector<2x64x64xi1>, vector<2x64x64xf32>
    %cst_32 = arith.constant dense<0xFF800000> : vector<2x64xf32>
    %94 = vector.multi_reduction <maximumf>, %93, %cst_32 [2] : vector<2x64x64xf32> to vector<2x64xf32>
    %95 = vector.shape_cast %94 : vector<2x64xf32> to vector<2x64x1xf32>
    %96 = vector.broadcast %95 : vector<2x64x1xf32> to vector<2x64x64xf32>
    %97 = arith.subf %93, %96 : vector<2x64x64xf32>
    %98 = math.exp %97 : vector<2x64x64xf32>
    %cst_33 = arith.constant dense<0.000000e+00> : vector<2x64xf32>
    %99 = vector.multi_reduction <add>, %98, %cst_33 [2] : vector<2x64x64xf32> to vector<2x64xf32>
    %100 = vector.shape_cast %99 : vector<2x64xf32> to vector<2x64x1xf32>
    %101 = tpu.reciprocal %100 {approx = true} : vector<2x64x1xf32> -> vector<2x64x1xf32>
    %102 = vector.broadcast %101 : vector<2x64x1xf32> to vector<2x64x64xf32>
    %103 = arith.mulf %98, %102 : vector<2x64x64xf32>
    %104 = arith.truncf %103 : vector<2x64x64xf32> to vector<2x64x64xbf16>
    "tpu.trace_start"() <{level = 10 : i32, message = "bqk,bkd->bqd"}> : () -> ()
    %cst_34 = arith.constant dense<0.000000e+00> : vector<2x64x64xf32>
    %105 = tpu.matmul %104, %88, %cst_34 {dimension_numbers = #tpu.dot_dimension_numbers<[2], [1], [1], [2], [0, 0, 0, 1, 1, 2], [0], [0]>} : vector<2x64x64xbf16>, vector<2x64x64xbf16>, vector<2x64x64xf32> -> vector<2x64x64xf32>
    "tpu.trace_stop"() : () -> ()
    %106 = tpu.concatenate %85, %105 in 2 : vector<2x64x64xf32>, vector<2x64x64xf32> -> vector<2x64x128xf32>
    %107 = vector.shape_cast %106 : vector<2x64x128xf32> to vector<128x128xf32>
    %108 = arith.truncf %107 : vector<128x128xf32> to vector<128x128xbf16>
    %c0_35 = arith.constant 0 : index
    %c128_36 = arith.constant 128 : index
    %109 = vector.load %arg7[%c0_35, %c128_36] : memref<128x384xbf16, #tpu.memory_space<vmem>>, vector<128x128xbf16>
    tpu.vector_store %arg7[%c0_35, %c128_36], %108 {strides = array<i32>} : memref<128x384xbf16, #tpu.memory_space<vmem>>, vector<128x128xbf16>,
    %c0_37 = arith.constant 0 : index
    %c256 = arith.constant 256 : index
    %110 = vector.load %arg6[%c0_37, %c256] : memref<128x1152xbf16, #tpu.memory_space<vmem>>, vector<128x128xbf16>
    %111 = vector.shape_cast %110 : vector<128x128xbf16> to vector<2x64x128xbf16>
    %c0_38 = arith.constant 0 : index
    %c640 = arith.constant 640 : index
    %112 = vector.load %arg6[%c0_38, %c640] : memref<128x1152xbf16, #tpu.memory_space<vmem>>, vector<128x128xbf16>
    %113 = vector.shape_cast %112 : vector<128x128xbf16> to vector<2x64x128xbf16>
    %c0_39 = arith.constant 0 : index
    %c1024 = arith.constant 1024 : index
    %114 = vector.load %arg6[%c0_39, %c1024] : memref<128x1152xbf16, #tpu.memory_space<vmem>>, vector<128x128xbf16>
    %115 = vector.shape_cast %114 : vector<128x128xbf16> to vector<2x64x128xbf16>
    %116 = vector.extract_strided_slice %111 {offsets = [0, 0, 0], sizes = [2, 64, 64], strides = [1, 1, 1]} : vector<2x64x128xbf16> to vector<2x64x64xbf16>
    %117 = vector.extract_strided_slice %113 {offsets = [0, 0, 0], sizes = [2, 64, 64], strides = [1, 1, 1]} : vector<2x64x128xbf16> to vector<2x64x64xbf16>
    %118 = vector.extract_strided_slice %115 {offsets = [0, 0, 0], sizes = [2, 64, 64], strides = [1, 1, 1]} : vector<2x64x128xbf16> to vector<2x64x64xbf16>
    "tpu.trace_start"() <{level = 10 : i32, message = "bqd,bkd->bqk"}> : () -> ()
    %cst_40 = arith.constant dense<0.000000e+00> : vector<2x64x64xf32>
    %119 = tpu.matmul %116, %117, %cst_40 {dimension_numbers = #tpu.dot_dimension_numbers<[2], [2], [1], [1], [0, 0, 0, 1, 1, 1], [0], [0]>} : vector<2x64x64xbf16>, vector<2x64x64xbf16>, vector<2x64x64xf32> -> vector<2x64x64xf32>
    %cst_41 = arith.constant 0xFF800000 : f32
    "tpu.trace_stop"() : () -> ()
    %120 = vector.shape_cast %9 : vector<1x64x64xi1> to vector<1x64x64xi1>
    %121 = vector.broadcast %120 : vector<1x64x64xi1> to vector<2x64x64xi1>
    %122 = vector.broadcast %cst_41 : f32 to vector<2x64x64xf32>
    %123 = arith.select %121, %119, %122 : vector<2x64x64xi1>, vector<2x64x64xf32>
    %cst_42 = arith.constant dense<0xFF800000> : vector<2x64xf32>
    %124 = vector.multi_reduction <maximumf>, %123, %cst_42 [2] : vector<2x64x64xf32> to vector<2x64xf32>
    %125 = vector.shape_cast %124 : vector<2x64xf32> to vector<2x64x1xf32>
    %126 = vector.broadcast %125 : vector<2x64x1xf32> to vector<2x64x64xf32>
    %127 = arith.subf %123, %126 : vector<2x64x64xf32>
    %128 = math.exp %127 : vector<2x64x64xf32>
    %cst_43 = arith.constant dense<0.000000e+00> : vector<2x64xf32>
    %129 = vector.multi_reduction <add>, %128, %cst_43 [2] : vector<2x64x64xf32> to vector<2x64xf32>
    %130 = vector.shape_cast %129 : vector<2x64xf32> to vector<2x64x1xf32>
    %131 = tpu.reciprocal %130 {approx = true} : vector<2x64x1xf32> -> vector<2x64x1xf32>
    %132 = vector.broadcast %131 : vector<2x64x1xf32> to vector<2x64x64xf32>
    %133 = arith.mulf %128, %132 : vector<2x64x64xf32>
    %134 = arith.truncf %133 : vector<2x64x64xf32> to vector<2x64x64xbf16>
    "tpu.trace_start"() <{level = 10 : i32, message = "bqk,bkd->bqd"}> : () -> ()
    %cst_44 = arith.constant dense<0.000000e+00> : vector<2x64x64xf32>
    %135 = tpu.matmul %134, %118, %cst_44 {dimension_numbers = #tpu.dot_dimension_numbers<[2], [1], [1], [2], [0, 0, 0, 1, 1, 2], [0], [0]>} : vector<2x64x64xbf16>, vector<2x64x64xbf16>, vector<2x64x64xf32> -> vector<2x64x64xf32>
    "tpu.trace_stop"() : () -> ()
    %136 = vector.extract_strided_slice %111 {offsets = [0, 0, 64], sizes = [2, 64, 64], strides = [1, 1, 1]} : vector<2x64x128xbf16> to vector<2x64x64xbf16>
    %137 = vector.extract_strided_slice %113 {offsets = [0, 0, 64], sizes = [2, 64, 64], strides = [1, 1, 1]} : vector<2x64x128xbf16> to vector<2x64x64xbf16>
    %138 = vector.extract_strided_slice %115 {offsets = [0, 0, 64], sizes = [2, 64, 64], strides = [1, 1, 1]} : vector<2x64x128xbf16> to vector<2x64x64xbf16>
    "tpu.trace_start"() <{level = 10 : i32, message = "bqd,bkd->bqk"}> : () -> ()
    %cst_45 = arith.constant dense<0.000000e+00> : vector<2x64x64xf32>
    %139 = tpu.matmul %136, %137, %cst_45 {dimension_numbers = #tpu.dot_dimension_numbers<[2], [2], [1], [1], [0, 0, 0, 1, 1, 1], [0], [0]>} : vector<2x64x64xbf16>, vector<2x64x64xbf16>, vector<2x64x64xf32> -> vector<2x64x64xf32>
    %cst_46 = arith.constant 0xFF800000 : f32
    "tpu.trace_stop"() : () -> ()
    %140 = vector.shape_cast %9 : vector<1x64x64xi1> to vector<1x64x64xi1>
    %141 = vector.broadcast %140 : vector<1x64x64xi1> to vector<2x64x64xi1>
    %142 = vector.broadcast %cst_46 : f32 to vector<2x64x64xf32>
    %143 = arith.select %141, %139, %142 : vector<2x64x64xi1>, vector<2x64x64xf32>
    %cst_47 = arith.constant dense<0xFF800000> : vector<2x64xf32>
    %144 = vector.multi_reduction <maximumf>, %143, %cst_47 [2] : vector<2x64x64xf32> to vector<2x64xf32>
    %145 = vector.shape_cast %144 : vector<2x64xf32> to vector<2x64x1xf32>
    %146 = vector.broadcast %145 : vector<2x64x1xf32> to vector<2x64x64xf32>
    %147 = arith.subf %143, %146 : vector<2x64x64xf32>
    %148 = math.exp %147 : vector<2x64x64xf32>
    %cst_48 = arith.constant dense<0.000000e+00> : vector<2x64xf32>
    %149 = vector.multi_reduction <add>, %148, %cst_48 [2] : vector<2x64x64xf32> to vector<2x64xf32>
    %150 = vector.shape_cast %149 : vector<2x64xf32> to vector<2x64x1xf32>
    %151 = tpu.reciprocal %150 {approx = true} : vector<2x64x1xf32> -> vector<2x64x1xf32>
    %152 = vector.broadcast %151 : vector<2x64x1xf32> to vector<2x64x64xf32>
    %153 = arith.mulf %148, %152 : vector<2x64x64xf32>
    %154 = arith.truncf %153 : vector<2x64x64xf32> to vector<2x64x64xbf16>
    "tpu.trace_start"() <{level = 10 : i32, message = "bqk,bkd->bqd"}> : () -> ()
    %cst_49 = arith.constant dense<0.000000e+00> : vector<2x64x64xf32>
    %155 = tpu.matmul %154, %138, %cst_49 {dimension_numbers = #tpu.dot_dimension_numbers<[2], [1], [1], [2], [0, 0, 0, 1, 1, 2], [0], [0]>} : vector<2x64x64xbf16>, vector<2x64x64xbf16>, vector<2x64x64xf32> -> vector<2x64x64xf32>
    "tpu.trace_stop"() : () -> ()
    %156 = tpu.concatenate %135, %155 in 2 : vector<2x64x64xf32>, vector<2x64x64xf32> -> vector<2x64x128xf32>
    %157 = vector.shape_cast %156 : vector<2x64x128xf32> to vector<128x128xf32>
    %158 = arith.truncf %157 : vector<128x128xf32> to vector<128x128xbf16>
    %c0_50 = arith.constant 0 : index
    %c256_51 = arith.constant 256 : index
    %159 = vector.load %arg7[%c0_50, %c256_51] : memref<128x384xbf16, #tpu.memory_space<vmem>>, vector<128x128xbf16>
    tpu.vector_store %arg7[%c0_50, %c256_51], %158 {strides = array<i32>} : memref<128x384xbf16, #tpu.memory_space<vmem>>, vector<128x128xbf16>,
    %c0_52 = arith.constant 0 : index
    %c0_53 = arith.constant 0 : index
    %160 = vector.load %arg7[%c0_52, %c0_53] : memref<128x384xbf16, #tpu.memory_space<vmem>>, vector<128x384xbf16>
    %c0_54 = arith.constant 0 : index
    %c0_55 = arith.constant 0 : index
    %161 = vector.load %arg3[%c0_54, %c0_55] : memref<384x384xbf16, #tpu.memory_space<vmem>>, vector<384x384xbf16>
    %cst_56 = arith.constant dense<0.000000e+00> : vector<128x384xf32>
    %162 = tpu.matmul %160, %161, %cst_56 {dimension_numbers = #tpu.dot_dimension_numbers<[1], [0], [0], [1], [0, 0, 1, 1], [], []>} : vector<128x384xbf16>, vector<384x384xbf16>, vector<128x384xf32> -> vector<128x384xf32>
    %c0_57 = arith.constant 0 : index
    %c0_58 = arith.constant 0 : index
    %163 = vector.load %arg4[%c0_57, %c0_58] : memref<1x384xf32, #tpu.memory_space<vmem>>, vector<1x384xf32>
    %164 = vector.broadcast %163 : vector<1x384xf32> to vector<128x384xf32>
    %165 = arith.addf %162, %164 : vector<128x384xf32>
    %166 = vector.shape_cast %165 : vector<128x384xf32> to vector<2x64x384xf32>
    %c0_59 = arith.constant 0 : index
    %c0_60 = arith.constant 0 : index
    %c0_61 = arith.constant 0 : index
    %167 = vector.load %arg5[%c0_59, %c0_60, %c0_61] : memref<2x64x384xf32, #tpu.memory_space<vmem>>, vector<2x64x384xf32>
    tpu.vector_store %arg5[%c0_59, %c0_60, %c0_61], %166 {strides = array<i32>} : memref<2x64x384xf32, #tpu.memory_space<vmem>>, vector<2x64x384xf32>,
    return
  }
  func.func @transform_0(%arg0: i32) -> (i32, i32, i32) {
    %c0_i32 = arith.constant 0 : i32
    %c0_i32_0 = arith.constant 0 : i32
    %c0_i32_1 = arith.constant 0 : i32
    return %arg0, %c0_i32, %c0_i32_0 : i32, i32, i32
  }
  func.func @transform_1(%arg0: i32) -> (i32, i32) {
    %c0_i32 = arith.constant 0 : i32
    %c0_i32_0 = arith.constant 0 : i32
    %c0_i32_1 = arith.constant 0 : i32
    return %c0_i32, %c0_i32_0 : i32, i32
  }
  func.func @transform_2(%arg0: i32) -> (i32, i32) {
    %c0_i32 = arith.constant 0 : i32
    %c0_i32_0 = arith.constant 0 : i32
    %c0_i32_1 = arith.constant 0 : i32
    return %c0_i32, %c0_i32_0 : i32, i32
  }
  func.func @transform_3(%arg0: i32) -> (i32, i32) {
    %c0_i32 = arith.constant 0 : i32
    %c0_i32_0 = arith.constant 0 : i32
    %c0_i32_1 = arith.constant 0 : i32
    return %c0_i32, %c0_i32_0 : i32, i32
  }
  func.func @transform_4(%arg0: i32) -> (i32, i32, i32) {
    %c0_i32 = arith.constant 0 : i32
    %c0_i32_0 = arith.constant 0 : i32
    %c0_i32_1 = arith.constant 0 : i32
    return %arg0, %c0_i32, %c0_i32_0 : i32, i32, i32
  }
}

</mosaic_0001>

<bundles_post_ra>
// kernel: tpu_custom_call.1
= control target key start
LH: loop header
LB: loop body
LE: loop exit
PB: predicated region body
PF: predicated region fallthrough
CT: control target
= control target key end

     0   :  { %9 = vsyncpa [#allocation5], 0  ;;  %s13658_s0 = inlined_call_operand.hbm [shape: bf16[4,64,384], index: 0, kind: input, shape index: {}]   ;;  %s13659_s1 = inlined_call_operand.hbm [shape: bf16[384,1152], index: 1, kind: input, shape index: {}]   ;;  %s13660_s2 = inlined_call_operand.hbm [shape: bf16[384,384], index: 2, kind: input, shape index: {}]   ;;  %s13661_s3 = inlined_call_operand.vmem [shape: f32[1,384], index: 3, kind: input, shape index: {}]   ;;  %s13662_s4 = inlined_call_operand.hbm [shape: f32[4,64,384], index: 4, kind: output, shape index: {}]  }
   0x1   :  { %11 = vsyncpa [#allocation5 + $0x1], 0 }
   0x2   :  { %12 = vsyncpa [#allocation8], 0 }
   0x3   :  { %13 = vsyncpa [#allocation6], 0 }
   0x4   :  { %15 = vsyncpa [#allocation6 + $0x1], 0  ;;  %s10626_s15 = smov 0   ;;  %s10628_s16 = smov 0  }
   0x5   :  { %s10630_s17 = smov 0   ;;  %s10632_s18 = smov 0  }
   0x6 LB: > { %s10647_s19 = sadd.s32 4294967295, %s10587_s18   ;;  %s7919_s20 = sadd.s32 4294967294, %s10587_s18   ;;  %s10587_s18 = sphi %s10632_s18, %s13995_s18   ;;  %s10583_s17 = sphi %s10630_s17, %s13994_s17   ;;  %s10579_s16 = sphi %s10628_s16, %s13993_s16   ;;  %s10575_s15 = sphi %s10626_s15, %s13992_s15  }
   0x7   : > { %p41_p0 = scmp.ne.s32.totalorder %s10579_s16, %s10575_s15  ;;  %p13663_p1 = scmp.eq.s32.totalorder %s10647_s19, 0 }
   0x8   : > { %p134_p3 = scmp.eq.s32.totalorder %s7919_s20, 1  ;;  %p7920_p5 = scmp.ge.s32.totalorder %s10587_s18, 1 }
   0x9   : > { %p10656_p4 = por %p13663_p1, %p41_p0  ;;  %p141_p7 = scmp.lt.s32.totalorder %s10587_s18, 3 }
   0xa   : > { %p10661_p6 = por %p134_p3, %p41_p0  ;;  %s10589_s24 = smov [#allocation7]  }
   0xb   : > { %s13740_s21 = scalar_select %p10656_p4, 1, 0 }
   0xc   : > { %s13741_s22 = scalar_select %p10661_p6, 1, 0 }
   0xd   : > { %p10666_p8 = pnand %p7920_p5, %p141_p7  ;;  %s153_s25 = sshll.u32 %s10589_s24, 4  ;;  %s10670_s25 = int_to_ptr.vmem [resolvable:$true] %s153_s25 }
   0xe   : > { %s10590_s27 = smov [#allocation9]   ;;  %s10431_s5 = scalar_lea.hbm %s13659_s1, 27648 }
   0xf   : > { %p9400_p9 = pneg %p10666_p8  ;;  %s166_s28 = sshll.u32 %s10590_s27, 4  ;;  %s10681_s28 = int_to_ptr.vmem [resolvable:$true] %s166_s28 }
  0x10   : > { %p10432_p12 = scmp.ne.s32.totalorder %s13659_s1, %s10431_s5  ;;  %p10438_p5 = scmp.lt.u32.totalorder %s10431_s5, %s13659_s1 }
  0x11   : > { %p10677_p11 = pnand %p9400_p9, %p13663_p1 }
  0x13   : > { %p10433_p13 = pneg %p10677_p11 }
  0x15   : > { %p10434_p0 = pnand %p10433_p13, %p10432_p12 }
  0x17   : > { %p10435_p3 = pneg %p10434_p0 }
  0x19   : > { %p10440_p7 = pnand %p10438_p5, %p10435_p3 }
  0x1b   : > { %10443 = shalt.err (!%p10440_p7)
}
  0x1c   : > { %s10444_s10 = scalar_lea.vmem %s10670_s25, 27648  ;;  %p10452_p2 = scmp.lt.s32.totalorder %s10670_s25, %s10670_s25 }
  0x1d   : > { %p10445_p9 = scmp.ne.s32.totalorder %s10670_s25, %s10444_s10  ;;  %p10453_p12 = scmp.lt.s32.totalorder %s10444_s10, %s10444_s10 }
  0x1f   : > { %p10447_p10 = pnand %p10445_p9, %p10433_p13  ;;  %p10454_p0 = por %p10453_p12, %p10452_p2 }
  0x21   : > { %p10448_p1 = pneg %p10447_p10 }
  0x23   : > { %p10455_p6 = pnand %p10454_p0, %p10448_p1 }
  0x25   : > { %10458 = shalt.err (!%p10455_p6)
}
  0x26   : > { %s10591_s11 = smov 576   ;;  %s10592_s12 = smov 36  }
  0x27   : > { %9403 = dma.hbm_to_vmem [thread:$0]  (!%p10677_p11), %s13659_s1, 27648, %s10670_s25, [#allocation8], %s10591_s11, %s10591_s11, %s10592_s12  }
  0x28   : > { %s10459_s27 = scalar_lea.hbm %s13660_s2, 9216 }
  0x29   : > { %p10460_p2 = scmp.ne.s32.totalorder %s13660_s2, %s10459_s27  ;;  %p10466_p10 = scmp.lt.u32.totalorder %s10459_s27, %s13660_s2 }
  0x2b   : > { %p10462_p1 = pnand %p10460_p2, %p10433_p13 }
  0x2d   : > { %p10463_p6 = pneg %p10462_p1 }
  0x2f   : > { %p10468_p3 = pnand %p10466_p10, %p10463_p6 }
  0x31   : > { %10471 = shalt.err (!%p10468_p3)
}
  0x32   : > { %s10472_s25 = scalar_lea.vmem %s10681_s28, 9216  ;;  %p10480_p12 = scmp.lt.s32.totalorder %s10681_s28, %s10681_s28 }
  0x33   : > { %p10473_p5 = scmp.ne.s32.totalorder %s10681_s28, %s10472_s25  ;;  %p10481_p0 = scmp.lt.s32.totalorder %s10472_s25, %s10472_s25 }
  0x35   : > { %p10475_p7 = pnand %p10473_p5, %p10433_p13  ;;  %p10482_p2 = por %p10481_p0, %p10480_p12 }
  0x37   : > { %p10476_p9 = pneg %p10475_p7 }
  0x39   : > { %p10483_p1 = pnand %p10482_p2, %p10476_p9 }
  0x3b   : > { %10486 = shalt.err (!%p10483_p1)
}
  0x3c   : > { %s10593_s7 = smov 192   ;;  %s10594_s8 = smov 12  }
  0x3d   : > { %9406 = dma.hbm_to_vmem [thread:$0]  (!%p10677_p11), %s13660_s2, 9216, %s10681_s28, [#allocation8], %s10593_s7, %s10593_s7, %s10594_s8  }
  0x3e   : > { %s10739_s11 = sadd.s32 1, %s10587_s18   ;;  %s28_s13 = sadd.s32 1, %s10583_s17 }
  0x3f   : > { %s25_s12 = ssub.s32 %s10587_s18, %s10739_s11  ;;  %p35_p6 = scmp.ne.s32.totalorder %s10583_s17, %s10579_s16 }
  0x40   : > { %p26_p13 = scmp.eq.s32.totalorder %s25_s12, 0  ;;  %p36_p10 = scmp.eq.s32.totalorder %s10587_s18, 0 }
  0x41   : > { %p13744_p5 = scmp.eq.s32.totalorder %s10647_s19, 1  ;;  %p9417_p9 = scmp.lt.s32.totalorder %s10587_s18, 2 }
  0x42   : > { %s10748_s14 = scalar_select %p26_p13, %s10583_s17, %s28_s13  }
  0x43   : > { %p37_p3 = por %p36_p10, %p35_p6  ;;  %p10752_p7 = por %p13744_p5, %p35_p6 }
  0x44   : > { %s183_s20 = sand.u32 1, %s10583_s17   ;;  %s9384_s28 = smul.u32 3072, %s10587_s18 }
  0x45   : > { %s13745_s26 = scalar_select %p10752_p7, 1, 0 }
  0x46   : > { %s9383_s24 = smul.u32 192, %s183_s20  ;;  %p10759_p11 = pnand %p9417_p9, %p37_p3 }
  0x47   : > { %s10766_s5 = scalar_lea.hbm %s13658_s0, %s9384_s28  ;;  %s10770_s9 = scalar_lea.sflag [#allocation5], %s183_s20 }
  0x48   : > { %s187_s6 = scalar_lea.vmem [#allocation4], %s9383_s24  ;;  %s10487_s10 = scalar_lea.hbm %s10766_s5, 3072 }
  0x49   : > { %s195_s25 = sshll.u32 %s187_s6, 4  ;;  %p10488_p12 = scmp.ne.s32.totalorder %s10766_s5, %s10487_s10  ;;  %s10768_s25 = int_to_ptr.vmem [resolvable:$true] %s195_s25 }
  0x4a   : > { %p10489_p0 = pneg %p10759_p11  ;;  %s10492_s28 = scalar_lea.hbm %s13658_s0, 6144 }
  0x4b   : > { %p10493_p13 = scmp.lt.u32.totalorder %s10766_s5, %s13658_s0  ;;  %p10494_p6 = scmp.lt.u32.totalorder %s10492_s28, %s10487_s10 }
  0x4c   : > { %p10490_p2 = pnand %p10489_p0, %p10488_p12  ;;  %p10496_p3 = scmp.lt.u32.totalorder %s10487_s10, %s10766_s5 }
  0x4d   : > { %p10495_p10 = por %p10494_p6, %p10493_p13 }
  0x4e   : > { %p10491_p1 = pneg %p10490_p2 }
  0x4f   : > { %p10497_p5 = por %p10496_p3, %p10495_p10 }
  0x51   : > { %p10498_p9 = pnand %p10497_p5, %p10491_p1 }
  0x53   : > { %10501 = shalt.err (!%p10498_p9)
}
  0x54   : > { %s10502_s20 = scalar_lea.vmem %s10768_s25, 3072  ;;  %s10595_s24 = smov [#allocation4]  }
  0x55   : > { %p10503_p12 = scmp.ne.s32.totalorder %s10768_s25, %s10502_s20  ;;  %s10507_s6 = sshll.u32 %s10595_s24, 4  ;;  %s10508_s6 = int_to_ptr.vmem [resolvable:$false] %s10507_s6 }
  0x56   : > { %s10509_s12 = scalar_lea.vmem %s10508_s6, 6144  ;;  %p10510_p4 = scmp.lt.s32.totalorder %s10768_s25, %s10508_s6 }
  0x57   : > { %p10505_p2 = pnand %p10503_p12, %p10489_p0  ;;  %p10511_p13 = scmp.lt.s32.totalorder %s10509_s12, %s10502_s20 }
  0x59   : > { %p10506_p7 = pneg %p10505_p2  ;;  %p10512_p6 = por %p10511_p13, %p10510_p4 }
  0x5b   : > { %p10513_p10 = pnand %p10512_p6, %p10506_p7 }
  0x5d   : > { %10516 = shalt.err (!%p10513_p10)
}
  0x5e   : > { %9410 = dma.hbm_to_vmem [thread:$0]  (!%p10759_p11), %s10766_s5, 3072, %s10768_s25, %s10770_s9, %s10593_s7, %s10593_s7, %s10594_s8  }
  0x5f   : > { %207 = sbr.rel (%p10666_p8) target bundleno = 4802 (0x12c2), region = 36 }
  0x66   : > { %s10804_s10 = sand.u32 1, %s10579_s16   ;;  %p13747_p4 = scmp.ne.s32.totalorder %s13740_s21, 0 }
  0x67   : > { %s9385_s13 = smul.u32 192, %s10804_s10  ;;  %s210_s28 = scalar_lea.sflag [#allocation5], %s10804_s10 }
  0x69   : > { %s10808_s29 = scalar_lea.vmem [#allocation4], %s9385_s13 }
  0x6a   : > { %10562 = dma.done.wait (%p13747_p4), %s210_s28, 3072  }
  0x6b   : > { %10564 = vsyncadd (%p13747_p4), %s210_s28, 4294964224  ;;  %p13748_p7 = scmp.eq.s32.totalorder %s10647_s19, 0 }
  0x6d   : > { %10566 = dma.done.wait (%p13748_p7), [#allocation8], 36864   ;;  %p13749_p8 = pmov %p13748_p7 }
  0x6e   : > { %v13666_v0 = vmov 0   ;;  %v9583_v1 = vld [vmem:[#allocation7 + $0x4] ss:$36 sps:$4 sm:$0xff]   ;;  %v9589_v5 = vld [vmem:[#allocation7 + $0x4c] ss:$36 sps:$4 sm:$0xff]   ;;  %vm3038_vm0 = vcmask 523264  }
  0x6f   : > { %10568 = vsyncadd (%p13749_p8), [#allocation8], 4294930432  ;;  %1898 = vmatprep.mubr.bf16.mxu1 %v13666_v0  ;;  %v9585_v2 = vld [vmem:[#allocation7 + $0x484] ss:$36 sps:$4 sm:$0xff]   ;;  %1753 = vmatprep.subr.bf16.mxu0 %v9583_v1  ;;  %v9591_v6 = vld [vmem:[#allocation7 + $0x4cc] ss:$36 sps:$4 sm:$0xff]  }
  0x70   : > { %v9587_v3 = vld [vmem:[#allocation7] ss:$36 sps:$4 sm:$0xff]   ;;  %1866 = vmatprep.subr.bf16.mxu1 %v9585_v2  ;;  %v9593_v7 = vld [vmem:[#allocation7 + $0x48] ss:$36 sps:$4 sm:$0xff]   ;;  %v9595_v9 = vld [vmem:[#allocation7 + $0x94] ss:$36 sps:$4 sm:$0xff]  }
  0x71   : > { %v9588_v4 = vld [vmem:[#allocation7 + $0x480] ss:$36 sps:$4 sm:$0xff]   ;;  %1754 = vmatpush1.bf16.msra.mxu0 %v9587_v3  ;;  %v9594_v8 = vld [vmem:[#allocation7 + $0x4c8] ss:$36 sps:$4 sm:$0xff]   ;;  %v9597_v10 = vld [vmem:[#allocation7 + $0x514] ss:$36 sps:$4 sm:$0xff]  }
  0x72   : > { %1867 = vmatpush1.bf16.msra.mxu1 %v9588_v4  ;;  %1755 = vmatprep.subr.bf16.mxu0 %v9589_v5  ;;  %v9599_v11 = vld [vmem:[#allocation7 + $0x90] ss:$36 sps:$4 sm:$0xff]   ;;  %v9601_v13 = vld [vmem:[#allocation7 + $0xdc] ss:$36 sps:$4 sm:$0xff]   ;;  %v9607_v17 = vld [vmem:[#allocation7 + $0x124] ss:$36 sps:$4 sm:$0xff]  }
  0x73   : > { %1868 = vmatprep.subr.bf16.mxu1 %v9591_v6  ;;  %v9600_v12 = vld [vmem:[#allocation7 + $0x510] ss:$36 sps:$4 sm:$0xff]   ;;  %v9603_v14 = vld [vmem:[#allocation7 + $0x55c] ss:$36 sps:$4 sm:$0xff]   ;;  %v9609_v18 = vld [vmem:[#allocation7 + $0x5a4] ss:$36 sps:$4 sm:$0xff]  }
  0x74   : > { %v9605_v15 = vld [vmem:[#allocation7 + $0xd8] ss:$36 sps:$4 sm:$0xff]   ;;  %v9611_v19 = vld [vmem:[#allocation7 + $0x120] ss:$36 sps:$4 sm:$0xff]   ;;  %v9613_v21 = vld [vmem:[#allocation7 + $0x16c] ss:$36 sps:$4 sm:$0xff]  }
  0x75   : > { %1756 = vmatpush1.bf16.msra.mxu0 %v9593_v7  ;;  %v9606_v16 = vld [vmem:[#allocation7 + $0x558] ss:$36 sps:$4 sm:$0xff]   ;;  %v9612_v20 = vld [vmem:[#allocation7 + $0x5a0] ss:$36 sps:$4 sm:$0xff]   ;;  %v9615_v22 = vld [vmem:[#allocation7 + $0x5ec] ss:$36 sps:$4 sm:$0xff]  }
  0x76   : > { %1869 = vmatpush1.bf16.msra.mxu1 %v9594_v8  ;;  %1757 = vmatprep.subr.bf16.mxu0 %v9595_v9  ;;  %v9617_v23 = vld [vmem:[#allocation7 + $0x168] ss:$36 sps:$4 sm:$0xff]   ;;  %v9619_v25 = vld [vmem:[#allocation7 + $0x1b4] ss:$36 sps:$4 sm:$0xff]   ;;  %v9625_v29 = vld [vmem:[#allocation7 + $0x1fc] ss:$36 sps:$4 sm:$0xff]  }
  0x77   : > { %1870 = vmatprep.subr.bf16.mxu1 %v9597_v10  ;;  %v9618_v24 = vld [vmem:[#allocation7 + $0x5e8] ss:$36 sps:$4 sm:$0xff]   ;;  %v9621_v26 = vld [vmem:[#allocation7 + $0x634] ss:$36 sps:$4 sm:$0xff]   ;;  %v9627_v30 = vld [vmem:[#allocation7 + $0x67c] ss:$36 sps:$4 sm:$0xff]  }
  0x78   : > { %v9623_v27 = vld [vmem:[#allocation7 + $0x1b0] ss:$36 sps:$4 sm:$0xff]   ;;  %v9629_v31 = vld [vmem:[#allocation7 + $0x1f8] ss:$36 sps:$4 sm:$0xff]   ;;  %v9631_v33 = vld [vmem:[#allocation7 + $0x244] ss:$36 sps:$4 sm:$0xff]  }
  0x79   : > { %1758 = vmatpush1.bf16.msra.mxu0 %v9599_v11  ;;  %v9624_v28 = vld [vmem:[#allocation7 + $0x630] ss:$36 sps:$4 sm:$0xff]   ;;  %v9630_v32 = vld [vmem:[#allocation7 + $0x678] ss:$36 sps:$4 sm:$0xff]   ;;  %v9634_v36 = vld [vmem:[#allocation7 + $0x8] ss:$36 sps:$4 sm:$0xff]  }
  0x7a   : > { %1871 = vmatpush1.bf16.msra.mxu1 %v9600_v12  ;;  %1759 = vmatprep.subr.bf16.mxu0 %v9601_v13  ;;  %v9636_v34 = vld [vmem:[#allocation7 + $0xc] ss:$36 sps:$4 sm:$0xff]   ;;  %v9633_v35 = vld [vmem:[%s10808_s29 + $0x8] ss:$12 sps:$4 sm:$0xff]   ;;  %v9637_v37 = vld [vmem:[#allocation7 + $0x240] ss:$36 sps:$4 sm:$0xff]  }
  0x7b   : > { %1872 = vmatprep.subr.bf16.mxu1 %v9603_v14  ;;  %v9638_v38 = vld [vmem:[#allocation7 + $0x28c] ss:$36 sps:$4 sm:$0xff]   ;;  %v9642_v39 = vld [vmem:[#allocation7 + $0x54] ss:$36 sps:$4 sm:$0xff]   ;;  %v9649_v43 = vld [vmem:[#allocation7 + $0x9c] ss:$36 sps:$4 sm:$0xff]  }
  0x7c   : > { %v9640_v40 = vld [vmem:[#allocation7 + $0x50] ss:$36 sps:$4 sm:$0xff]   ;;  %v9643_v41 = vld [vmem:[#allocation7 + $0x288] ss:$36 sps:$4 sm:$0xff]   ;;  %v9647_v45 = vld [vmem:[#allocation7 + $0x98] ss:$36 sps:$4 sm:$0xff]  }
  0x7d   : > { %1760 = vmatpush1.bf16.msra.mxu0 %v9605_v15  ;;  %v9644_v42 = vld [vmem:[#allocation7 + $0x2d4] ss:$36 sps:$4 sm:$0xff]   ;;  %v9646_v44 = vld [vmem:[%s10808_s29 + $0x20] ss:$12 sps:$4 sm:$0xff]   ;;  %v9655_v48 = vld [vmem:[#allocation7 + $0xe4] ss:$36 sps:$4 sm:$0xff]  }
  0x7e   : > { %1873 = vmatpush1.bf16.msra.mxu1 %v9606_v16  ;;  %1761 = vmatprep.subr.bf16.mxu0 %v9607_v17  ;;  %v9650_v46 = vld [vmem:[#allocation7 + $0x2d0] ss:$36 sps:$4 sm:$0xff]   ;;  %v9651_v47 = vld [vmem:[#allocation7 + $0x31c] ss:$36 sps:$4 sm:$0xff]   ;;  %v9657_v51 = vld [vmem:[#allocation7 + $0x364] ss:$36 sps:$4 sm:$0xff]  }
  0x7f   : > { %1874 = vmatprep.subr.bf16.mxu1 %v9609_v18  ;;  %v9653_v49 = vld [vmem:[#allocation7 + $0xe0] ss:$36 sps:$4 sm:$0xff]   ;;  %v9656_v50 = vld [vmem:[#allocation7 + $0x318] ss:$36 sps:$4 sm:$0xff]   ;;  %v9662_v52 = vld [vmem:[#allocation7 + $0x12c] ss:$36 sps:$4 sm:$0xff]  }
  0x80   : > { %v9659_v53 = vld [vmem:[%s10808_s29 + $0x38] ss:$12 sps:$4 sm:$0xff]   ;;  %v9660_v54 = vld [vmem:[#allocation7 + $0x128] ss:$36 sps:$4 sm:$0xff]   ;;  %v9666_v59 = vld [vmem:[#allocation7 + $0x170] ss:$36 sps:$4 sm:$0xff]  }
  0x81   : > { %1762 = vmatpush1.bf16.msra.mxu0 %v9611_v19  ;;  %v9663_v55 = vld [vmem:[#allocation7 + $0x360] ss:$36 sps:$4 sm:$0xff]   ;;  %v9664_v57 = vld [vmem:[#allocation7 + $0x3ac] ss:$36 sps:$4 sm:$0xff]   ;;  %v9668_v58 = vld [vmem:[#allocation7 + $0x174] ss:$36 sps:$4 sm:$0xff]  }
  0x82   : > { %1875 = vmatpush1.bf16.msra.mxu1 %v9612_v20  ;;  %1763 = vmatprep.subr.bf16.mxu0 %v9613_v21  ;;  %v10825_v56 = vld [vmem:[%s10808_s29 + $0x4] ss:$12 sps:$4 sm:$0xff]   ;;  %v9669_v60 = vld [vmem:[#allocation7 + $0x3a8] ss:$36 sps:$4 sm:$0xff]   ;;  %v9670_v61 = vld [vmem:[#allocation7 + $0x3f4] ss:$36 sps:$4 sm:$0xff]  }
  0x83   : > { %1876 = vmatprep.subr.bf16.mxu1 %v9615_v22  ;;  %1785 = vmatprep.mubr.bf16.mxu0 %v10825_v56  ;;  %v9675_v62 = vld [vmem:[#allocation7 + $0x1bc] ss:$36 sps:$4 sm:$0xff]   ;;  %v9676_v2 = vld [vmem:[#allocation7 + $0x3f0] ss:$36 sps:$4 sm:$0xff]   ;;  %v9681_v4 = vld [vmem:[#allocation7 + $0x204] ss:$36 sps:$4 sm:$0xff]  }
  0x84   : > { %v9672_v63 = vld [vmem:[%s10808_s29 + $0x50] ss:$12 sps:$4 sm:$0xff]   ;;  %v9679_v5 = vld [vmem:[#allocation7 + $0x200] ss:$36 sps:$4 sm:$0xff]   ;;  %v9692_v9 = vld [vmem:[#allocation7 + $0x14] ss:$36 sps:$4 sm:$0xff]  }
  0x85   : > { %1764 = vmatpush1.bf16.msra.mxu0 %v9617_v23  ;;  %v9673_v1 = vld [vmem:[#allocation7 + $0x1b8] ss:$36 sps:$4 sm:$0xff]   ;;  %v10831_v7 = vld [vmem:[%s10808_s29] ss:$12 sps:$4 sm:$0xff]   ;;  %v9686_v10 = vld [vmem:[%s10808_s29 + $0x68] ss:$12 sps:$4 sm:$0xff]  }
  0x86   : > { %1877 = vmatpush1.bf16.msra.mxu1 %v9618_v24  ;;  %1765 = vmatprep.subr.bf16.mxu0 %v9619_v25  ;;  %v9677_v3 = vld [vmem:[#allocation7 + $0x43c] ss:$36 sps:$4 sm:$0xff]   ;;  %v9689_v8 = vld [vmem:[#allocation7 + $0x24c] ss:$36 sps:$4 sm:$0xff]   ;;  %v9695_v13 = vld [vmem:[#allocation7 + $0x294] ss:$36 sps:$4 sm:$0xff]  }
  0x87   : > { %1878 = vmatprep.subr.bf16.mxu1 %v9621_v26  ;;  %v9682_v6 = vld [vmem:[#allocation7 + $0x438] ss:$36 sps:$4 sm:$0xff]   ;;  %v9687_v11 = vld [vmem:[#allocation7 + $0x248] ss:$36 sps:$4 sm:$0xff]   ;;  %v9690_v12 = vld [vmem:[#allocation7 + $0x10] ss:$36 sps:$4 sm:$0xff]  }
  0x88   : > { %v9698_v14 = vld [vmem:[#allocation7 + $0x5c] ss:$36 sps:$4 sm:$0xff]   ;;  %v9693_v16 = vld [vmem:[#allocation7 + $0x290] ss:$36 sps:$4 sm:$0xff]   ;;  %v10840_v18 = vld [vmem:[%s10808_s29 + $0x18] ss:$12 sps:$4 sm:$0xff]  }
  0x89   : > { %1766 = vmatpush1.bf16.msra.mxu0 %v9623_v27  ;;  %v10836_v15 = vld [vmem:[%s10808_s29 + $0x1c] ss:$12 sps:$4 sm:$0xff]   ;;  %v9702_v21 = vld [vmem:[%s10808_s29 + $0x80] ss:$12 sps:$4 sm:$0xff]   ;;  %s10597_s21 = smov 64   ;;  %s9386_s8 = smul.u32 384, %s10804_s10 }
  0x8a   : > { %1879 = vmatpush1.bf16.msra.mxu1 %v9624_v28  ;;  %1767 = vmatprep.subr.bf16.mxu0 %v9625_v29  ;;  %v9696_v17 = vld [vmem:[#allocation7 + $0x58] ss:$36 sps:$4 sm:$0xff]   ;;  %v9708_v20 = vld [vmem:[#allocation7 + $0xa4] ss:$36 sps:$4 sm:$0xff]   ;;  %v9714_v25 = vld [vmem:[#allocation7 + $0xec] ss:$36 sps:$4 sm:$0xff]  }
  0x8b   : > { %1880 = vmatprep.subr.bf16.mxu1 %v9627_v30  ;;  %v9705_v19 = vld [vmem:[#allocation7 + $0x2dc] ss:$36 sps:$4 sm:$0xff]   ;;  %v9711_v24 = vld [vmem:[#allocation7 + $0x324] ss:$36 sps:$4 sm:$0xff]   ;;  %v9721_v29 = vld [vmem:[#allocation7 + $0x36c] ss:$36 sps:$4 sm:$0xff]  }
  0x8c   : > { %v9703_v22 = vld [vmem:[#allocation7 + $0x2d8] ss:$36 sps:$4 sm:$0xff]   ;;  %v9706_v23 = vld [vmem:[#allocation7 + $0xa0] ss:$36 sps:$4 sm:$0xff]   ;;  %v9712_v28 = vld [vmem:[#allocation7 + $0xe8] ss:$36 sps:$4 sm:$0xff]  }
  0x8d   : > { %1768 = vmatpush1.bf16.msra.mxu0 %v9629_v31  ;;  %v10846_v26 = vld [vmem:[%s10808_s29 + $0x34] ss:$12 sps:$4 sm:$0xff]   ;;  %v10852_v31 = vld [vmem:[%s10808_s29 + $0x30] ss:$12 sps:$4 sm:$0xff]   ;;  %s13509_s27 = scalar_lea.vmem [#allocation10], %s9386_s8  ;;  %s9387_s5 = smul.u32 6144, %s10647_s19 }
  0x8e   : > { %1881 = vmatpush1.bf16.msra.mxu1 %v9630_v32  ;;  %1769 = vmatprep.subr.bf16.mxu0 %v9631_v33  ;;  %v9709_v27 = vld [vmem:[#allocation7 + $0x320] ss:$36 sps:$4 sm:$0xff]   ;;  %v9724_v30 = vld [vmem:[#allocation7 + $0x134] ss:$36 sps:$4 sm:$0xff]   ;;  %v9719_v33 = vld [vmem:[#allocation7 + $0x368] ss:$36 sps:$4 sm:$0xff]  }
  0x8f   : > { %1979 = vmatprep.subr.bf16.mxu1 %v9636_v34  ;;  %v9718_v32 = vld [vmem:[%s10808_s29 + $0x98] ss:$12 sps:$4 sm:$0xff]   ;;  %v9722_v34 = vld [vmem:[#allocation7 + $0x130] ss:$36 sps:$4 sm:$0xff]   ;;  %s7827_s25 = sshll.u32 %s13509_s27, 4  ;;  %s13608_s20 = scalar_lea.hbm %s13662_s4, %s9387_s5  ;;  %s13612_s25 = int_to_ptr.vmem [resolvable:$true] %s7827_s25 }
  0x90   : > { %s7813_s19 = scalar_lea.sflag [#allocation6], %s10804_s10  ;;  %s10517_s24 = scalar_lea.vmem %s13612_s25, 6144 }
  0x91   : > { %1899 = vmatmul.mubr.bf16.vlgmr.msra.gmra.mrb[0].mxu1 %v9633_v35  ;;  %1770 = vmatpush1.bf16.msra.mxu0 %v9637_v37  ;;  %v9727_v35 = vld [vmem:[#allocation7 + $0x3b4] ss:$36 sps:$4 sm:$0xff]   ;;  %p10518_p11 = scmp.ne.s32.totalorder %s13612_s25, %s10517_s24  ;;  %p13989_p0 = scmp.ne.s32.totalorder %s13745_s26, 0 }
  0x92   : > { %1980 = vmatpush1.bf16.msra.mxu1 %v9634_v36  ;;  %1771 = vmatprep.subr.bf16.mxu0 %v9638_v38  ;;  %v9730_v36 = vld [vmem:[#allocation7 + $0x17c] ss:$36 sps:$4 sm:$0xff]   ;;  %v10856_v37 = vld [vmem:[%s10808_s29 + $0x4c] ss:$12 sps:$4 sm:$0xff]   ;;  %v9725_v38 = vld [vmem:[#allocation7 + $0x3b0] ss:$36 sps:$4 sm:$0xff]  }
  0x93   : > { %1981 = vmatprep.subr.bf16.mxu1 %v9642_v39  ;;  %1908 = vmatprep.mubr.bf16.mxu1 %v13666_v0  ;;  %v9728_v39 = vld [vmem:[#allocation7 + $0x178] ss:$36 sps:$4 sm:$0xff]   ;;  %p10519_p1 = pnand %p10518_p11, %p13989_p0  ;;  %s10598_s6 = smov [#allocation10]  }
  0x94   : > { %s10521_s12 = sshll.u32 %s10598_s6, 4  ;;  %s10522_s12 = int_to_ptr.vmem [resolvable:$false] %s10521_s12 }
  0x95   : > { %1772 = vmatpush1.bf16.msra.mxu0 %v9643_v41  ;;  %v9740_v41 = vld [vmem:[#allocation7 + $0x1c4] ss:$36 sps:$4 sm:$0xff]   ;;  %p10520_p3 = pneg %p10519_p1  ;;  %s10523_s13 = scalar_lea.vmem %s10522_s12, 12288 }
  0x96   : > { %1982 = vmatpush1.bf16.msra.mxu1 %v9640_v40  ;;  %1773 = vmatprep.subr.bf16.mxu0 %v9644_v42  ;;  %v9737_v40 = vld [vmem:[#allocation7 + $0x3fc] ss:$36 sps:$4 sm:$0xff]   ;;  %v10862_v42 = vld [vmem:[%s10808_s29 + $0x48] ss:$12 sps:$4 sm:$0xff]   ;;  %p10524_p5 = scmp.lt.s32.totalorder %s13612_s25, %s10522_s12  ;;  %p10525_p9 = scmp.lt.s32.totalorder %s10523_s13, %s10517_s24 }
  0x97   : > { %1983 = vmatprep.subr.bf16.mxu1 %v9649_v43  ;;  %v10865_v43 = vld [vmem:[%s10808_s29 + $0xb0] ss:$12 sps:$4 sm:$0xff]  }
  0x98   : > { %p10526_p12 = por %p10525_p9, %p10524_p5 }
  0x99   : > { %1909 = vmatmul.mubr.bf16.gmra.mrb[4].mxu1 %v9646_v44  ;;  %1774 = vmatpush1.bf16.msra.mxu0 %v9650_v46  ;;  %v9735_v44 = vld [vmem:[#allocation7 + $0x3f8] ss:$36 sps:$4 sm:$0xff]   ;;  %v9743_v46 = vld [vmem:[#allocation7 + $0x444] ss:$36 sps:$4 sm:$0xff]  }
  0x9a   : > { %1984 = vmatpush1.bf16.msra.mxu1 %v9647_v45  ;;  %1775 = vmatprep.subr.bf16.mxu0 %v9651_v47  ;;  %v9738_v45 = vld [vmem:[#allocation7 + $0x1c0] ss:$36 sps:$4 sm:$0xff]   ;;  %v9746_v47 = vld [vmem:[#allocation7 + $0x20c] ss:$36 sps:$4 sm:$0xff]   ;;  %p10527_p2 = pnand %p10526_p12, %p10520_p3 }
  0x9b   : > { %1985 = vmatprep.subr.bf16.mxu1 %v9655_v48  ;;  %1918 = vmatprep.mubr.bf16.mxu1 %v13666_v0  ;;  %v10868_v48 = vld [vmem:[%s10808_s29 + $0x64] ss:$12 sps:$4 sm:$0xff]  }
  0x9d   : > { %1776 = vmatpush1.bf16.msra.mxu0 %v9656_v50  ;;  %v9744_v50 = vld [vmem:[#allocation7 + $0x208] ss:$36 sps:$4 sm:$0xff]  }
  0x9e   : > { %1986 = vmatpush1.bf16.msra.mxu1 %v9653_v49  ;;  %1777 = vmatprep.subr.bf16.mxu0 %v9657_v51  ;;  %v9741_v49 = vld [vmem:[#allocation7 + $0x440] ss:$36 sps:$4 sm:$0xff]   ;;  %v9752_v51 = vld [vmem:[#allocation7 + $0x254] ss:$36 sps:$4 sm:$0xff]  }
  0x9f   : > { %1987 = vmatprep.subr.bf16.mxu1 %v9662_v52  ;;  %v9785_v52 = vld [vmem:[#allocation7 + $0x48c] ss:$36 sps:$4 sm:$0xff]  }
  0xa1   : > { %1919 = vmatmul.mubr.bf16.gmra.mrb[8].mxu1 %v9659_v53  ;;  %1778 = vmatpush1.bf16.msra.mxu0 %v9663_v55  ;;  %v10875_v53 = vld [vmem:[%s10808_s29 + $0x60] ss:$12 sps:$4 sm:$0xff]   ;;  %v10878_v55 = vld [vmem:[%s10808_s29 + $0x7c] ss:$12 sps:$4 sm:$0xff]  }
  0xa2   : > { %1988 = vmatpush1.bf16.msra.mxu1 %v9660_v54  ;;  %1779 = vmatprep.subr.bf16.mxu0 %v9664_v57  ;;  %v9750_v54 = vld [vmem:[#allocation7 + $0x250] ss:$36 sps:$4 sm:$0xff]   ;;  %v9755_v57 = vld [vmem:[#allocation7 + $0x29c] ss:$36 sps:$4 sm:$0xff]  }
  0xa3   : > { %1989 = vmatprep.subr.bf16.mxu1 %v9668_v58  ;;  %1928 = vmatprep.mubr.bf16.mxu1 %v13666_v0  ;;  %v9783_v58 = vld [vmem:[#allocation7 + $0x488] ss:$36 sps:$4 sm:$0xff]  }
  0xa5   : > { %1780 = vmatpush1.bf16.msra.mxu0 %v9669_v60  ;;  %v9753_v60 = vld [vmem:[#allocation7 + $0x298] ss:$36 sps:$4 sm:$0xff]  }
  0xa6   : > { %1990 = vmatpush1.bf16.msra.mxu1 %v9666_v59  ;;  %1781 = vmatprep.subr.bf16.mxu0 %v9670_v61  ;;  %v9788_v59 = vld [vmem:[#allocation7 + $0x4d4] ss:$36 sps:$4 sm:$0xff]   ;;  %v9761_v61 = vld [vmem:[#allocation7 + $0x2e4] ss:$36 sps:$4 sm:$0xff]  }
  0xa7   : > { %1991 = vmatprep.subr.bf16.mxu1 %v9675_v62  ;;  %v9786_v62 = vld [vmem:[#allocation7 + $0x4d0] ss:$36 sps:$4 sm:$0xff]  }
  0xa9   : > { %1929 = vmatmul.mubr.bf16.gmra.mrb[12].mxu1 %v9672_v63  ;;  %1782 = vmatpush1.bf16.msra.mxu0 %v9676_v2  ;;  %v10885_v63 = vld [vmem:[%s10808_s29 + $0x78] ss:$12 sps:$4 sm:$0xff]   ;;  %v10888_v2 = vld [vmem:[%s10808_s29 + $0x94] ss:$12 sps:$4 sm:$0xff]  }
  0xaa   : > { %1992 = vmatpush1.bf16.msra.mxu1 %v9673_v1  ;;  %1783 = vmatprep.subr.bf16.mxu0 %v9677_v3  ;;  %v9759_v1 = vld [vmem:[#allocation7 + $0x2e0] ss:$36 sps:$4 sm:$0xff]   ;;  %v9764_v3 = vld [vmem:[#allocation7 + $0x32c] ss:$36 sps:$4 sm:$0xff]  }
  0xab   : > { %1993 = vmatprep.subr.bf16.mxu1 %v9681_v4  ;;  %1938 = vmatprep.mubr.bf16.mxu1 %v13666_v0  ;;  %v9791_v4 = vld [vmem:[#allocation7 + $0x51c] ss:$36 sps:$4 sm:$0xff]  }
  0xad   : > { %1784 = vmatpush1.bf16.msra.mxu0 %v9682_v6  ;;  %v9789_v6 = vld [vmem:[#allocation7 + $0x518] ss:$36 sps:$4 sm:$0xff]  }
  0xae   : > { %1994 = vmatpush1.bf16.msra.mxu1 %v9679_v5  ;;  %2205 = vmatprep.subr.bf16.mxu0 %v9692_v9  ;;  %v9762_v5 = vld [vmem:[#allocation7 + $0x328] ss:$36 sps:$4 sm:$0xff]   ;;  %v9770_v9 = vld [vmem:[#allocation7 + $0x374] ss:$36 sps:$4 sm:$0xff]  }
  0xaf   : > { %1995 = vmatprep.subr.bf16.mxu1 %v9689_v8  ;;  %v9794_v8 = vld [vmem:[#allocation7 + $0x564] ss:$36 sps:$4 sm:$0xff]  }
  0xb0   : > { %1786 = vmatmul.mubr.bf16.vlgmr.msra.gmra.mrb[0].mxu0 %v10831_v7 }
  0xb1   : > { %1939 = vmatmul.mubr.bf16.gmra.mrb[16].mxu1 %v9686_v10  ;;  %2206 = vmatpush1.bf16.msra.mxu0 %v9690_v12  ;;  %v10895_v10 = vld [vmem:[%s10808_s29 + $0x90] ss:$12 sps:$4 sm:$0xff]   ;;  %v10898_v12 = vld [vmem:[%s10808_s29 + $0xac] ss:$12 sps:$4 sm:$0xff]  }
  0xb2   : > { %1996 = vmatpush1.bf16.msra.mxu1 %v9687_v11  ;;  %2207 = vmatprep.subr.bf16.mxu0 %v9698_v14  ;;  %v9768_v11 = vld [vmem:[#allocation7 + $0x370] ss:$36 sps:$4 sm:$0xff]   ;;  %v9792_v14 = vld [vmem:[#allocation7 + $0x560] ss:$36 sps:$4 sm:$0xff]  }
  0xb3   : > { %1997 = vmatprep.subr.bf16.mxu1 %v9695_v13  ;;  %1795 = vmatprep.mubr.bf16.mxu0 %v10836_v15  ;;  %v9773_v13 = vld [vmem:[#allocation7 + $0x3bc] ss:$36 sps:$4 sm:$0xff]  }
  0xb4   : > { %1948 = vmatprep.mubr.bf16.mxu1 %v13666_v0 }
  0xb5   : > { %2208 = vmatpush1.bf16.msra.mxu0 %v9696_v17  ;;  %v9771_v17 = vld [vmem:[#allocation7 + $0x3b8] ss:$36 sps:$4 sm:$0xff]  }
  0xb6   : > { %1998 = vmatpush1.bf16.msra.mxu1 %v9693_v16  ;;  %2209 = vmatprep.subr.bf16.mxu0 %v9708_v20  ;;  %v9797_v16 = vld [vmem:[#allocation7 + $0x5ac] ss:$36 sps:$4 sm:$0xff]  }
  0xb7   : > { %1999 = vmatprep.subr.bf16.mxu1 %v9705_v19  ;;  %v9779_v19 = vld [vmem:[#allocation7 + $0x404] ss:$36 sps:$4 sm:$0xff]  }
  0xb8   : > { %1796 = vmatmul.mubr.bf16.gmra.mrb[4].mxu0 %v10840_v18  ;;  %v9795_v20 = vld [vmem:[#allocation7 + $0x5a8] ss:$36 sps:$4 sm:$0xff]  }
  0xb9   : > { %1949 = vmatmul.mubr.bf16.gmra.mrb[20].mxu1 %v9702_v21  ;;  %2210 = vmatpush1.bf16.msra.mxu0 %v9706_v23  ;;  %v10905_v21 = vld [vmem:[%s10808_s29 + $0xa8] ss:$12 sps:$4 sm:$0xff]   ;;  %v9782_v23 = vld [vmem:[#allocation7 + $0x44c] ss:$36 sps:$4 sm:$0xff]  }
  0xba   : > { %2000 = vmatpush1.bf16.msra.mxu1 %v9703_v22  ;;  %2211 = vmatprep.subr.bf16.mxu0 %v9714_v25  ;;  %v9777_v22 = vld [vmem:[#allocation7 + $0x400] ss:$36 sps:$4 sm:$0xff]   ;;  %v9780_v25 = vld [vmem:[#allocation7 + $0x448] ss:$36 sps:$4 sm:$0xff]  }
  0xbb   : > { %2001 = vmatprep.subr.bf16.mxu1 %v9711_v24  ;;  %1805 = vmatprep.mubr.bf16.mxu0 %v10846_v26  ;;  %v9800_v24 = vld [vmem:[#allocation7 + $0x5f4] ss:$36 sps:$4 sm:$0xff]  }
  0xbc   : > { %1958 = vmatprep.mubr.bf16.mxu1 %v13666_v0 }
  0xbd   : > { %2212 = vmatpush1.bf16.msra.mxu0 %v9712_v28  ;;  %v9803_v28 = vld [vmem:[#allocation7 + $0x63c] ss:$36 sps:$4 sm:$0xff]  }
  0xbe   : > { %2002 = vmatpush1.bf16.msra.mxu1 %v9709_v27  ;;  %2213 = vmatprep.subr.bf16.mxu0 %v9724_v30  ;;  %v9798_v27 = vld [vmem:[#allocation7 + $0x5f0] ss:$36 sps:$4 sm:$0xff]   ;;  %v9801_v30 = vld [vmem:[#allocation7 + $0x638] ss:$36 sps:$4 sm:$0xff]  }
  0xbf   : > { %2003 = vmatprep.subr.bf16.mxu1 %v9721_v29  ;;  %v9812_v29 = vld [vmem:[#allocation7 + $0x494] ss:$36 sps:$4 sm:$0xff]  }
  0xc0   : > { %1806 = vmatmul.mubr.bf16.gmra.mrb[8].mxu0 %v10852_v31 }
  0xc1   : > { %1959 = vmatmul.mubr.bf16.gmra.mrb[24].mxu1 %v9718_v32  ;;  %2214 = vmatpush1.bf16.msra.mxu0 %v9722_v34  ;;  %v9810_v32 = vld [vmem:[#allocation7 + $0x490] ss:$36 sps:$4 sm:$0xff]   ;;  %v9818_v34 = vld [vmem:[#allocation7 + $0x4dc] ss:$36 sps:$4 sm:$0xff]  }
  0xc2   : > { %2004 = vmatpush1.bf16.msra.mxu1 %v9719_v33  ;;  %2215 = vmatprep.subr.bf16.mxu0 %v9730_v36  ;;  %v9806_v33 = vld [vmem:[#allocation7 + $0x684] ss:$36 sps:$4 sm:$0xff]   ;;  %v9809_v36 = vld [vmem:[#allocation7 + $0x1c] ss:$36 sps:$4 sm:$0xff]  }
  0xc3   : > { %2005 = vmatprep.subr.bf16.mxu1 %v9727_v35  ;;  %1815 = vmatprep.mubr.bf16.mxu0 %v10856_v37  ;;  %v9804_v35 = vld [vmem:[#allocation7 + $0x680] ss:$36 sps:$4 sm:$0xff]  }
  0xc4   : > { %1968 = vmatprep.mubr.bf16.mxu1 %v13666_v0 }
  0xc5   : > { %2216 = vmatpush1.bf16.msra.mxu0 %v9728_v39  ;;  %v9822_v39 = vld [vmem:[#allocation7 + $0x520] ss:$36 sps:$4 sm:$0xff]  }
  0xc6   : > { %2006 = vmatpush1.bf16.msra.mxu1 %v9725_v38  ;;  %2217 = vmatprep.subr.bf16.mxu0 %v9740_v41  ;;  %v9824_v38 = vld [vmem:[#allocation7 + $0x524] ss:$36 sps:$4 sm:$0xff]   ;;  %v9834_v41 = vld [vmem:[#allocation7 + $0x5b0] ss:$36 sps:$4 sm:$0xff]  }
  0xc7   : > { %2007 = vmatprep.subr.bf16.mxu1 %v9737_v40  ;;  %v9830_v40 = vld [vmem:[#allocation7 + $0x56c] ss:$36 sps:$4 sm:$0xff]  }
  0xc8   : > { %1816 = vmatmul.mubr.bf16.gmra.mrb[12].mxu0 %v10862_v42 }
  0xc9   : > { %1969 = vmatmul.mubr.bf16.gmra.mrb[28].mxu1 %v10865_v43  ;;  %2218 = vmatpush1.bf16.msra.mxu0 %v9738_v45  ;;  %v9846_v45 = vld [vmem:[#allocation7 + $0x640] ss:$36 sps:$4 sm:$0xff]  }
  0xca   : > { %2008 = vmatpush1.bf16.msra.mxu1 %v9735_v44  ;;  %2219 = vmatprep.subr.bf16.mxu0 %v9746_v47  ;;  %v9842_v44 = vld [vmem:[#allocation7 + $0x5fc] ss:$36 sps:$4 sm:$0xff]  }
  0xcb   : > { %2009 = vmatprep.subr.bf16.mxu1 %v9743_v46  ;;  %1825 = vmatprep.mubr.bf16.mxu0 %v10868_v48  ;;  %v9854_v46 = vld [vmem:[#allocation7 + $0x68c] ss:$36 sps:$4 sm:$0xff]   ;;  %v9807_v47 = vld [vmem:[#allocation7 + $0x18] ss:$36 sps:$4 sm:$0xff]  }
  0xcc   : > { %2011 = vmatprep.mubr.bf16.mxu1 %v10825_v56 }
  0xcd   : > { %2220 = vmatpush1.bf16.msra.mxu0 %v9744_v50  ;;  %v9813_v50 = vld [vmem:[#allocation7 + $0x60] ss:$36 sps:$4 sm:$0xff]  }
  0xce   : > { %2010 = vmatpush1.bf16.msra.mxu1 %v9741_v49  ;;  %2221 = vmatprep.subr.bf16.mxu0 %v9752_v51  ;;  %v9815_v49 = vld [vmem:[#allocation7 + $0x64] ss:$36 sps:$4 sm:$0xff]  }
  0xcf   : > { %2092 = vmatprep.subr.bf16.mxu1 %v9785_v52  ;;  %v10928_v51 = vld [vmem:[%s10808_s29 + $0x8] ss:$12 sps:$4 sm:$0xff]  }
  0xd0   : > { %1826 = vmatmul.mubr.bf16.gmra.mrb[16].mxu0 %v10875_v53  ;;  %v9827_v52 = vld [vmem:[#allocation7 + $0xf4] ss:$36 sps:$4 sm:$0xff]  }
  0xd1   : > { %2012 = vmatmul.mubr.bf16.vlgmr.msra.gmra.mrb[32].mxu1 %v10831_v7  ;;  %2222 = vmatpush1.bf16.msra.mxu0 %v9750_v54  ;;  %v9825_v54 = vld [vmem:[#allocation7 + $0xf0] ss:$36 sps:$4 sm:$0xff]  }
  0xd2   : > { %1835 = vmatprep.mubr.bf16.mxu0 %v10878_v55  ;;  %2223 = vmatprep.subr.bf16.mxu0 %v9755_v57  ;;  %v10935_v57 = vld [vmem:[%s10808_s29 + $0x20] ss:$12 sps:$4 sm:$0xff]  }
  0xd3   : > { %2021 = vmatprep.mubr.bf16.mxu1 %v10836_v15  ;;  %2093 = vmatpush1.bf16.msra.mxu1 %v9783_v58  ;;  %v9839_v58 = vld [vmem:[#allocation7 + $0x184] ss:$36 sps:$4 sm:$0xff]  }
  0xd4   : > { %2094 = vmatprep.subr.bf16.mxu1 %v9788_v59  ;;  %v9837_v59 = vld [vmem:[#allocation7 + $0x180] ss:$36 sps:$4 sm:$0xff]  }
  0xd5   : > { %2224 = vmatpush1.bf16.msra.mxu0 %v9753_v60  ;;  %v10942_v60 = vld [vmem:[%s10808_s29 + $0x38] ss:$12 sps:$4 sm:$0xff]  }
  0xd6   : > { %2225 = vmatprep.subr.bf16.mxu0 %v9761_v61  ;;  %v9845_v61 = vld [vmem:[#allocation7 + $0x1cc] ss:$36 sps:$4 sm:$0xff]  }
  0xd7   : > { %2095 = vmatpush1.bf16.msra.mxu1 %v9786_v62  ;;  %v9843_v62 = vld [vmem:[#allocation7 + $0x1c8] ss:$36 sps:$4 sm:$0xff]  }
  0xd8   : > { %1836 = vmatmul.mubr.bf16.gmra.mrb[20].mxu0 %v10885_v63  ;;  %2096 = vmatprep.subr.bf16.mxu1 %v9791_v4  ;;  %v9855_v4 = vld [vmem:[#allocation7 + $0x258] ss:$36 sps:$4 sm:$0xff]  }
  0xd9   : > { %2022 = vmatmul.mubr.bf16.gmra.mrb[36].mxu1 %v10840_v18  ;;  %2226 = vmatpush1.bf16.msra.mxu0 %v9759_v1  ;;  %v9849_v1 = vld [vmem:[#allocation7 + $0x210] ss:$36 sps:$4 sm:$0xff]  }
  0xda   : > { %1845 = vmatprep.mubr.bf16.mxu0 %v10888_v2  ;;  %2227 = vmatprep.subr.bf16.mxu0 %v9764_v3  ;;  %v9857_v3 = vld [vmem:[#allocation7 + $0x25c] ss:$36 sps:$4 sm:$0xff]  }
  0xdb   : > { %2031 = vmatprep.mubr.bf16.mxu1 %v10846_v26  ;;  %2097 = vmatpush1.bf16.msra.mxu1 %v9789_v6  ;;  %v9880_v6 = vld [vmem:[#allocation7 + $0x20] ss:$36 sps:$4 sm:$0xff]  }
  0xdc   : > { %2098 = vmatprep.subr.bf16.mxu1 %v9794_v8  ;;  %v9881_v8 = vld [vmem:[#allocation7 + $0x2a8] ss:$36 sps:$4 sm:$0xff]  }
  0xdd   : > { %2228 = vmatpush1.bf16.msra.mxu0 %v9762_v5  ;;  %v9860_v5 = vld [vmem:[#allocation7 + $0x2a4] ss:$36 sps:$4 sm:$0xff]  }
  0xde   : > { %2229 = vmatprep.subr.bf16.mxu0 %v9770_v9  ;;  %v9858_v9 = vld [vmem:[#allocation7 + $0x2a0] ss:$36 sps:$4 sm:$0xff]  }
  0xdf   : > { %2099 = vmatpush1.bf16.msra.mxu1 %v9792_v14  ;;  %v9882_v14 = vld [vmem:[#allocation7 + $0x68] ss:$36 sps:$4 sm:$0xff]  }
  0xe0   : > { %1846 = vmatmul.mubr.bf16.gmra.mrb[24].mxu0 %v10895_v10  ;;  %2100 = vmatprep.subr.bf16.mxu1 %v9797_v16  ;;  %v9861_v16 = vld [vmem:[#allocation7 + $0x2e8] ss:$36 sps:$4 sm:$0xff]  }
  0xe1   : > { %2032 = vmatmul.mubr.bf16.gmra.mrb[40].mxu1 %v10852_v31  ;;  %2230 = vmatpush1.bf16.msra.mxu0 %v9768_v11  ;;  %v10956_v11 = vld [vmem:[%s10808_s29 + $0x68] ss:$12 sps:$4 sm:$0xff]  }
  0xe2   : > { %1855 = vmatprep.mubr.bf16.mxu0 %v10898_v12  ;;  %2231 = vmatprep.subr.bf16.mxu0 %v9773_v13  ;;  %v9863_v13 = vld [vmem:[#allocation7 + $0x2ec] ss:$36 sps:$4 sm:$0xff]  }
  0xe3   : > { %2041 = vmatprep.mubr.bf16.mxu1 %v10856_v37  ;;  %2101 = vmatpush1.bf16.msra.mxu1 %v9795_v20  ;;  %v10963_v20 = vld [vmem:[%s10808_s29 + $0x80] ss:$12 sps:$4 sm:$0xff]  }
  0xe4   : > { %2102 = vmatprep.subr.bf16.mxu1 %v9800_v24  ;;  %v9885_v24 = vld [vmem:[#allocation7 + $0x338] ss:$36 sps:$4 sm:$0xff]  }
  0xe5   : > { %2232 = vmatpush1.bf16.msra.mxu0 %v9771_v17  ;;  %v9866_v17 = vld [vmem:[#allocation7 + $0x334] ss:$36 sps:$4 sm:$0xff]  }
  0xe6   : > { %2233 = vmatprep.subr.bf16.mxu0 %v9779_v19  ;;  %v9883_v19 = vld [vmem:[#allocation7 + $0x2f0] ss:$36 sps:$4 sm:$0xff]  }
  0xe7   : > { %2103 = vmatpush1.bf16.msra.mxu1 %v9798_v27  ;;  %v9867_v27 = vld [vmem:[#allocation7 + $0x378] ss:$36 sps:$4 sm:$0xff]  }
  0xe8   : > { %1856 = vmatmul.mubr.bf16.gmra.mrb[28].mxu0 %v10905_v21  ;;  %2104 = vmatprep.subr.bf16.mxu1 %v9803_v28  ;;  %v9872_v28 = vld [vmem:[#allocation7 + $0x3c4] ss:$36 sps:$4 sm:$0xff]  }
  0xe9   : > { %2042 = vmatmul.mubr.bf16.gmra.mrb[44].mxu1 %v10862_v42  ;;  %2234 = vmatpush1.bf16.msra.mxu0 %v9777_v22  ;;  %v9884_v22 = vld [vmem:[#allocation7 + $0xb0] ss:$36 sps:$4 sm:$0xff]  }
  0xea   : > { %2051 = vmatprep.mubr.bf16.mxu1 %v10868_v48  ;;  %2235 = vmatprep.subr.bf16.mxu0 %v9782_v23  ;;  %v9864_v23 = vld [vmem:[#allocation7 + $0x330] ss:$36 sps:$4 sm:$0xff]  }
  0xeb   : > { %2237 = vmatprep.mubr.bf16.mxu0 %v10825_v56  ;;  %2105 = vmatpush1.bf16.msra.mxu1 %v9801_v30  ;;  %v9816_v56 = vld [vmem:[#allocation7 + $0x4d8] ss:$36 sps:$4 sm:$0xff]  }
  0xec   : > { %2106 = vmatprep.subr.bf16.mxu1 %v9806_v33  ;;  %v10970_v30 = vld [vmem:[%s10808_s29 + $0x98] ss:$12 sps:$4 sm:$0xff]  }
  0xed   : > { %2236 = vmatpush1.bf16.msra.mxu0 %v9780_v25  ;;  %v9869_v25 = vld [vmem:[#allocation7 + $0x37c] ss:$36 sps:$4 sm:$0xff]  }
  0xee   : > { %2318 = vmatprep.subr.bf16.mxu0 %v9812_v29  ;;  %v9886_v29 = vld [vmem:[#allocation7 + $0xf8] ss:$36 sps:$4 sm:$0xff]   ;;  %v9870_v33 = vld [vmem:[#allocation7 + $0x3c0] ss:$36 sps:$4 sm:$0xff]  }
  0xef   : > { %2107 = vmatpush1.bf16.msra.mxu1 %v9804_v35  ;;  %v9888_v35 = vld [vmem:[#allocation7 + $0x140] ss:$36 sps:$4 sm:$0xff]  }
  0xf0   : > { %2238 = vmatmul.mubr.bf16.vlgmr.msra.gmra.mrb[32].mxu0 %v10831_v7  ;;  %2431 = vmatprep.subr.bf16.mxu1 %v9809_v36  ;;  %v9828_v7 = vld [vmem:[#allocation7 + $0x568] ss:$36 sps:$4 sm:$0xff]   ;;  %v9878_v36 = vld [vmem:[#allocation7 + $0x454] ss:$36 sps:$4 sm:$0xff]  }
  0xf1   : > { %2052 = vmatmul.mubr.bf16.gmra.mrb[48].mxu1 %v10875_v53  ;;  %2247 = vmatprep.mubr.bf16.mxu0 %v10836_v15  ;;  %v9836_v15 = vld [vmem:[#allocation7 + $0x5b4] ss:$36 sps:$4 sm:$0xff]  }
  0xf2   : > { %2061 = vmatprep.mubr.bf16.mxu1 %v10878_v55  ;;  %2319 = vmatpush1.bf16.msra.mxu0 %v9810_v32  ;;  %v9887_v32 = vld [vmem:[#allocation7 + $0x380] ss:$36 sps:$4 sm:$0xff]  }
  0xf3   : > { %2320 = vmatprep.subr.bf16.mxu0 %v9818_v34  ;;  %v9875_v34 = vld [vmem:[#allocation7 + $0x40c] ss:$36 sps:$4 sm:$0xff]  }
  0xf6   : > { %2321 = vmatpush1.bf16.msra.mxu0 %v9816_v56  ;;  %v9873_v56 = vld [vmem:[#allocation7 + $0x408] ss:$36 sps:$4 sm:$0xff]  }
  0xf7   : > { %2322 = vmatprep.subr.bf16.mxu0 %v9824_v38  ;;  %v9889_v38 = vld [vmem:[#allocation7 + $0x3c8] ss:$36 sps:$4 sm:$0xff]  }
  0xf8   : > { %2248 = vmatmul.mubr.bf16.gmra.mrb[36].mxu0 %v10840_v18  ;;  %v9840_v18 = vld [vmem:[#allocation7 + $0x5f8] ss:$36 sps:$4 sm:$0xff]  }
  0xf9   : > { %2062 = vmatmul.mubr.bf16.gmra.mrb[52].mxu1 %v10885_v63  ;;  %2257 = vmatprep.mubr.bf16.mxu0 %v10846_v26  ;;  %v9848_v26 = vld [vmem:[#allocation7 + $0x644] ss:$36 sps:$4 sm:$0xff]  }
  0xfa   : > { %2071 = vmatprep.mubr.bf16.mxu1 %v10888_v2  ;;  %2323 = vmatpush1.bf16.msra.mxu0 %v9822_v39  ;;  %v9890_v39 = vld [vmem:[#allocation7 + $0x188] ss:$36 sps:$4 sm:$0xff]  }
  0xfb   : > { %2324 = vmatprep.subr.bf16.mxu0 %v9830_v40  ;;  %v9876_v40 = vld [vmem:[#allocation7 + $0x450] ss:$36 sps:$4 sm:$0xff]  }
  0xfe   : > { %2325 = vmatpush1.bf16.msra.mxu0 %v9828_v7  ;;  %v10979_v7 = vld [vmem:[%s10808_s29 + $0x4] ss:$12 sps:$4 sm:$0xff]  }
  0xff   : > { %2326 = vmatprep.subr.bf16.mxu0 %v9836_v15  ;;  %v9891_v15 = vld [vmem:[#allocation7 + $0x410] ss:$36 sps:$4 sm:$0xff]  }
 0x100   : > { %2258 = vmatmul.mubr.bf16.gmra.mrb[40].mxu0 %v10852_v31  ;;  %v9852_v31 = vld [vmem:[#allocation7 + $0x688] ss:$36 sps:$4 sm:$0xff]  }
 0x101   : > { %2072 = vmatmul.mubr.bf16.gmra.mrb[56].mxu1 %v10895_v10  ;;  %2267 = vmatprep.mubr.bf16.mxu0 %v10856_v37  ;;  %v9879_v37 = vld [vmem:[#allocation7 + $0x260] ss:$36 sps:$4 sm:$0xff]  }
 0x102   : > { %2081 = vmatprep.mubr.bf16.mxu1 %v10898_v12  ;;  %2327 = vmatpush1.bf16.msra.mxu0 %v9834_v41  ;;  %v9897_v41 = vld [vmem:[#allocation7 + $0x49c] ss:$36 sps:$4 sm:$0xff]  }
 0x103   : > { %2328 = vmatprep.subr.bf16.mxu0 %v9842_v44  ;;  %v9895_v44 = vld [vmem:[#allocation7 + $0x498] ss:$36 sps:$4 sm:$0xff]  }
 0x106   : > { %2329 = vmatpush1.bf16.msra.mxu0 %v9840_v18  ;;  %v9893_v18 = vld [vmem:[#allocation7 + $0x458] ss:$36 sps:$4 sm:$0xff]  }
 0x107   : > { %2330 = vmatprep.subr.bf16.mxu0 %v9848_v26  ;;  %v9900_v26 = vld [vmem:[#allocation7 + $0x4e4] ss:$36 sps:$4 sm:$0xff]  }
 0x108   : > { %2268 = vmatmul.mubr.bf16.gmra.mrb[44].mxu0 %v10862_v42  ;;  %v9821_v42 = vld [vmem:[#allocation7 + $0xac] ss:$36 sps:$4 sm:$0xff]  }
 0x109   : > { %2082 = vmatmul.mubr.bf16.gmra.mrb[60].mxu1 %v10905_v21  ;;  %2277 = vmatprep.mubr.bf16.mxu0 %v10868_v48  ;;  %v9819_v48 = vld [vmem:[#allocation7 + $0xa8] ss:$36 sps:$4 sm:$0xff]  }
 0x10a   : > { %2124 = vmatprep.mubr.bf16.mxu1 %v13666_v0  ;;  %2331 = vmatpush1.bf16.msra.mxu0 %v9846_v45  ;;  %v10984_v45 = vld [vmem:[%s10808_s29] ss:$12 sps:$4 sm:$0xff]  }
 0x10b   : > { %2332 = vmatprep.subr.bf16.mxu0 %v9854_v46  ;;  %v10989_v46 = vld [vmem:[%s10808_s29 + $0x1c] ss:$12 sps:$4 sm:$0xff]  }
 0x10e   : > { %2333 = vmatpush1.bf16.msra.mxu0 %v9852_v31  ;;  %v9894_v31 = vld [vmem:[#allocation7 + $0x218] ss:$36 sps:$4 sm:$0xff]  }
 0x10f   : > { %8343 = vmatprep.subr.bf16.mxu0 %v9879_v37  ;;  %v9898_v37 = vld [vmem:[#allocation7 + $0x4e0] ss:$36 sps:$4 sm:$0xff]  }
 0x110   : > { %2278 = vmatmul.mubr.bf16.gmra.mrb[48].mxu0 %v10875_v53  ;;  %v9833_v53 = vld [vmem:[#allocation7 + $0x13c] ss:$36 sps:$4 sm:$0xff]  }
 0x111   : > { %2125 = vmatmul.mubr.bf16.vlgmr.msra.gmra.mrb[32].mxu1 %v10928_v51  ;;  %2287 = vmatprep.mubr.bf16.mxu0 %v10878_v55  ;;  %v9831_v55 = vld [vmem:[#allocation7 + $0x138] ss:$36 sps:$4 sm:$0xff]  }
 0x112   : > { %2432 = vmatpush1.bf16.msra.mxu1 %v9807_v47  ;;  %2134 = vmatprep.mubr.bf16.mxu1 %v13666_v0  ;;  %v9903_v47 = vld [vmem:[#allocation7 + $0x52c] ss:$36 sps:$4 sm:$0xff]  }
 0x113   : > { %2433 = vmatprep.subr.bf16.mxu1 %v9815_v49  ;;  %v9901_v49 = vld [vmem:[#allocation7 + $0x528] ss:$36 sps:$4 sm:$0xff]  }
 0x116   : > { %2434 = vmatpush1.bf16.msra.mxu1 %v9813_v50  ;;  %v9906_v50 = vld [vmem:[#allocation7 + $0x574] ss:$36 sps:$4 sm:$0xff]  }
 0x117   : > { %2435 = vmatprep.subr.bf16.mxu1 %v9821_v42  ;;  %v10417_v42 = vld [vmem:[%s10808_s29 + $0x18] ss:$12 sps:$4 sm:$0xff]  }
 0x118   : > { %2288 = vmatmul.mubr.bf16.gmra.mrb[52].mxu0 %v10885_v63  ;;  %v9851_v63 = vld [vmem:[#allocation7 + $0x214] ss:$36 sps:$4 sm:$0xff]  }
 0x119   : > { %2135 = vmatmul.mubr.bf16.gmra.mrb[36].mxu1 %v10935_v57  ;;  %2297 = vmatprep.mubr.bf16.mxu0 %v10888_v2  ;;  %v10949_v2 = vld [vmem:[%s10808_s29 + $0x50] ss:$12 sps:$4 sm:$0xff]  }
 0x11a   : > { %2436 = vmatpush1.bf16.msra.mxu1 %v9819_v48  ;;  %2144 = vmatprep.mubr.bf16.mxu1 %v13666_v0  ;;  %v10418_v48 = vld [vmem:[%s10808_s29 + $0x34] ss:$12 sps:$4 sm:$0xff]  }
 0x11b   : > { %2437 = vmatprep.subr.bf16.mxu1 %v9827_v52  ;;  %v9904_v52 = vld [vmem:[#allocation7 + $0x570] ss:$36 sps:$4 sm:$0xff]  }
 0x11e   : > { %2438 = vmatpush1.bf16.msra.mxu1 %v9825_v54  ;;  %v9909_v54 = vld [vmem:[#allocation7 + $0x5bc] ss:$36 sps:$4 sm:$0xff]  }
 0x11f   : > { %2439 = vmatprep.subr.bf16.mxu1 %v9833_v53  ;;  %v9907_v53 = vld [vmem:[#allocation7 + $0x5b8] ss:$36 sps:$4 sm:$0xff]  }
 0x120   : > { %2298 = vmatmul.mubr.bf16.gmra.mrb[56].mxu0 %v10895_v10 }
 0x121   : > { %2145 = vmatmul.mubr.bf16.gmra.mrb[40].mxu1 %v10942_v60  ;;  %2307 = vmatprep.mubr.bf16.mxu0 %v10898_v12 }
 0x122   : > { %2440 = vmatpush1.bf16.msra.mxu1 %v9831_v55  ;;  %2154 = vmatprep.mubr.bf16.mxu1 %v13666_v0  ;;  %v9912_v55 = vld [vmem:[#allocation7 + $0x604] ss:$36 sps:$4 sm:$0xff]  }
 0x123   : > { %2441 = vmatprep.subr.bf16.mxu1 %v9839_v58  ;;  %v10419_v58 = vld [vmem:[%s10808_s29 + $0x30] ss:$12 sps:$4 sm:$0xff]  }
 0x126   : > { %2442 = vmatpush1.bf16.msra.mxu1 %v9837_v59  ;;  %v10420_v59 = vld [vmem:[%s10808_s29 + $0x4c] ss:$12 sps:$4 sm:$0xff]  }
 0x127   : > { %2443 = vmatprep.subr.bf16.mxu1 %v9845_v61  ;;  %v9910_v61 = vld [vmem:[#allocation7 + $0x600] ss:$36 sps:$4 sm:$0xff]  }
 0x128   : > { %2308 = vmatmul.mubr.bf16.gmra.mrb[60].mxu0 %v10905_v21 }
 0x129   : > { %2155 = vmatmul.mubr.bf16.gmra.mrb[44].mxu1 %v10949_v2  ;;  %2350 = vmatprep.mubr.bf16.mxu0 %v13666_v0 }
 0x12a   : > { %2444 = vmatpush1.bf16.msra.mxu1 %v9843_v62  ;;  %2164 = vmatprep.mubr.bf16.mxu1 %v13666_v0 }
 0x12b   : > { %2445 = vmatprep.subr.bf16.mxu1 %v9851_v63  ;;  %v9915_v63 = vld [vmem:[#allocation7 + $0x64c] ss:$36 sps:$4 sm:$0xff]  }
 0x12e   : > { %2446 = vmatpush1.bf16.msra.mxu1 %v9849_v1 }
 0x12f   : > { %2447 = vmatprep.subr.bf16.mxu1 %v9857_v3 }
 0x130   : > { %2351 = vmatmul.mubr.bf16.vlgmr.msra.gmra.mrb[32].mxu0 %v10928_v51 }
 0x131   : > { %2165 = vmatmul.mubr.bf16.gmra.mrb[48].mxu1 %v10956_v11  ;;  %2360 = vmatprep.mubr.bf16.mxu0 %v13666_v0 }
 0x132   : > { %2448 = vmatpush1.bf16.msra.mxu1 %v9855_v4  ;;  %2174 = vmatprep.mubr.bf16.mxu1 %v13666_v0 }
 0x133   : > { %2449 = vmatprep.subr.bf16.mxu1 %v9860_v5  ;;  %8344 = vmatpush3.bf16.msra.mxu0 %v9880_v6  ;;  %v9913_v5 = vld [vmem:[#allocation7 + $0x648] ss:$36 sps:$4 sm:$0xff]   ;;  %v9918_v6 = vld [vmem:[#allocation7 + $0x694] ss:$36 sps:$4 sm:$0xff]  }
 0x134   : > { %8345 = vmatprep.subr.bf16.mxu0 %v9881_v8  ;;  %v10421_v8 = vld [vmem:[%s10808_s29 + $0x48] ss:$12 sps:$4 sm:$0xff]  }
 0x136   : > { %2450 = vmatpush1.bf16.msra.mxu1 %v9858_v9  ;;  %v11003_v9 = vld [vmem:[%s10808_s29 + $0xb0] ss:$12 sps:$4 sm:$0xff]  }
 0x137   : > { %2451 = vmatprep.subr.bf16.mxu1 %v9863_v13  ;;  %8346 = vmatpush3.bf16.msra.mxu0 %v9882_v14  ;;  %v10423_v13 = vld [vmem:[%s10808_s29 + $0x64] ss:$12 sps:$4 sm:$0xff]  }
 0x138   : > { %2361 = vmatmul.mubr.bf16.gmra.mrb[36].mxu0 %v10935_v57  ;;  %8347 = vmatprep.subr.bf16.mxu0 %v9883_v19  ;;  %v9916_v14 = vld [vmem:[#allocation7 + $0x690] ss:$36 sps:$4 sm:$0xff]  }
 0x139   : > { %2175 = vmatmul.mubr.bf16.gmra.mrb[52].mxu1 %v10963_v20  ;;  %2370 = vmatprep.mubr.bf16.mxu0 %v13666_v0 }
 0x13a   : > { %2452 = vmatpush1.bf16.msra.mxu1 %v9861_v16  ;;  %2184 = vmatprep.mubr.bf16.mxu1 %v13666_v0 }
 0x13b   : > { %2453 = vmatprep.subr.bf16.mxu1 %v9866_v17  ;;  %8348 = vmatpush3.bf16.msra.mxu0 %v9884_v22  ;;  %v11008_v17 = vld [vmem:[#allocation7 + $0x4a0] ss:$36 sps:$4 sm:$0xff]  }
 0x13c   : > { %8349 = vmatprep.subr.bf16.mxu0 %v9885_v24  ;;  %v10424_v24 = vld [vmem:[%s10808_s29 + $0x60] ss:$12 sps:$4 sm:$0xff]  }
 0x13e   : > { %2454 = vmatpush1.bf16.msra.mxu1 %v9864_v23 }
 0x13f   : > { %2455 = vmatprep.subr.bf16.mxu1 %v9869_v25  ;;  %8350 = vmatpush3.bf16.msra.mxu0 %v9886_v29  ;;  %v10425_v25 = vld [vmem:[%s10808_s29 + $0x7c] ss:$12 sps:$4 sm:$0xff]  }
 0x140   : > { %2371 = vmatmul.mubr.bf16.gmra.mrb[40].mxu0 %v10942_v60  ;;  %8351 = vmatprep.subr.bf16.mxu0 %v9887_v32 }
 0x141   : > { %2185 = vmatmul.mubr.bf16.gmra.mrb[56].mxu1 %v10970_v30  ;;  %2380 = vmatprep.mubr.bf16.mxu0 %v13666_v0 }
 0x142   : > { %2456 = vmatpush1.bf16.msra.mxu1 %v9867_v27  ;;  %2194 = vmatprep.mubr.bf16.mxu1 %v13666_v0 }
 0x143   : > { %2457 = vmatprep.subr.bf16.mxu1 %v9872_v28  ;;  %8352 = vmatpush3.bf16.msra.mxu0 %v9888_v35 }
 0x144   : > { %8353 = vmatprep.subr.bf16.mxu0 %v9889_v38 }
 0x146   : > { %2458 = vmatpush1.bf16.msra.mxu1 %v9870_v33  ;;  %v11020_v33 = vld [vmem:[%s10808_s29 + $0x78] ss:$12 sps:$4 sm:$0xff]  }
 0x147   : > { %2459 = vmatprep.subr.bf16.mxu1 %v9875_v34  ;;  %8354 = vmatpush3.bf16.msra.mxu0 %v9890_v39  ;;  %v11024_v34 = vld [vmem:[%s10808_s29 + $0x94] ss:$12 sps:$4 sm:$0xff]  }
 0x148   : > { %2381 = vmatmul.mubr.bf16.gmra.mrb[44].mxu0 %v10949_v2  ;;  %8355 = vmatprep.subr.bf16.mxu0 %v9891_v15 }
 0x149   : > { %2195 = vmatmul.mubr.bf16.gmra.mrb[60].mxu1 %v10865_v43  ;;  %2390 = vmatprep.mubr.bf16.mxu0 %v13666_v0  ;;  %v9892_v43 = vld [vmem:[#allocation7 + $0x1d0] ss:$36 sps:$4 sm:$0xff]  }
 0x14a   : > { %2460 = vmatpush1.bf16.msra.mxu1 %v9873_v56  ;;  %2463 = vmatprep.mubr.bf16.mxu1 %v10979_v7 }
 0x14b   : > { %2461 = vmatprep.subr.bf16.mxu1 %v9878_v36  ;;  %8356 = vmatpush3.bf16.msra.mxu0 %v9892_v43 }
 0x14c   : > { %8357 = vmatprep.subr.bf16.mxu0 %v9893_v18 }
 0x14e   : > { %2462 = vmatpush1.bf16.msra.mxu1 %v9876_v40 }
 0x14f   : > { %2544 = vmatprep.subr.bf16.mxu1 %v9897_v41  ;;  %8358 = vmatpush3.bf16.msra.mxu0 %v9894_v31 }
 0x150   : > { %2391 = vmatmul.mubr.bf16.gmra.mrb[48].mxu0 %v10956_v11 }
 0x151   : > { %2464 = vmatmul.mubr.bf16.vlgmr.msra.gmra.mrb[64].mxu1 %v10984_v45  ;;  %2400 = vmatprep.mubr.bf16.mxu0 %v13666_v0 }
 0x152   : > { %2473 = vmatprep.mubr.bf16.mxu1 %v10989_v46  ;;  %2545 = vmatpush1.bf16.msra.mxu1 %v9895_v44 }
 0x153   : > { %2546 = vmatprep.subr.bf16.mxu1 %v9900_v26 }
 0x156   : > { %2547 = vmatpush1.bf16.msra.mxu1 %v9898_v37 }
 0x157   : > { %2548 = vmatprep.subr.bf16.mxu1 %v9903_v47 }
 0x158   : > { %2401 = vmatmul.mubr.bf16.gmra.mrb[52].mxu0 %v10963_v20 }
 0x159   : > { %2474 = vmatmul.mubr.bf16.gmra.mrb[68].mxu1 %v10417_v42  ;;  %2410 = vmatprep.mubr.bf16.mxu0 %v13666_v0 }
 0x15a   : > { %2483 = vmatprep.mubr.bf16.mxu1 %v10418_v48  ;;  %2549 = vmatpush1.bf16.msra.mxu1 %v9901_v49 }
 0x15b   : > { %2550 = vmatprep.subr.bf16.mxu1 %v9906_v50 }
 0x15e   : > { %2551 = vmatpush1.bf16.msra.mxu1 %v9904_v52 }
 0x15f   : > { %2552 = vmatprep.subr.bf16.mxu1 %v9909_v54 }
 0x160   : > { %2411 = vmatmul.mubr.bf16.gmra.mrb[56].mxu0 %v10970_v30 }
 0x161   : > { %2484 = vmatmul.mubr.bf16.gmra.mrb[72].mxu1 %v10419_v58  ;;  %2420 = vmatprep.mubr.bf16.mxu0 %v13666_v0 }
 0x162   : > { %2493 = vmatprep.mubr.bf16.mxu1 %v10420_v59  ;;  %2553 = vmatpush1.bf16.msra.mxu1 %v9907_v53 }
 0x163   : > { %2554 = vmatprep.subr.bf16.mxu1 %v9912_v55 }
 0x164   : > { %v1900_v62 = vpop.f32.mrb[0].mxu1 }
 0x165   : > { %v1902_v1 = vpop.f32.mrb[1].mxu1 }
 0x166   : > { %v1904_v3 = vpop.f32.mrb[2].mxu1  ;;  %2555 = vmatpush1.bf16.msra.mxu1 %v9910_v61 }
 0x167   : > { %v1906_v4 = vpop.f32.mrb[3].mxu1  ;;  %2556 = vmatprep.subr.bf16.mxu1 %v9915_v63 }
 0x168   : > { %2421 = vmatmul.mubr.bf16.gmra.mrb[60].mxu0 %v11003_v9 }
 0x169   : > { %2494 = vmatmul.mubr.bf16.gmra.mrb[76].mxu1 %v10421_v8  ;;  %2689 = vmatprep.mubr.bf16.mxu0 %v10979_v7 }
 0x16a   : > { %2503 = vmatprep.mubr.bf16.mxu1 %v10423_v13  ;;  %2557 = vmatpush1.bf16.msra.mxu1 %v9913_v5 }
 0x16b   : > { %2558 = vmatprep.subr.bf16.mxu1 %v9918_v6 }
 0x16c   : > { %v1910_v16 = vpop.f32.mrb[4].mxu1 }
 0x16d   : > { %v1912_v19 = vpop.f32.mrb[5].mxu1 }
 0x16e   : > { %v1914_v22 = vpop.f32.mrb[6].mxu1  ;;  %2559 = vmatpush1.bf16.msra.mxu1 %v9916_v14 }
 0x16f   : > { %v1916_v23 = vpop.f32.mrb[7].mxu1  ;;  %8695 = vmatprep.subr.bf16.mxu1 %v11008_v17 }
 0x170   : > { %2690 = vmatmul.mubr.bf16.vlgmr.msra.gmra.mrb[64].mxu0 %v10984_v45 }
 0x171   : > { %2504 = vmatmul.mubr.bf16.gmra.mrb[80].mxu1 %v10424_v24  ;;  %2697 = vmatprep.mubr.bf16.mxu0 %v10989_v46 }
 0x172   : > { %2513 = vmatprep.mubr.bf16.mxu1 %v10425_v25 }
 0x174   : > { %v1920_v27 = vpop.f32.mrb[8].mxu1 }
 0x175   : > { %v1922_v28 = vpop.f32.mrb[9].mxu1 }
 0x176   : > { %v11015_v29 = vpop.f32.mrb[10].mxu1 }
 0x177   : > { %v11017_v32 = vpop.f32.mrb[11].mxu1 }
 0x178   : > { %2698 = vmatmul.mubr.bf16.gmra.mrb[68].mxu0 %v10417_v42 }
 0x179   : > { %2514 = vmatmul.mubr.bf16.gmra.mrb[84].mxu1 %v11020_v33  ;;  %2705 = vmatprep.mubr.bf16.mxu0 %v10418_v48 }
 0x17a   : > { %2523 = vmatprep.mubr.bf16.mxu1 %v11024_v34 }
 0x17c   : > { %v11027_v35 = vpop.f32.mrb[12].mxu1 }
 0x17d   : > { %v11029_v56 = vpop.f32.mrb[13].mxu1 }
 0x17e   : > { %v11031_v36 = vpop.f32.mrb[14].mxu1 }
 0x17f   : > { %v11033_v38 = vpop.f32.mrb[15].mxu1 }
 0x180   : > { %2706 = vmatmul.mubr.bf16.gmra.mrb[72].mxu0 %v10419_v58 }
 0x181   : > { %2524 = vmatmul.mubr.bf16.gmra.mrb[88].mxu1 %v10895_v10  ;;  %2713 = vmatprep.mubr.bf16.mxu0 %v10420_v59  ;;  %v9920_v59 = vld [vmem:[#allocation7 + $0x4e8] ss:$36 sps:$4 sm:$0xff]  }
 0x182   : > { %2533 = vmatprep.mubr.bf16.mxu1 %v10898_v12 }
 0x183   : > { %v1787_v39 = vpop.f32.mrb[0].mxu0 }
 0x184   : > { %v11037_v40 = vpop.f32.mrb[16].mxu1  ;;  %v1901_v7 = vadd.f32 %v1900_v62, %v1787_v39  ;;  %v1789_v15 = vpop.f32.mrb[1].mxu0 }
 0x185   : > { %v11039_v41 = vpop.f32.mrb[17].mxu1  ;;  %v1903_v43 = vadd.f32 %v1902_v1, %v1789_v15  ;;  %v1791_v44 = vpop.f32.mrb[2].mxu0 }
 0x186   : > { %v11041_v18 = vpop.f32.mrb[18].mxu1  ;;  %v1905_v26 = vadd.f32 %v1904_v3, %v1791_v44  ;;  %v1793_v45 = vpop.f32.mrb[3].mxu0  ;;  %v9921_v3 = vld [vmem:[#allocation7 + $0x530] ss:$36 sps:$4 sm:$0xff]  }
 0x187   : > { %v11043_v46 = vpop.f32.mrb[19].mxu1  ;;  %v1907_v10 = vadd.f32 %v1906_v4, %v1793_v45 }
 0x188   : > { %v11045_v31 = vpack.c.bf16 %v1905_v26, %v1901_v7  ;;  %2714 = vmatmul.mubr.bf16.gmra.mrb[76].mxu0 %v10421_v8 }
 0x189   : > { %2534 = vmatmul.mubr.bf16.gmra.mrb[92].mxu1 %v10905_v21  ;;  %v11048_v12 = vpack.c.bf16 %v1907_v10, %v1903_v43  ;;  %2721 = vmatprep.mubr.bf16.mxu0 %v10423_v13  ;;  %v9924_v10 = vld [vmem:[#allocation7 + $0x608] ss:$36 sps:$4 sm:$0xff]  }
 0x18a   : > { %2576 = vmatprep.mubr.bf16.mxu1 %v13666_v0 }
 0x18b   : > { %v1797_v37 = vpop.f32.mrb[4].mxu0 }
 0x18c   : > { %v11051_v47 = vpop.f32.mrb[20].mxu1  ;;  %v1911_v49 = vadd.f32 %v1910_v16, %v1797_v37  ;;  %v1799_v50 = vpop.f32.mrb[5].mxu0  ;;  %v10428_v37 = vld [vmem:[%s10808_s29 + $0x90] ss:$12 sps:$4 sm:$0xff]  }
 0x18d   : > { %v11053_v42 = vpop.f32.mrb[21].mxu1  ;;  %v1913_v48 = vadd.f32 %v1912_v19, %v1799_v50  ;;  %v1801_v52 = vpop.f32.mrb[6].mxu0  ;;  %v9925_v50 = vld [vmem:[#allocation7 + $0x650] ss:$36 sps:$4 sm:$0xff]  }
 0x18e   : > { %v11055_v54 = vpop.f32.mrb[22].mxu1  ;;  %v1915_v53 = vadd.f32 %v1914_v22, %v1801_v52  ;;  %v1803_v55 = vpop.f32.mrb[7].mxu0 }
 0x18f   : > { %v11057_v21 = vpop.f32.mrb[23].mxu1  ;;  %v1917_v58 = vadd.f32 %v1916_v23, %v1803_v55  ;;  %v9922_v23 = vld [vmem:[#allocation7 + $0x578] ss:$36 sps:$4 sm:$0xff]  }
 0x190   : > { %v11059_v61 = vpack.c.bf16 %v1915_v53, %v1911_v49  ;;  %2722 = vmatmul.mubr.bf16.gmra.mrb[80].mxu0 %v10424_v24  ;;  %v10429_v49 = vld [vmem:[%s10808_s29 + $0xac] ss:$12 sps:$4 sm:$0xff]  }
 0x191   : > { %2577 = vmatmul.mubr.bf16.vlgmr.msra.gmra.mrb[64].mxu1 %v10928_v51  ;;  %v11062_v62 = vpack.c.bf16 %v1917_v58, %v1913_v48  ;;  %2729 = vmatprep.mubr.bf16.mxu0 %v10425_v25 }
 0x192   : > { %2586 = vmatprep.mubr.bf16.mxu1 %v13666_v0  ;;  %8696 = vmatpush3.bf16.msra.mxu1 %v11008_v17 }
 0x193   : > { %13750 = vst [vmem:[#allocation14_spill] sm:$0xff] %v11062_v62  ;;  %v1807_v63 = vpop.f32.mrb[8].mxu0  ;;  %8697 = vmatprep.subr.bf16.mxu1 %v9920_v59 }
 0x194   : > { %v11066_v1 = vpop.f32.mrb[24].mxu1  ;;  %v1921_v4 = vadd.f32 %v1920_v27, %v1807_v63  ;;  %v1809_v5 = vpop.f32.mrb[9].mxu0  ;;  %v9926_v63 = vld [vmem:[#allocation7 + $0x698] ss:$36 sps:$4 sm:$0xff]  }
 0x195   : > { %v11068_v6 = vpop.f32.mrb[25].mxu1  ;;  %v1923_v8 = vadd.f32 %v1922_v28, %v1809_v5  ;;  %v1811_v13 = vpop.f32.mrb[10].mxu0 }
 0x196   : > { %v11070_v14 = vpop.f32.mrb[26].mxu1  ;;  %v1925_v16 = vadd.f32 %v11015_v29, %v1811_v13  ;;  %v1813_v19 = vpop.f32.mrb[11].mxu0  ;;  %8698 = vmatpush3.bf16.msra.mxu1 %v9920_v59  ;;  %v9923_v29 = vld [vmem:[#allocation7 + $0x5c0] ss:$36 sps:$4 sm:$0xff]  }
 0x197   : > { %v11073_v22 = vpop.f32.mrb[27].mxu1  ;;  %v1927_v17 = vadd.f32 %v11017_v32, %v1813_v19  ;;  %8699 = vmatprep.subr.bf16.mxu1 %v9921_v3 }
 0x198   : > { %v11076_v24 = vpack.c.bf16 %v1925_v16, %v1921_v4  ;;  %2730 = vmatmul.mubr.bf16.gmra.mrb[84].mxu0 %v11020_v33  ;;  %v10430_v4 = vld [vmem:[%s10808_s29 + $0xa8] ss:$12 sps:$4 sm:$0xff]  }
 0x199   : > { %2587 = vmatmul.mubr.bf16.gmra.mrb[68].mxu1 %v10935_v57  ;;  %v11080_v25 = vpack.c.bf16 %v1927_v17, %v1923_v8  ;;  %2737 = vmatprep.mubr.bf16.mxu0 %v11024_v34 }
 0x19a   : > { %2596 = vmatprep.mubr.bf16.mxu1 %v13666_v0  ;;  %8700 = vmatpush3.bf16.msra.mxu1 %v9921_v3 }
 0x19b   : > { %13751 = vst [vmem:[#allocation15_spill] sm:$0xff] %v11080_v25  ;;  %v1817_v27 = vpop.f32.mrb[12].mxu0  ;;  %8701 = vmatprep.subr.bf16.mxu1 %v9922_v23 }
 0x19c   : > { %v11084_v28 = vpop.f32.mrb[28].mxu1  ;;  %v1931_v32 = vadd.f32 %v11027_v35, %v1817_v27  ;;  %v1819_v39 = vpop.f32.mrb[13].mxu0 }
 0x19d   : > { %v11087_v7 = vpop.f32.mrb[29].mxu1  ;;  %v1933_v33 = vadd.f32 %v11029_v56, %v1819_v39  ;;  %v1821_v15 = vpop.f32.mrb[14].mxu0 }
 0x19e   : > { %v11090_v43 = vpop.f32.mrb[30].mxu1  ;;  %v1935_v34 = vadd.f32 %v11031_v36, %v1821_v15  ;;  %v1823_v44 = vpop.f32.mrb[15].mxu0  ;;  %8702 = vmatpush3.bf16.msra.mxu1 %v9922_v23 }
 0x19f   : > { %v11093_v26 = vpop.f32.mrb[31].mxu1  ;;  %v1937_v45 = vadd.f32 %v11033_v38, %v1823_v44  ;;  %8703 = vmatprep.subr.bf16.mxu1 %v9923_v29 }
 0x1a0   : > { %v11096_v35 = vpack.c.bf16 %v1935_v34, %v1931_v32  ;;  %2738 = vmatmul.mubr.bf16.gmra.mrb[88].mxu0 %v10428_v37 }
 0x1a1   : > { %2597 = vmatmul.mubr.bf16.gmra.mrb[72].mxu1 %v10942_v60  ;;  %v11100_v56 = vpack.c.bf16 %v1937_v45, %v1933_v33  ;;  %2745 = vmatprep.mubr.bf16.mxu0 %v10429_v49 }
 0x1a2   : > { %2606 = vmatprep.mubr.bf16.mxu1 %v13666_v0  ;;  %8704 = vmatpush3.bf16.msra.mxu1 %v9923_v29 }
 0x1a3   : > { %13752 = vst [vmem:[#allocation16_spill] sm:$0xff] %v11100_v56  ;;  %v1827_v36 = vpop.f32.mrb[16].mxu0  ;;  %8705 = vmatprep.subr.bf16.mxu1 %v9924_v10 }
 0x1a4   : > { %v1941_v38 = vadd.f32 %v11037_v40, %v1827_v36  ;;  %v1829_v48 = vpop.f32.mrb[17].mxu0 }
 0x1a5   : > { %v1943_v52 = vadd.f32 %v11039_v41, %v1829_v48  ;;  %v1831_v53 = vpop.f32.mrb[18].mxu0 }
 0x1a6   : > { %v1945_v55 = vadd.f32 %v11041_v18, %v1831_v53  ;;  %v1833_v58 = vpop.f32.mrb[19].mxu0  ;;  %8706 = vmatpush3.bf16.msra.mxu1 %v9924_v10 }
 0x1a7   : > { %v1947_v59 = vadd.f32 %v11043_v46, %v1833_v58  ;;  %8707 = vmatprep.subr.bf16.mxu1 %v9925_v50 }
 0x1a8   : > { %v11108_v3 = vpack.c.bf16 %v1945_v55, %v1941_v38  ;;  %2746 = vmatmul.mubr.bf16.gmra.mrb[92].mxu0 %v10430_v4 }
 0x1a9   : > { %2607 = vmatmul.mubr.bf16.gmra.mrb[76].mxu1 %v10949_v2  ;;  %v11112_v40 = vpack.c.bf16 %v1947_v59, %v1943_v52 }
 0x1aa   : > { %2616 = vmatprep.mubr.bf16.mxu1 %v13666_v0  ;;  %8751 = vmatprep.mubr.msk.bf16.mxu0 %vm3038_vm0, %v11108_v3 }
 0x1ab   : > { %13753 = vst [vmem:[#allocation17_spill] sm:$0xff] %v11112_v40  ;;  %8708 = vmatpush3.bf16.msra.mxu1 %v9925_v50  ;;  %v1837_v41 = vpop.f32.mrb[20].mxu0 }
 0x1ac   : > { %8709 = vmatprep.subr.bf16.mxu1 %v9926_v63  ;;  %v1951_v18 = vadd.f32 %v11051_v47, %v1837_v41  ;;  %v1839_v46 = vpop.f32.mrb[21].mxu0 }
 0x1ad   : > { %v1953_v5 = vadd.f32 %v11053_v42, %v1839_v46  ;;  %v1841_v8 = vpop.f32.mrb[22].mxu0 }
 0x1ae   : > { %v1955_v13 = vadd.f32 %v11055_v54, %v1841_v8  ;;  %v1843_v16 = vpop.f32.mrb[23].mxu0 }
 0x1af   : > { %8710 = vmatpush3.bf16.msra.mxu1 %v9926_v63  ;;  %v1957_v19 = vadd.f32 %v11057_v21, %v1843_v16 }
 0x1b0   : > { %v11121_v17 = vpack.c.bf16 %v1955_v13, %v1951_v18 }
 0x1b1   : > { %2617 = vmatmul.mubr.bf16.gmra.mrb[80].mxu1 %v10956_v11  ;;  %v11124_v23 = vpack.c.bf16 %v1957_v19, %v1953_v5 }
 0x1b2   : > { %2626 = vmatprep.mubr.bf16.mxu1 %v13666_v0 }
 0x1b3   : > { %13754 = vst [vmem:[#allocation18_spill] sm:$0xff] %v11124_v23  ;;  %v1847_v27 = vpop.f32.mrb[24].mxu0 }
 0x1b4   : > { %v1961_v47 = vadd.f32 %v11066_v1, %v1847_v27  ;;  %v1849_v29 = vpop.f32.mrb[25].mxu0 }
 0x1b5   : > { %v1963_v42 = vadd.f32 %v11068_v6, %v1849_v29  ;;  %v1851_v32 = vpop.f32.mrb[26].mxu0 }
 0x1b6   : > { %v1965_v54 = vadd.f32 %v11070_v14, %v1851_v32  ;;  %v1853_v39 = vpop.f32.mrb[27].mxu0 }
 0x1b7   : > { %v1967_v21 = vadd.f32 %v11073_v22, %v1853_v39 }
 0x1b8   : > { %v11131_v33 = vpack.c.bf16 %v1965_v54, %v1961_v47 }
 0x1b9   : > { %2627 = vmatmul.mubr.bf16.gmra.mrb[84].mxu1 %v10963_v20  ;;  %v11134_v15 = vpack.c.bf16 %v1967_v21, %v1963_v42 }
 0x1ba   : > { %2636 = vmatprep.mubr.bf16.mxu1 %v13666_v0 }
 0x1bb   : > { %13755 = vst [vmem:[#allocation19_spill] sm:$0xff] %v11134_v15  ;;  %v1857_v34 = vpop.f32.mrb[28].mxu0 }
 0x1bc   : > { %v1971_v1 = vadd.f32 %v11084_v28, %v1857_v34  ;;  %v1859_v44 = vpop.f32.mrb[29].mxu0 }
 0x1bd   : > { %v1973_v6 = vadd.f32 %v11087_v7, %v1859_v44  ;;  %v1861_v45 = vpop.f32.mrb[30].mxu0 }
 0x1be   : > { %v1975_v14 = vadd.f32 %v11090_v43, %v1861_v45  ;;  %v1863_v10 = vpop.f32.mrb[31].mxu0 }
 0x1bf   : > { %v1977_v22 = vadd.f32 %v11093_v26, %v1863_v10 }
 0x1c0   : > { %v11141_v37 = vpack.c.bf16 %v1975_v14, %v1971_v1 }
 0x1c1   : > { %2637 = vmatmul.mubr.bf16.gmra.mrb[88].mxu1 %v10970_v30  ;;  %v11144_v49 = vpack.c.bf16 %v1977_v22, %v1973_v6 }
 0x1c2   : > { %2646 = vmatprep.mubr.bf16.mxu1 %v13666_v0 }
 0x1c3   : > { %13756 = vst [vmem:[#allocation20_spill] sm:$0xff] %v11144_v49 }
 0x1c9   : > { %2647 = vmatmul.mubr.bf16.gmra.mrb[92].mxu1 %v11003_v9 }
 0x1ca   : > { %8711 = vmatprep.mubr.bf16.mxu1 %v10928_v51 }
 0x1d1   : > { %8712 = vmatmul.mubr.bf16.vlgmr.msra.gmra.mrb[96].mxu1 %v10935_v57 }
 0x1d2   : > { %8715 = vmatprep.mubr.bf16.mxu1 %v10942_v60 }
 0x1d9   : > { %8716 = vmatmul.mubr.bf16.gmra.mrb[100].mxu1 %v10949_v2 }
 0x1da   : > { %8719 = vmatprep.mubr.bf16.mxu1 %v10956_v11 }
 0x1e1   : > { %8720 = vmatmul.mubr.bf16.gmra.mrb[104].mxu1 %v10963_v20 }
 0x1e2   : > { %8723 = vmatprep.mubr.bf16.mxu1 %v10970_v30 }
 0x1e4   : > { %v2126_v28 = vpop.f32.mrb[32].mxu1 }
 0x1e5   : > { %v2128_v7 = vpop.f32.mrb[33].mxu1 }
 0x1e6   : > { %v2130_v43 = vpop.f32.mrb[34].mxu1 }
 0x1e7   : > { %v11155_v26 = vpack.c.bf16 %v2130_v43, %v2126_v28  ;;  %v2132_v36 = vpop.f32.mrb[35].mxu1 }
 0x1e8   : > { %v2854_v50 = vpack.c.bf16 %v2132_v36, %v2128_v7 }
 0x1e9   : > { %13757 = vst [vmem:[#allocation21_spill] sm:$0xff] %v11155_v26  ;;  %8724 = vmatmul.mubr.bf16.gmra.mrb[108].mxu1 %v11003_v9 }
 0x1ea   : > { %3603 = vrot.lane.b32.xlu0 %v2854_v50, %s10597_s21  ;;  %9335 = vmatprep.subr.msk.bf16.mxu1 %vm3038_vm0, %v2854_v50  ;;  %v3052_v51 = vsel %vm3038_vm0, %v2854_v50, 0 }
 0x1eb   : > { %8735 = vmatprep.mubr.msk.bf16.mxu1 %vm3038_vm0, %v11045_v31  ;;  %8728 = vmatpush3.bf16.xpose.msra.mxu1 %v3052_v51 }
 0x1ec   : > { %v2136_v57 = vpop.f32.mrb[36].mxu1 }
 0x1ed   : > { %v2138_v60 = vpop.f32.mrb[37].mxu1 }
 0x1ee   : > { %v2140_v2 = vpop.f32.mrb[38].mxu1 }
 0x1ef   : > { %v11163_v11 = vpack.c.bf16 %v2140_v2, %v2136_v57  ;;  %v2142_v20 = vpop.f32.mrb[39].mxu1 }
 0x1f0   : > { %v2863_v30 = vpack.c.bf16 %v2142_v20, %v2138_v60 }
 0x1f1   : > { %13758 = vst [vmem:[#allocation22_spill] sm:$0xff] %v11163_v11 }
 0x1f2   : > { %3605 = vrot.lane.b32.xlu1 %v2863_v30, %s10597_s21  ;;  %9336 = vmatprep.subr.msk.bf16.mxu1 %vm3038_vm0, %v2863_v30  ;;  %v3055_v9 = vsel %vm3038_vm0, %v2863_v30, 0 }
 0x1f3   : > { %8730 = vmatpush3.bf16.xpose.msra.mxu1 %v3055_v9 }
 0x1f4   : > { %v2146_v38 = vpop.f32.mrb[40].mxu1 }
 0x1f5   : > { %v2148_v48 = vpop.f32.mrb[41].mxu1 }
 0x1f6   : > { %v2150_v52 = vpop.f32.mrb[42].mxu1 }
 0x1f7   : > { %v11168_v53 = vpack.c.bf16 %v2150_v52, %v2146_v38  ;;  %v2152_v55 = vpop.f32.mrb[43].mxu1 }
 0x1f8   : > { %v2872_v58 = vpack.c.bf16 %v2152_v55, %v2148_v48 }
 0x1f9   : > { %13759 = vst [vmem:[#allocation23_spill] sm:$0xff] %v11168_v53 }
 0x1fa   : > { %3607 = vrot.lane.b32.xlu0 %v2872_v58, %s10597_s21  ;;  %9337 = vmatprep.subr.msk.bf16.mxu1 %vm3038_vm0, %v2872_v58  ;;  %v3058_v59 = vsel %vm3038_vm0, %v2872_v58, 0 }
 0x1fb   : > { %8732 = vmatpush3.bf16.xpose.msra.mxu1 %v3058_v59 }
 0x1fc   : > { %v2156_v63 = vpop.f32.mrb[44].mxu1 }
 0x1fd   : > { %v2158_v4 = vpop.f32.mrb[45].mxu1 }
 0x1fe   : > { %v2160_v41 = vpop.f32.mrb[46].mxu1 }
 0x1ff   : > { %v11173_v18 = vpack.c.bf16 %v2160_v41, %v2156_v63  ;;  %v2162_v46 = vpop.f32.mrb[47].mxu1 }
 0x200   : > { %v2881_v5 = vpack.c.bf16 %v2162_v46, %v2158_v4 }
 0x201   : > { %13760 = vst [vmem:[#allocation24_spill] sm:$0xff] %v11173_v18 }
 0x202   : > { %3609 = vrot.lane.b32.xlu0 %v2881_v5, %s10597_s21  ;;  %9338 = vmatprep.subr.msk.bf16.mxu1 %vm3038_vm0, %v2881_v5  ;;  %v3061_v8 = vsel %vm3038_vm0, %v2881_v5, 0 }
 0x203   : > { %8734 = vmatpush3.bf16.xpose.msra.mxu1 %v3061_v8  ;;  %v2352_v16 = vpop.f32.mrb[32].mxu0 }
 0x204   : > { %v2166_v13 = vpop.f32.mrb[48].mxu1  ;;  %v2354_v27 = vpop.f32.mrb[33].mxu0 }
 0x205   : > { %v2168_v19 = vpop.f32.mrb[49].mxu1  ;;  %v2356_v29 = vpop.f32.mrb[34].mxu0 }
 0x206   : > { %v2170_v47 = vpop.f32.mrb[50].mxu1  ;;  %v11180_v54 = vpack.c.bf16 %v2356_v29, %v2352_v16  ;;  %v2358_v39 = vpop.f32.mrb[35].mxu0 }
 0x207   : > { %v11178_v42 = vpack.c.bf16 %v2170_v47, %v2166_v13  ;;  %v2172_v32 = vpop.f32.mrb[51].mxu1  ;;  %v11184_v34 = vpack.c.bf16 %v2358_v39, %v2354_v27 }
 0x208   : > { %v11182_v21 = vpack.c.bf16 %v2172_v32, %v2168_v19 }
 0x209   : > { %13761 = vst [vmem:[#allocation25_spill] sm:$0xff] %v11178_v42  ;;  %13762 = vst [vmem:[#allocation26_spill] sm:$0xff] %v11184_v34 }
 0x20a   : > { %8736 = vmatmul.mubr.msk.bf16.vlgmr.msra.gmra.mrb[112].mxu1 %vm3038_vm0, %v11059_v61  ;;  %9339 = vmatprep.subr.msk.bf16.mxu0 %vm3038_vm0, %v11182_v21  ;;  %v3141_v1 = vsel %vm3038_vm0, %v11182_v21, 0 }
 0x20b   : > { %8739 = vmatprep.mubr.msk.bf16.mxu1 %vm3038_vm0, %v11076_v24  ;;  %8744 = vmatpush3.bf16.xpose.msra.mxu0 %v3141_v1  ;;  %v2362_v6 = vpop.f32.mrb[36].mxu0 }
 0x20c   : > { %v2176_v44 = vpop.f32.mrb[52].mxu1  ;;  %v2364_v14 = vpop.f32.mrb[37].mxu0 }
 0x20d   : > { %v2178_v45 = vpop.f32.mrb[53].mxu1  ;;  %v2366_v22 = vpop.f32.mrb[38].mxu0 }
 0x20e   : > { %v2180_v10 = vpop.f32.mrb[54].mxu1  ;;  %v11196_v43 = vpack.c.bf16 %v2366_v22, %v2362_v6  ;;  %v2368_v36 = vpop.f32.mrb[39].mxu0 }
 0x20f   : > { %v11194_v28 = vpack.c.bf16 %v2180_v10, %v2176_v44  ;;  %v2182_v7 = vpop.f32.mrb[55].mxu1  ;;  %v11200_v51 = vpack.c.bf16 %v2368_v36, %v2364_v14 }
 0x210   : > { %v11198_v50 = vpack.c.bf16 %v2182_v7, %v2178_v45 }
 0x211   : > { %13763 = vst [vmem:[#allocation27_spill] sm:$0xff] %v11194_v28  ;;  %13764 = vst [vmem:[#allocation28_spill] sm:$0xff] %v11200_v51 }
 0x212   : > { %8740 = vmatmul.mubr.msk.bf16.gmra.mrb[116].mxu1 %vm3038_vm0, %v11096_v35  ;;  %9340 = vmatprep.subr.msk.bf16.mxu0 %vm3038_vm0, %v11198_v50  ;;  %v3144_v57 = vsel %vm3038_vm0, %v11198_v50, 0 }
 0x213   : > { %8746 = vmatpush3.bf16.xpose.msra.mxu0 %v3144_v57  ;;  %v2372_v2 = vpop.f32.mrb[40].mxu0 }
 0x214   : > { %v2186_v60 = vpop.f32.mrb[56].mxu1  ;;  %v2374_v30 = vpop.f32.mrb[41].mxu0 }
 0x215   : > { %v2188_v20 = vpop.f32.mrb[57].mxu1  ;;  %v2376_v38 = vpop.f32.mrb[42].mxu0 }
 0x216   : > { %v2190_v9 = vpop.f32.mrb[58].mxu1  ;;  %v11210_v55 = vpack.c.bf16 %v2376_v38, %v2372_v2  ;;  %v2378_v58 = vpop.f32.mrb[43].mxu0 }
 0x217   : > { %v11208_v48 = vpack.c.bf16 %v2190_v9, %v2186_v60  ;;  %v2192_v52 = vpop.f32.mrb[59].mxu1  ;;  %v11214_v63 = vpack.c.bf16 %v2378_v58, %v2374_v30 }
 0x218   : > { %v11212_v59 = vpack.c.bf16 %v2192_v52, %v2188_v20 }
 0x219   : > { %13765 = vst [vmem:[#allocation29_spill] sm:$0xff] %v11208_v48  ;;  %13766 = vst [vmem:[#allocation30_spill] sm:$0xff] %v11214_v63 }
 0x21a   : > { %9341 = vmatprep.subr.msk.bf16.mxu0 %vm3038_vm0, %v11212_v59  ;;  %v3147_v4 = vsel %vm3038_vm0, %v11212_v59, 0 }
 0x21b   : > { %8748 = vmatpush3.bf16.xpose.msra.mxu0 %v3147_v4  ;;  %v2382_v46 = vpop.f32.mrb[44].mxu0 }
 0x21c   : > { %v2196_v41 = vpop.f32.mrb[60].mxu1  ;;  %v2384_v8 = vpop.f32.mrb[45].mxu0 }
 0x21d   : > { %v2198_v5 = vpop.f32.mrb[61].mxu1  ;;  %v2386_v16 = vpop.f32.mrb[46].mxu0 }
 0x21e   : > { %v2200_v13 = vpop.f32.mrb[62].mxu1  ;;  %v11222_v47 = vpack.c.bf16 %v2386_v16, %v2382_v46  ;;  %v2388_v29 = vpop.f32.mrb[47].mxu0 }
 0x21f   : > { %v11220_v19 = vpack.c.bf16 %v2200_v13, %v2196_v41  ;;  %v2202_v27 = vpop.f32.mrb[63].mxu1  ;;  %v11226_v39 = vpack.c.bf16 %v2388_v29, %v2384_v8 }
 0x220   : > { %v11224_v32 = vpack.c.bf16 %v2202_v27, %v2198_v5 }
 0x221   : > { %13767 = vst [vmem:[#allocation31_spill] sm:$0xff] %v11220_v19  ;;  %13768 = vst [vmem:[#allocation32_spill] sm:$0xff] %v11226_v39 }
 0x222   : > { %9342 = vmatprep.subr.msk.bf16.mxu0 %vm3038_vm0, %v11224_v32  ;;  %v3150_v1 = vsel %vm3038_vm0, %v11224_v32, 0 }
 0x223   : > { %8750 = vmatpush3.bf16.xpose.msra.mxu0 %v3150_v1  ;;  %v2392_v44 = vpop.f32.mrb[48].mxu0 }
 0x224   : > { %v2394_v6 = vpop.f32.mrb[49].mxu0 }
 0x225   : > { %v2396_v45 = vpop.f32.mrb[50].mxu0 }
 0x226   : > { %v11232_v14 = vpack.c.bf16 %v2396_v45, %v2392_v44  ;;  %v2398_v10 = vpop.f32.mrb[51].mxu0 }
 0x227   : > { %v11234_v22 = vpack.c.bf16 %v2398_v10, %v2394_v6 }
 0x228   : > { %13769 = vst [vmem:[#allocation33_spill] sm:$0xff] %v11232_v14 }
 0x229   : > { %13770 = vst [vmem:[#allocation34_spill] sm:$0xff] %v11234_v22 }
 0x22a   : > { %8752 = vmatmul.mubr.msk.bf16.vlgmr.msra.gmra.mrb[96].mxu0 %vm3038_vm0, %v11121_v17 }
 0x22b   : > { %8755 = vmatprep.mubr.msk.bf16.mxu0 %vm3038_vm0, %v11131_v33  ;;  %v2402_v7 = vpop.f32.mrb[52].mxu0 }
 0x22c   : > { %v2404_v36 = vpop.f32.mrb[53].mxu0 }
 0x22d   : > { %v2406_v57 = vpop.f32.mrb[54].mxu0 }
 0x22e   : > { %v11240_v60 = vpack.c.bf16 %v2406_v57, %v2402_v7  ;;  %v2408_v2 = vpop.f32.mrb[55].mxu0 }
 0x22f   : > { %v11242_v20 = vpack.c.bf16 %v2408_v2, %v2404_v36 }
 0x230   : > { %13771 = vst [vmem:[#allocation35_spill] sm:$0xff] %v11240_v60 }
 0x231   : > { %13772 = vst [vmem:[#allocation36_spill] sm:$0xff] %v11242_v20 }
 0x232   : > { %8756 = vmatmul.mubr.msk.bf16.gmra.mrb[100].mxu0 %vm3038_vm0, %v11141_v37 }
 0x233   : > { %v2412_v30 = vpop.f32.mrb[56].mxu0 }
 0x234   : > { %v2414_v9 = vpop.f32.mrb[57].mxu0 }
 0x235   : > { %v2416_v38 = vpop.f32.mrb[58].mxu0 }
 0x236   : > { %v11246_v52 = vpack.c.bf16 %v2416_v38, %v2412_v30  ;;  %v2418_v58 = vpop.f32.mrb[59].mxu0 }
 0x237   : > { %v11248_v4 = vpack.c.bf16 %v2418_v58, %v2414_v9 }
 0x238   : > { %13773 = vst [vmem:[#allocation37_spill] sm:$0xff] %v11246_v52 }
 0x239   : > { %13774 = vst [vmem:[#allocation38_spill] sm:$0xff] %v11248_v4 }
 0x23b   : > { %v2422_v41 = vpop.f32.mrb[60].mxu0 }
 0x23c   : > { %v2424_v46 = vpop.f32.mrb[61].mxu0 }
 0x23d   : > { %v2426_v5 = vpop.f32.mrb[62].mxu0 }
 0x23e   : > { %v11250_v8 = vpack.c.bf16 %v2426_v5, %v2422_v41  ;;  %v2428_v13 = vpop.f32.mrb[63].mxu0 }
 0x23f   : > { %v11252_v16 = vpack.c.bf16 %v2428_v13, %v2424_v46 }
 0x240   : > { %13775 = vst [vmem:[#allocation39_spill] sm:$0xff] %v11250_v8 }
 0x241   : > { %13776 = vst [vmem:[#allocation40_spill] sm:$0xff] %v11252_v16 }
 0x243   : > { %v8359_v27 = vpop.f32.mrb[64].mxu0 }
 0x244   : > { %v8360_v29 = vpop.f32.mrb[65].mxu0 }
 0x245   : > { %v11254_v1 = vadd.f32 %v8360_v29, %v8359_v27  ;;  %v8362_v44 = vpop.f32.mrb[66].mxu0 }
 0x246   : > { %v8363_v6 = vpop.f32.mrb[67].mxu0 }
 0x247   : > { %v11256_v45 = vadd.f32 %v8363_v6, %v8362_v44 }
 0x24b   : > { %v8365_v10 = vpop.f32.mrb[68].mxu0 }
 0x24c   : > { %v8366_v7 = vpop.f32.mrb[69].mxu0 }
 0x24d   : > { %v11258_v36 = vadd.f32 %v8366_v7, %v8365_v10  ;;  %v8368_v57 = vpop.f32.mrb[70].mxu0 }
 0x24e   : > { %v8369_v2 = vpop.f32.mrb[71].mxu0 }
 0x24f   : > { %v11260_v30 = vadd.f32 %v8369_v2, %v8368_v57 }
 0x253   : > { %v8371_v9 = vpop.f32.mrb[72].mxu0 }
 0x254   : > { %v8372_v38 = vpop.f32.mrb[73].mxu0 }
 0x255   : > { %v11262_v58 = vadd.f32 %v8372_v38, %v8371_v9  ;;  %v8374_v41 = vpop.f32.mrb[74].mxu0 }
 0x256   : > { %v8375_v46 = vpop.f32.mrb[75].mxu0 }
 0x257   : > { %v11264_v5 = vadd.f32 %v8375_v46, %v8374_v41 }
 0x25b   : > { %v8377_v13 = vpop.f32.mrb[76].mxu0 }
 0x25c   : > { %v8378_v27 = vpop.f32.mrb[77].mxu0 }
 0x25d   : > { %v11266_v29 = vadd.f32 %v8378_v27, %v8377_v13  ;;  %v8380_v44 = vpop.f32.mrb[78].mxu0 }
 0x25e   : > { %v8381_v6 = vpop.f32.mrb[79].mxu0 }
 0x25f   : > { %v11268_v10 = vadd.f32 %v8381_v6, %v8380_v44 }
 0x263   : > { %v8383_v57 = vpop.f32.mrb[80].mxu0 }
 0x264   : > { %v2578_v7 = vpop.f32.mrb[64].mxu1  ;;  %v8384_v19 = vpop.f32.mrb[81].mxu0 }
 0x265   : > { %v2580_v0 = vpop.f32.mrb[65].mxu1  ;;  %v11272_v38 = vadd.f32 %v8384_v19, %v8383_v57  ;;  %v8386_v41 = vpop.f32.mrb[82].mxu0 }
 0x266   : > { %v2582_v2 = vpop.f32.mrb[66].mxu1  ;;  %v8387_v28 = vpop.f32.mrb[83].mxu0 }
 0x267   : > { %v11270_v48 = vpack.c.bf16 %v2582_v2, %v2578_v7  ;;  %v2584_v9 = vpop.f32.mrb[67].mxu1  ;;  %v11277_v13 = vadd.f32 %v8387_v28, %v8386_v41 }
 0x268   : > { %v11274_v46 = vpack.c.bf16 %v2584_v9, %v2580_v0 }
 0x269   : > { %8759 = vmatprep.subr.bf16.mxu0 %v11270_v48 }
 0x26a   : > { %8760 = vmatpush3.bf16.msra.mxu0 %v11270_v48 }
 0x26b   : > { %v8389_v6 = vpop.f32.mrb[84].mxu0 }
 0x26c   : > { %v2588_v27 = vpop.f32.mrb[68].mxu1  ;;  %v8390_v16 = vpop.f32.mrb[85].mxu0 }
 0x26d   : > { %v2590_v44 = vpop.f32.mrb[69].mxu1  ;;  %v11282_v19 = vadd.f32 %v8390_v16, %v8389_v6  ;;  %v8392_v57 = vpop.f32.mrb[86].mxu0 }
 0x26e   : > { %v2592_v42 = vpop.f32.mrb[70].mxu1  ;;  %v8393_v9 = vpop.f32.mrb[87].mxu0 }
 0x26f   : > { %v11280_v7 = vpack.c.bf16 %v2592_v42, %v2588_v27  ;;  %v2594_v2 = vpop.f32.mrb[71].mxu1  ;;  %v11287_v28 = vadd.f32 %v8393_v9, %v8392_v57 }
 0x270   : > { %v11284_v0 = vpack.c.bf16 %v2594_v2, %v2590_v44 }
 0x271   : > { %8761 = vmatprep.subr.bf16.mxu0 %v11280_v7 }
 0x272   : > { %13777 = vst [vmem:[#allocation41_spill] sm:$0xff] %v11284_v0  ;;  %8762 = vmatpush3.bf16.msra.mxu0 %v11280_v7 }
 0x273   : > { %v8395_v20 = vpop.f32.mrb[88].mxu0 }
 0x274   : > { %v2598_v41 = vpop.f32.mrb[72].mxu1  ;;  %v8396_v18 = vpop.f32.mrb[89].mxu0 }
 0x275   : > { %v2600_v4 = vpop.f32.mrb[73].mxu1  ;;  %v11292_v16 = vadd.f32 %v8396_v18, %v8395_v20  ;;  %v8398_v6 = vpop.f32.mrb[90].mxu0 }
 0x276   : > { %v2602_v22 = vpop.f32.mrb[74].mxu1  ;;  %v8399_v2 = vpop.f32.mrb[91].mxu0 }
 0x277   : > { %v11290_v42 = vpack.c.bf16 %v2602_v22, %v2598_v41  ;;  %v2604_v27 = vpop.f32.mrb[75].mxu1  ;;  %v11297_v57 = vadd.f32 %v8399_v2, %v8398_v6  ;;  %v11309_v6 = vpop.permute.xlu0 %3603 }
 0x278   : > { %v11294_v44 = vpack.c.bf16 %v2604_v27, %v2600_v4 }
 0x279   : > { %8763 = vmatprep.subr.bf16.mxu0 %v11290_v42 }
 0x27a   : > { %13778 = vst [vmem:[#allocation42_spill] sm:$0xff] %v11294_v44  ;;  %8764 = vmatpush3.bf16.msra.mxu0 %v11290_v42 }
 0x27b   : > { %v8401_v53 = vpop.f32.mrb[92].mxu0 }
 0x27c   : > { %v2608_v9 = vpop.f32.mrb[76].mxu1  ;;  %v8402_v26 = vpop.f32.mrb[93].mxu0 }
 0x27d   : > { %v2610_v11 = vpop.f32.mrb[77].mxu1  ;;  %v11300_v22 = vadd.f32 %v8402_v26, %v8401_v53  ;;  %v8404_v41 = vpop.f32.mrb[94].mxu0 }
 0x27e   : > { %v2612_v39 = vpop.f32.mrb[78].mxu1  ;;  %v8405_v4 = vpop.f32.mrb[95].mxu0 }
 0x27f   : > { %v11302_v18 = vpack.c.bf16 %v2612_v39, %v2608_v9  ;;  %v2614_v20 = vpop.f32.mrb[79].mxu1  ;;  %v11306_v63 = vadd.f32 %v8405_v4, %v8404_v41 }
 0x280   : > { %v11304_v27 = vpack.c.bf16 %v2614_v20, %v2610_v11 }
 0x281   : > { %8765 = vmatprep.subr.bf16.mxu0 %v11302_v18 }
 0x282   : > { %13779 = vst [vmem:[#allocation43_spill] sm:$0xff] %v11304_v27  ;;  %8766 = vmatpush3.bf16.msra.mxu0 %v11302_v18 }
 0x283   : > { %9343 = vmatprep.subr.msk.bf16.mxu0 %vm3038_vm0, %v11309_v6 }
 0x284   : > { %v2618_v26 = vpop.f32.mrb[80].mxu1 }
 0x285   : > { %v2620_v53 = vpop.f32.mrb[81].mxu1 }
 0x286   : > { %v2622_v2 = vpop.f32.mrb[82].mxu1 }
 0x287   : > { %v11314_v39 = vpack.c.bf16 %v2622_v2, %v2618_v26  ;;  %v2624_v9 = vpop.f32.mrb[83].mxu1 }
 0x288   : > { %v11316_v51 = vpack.c.bf16 %v2624_v9, %v2620_v53 }
 0x289   : > { %8775 = vmatprep.subr.bf16.mxu1 %v11314_v39 }
 0x28a   : > { %13780 = vst [vmem:[#allocation44_spill] sm:$0xff] %v11316_v51  ;;  %8776 = vmatpush3.bf16.msra.mxu1 %v11314_v39 }
 0x28c   : > { %v2628_v11 = vpop.f32.mrb[84].mxu1 }
 0x28d   : > { %v2630_v41 = vpop.f32.mrb[85].mxu1 }
 0x28e   : > { %v2632_v20 = vpop.f32.mrb[86].mxu1 }
 0x28f   : > { %v11320_v4 = vpack.c.bf16 %v2632_v20, %v2628_v11  ;;  %v2634_v34 = vpop.f32.mrb[87].mxu1 }
 0x290   : > { %v11322_v49 = vpack.c.bf16 %v2634_v34, %v2630_v41 }
 0x291   : > { %8777 = vmatprep.subr.bf16.mxu1 %v11320_v4 }
 0x292   : > { %13781 = vst [vmem:[#allocation45_spill] sm:$0xff] %v11322_v49  ;;  %8778 = vmatpush3.bf16.msra.mxu1 %v11320_v4 }
 0x294   : > { %v2638_v26 = vpop.f32.mrb[88].mxu1 }
 0x295   : > { %v2640_v2 = vpop.f32.mrb[89].mxu1 }
 0x296   : > { %v2642_v53 = vpop.f32.mrb[90].mxu1 }
 0x297   : > { %v11326_v9 = vpack.c.bf16 %v2642_v53, %v2638_v26  ;;  %v2644_v15 = vpop.f32.mrb[91].mxu1 }
 0x298   : > { %v11328_v23 = vpack.c.bf16 %v2644_v15, %v2640_v2 }
 0x299   : > { %8779 = vmatprep.subr.bf16.mxu1 %v11326_v9 }
 0x29a   : > { %13782 = vst [vmem:[#allocation46_spill] sm:$0xff] %v11328_v23  ;;  %8780 = vmatpush3.bf16.msra.mxu1 %v11326_v9 }
 0x29c   : > { %v2648_v11 = vpop.f32.mrb[92].mxu1 }
 0x29d   : > { %v2650_v20 = vpop.f32.mrb[93].mxu1 }
 0x29e   : > { %v2652_v34 = vpop.f32.mrb[94].mxu1 }
 0x29f   : > { %v11332_v41 = vpack.c.bf16 %v2652_v34, %v2648_v11  ;;  %v2654_v49 = vpop.f32.mrb[95].mxu1 }
 0x2a0   : > { %v11334_v40 = vpack.c.bf16 %v2654_v49, %v2650_v20 }
 0x2a1   : > { %8781 = vmatprep.subr.bf16.mxu1 %v11332_v41 }
 0x2a2   : > { %13783 = vst [vmem:[#allocation47_spill] sm:$0xff] %v11334_v40  ;;  %8782 = vmatpush3.bf16.msra.mxu1 %v11332_v41 }
 0x2a4   : > { %v8713_v26 = vpop.f32.mrb[96].mxu1 }
 0x2a5   : > { %v2788_v53 = vpop.f32.mrb[97].mxu1  ;;  %v2797_v15 = vadd.f32 %v8713_v26, %v11258_v36 }
 0x2a6   : > { %v8714_v2 = vpop.f32.mrb[98].mxu1  ;;  %v2789_v23 = vadd.f32 %v11254_v1, %v2788_v53 }
 0x2a7   : > { %v2791_v51 = vpop.f32.mrb[99].mxu1  ;;  %v2800_v8 = vadd.f32 %v8714_v2, %v11260_v30 }
 0x2a8   : > { %v2792_v11 = vadd.f32 %v11256_v45, %v2791_v51 }
 0x2a9   : > { %v11342_v34 = vpack.c.bf16 %v2800_v8, %v2797_v15 }
 0x2aa   : > { %v11344_v49 = vpack.c.bf16 %v2792_v11, %v2789_v23 }
 0x2ab   : > { %13784 = vst [vmem:[#allocation48_spill] sm:$0xff] %v11342_v34 }
 0x2ac   : > { %13785 = vst [vmem:[#allocation49_spill] sm:$0xff] %v11344_v49  ;;  %v8717_v20 = vpop.f32.mrb[100].mxu1 }
 0x2ad   : > { %v2804_v40 = vpop.f32.mrb[101].mxu1  ;;  %v2813_v52 = vadd.f32 %v8717_v20, %v11266_v29 }
 0x2ae   : > { %v8718_v60 = vpop.f32.mrb[102].mxu1  ;;  %v2805_v14 = vadd.f32 %v11262_v58, %v2804_v40 }
 0x2af   : > { %v2807_v36 = vpop.f32.mrb[103].mxu1  ;;  %v2816_v26 = vadd.f32 %v8718_v60, %v11268_v10 }
 0x2b0   : > { %v2808_v1 = vadd.f32 %v11264_v5, %v2807_v36 }
 0x2b1   : > { %v11350_v53 = vpack.c.bf16 %v2816_v26, %v2813_v52 }
 0x2b2   : > { %v11352_v30 = vpack.c.bf16 %v2808_v1, %v2805_v14 }
 0x2b3   : > { %13786 = vst [vmem:[#allocation50_spill] sm:$0xff] %v11350_v53 }
 0x2b4   : > { %13787 = vst [vmem:[#allocation51_spill] sm:$0xff] %v11352_v30  ;;  %v8721_v51 = vpop.f32.mrb[104].mxu1 }
 0x2b5   : > { %v2820_v8 = vpop.f32.mrb[105].mxu1  ;;  %v2829_v23 = vadd.f32 %v8721_v51, %v11282_v19 }
 0x2b6   : > { %v8722_v45 = vpop.f32.mrb[106].mxu1  ;;  %v2821_v15 = vadd.f32 %v11272_v38, %v2820_v8 }
 0x2b7   : > { %v2823_v29 = vpop.f32.mrb[107].mxu1  ;;  %v2832_v2 = vadd.f32 %v8722_v45, %v11287_v28 }
 0x2b8   : > { %v2824_v40 = vadd.f32 %v11277_v13, %v2823_v29  ;;  %v2995_v13 = vlaneseq }
 0x2b9   : > { %v11358_v58 = vpack.c.bf16 %v2832_v2, %v2829_v23 }
 0x2ba   : > { %v11360_v60 = vpack.c.bf16 %v2824_v40, %v2821_v15  ;;  %v11370_v26 = vshrl.u32 %v2995_v13, 7  ;;  %v3005_v51 = vand.u32 127, %v2995_v13 }
 0x2bb   : > { %13788 = vst [vmem:[#allocation52_spill] sm:$0xff] %v11358_v58 }
 0x2bc   : > { %13789 = vst [vmem:[#allocation53_spill] sm:$0xff] %v11360_v60  ;;  %v8725_v52 = vpop.f32.mrb[108].mxu1  ;;  %13792 = vst [vmem:[#allocation56_spill] sm:$0xff] %v11370_v26  ;;  %v2998_v1 = vadd.s32 16, %v11370_v26  ;;  %v2997_v8 = vadd.s32 8, %v11370_v26  ;;  %vm11380_vm2 = vcmp.le.s32.totalorder %v3005_v51, %v11370_v26 }
 0x2bd   : > { %v2836_v5 = vpop.f32.mrb[109].mxu1  ;;  %v2845_v14 = vadd.f32 %v8725_v52, %v11300_v22  ;;  %v2999_v22 = vadd.s32 24, %v11370_v26 }
 0x2be   : > { %v8726_v10 = vpop.f32.mrb[110].mxu1  ;;  %v2837_v11 = vadd.f32 %v11292_v16, %v2836_v5  ;;  %vm11375_vm1 = vcmp.le.s32.totalorder %v3005_v51, %v2998_v1  ;;  %vm11392_vm4 = vcmp.le.s32.totalorder %v3005_v51, %v2997_v8  ;;  %v3002_v5 = vadd.s32 48, %v11370_v26 }
 0x2bf   : > { %v2839_v19 = vpop.f32.mrb[111].mxu1  ;;  %v2848_v20 = vadd.f32 %v8726_v10, %v11306_v63  ;;  %vm11384_vm3 = vcmp.le.s32.totalorder %v3005_v51, %v2999_v22  ;;  %v3001_v22 = vadd.s32 40, %v11370_v26 }
 0x2c0   : > { %v2840_v38 = vadd.f32 %v11297_v57, %v2839_v19  ;;  %vm11417_vm5 = vcmp.le.s32.totalorder %v3005_v51, %v3002_v5 }
 0x2c1   : > { %v11366_v36 = vpack.c.bf16 %v2848_v20, %v2845_v14  ;;  %v3003_v20 = vadd.s32 56, %v11370_v26  ;;  %vm11436_vm8 = vcmp.le.s32.totalorder %v3005_v51, %v3001_v22 }
 0x2c2   : > { %v11368_v28 = vpack.c.bf16 %v2840_v38, %v2837_v11  ;;  %v3000_v38 = vadd.s32 32, %v11370_v26 }
 0x2c3   : > { %13790 = vst [vmem:[#allocation54_spill] sm:$0xff] %v11366_v36  ;;  %vm11424_vm6 = vcmp.le.s32.totalorder %v3005_v51, %v3003_v20 }
 0x2c4   : > { %13791 = vst [vmem:[#allocation55_spill] sm:$0xff] %v11368_v28  ;;  %vm11432_vm7 = vcmp.le.s32.totalorder %v3005_v51, %v3000_v38 }
 0x2dd   : > { %v8737_v57 = vpop.f32.mrb[112].mxu1 }
 0x2de   : > { %v11390_v45 = vsel %vm11375_vm1, %v8737_v57, -inf  ;;  %v3097_v15 = vpop.f32.mrb[113].mxu1 }
 0x2df   : > { %v11398_v2 = vsel %vm11380_vm2, %v3097_v15, -inf  ;;  %v8738_v40 = vpop.f32.mrb[114].mxu1  ;;  %v3255_v52 = vsel %vm3038_vm0, %v11390_v45, -inf }
 0x2e0   : > { %v11405_v14 = vsel %vm11384_vm3, %v8738_v40, -inf  ;;  %3256 = vmax.xlane.f32.xlu1 %v3255_v52  ;;  %v3100_v10 = vpop.f32.mrb[115].mxu1  ;;  %v3249_v11 = vsel %vm3038_vm0, %v11398_v2, -inf }
 0x2e1   : > { %v11411_v19 = vsel %vm11392_vm4, %v3100_v10, -inf  ;;  %3250 = vmax.xlane.f32.xlu0 %v3249_v11  ;;  %v3258_v13 = vsel %vm3038_vm0, %v11405_v14, -inf }
 0x2e2   : > { %v3252_v8 = vsel %vm3038_vm0, %v11411_v19, -inf }
 0x2e4   : > { %3259 = vmax.xlane.f32.xlu1 %v3258_v13 }
 0x2e5   : > { %3253 = vmax.xlane.f32.xlu0 %v3252_v8  ;;  %v8741_v57 = vpop.f32.mrb[116].mxu1 }
 0x2e6   : > { %v11430_v40 = vsel %vm11417_vm5, %v8741_v57, -inf  ;;  %v3113_v5 = vpop.f32.mrb[117].mxu1 }
 0x2e7   : > { %v8742_v10 = vpop.f32.mrb[118].mxu1  ;;  %v3267_v20 = vsel %vm3038_vm0, %v11430_v40, -inf  ;;  %v11448_v38 = vsel %vm11432_vm7, %v3113_v5, -inf }
 0x2e8   : > { %v11444_v13 = vsel %vm11424_vm6, %v8742_v10, -inf  ;;  %v3116_v8 = vpop.f32.mrb[119].mxu1  ;;  %v3261_v22 = vsel %vm3038_vm0, %v11448_v38, -inf }
 0x2e9   : > { %3268 = vmax.xlane.f32.xlu0 %v3267_v20  ;;  %v3270_v57 = vsel %vm3038_vm0, %v11444_v13, -inf  ;;  %v11454_v51 = vsel %vm11436_vm8, %v3116_v8, -inf }
 0x2ea   : > { %3271 = vmax.xlane.f32.xlu1 %v3270_v57  ;;  %v3264_v10 = vsel %vm3038_vm0, %v11454_v51, -inf }
 0x2ed   : > { %3262 = vmax.xlane.f32.xlu0 %v3261_v22 }
 0x2ee   : > { %3265 = vmax.xlane.f32.xlu1 %v3264_v10 }
 0x2fd   : > { %v8753_v26 = vpop.f32.mrb[96].mxu0 }
 0x2fe   : > { %v11462_v5 = vsel %vm11375_vm1, %v8753_v26, -inf  ;;  %v3186_v20 = vpop.f32.mrb[97].mxu0 }
 0x2ff   : > { %v8754_v36 = vpop.f32.mrb[98].mxu0  ;;  %v3279_v8 = vsel %vm3038_vm0, %v11462_v5, -inf  ;;  %v11468_v57 = vsel %vm11380_vm2, %v3186_v20, -inf }
 0x300   : > { %v11472_v22 = vsel %vm11384_vm3, %v8754_v36, -inf  ;;  %3280 = vmax.xlane.f32.xlu0 %v3279_v8  ;;  %v3189_v10 = vpop.f32.mrb[99].mxu0  ;;  %v3273_v58 = vsel %vm3038_vm0, %v11468_v57, -inf }
 0x301   : > { %v3282_v28 = vsel %vm3038_vm0, %v11472_v22, -inf  ;;  %v11478_v26 = vsel %vm11392_vm4, %v3189_v10, -inf }
 0x302   : > { %3283 = vmax.xlane.f32.xlu1 %v3282_v28  ;;  %v3276_v60 = vsel %vm3038_vm0, %v11478_v26, -inf }
 0x304   : > { %3274 = vmax.xlane.f32.xlu0 %v3273_v58 }
 0x305   : > { %v8757_v20 = vpop.f32.mrb[100].mxu0 }
 0x306   : > { %v11486_v36 = vsel %vm11417_vm5, %v8757_v20, -inf  ;;  %3277 = vmax.xlane.f32.xlu1 %v3276_v60  ;;  %v3202_v8 = vpop.f32.mrb[101].mxu0 }
 0x307   : > { %v8758_v53 = vpop.f32.mrb[102].mxu0  ;;  %v3291_v10 = vsel %vm3038_vm0, %v11486_v36, -inf  ;;  %v11492_v28 = vsel %vm11432_vm7, %v3202_v8, -inf }
 0x308   : > { %3292 = vmax.xlane.f32.xlu0 %v3291_v10  ;;  %v3205_v58 = vpop.f32.mrb[103].mxu0  ;;  %v3285_v30 = vsel %vm3038_vm0, %v11492_v28, -inf  ;;  %v11506_v60 = vsel %vm11424_vm6, %v8758_v53, -inf }
 0x309   : > { %v3294_v20 = vsel %vm3038_vm0, %v11506_v60, -inf }
 0x30c   : > { %3286 = vmax.xlane.f32.xlu0 %v3285_v30  ;;  %v11512_v30 = vsel %vm11436_vm8, %v3205_v58, -inf }
 0x317   : > { %3593 = vrot.lane.b32.xlu1 %v11059_v61, %s10597_s21  ;;  %v3288_v61 = vsel %vm3038_vm0, %v11512_v30, -inf }
 0x31b   : > { %3716 = vrot.lane.b32.xlu1 %v11182_v21, %s10597_s21  ;;  %v11516_v21 = vpop.permute.xlu0 %3607 }
 0x31f   : > { %3718 = vrot.lane.b32.xlu1 %v11198_v50, %s10597_s21  ;;  %v11518_v50 = vpop.permute.xlu1 %3605 }
 0x322   : > { %3591 = vrot.lane.b32.xlu0 %v11045_v31, %s10597_s21  ;;  %v11520_v31 = vpop.permute.xlu0 %3609 }
 0x343   : > { %3295 = vmax.xlane.f32.xlu1 %v3294_v20 }
 0x347   : > { %3289 = vmax.xlane.f32.xlu1 %v3288_v61 }
 0x36d   : > { %v3257_v53 = vpop.xlane.xlu1 %3256 }
 0x36e   : > { %v3299_v8 = vsub.f32 %v11390_v45, %v3257_v53  ;;  %v3251_v10 = vpop.xlane.xlu0 %3250 }
 0x36f   : > { %v3297_v34 = vsub.f32 %v11398_v2, %v3251_v10 }
 0x370   : > { %v3317_v49 = vmul.f32 1.442695, %v3299_v8 }
 0x371   : > { %v3313_v58 = vmul.f32 1.442695, %v3297_v34  ;;  %v3260_v27 = vpop.xlane.xlu1 %3259 }
 0x372   : > { %10023 = vpow2.f32 %v3317_v49  ;;  %v3300_v20 = vsub.f32 %v11405_v14, %v3260_v27  ;;  %v3254_v56 = vpop.xlane.xlu0 %3253 }
 0x373   : > { %v3298_v61 = vsub.f32 %v11411_v19, %v3254_v56  ;;  %10025 = vpow2.f32 %v3313_v58 }
 0x374   : > { %v3319_v44 = vmul.f32 1.442695, %v3300_v20 }
 0x375   : > { %v3315_v0 = vmul.f32 1.442695, %v3298_v61 }
 0x376   : > { %10027 = vpow2.f32 %v3319_v44  ;;  %v3269_v25 = vpop.xlane.xlu0 %3268 }
 0x377   : > { %v3303_v62 = vsub.f32 %v11430_v40, %v3269_v25  ;;  %v3272_v45 = vpop.xlane.xlu1 %3271  ;;  %10029 = vpow2.f32 %v3315_v0 }
 0x378   : > { %v3304_v2 = vsub.f32 %v11444_v13, %v3272_v45 }
 0x379   : > { %v3325_v53 = vmul.f32 1.442695, %v3303_v62 }
 0x37a   : > { %v3327_v34 = vmul.f32 1.442695, %v3304_v2  ;;  %v3263_v8 = vpop.xlane.xlu0 %3262 }
 0x37b   : > { %10031 = vpow2.f32 %v3325_v53  ;;  %v3301_v27 = vsub.f32 %v11448_v38, %v3263_v8  ;;  %v3266_v49 = vpop.xlane.xlu1 %3265 }
 0x37c   : > { %v11529_v14 = vpop.eup %10023  ;;  %10033 = vpow2.f32 %v3327_v34  ;;  %v3302_v56 = vsub.f32 %v11454_v51, %v3266_v49 }
 0x37d   : > { %v3321_v44 = vmul.f32 1.442695, %v3301_v27  ;;  %v3351_v25 = vsel %vm3038_vm0, %v11529_v14, 0.0  ;;  %v11534_v19 = vpop.eup %10025 }
 0x37e   : > { %v3323_v0 = vmul.f32 1.442695, %v3302_v56  ;;  %3352 = vadd.xlane.f32.xlu0 %v3351_v25  ;;  %v3345_v40 = vsel %vm3038_vm0, %v11534_v19, 0.0 }
 0x37f   : > { %10035 = vpow2.f32 %v3321_v44 }
 0x380   : > { %v11536_v62 = vpop.eup %10027  ;;  %10037 = vpow2.f32 %v3323_v0 }
 0x381   : > { %v3354_v13 = vsel %vm3038_vm0, %v11536_v62, 0.0  ;;  %v11542_v38 = vpop.eup %10029 }
 0x382   : > { %3346 = vadd.xlane.f32.xlu0 %v3345_v40  ;;  %3355 = vadd.xlane.f32.xlu1 %v3354_v13  ;;  %v3348_v10 = vsel %vm3038_vm0, %v11542_v38, 0.0 }
 0x385   : > { %v11544_v51 = vpop.eup %10031 }
 0x386   : > { %v11548_v58 = vpop.eup %10033  ;;  %3349 = vadd.xlane.f32.xlu1 %v3348_v10  ;;  %v3363_v20 = vsel %vm3038_vm0, %v11544_v51, 0.0 }
 0x387   : > { %3364 = vadd.xlane.f32.xlu0 %v3363_v20  ;;  %v3366_v45 = vsel %vm3038_vm0, %v11548_v58, 0.0 }
 0x389   : > { %v11552_v61 = vpop.eup %10035 }
 0x38a   : > { %v11556_v2 = vpop.eup %10037  ;;  %3367 = vadd.xlane.f32.xlu1 %v3366_v45  ;;  %v3357_v53 = vsel %vm3038_vm0, %v11552_v61, 0.0 }
 0x38b   : > { %3358 = vadd.xlane.f32.xlu0 %v3357_v53  ;;  %v3360_v8 = vsel %vm3038_vm0, %v11556_v2, 0.0 }
 0x38d   : > { %v3281_v34 = vpop.xlane.xlu0 %3280 }
 0x38e   : > { %v3307_v27 = vsub.f32 %v11462_v5, %v3281_v34  ;;  %3361 = vadd.xlane.f32.xlu1 %v3360_v8 }
 0x38f   : > { %v3284_v49 = vpop.xlane.xlu1 %3283 }
 0x390   : > { %v3333_v56 = vmul.f32 1.442695, %v3307_v27  ;;  %v3308_v44 = vsub.f32 %v11472_v22, %v3284_v49 }
 0x391   : > { %v3275_v25 = vpop.xlane.xlu0 %3274 }
 0x392   : > { %10039 = vpow2.f32 %v3333_v56  ;;  %v3305_v0 = vsub.f32 %v11468_v57, %v3275_v25  ;;  %v3335_v13 = vmul.f32 1.442695, %v3308_v44 }
 0x393   : > { %v3278_v40 = vpop.xlane.xlu1 %3277 }
 0x394   : > { %v3329_v10 = vmul.f32 1.442695, %v3305_v0  ;;  %v3306_v20 = vsub.f32 %v11478_v26, %v3278_v40 }
 0x395   : > { %v3293_v27 = vpop.xlane.xlu0 %3292 }
 0x396   : > { %10041 = vpow2.f32 %v3329_v10  ;;  %v3331_v53 = vmul.f32 1.442695, %v3306_v20  ;;  %v3311_v25 = vsub.f32 %v11486_v36, %v3293_v27 }
 0x397   : > { %v11566_v45 = vpop.permute.xlu1 %3593  ;;  %10043 = vpow2.f32 %v3335_v13 }
 0x398   : > { %10045 = vpow2.f32 %v3331_v53  ;;  %v3341_v0 = vmul.f32 1.442695, %v3311_v25 }
 0x39a   : > { %10047 = vpow2.f32 %v3341_v0 }
 0x39b   : > { %v11568_v5 = vpop.permute.xlu1 %3716 }
 0x39c   : > { %v11570_v34 = vpop.eup %10039  ;;  %9347 = vmatprep.subr.msk.bf16.mxu1 %vm3038_vm0, %v11568_v5 }
 0x39d   : > { %v3375_v57 = vsel %vm3038_vm0, %v11570_v34, 0.0 }
 0x39e   : > { %3376 = vadd.xlane.f32.xlu1 %v3375_v57 }
 0x39f   : > { %v11602_v57 = vpop.permute.xlu1 %3718 }
 0x3a0   : > { %v11576_v22 = vpop.eup %10041 }
 0x3a1   : > { %3720 = vrot.lane.b32.xlu0 %v11212_v59, %s10597_s21  ;;  %v3369_v26 = vsel %vm3038_vm0, %v11576_v22, 0.0  ;;  %v11582_v8 = vpop.eup %10043  ;;  %v3287_v59 = vpop.xlane.xlu0 %3286 }
 0x3a2   : > { %3370 = vadd.xlane.f32.xlu1 %v3369_v26  ;;  %v3378_v49 = vsel %vm3038_vm0, %v11582_v8, 0.0  ;;  %v11586_v56 = vpop.eup %10045  ;;  %v3309_v40 = vsub.f32 %v11492_v28, %v3287_v59 }
 0x3a3   : > { %v3372_v44 = vsel %vm3038_vm0, %v11586_v56, 0.0 }
 0x3a4   : > { %v3337_v13 = vmul.f32 1.442695, %v3309_v40  ;;  %v11594_v10 = vpop.eup %10047 }
 0x3a5   : > { %v3387_v20 = vsel %vm3038_vm0, %v11594_v10, 0.0 }
 0x3a6   : > { %3379 = vadd.xlane.f32.xlu1 %v3378_v49  ;;  %10049 = vpow2.f32 %v3337_v13 }
 0x3aa   : > { %3373 = vadd.xlane.f32.xlu1 %v3372_v44 }
 0x3b0   : > { %v11598_v53 = vpop.eup %10049 }
 0x3b1   : > { %v3381_v36 = vsel %vm3038_vm0, %v11598_v53, 0.0 }
 0x3bb   : > { %3595 = vrot.lane.b32.xlu1 %v11076_v24, %s10597_s21 }
 0x3c0   : > { %3388 = vadd.xlane.f32.xlu0 %v3387_v20 }
 0x3c4   : > { %3382 = vadd.xlane.f32.xlu0 %v3381_v36 }
 0x3d0   : > { %v3296_v28 = vpop.xlane.xlu1 %3295 }
 0x3d1   : > { %v3312_v26 = vsub.f32 %v11506_v60, %v3296_v28  ;;  %v3592_v60 = vpop.permute.xlu0 %3591 }
 0x3d3   : > { %v3343_v27 = vmul.f32 1.442695, %v3312_v26 }
 0x3d4   : > { %v3290_v49 = vpop.xlane.xlu1 %3289 }
 0x3d5   : > { %10051 = vpow2.f32 %v3343_v27  ;;  %v3310_v24 = vsub.f32 %v11512_v30, %v3290_v49 }
 0x3d7   : > { %v3339_v44 = vmul.f32 1.442695, %v3310_v24 }
 0x3d9   : > { %10053 = vpow2.f32 %v3339_v44 }
 0x3df   : > { %v11606_v25 = vpop.eup %10051 }
 0x3e0   : > { %v3390_v59 = vsel %vm3038_vm0, %v11606_v25, 0.0 }
 0x3e1   : > { %3391 = vadd.xlane.f32.xlu0 %v3390_v59 }
 0x3e3   : > { %v11610_v0 = vpop.eup %10053 }
 0x3e4   : > { %v3384_v40 = vsel %vm3038_vm0, %v11610_v0, 0.0 }
 0x3e5   : > { %3385 = vadd.xlane.f32.xlu1 %v3384_v40 }
 0x3f6   : > { %3722 = vrot.lane.b32.xlu1 %v11224_v32, %s10597_s21 }
 0x3f7   : > { %3597 = vrot.lane.b32.xlu0 %v11096_v35, %s10597_s21 }
 0x3fa   : > { %3706 = vrot.lane.b32.xlu1 %v11121_v17, %s10597_s21 }
 0x3fb   : > { %3704 = vrot.lane.b32.xlu0 %v11108_v3, %s10597_s21 }
 0x3fe   : > { %3710 = vrot.lane.b32.xlu1 %v11141_v37, %s10597_s21 }
 0x3ff   : > { %3708 = vrot.lane.b32.xlu0 %v11131_v33, %s10597_s21 }
 0x40b   : > { %v3353_v30 = vpop.xlane.xlu0 %3352 }
 0x40f   : > { %v3347_v13 = vpop.xlane.xlu0 %3346  ;;  %v3356_v20 = vpop.xlane.xlu1 %3355 }
 0x410   : > { %10055 = vrcp.f32 %v3356_v20  ;;  %v3624_v20 = vsel %vm3038_vm0, %v11309_v6, 0  ;;  %v3627_v6 = vsel %vm3038_vm0, %v11518_v50, 0 }
 0x411   : > { %10057 = vrcp.f32 %v3347_v13 }
 0x412   : > { %10059 = vrcp.f32 %v3353_v30 }
 0x413   : > { %v3350_v35 = vpop.xlane.xlu1 %3349 }
 0x414   : > { %10061 = vrcp.f32 %v3350_v35  ;;  %v3365_v32 = vpop.xlane.xlu0 %3364 }
 0x417   : > { %v3368_v17 = vpop.xlane.xlu1 %3367 }
 0x418   : > { %v3359_v36 = vpop.xlane.xlu0 %3358  ;;  %10063 = vrcp.f32 %v3368_v17 }
 0x419   : > { %10065 = vrcp.f32 %v3359_v36 }
 0x41a   : > { %v10056_v3 = vpop.eup %10055  ;;  %10067 = vrcp.f32 %v3365_v32 }
 0x41b   : > { %v3362_v37 = vpop.xlane.xlu1 %3361  ;;  %v10058_v28 = vpop.eup %10057  ;;  %v3412_v27 = vmul.f32 %v10056_v3, %v11536_v62 }
 0x41c   : > { %10069 = vrcp.f32 %v3362_v37  ;;  %v10060_v33 = vpop.eup %10059  ;;  %v3409_v49 = vmul.f32 %v10058_v28, %v11534_v19 }
 0x41d   : > { %v3411_v44 = vmul.f32 %v10060_v33, %v11529_v14 }
 0x41e   : > { %v10062_v26 = vpop.eup %10061 }
 0x41f   : > { %v3410_v24 = vmul.f32 %v10062_v26, %v11542_v38  ;;  %v3426_v40 = vpack.c.bf16 %v3412_v27, %v3411_v44 }
 0x421   : > { %v3425_v59 = vpack.c.bf16 %v3410_v24, %v3409_v49 }
 0x422   : > { %v10064_v30 = vpop.eup %10063 }
 0x423   : > { %8767 = vmatprep.mubr.msk.bf16.mxu0 %vm3038_vm0, %v3425_v59  ;;  %v10066_v13 = vpop.eup %10065  ;;  %v3416_v19 = vmul.f32 %v10064_v30, %v11548_v58 }
 0x424   : > { %8768 = vmatmul.mubr.msk.bf16.vlgmr.msra.gmra.mrb[104].mxu0 %vm3038_vm0, %v3426_v40  ;;  %v10068_v35 = vpop.eup %10067  ;;  %v3413_v14 = vmul.f32 %v10066_v13, %v11552_v61 }
 0x425   : > { %8792 = vmatpush3.bf16.xpose.msra.mxu0 %v3624_v20  ;;  %v3415_v32 = vmul.f32 %v10068_v35, %v11544_v51  ;;  %v3630_v51 = vsel %vm3038_vm0, %v11516_v21, 0 }
 0x426   : > { %v10070_v62 = vpop.eup %10069  ;;  %9344 = vmatprep.subr.msk.bf16.mxu0 %vm3038_vm0, %v11518_v50  ;;  %v3633_v50 = vsel %vm3038_vm0, %v11520_v31, 0 }
 0x427   : > { %v3414_v38 = vmul.f32 %v10070_v62, %v11556_v2  ;;  %v3428_v36 = vpack.c.bf16 %v3416_v19, %v3415_v32 }
 0x429   : > { %v3427_v17 = vpack.c.bf16 %v3414_v38, %v3413_v14 }
 0x42b   : > { %8771 = vmatprep.mubr.msk.bf16.mxu0 %vm3038_vm0, %v3427_v17  ;;  %v3377_v3 = vpop.xlane.xlu1 %3376 }
 0x42c   : > { %8772 = vmatmul.mubr.msk.bf16.gmra.mrb[108].mxu0 %vm3038_vm0, %v3428_v36 }
 0x42d   : > { %8794 = vmatpush3.bf16.xpose.msra.mxu0 %v3627_v6  ;;  %8799 = vmatprep.mubr.msk.bf16.mxu0 %vm3038_vm0, %v3592_v60 }
 0x42e   : > { %9345 = vmatprep.subr.msk.bf16.mxu0 %vm3038_vm0, %v11516_v21 }
 0x42f   : > { %v3371_v58 = vpop.xlane.xlu1 %3370 }
 0x433   : > { %v3380_v61 = vpop.xlane.xlu1 %3379 }
 0x434   : > { %10071 = vrcp.f32 %v3380_v61 }
 0x435   : > { %8796 = vmatpush3.bf16.xpose.msra.mxu0 %v3630_v51  ;;  %10073 = vrcp.f32 %v3371_v58 }
 0x436   : > { %9346 = vmatprep.subr.msk.bf16.mxu0 %vm3038_vm0, %v11520_v31  ;;  %10075 = vrcp.f32 %v3377_v3 }
 0x437   : > { %v3374_v2 = vpop.xlane.xlu1 %3373 }
 0x438   : > { %10077 = vrcp.f32 %v3374_v2 }
 0x43b   : > { %v3596_v24 = vpop.permute.xlu1 %3595 }
 0x43d   : > { %8798 = vmatpush3.bf16.xpose.msra.mxu0 %v3633_v50 }
 0x43e   : > { %v10072_v60 = vpop.eup %10071 }
 0x43f   : > { %v10074_v37 = vpop.eup %10073  ;;  %v3420_v26 = vmul.f32 %v10072_v60, %v11582_v8  ;;  %v3737_v8 = vsel %vm3038_vm0, %v11568_v5, 0 }
 0x440   : > { %v10076_v28 = vpop.eup %10075  ;;  %v3417_v21 = vmul.f32 %v10074_v37, %v11576_v22  ;;  %v3721_v22 = vpop.permute.xlu0 %3720 }
 0x441   : > { %v3419_v49 = vmul.f32 %v10076_v28, %v11570_v34  ;;  %v3740_v34 = vsel %vm3038_vm0, %v11602_v57, 0 }
 0x442   : > { %v10078_v33 = vpop.eup %10077 }
 0x443   : > { %v3418_v27 = vmul.f32 %v10078_v33, %v11586_v56  ;;  %v3430_v44 = vpack.c.bf16 %v3420_v26, %v3419_v49 }
 0x444   : > { %8800 = vmatmul.mubr.msk.bf16.vlgmr.msra.gmra.mrb[112].mxu0 %vm3038_vm0, %v11566_v45  ;;  %v3743_v45 = vsel %vm3038_vm0, %v3721_v22, 0 }
 0x445   : > { %8803 = vmatprep.mubr.msk.bf16.mxu0 %vm3038_vm0, %v3596_v24  ;;  %v3429_v31 = vpack.c.bf16 %v3418_v27, %v3417_v21 }
 0x447   : > { %8783 = vmatprep.mubr.msk.bf16.mxu1 %vm3038_vm0, %v3429_v31 }
 0x448   : > { %8784 = vmatmul.mubr.msk.bf16.vlgmr.msra.gmra.mrb[120].mxu1 %vm3038_vm0, %v3430_v44 }
 0x449   : > { %8808 = vmatpush3.bf16.xpose.msra.mxu1 %v3737_v8 }
 0x44a   : > { %9348 = vmatprep.subr.msk.bf16.mxu1 %vm3038_vm0, %v11602_v57 }
 0x44d   : > { %v3389_v56 = vpop.xlane.xlu0 %3388 }
 0x451   : > { %8810 = vmatpush3.bf16.xpose.msra.mxu1 %v3740_v34  ;;  %v3383_v59 = vpop.xlane.xlu0 %3382 }
 0x452   : > { %9349 = vmatprep.subr.msk.bf16.mxu1 %vm3038_vm0, %v3721_v22 }
 0x459   : > { %8812 = vmatpush3.bf16.xpose.msra.mxu1 %v3743_v45 }
 0x46e   : > { %v3392_v40 = vpop.xlane.xlu0 %3391 }
 0x46f   : > { %10079 = vrcp.f32 %v3392_v40 }
 0x470   : > { %10081 = vrcp.f32 %v3383_v59 }
 0x471   : > { %10083 = vrcp.f32 %v3389_v56 }
 0x472   : > { %v3598_v5 = vpop.permute.xlu0 %3597  ;;  %v3386_v30 = vpop.xlane.xlu1 %3385 }
 0x473   : > { %10085 = vrcp.f32 %v3386_v30  ;;  %8804 = vmatmul.mubr.msk.bf16.gmra.mrb[116].mxu0 %vm3038_vm0, %v3598_v5 }
 0x476   : > { %v3723_v13 = vpop.permute.xlu1 %3722  ;;  %v3705_v6 = vpop.permute.xlu0 %3704 }
 0x477   : > { %9350 = vmatprep.subr.msk.bf16.mxu1 %vm3038_vm0, %v3723_v13  ;;  %v3746_v57 = vsel %vm3038_vm0, %v3723_v13, 0 }
 0x478   : > { %8814 = vmatpush3.bf16.xpose.msra.mxu1 %v3746_v57 }
 0x479   : > { %v10080_v20 = vpop.eup %10079 }
 0x47a   : > { %v10082_v35 = vpop.eup %10081  ;;  %v3424_v14 = vmul.f32 %v10080_v20, %v11606_v25  ;;  %v3707_v58 = vpop.permute.xlu1 %3706 }
 0x47b   : > { %v10084_v62 = vpop.eup %10083  ;;  %v3421_v38 = vmul.f32 %v10082_v35, %v11598_v53  ;;  %v3709_v61 = vpop.permute.xlu0 %3708 }
 0x47c   : > { %v3423_v17 = vmul.f32 %v10084_v62, %v11594_v10 }
 0x47d   : > { %v10086_v19 = vpop.eup %10085 }
 0x47e   : > { %v3422_v32 = vmul.f32 %v10086_v19, %v11610_v0  ;;  %v3432_v3 = vpack.c.bf16 %v3424_v14, %v3423_v17  ;;  %v3711_v53 = vpop.permute.xlu1 %3710 }
 0x480   : > { %v3431_v36 = vpack.c.bf16 %v3422_v32, %v3421_v38 }
 0x482   : > { %8787 = vmatprep.mubr.msk.bf16.mxu1 %vm3038_vm0, %v3431_v36 }
 0x483   : > { %8788 = vmatmul.mubr.msk.bf16.gmra.mrb[124].mxu1 %vm3038_vm0, %v3432_v3 }
 0x484   : > { %8815 = vmatprep.mubr.msk.bf16.mxu1 %vm3038_vm0, %v3705_v6 }
 0x48b   : > { %8816 = vmatmul.mubr.msk.bf16.vlgmr.msra.gmra.mrb[128].mxu1 %vm3038_vm0, %v3707_v58 }
 0x48c   : > { %8819 = vmatprep.mubr.msk.bf16.mxu1 %vm3038_vm0, %v3709_v61 }
 0x493   : > { %8820 = vmatmul.mubr.msk.bf16.gmra.mrb[132].mxu1 %vm3038_vm0, %v3711_v53 }
 0x4f7   : > { %v11683_v25 = vpop.f32.mrb[104].mxu0 }
 0x4f8   : > { %13809 = vst [vmem:[#allocation57_spill] sm:$0xff] %v11683_v25  ;;  %v11685_v10 = vpop.f32.mrb[105].mxu0 }
 0x4f9   : > { %13810 = vst [vmem:[#allocation58_spill] sm:$0xff] %v11685_v10  ;;  %v11687_v0 = vpop.f32.mrb[106].mxu0 }
 0x4fa   : > { %13811 = vst [vmem:[#allocation59_spill] sm:$0xff] %v11687_v0  ;;  %v11689_v51 = vpop.f32.mrb[107].mxu0 }
 0x4fb   : > { %13812 = vst [vmem:[#allocation60_spill] sm:$0xff] %v11689_v51 }
 0x4ff   : > { %v11691_v2 = vpop.f32.mrb[108].mxu0 }
 0x500   : > { %13813 = vst [vmem:[#allocation61_spill] sm:$0xff] %v11691_v2  ;;  %v11693_v50 = vpop.f32.mrb[109].mxu0 }
 0x501   : > { %13814 = vst [vmem:[#allocation62_spill] sm:$0xff] %v11693_v50  ;;  %v11695_v60 = vpop.f32.mrb[110].mxu0 }
 0x502   : > { %13815 = vst [vmem:[#allocation63_spill] sm:$0xff] %v11695_v60  ;;  %v11697_v37 = vpop.f32.mrb[111].mxu0 }
 0x503   : > { %13816 = vst [vmem:[#allocation64_spill] sm:$0xff] %v11697_v37 }
 0x517   : > { %v8801_v28 = vpop.f32.mrb[112].mxu0 }
 0x518   : > { %v11701_v33 = vsel %vm11375_vm1, %v8801_v28, -inf  ;;  %v3669_v26 = vpop.f32.mrb[113].mxu0 }
 0x519   : > { %v8802_v21 = vpop.f32.mrb[114].mxu0  ;;  %v3835_v27 = vsel %vm3038_vm0, %v11701_v33, -inf  ;;  %v11707_v49 = vsel %vm11380_vm2, %v3669_v26, -inf }
 0x51a   : > { %3836 = vmax.xlane.f32.xlu0 %v3835_v27  ;;  %v3672_v24 = vpop.f32.mrb[115].mxu0  ;;  %v3829_v22 = vsel %vm3038_vm0, %v11707_v49, -inf  ;;  %v11725_v56 = vsel %vm11384_vm3, %v8802_v21, -inf }
 0x51b   : > { %v11711_v31 = vsel %vm11392_vm4, %v3672_v24, -inf  ;;  %v11713_v44 = vpop.f32.mrb[120].mxu1  ;;  %v3838_v40 = vsel %vm3038_vm0, %v11725_v56, -inf }
 0x51c   : > { %13817 = vst [vmem:[#allocation65_spill] sm:$0xff] %v11713_v44  ;;  %v3832_v8 = vsel %vm3038_vm0, %v11711_v31, -inf  ;;  %v11717_v34 = vpop.f32.mrb[121].mxu1 }
 0x51d   : > { %13818 = vst [vmem:[#allocation66_spill] sm:$0xff] %v11717_v34  ;;  %3833 = vmax.xlane.f32.xlu1 %v3832_v8  ;;  %v11721_v45 = vpop.f32.mrb[122].mxu1 }
 0x51e   : > { %13819 = vst [vmem:[#allocation67_spill] sm:$0xff] %v11721_v45  ;;  %3830 = vmax.xlane.f32.xlu0 %v3829_v22  ;;  %v11727_v59 = vpop.f32.mrb[123].mxu1 }
 0x51f   : > { %13820 = vst [vmem:[#allocation68_spill] sm:$0xff] %v11727_v59 }
 0x522   : > { %3839 = vmax.xlane.f32.xlu0 %v3838_v40 }
 0x546   : > { %v8805_v5 = vpop.f32.mrb[116].mxu0 }
 0x547   : > { %v11733_v30 = vsel %vm11417_vm5, %v8805_v5, -inf  ;;  %v3685_v13 = vpop.f32.mrb[117].mxu0 }
 0x548   : > { %v8806_v57 = vpop.f32.mrb[118].mxu0  ;;  %v3847_v20 = vsel %vm3038_vm0, %v11733_v30, -inf  ;;  %v11739_v35 = vsel %vm11432_vm7, %v3685_v13, -inf }
 0x549   : > { %v11743_v62 = vsel %vm11424_vm6, %v8806_v57, -inf  ;;  %3848 = vmax.xlane.f32.xlu0 %v3847_v20  ;;  %v3688_v19 = vpop.f32.mrb[119].mxu0  ;;  %v3841_v32 = vsel %vm3038_vm0, %v11739_v35, -inf }
 0x54a   : > { %v3850_v14 = vsel %vm3038_vm0, %v11743_v62, -inf  ;;  %v11749_v38 = vsel %vm11436_vm8, %v3688_v19, -inf }
 0x54b   : > { %3851 = vmax.xlane.f32.xlu1 %v3850_v14  ;;  %v3844_v17 = vsel %vm3038_vm0, %v11749_v38, -inf }
 0x54d   : > { %3842 = vmax.xlane.f32.xlu0 %v3841_v32 }
 0x54f   : > { %3845 = vmax.xlane.f32.xlu1 %v3844_v17 }
 0x556   : > { %v11755_v36 = vpop.f32.mrb[124].mxu1 }
 0x557   : > { %13821 = vst [vmem:[#allocation69_spill] sm:$0xff] %v11755_v36  ;;  %v11757_v3 = vpop.f32.mrb[125].mxu1 }
 0x558   : > { %13822 = vst [vmem:[#allocation70_spill] sm:$0xff] %v11757_v3  ;;  %v11759_v6 = vpop.f32.mrb[126].mxu1 }
 0x559   : > { %13823 = vst [vmem:[#allocation71_spill] sm:$0xff] %v11759_v6  ;;  %v11761_v58 = vpop.f32.mrb[127].mxu1 }
 0x55a   : > { %13824 = vst [vmem:[#allocation72_spill] sm:$0xff] %v11761_v58 }
 0x55e   : > { %v8817_v61 = vpop.f32.mrb[128].mxu1 }
 0x55f   : > { %v11765_v53 = vsel %vm11375_vm1, %v8817_v61, -inf  ;;  %v3782_v28 = vpop.f32.mrb[129].mxu1 }
 0x560   : > { %4019 = vrot.lane.b32.xlu1 %v11280_v7, %s10597_s21  ;;  %v8818_v26 = vpop.f32.mrb[130].mxu1  ;;  %v3859_v21 = vsel %vm3038_vm0, %v11765_v53, -inf  ;;  %v11773_v27 = vsel %vm11380_vm2, %v3782_v28, -inf }
 0x561   : > { %3860 = vmax.xlane.f32.xlu0 %v3859_v21  ;;  %v3785_v24 = vpop.f32.mrb[131].mxu1  ;;  %v3853_v8 = vsel %vm3038_vm0, %v11773_v27, -inf  ;;  %v11785_v13 = vsel %vm11384_vm3, %v8818_v26, -inf }
 0x562   : > { %v11791_v57 = vsel %vm11392_vm4, %v3785_v24, -inf }
 0x564   : > { %4021 = vrot.lane.b32.xlu1 %v11290_v42, %s10597_s21  ;;  %v3862_v42 = vsel %vm3038_vm0, %v11785_v13, -inf }
 0x565   : > { %3854 = vmax.xlane.f32.xlu0 %v3853_v8 }
 0x566   : > { %v8821_v22 = vpop.f32.mrb[132].mxu1 }
 0x567   : > { %v3798_v40 = vpop.f32.mrb[133].mxu1  ;;  %v11807_v14 = vsel %vm11417_vm5, %v8821_v22, -inf }
 0x568   : > { %4023 = vrot.lane.b32.xlu1 %v11302_v18, %s10597_s21  ;;  %v8822_v7 = vpop.f32.mrb[134].mxu1  ;;  %v3856_v18 = vsel %vm3038_vm0, %v11791_v57, -inf  ;;  %v3871_v17 = vsel %vm3038_vm0, %v11807_v14, -inf  ;;  %v11815_v61 = vsel %vm11432_vm7, %v3798_v40, -inf }
 0x569   : > { %v3801_v5 = vpop.f32.mrb[135].mxu1  ;;  %v11797_v20 = vsel %vm11424_vm6, %v8822_v7, -inf  ;;  %v3865_v28 = vsel %vm3038_vm0, %v11815_v61, -inf }
 0x56a   : > { %v11803_v19 = vsel %vm11436_vm8, %v3801_v5, -inf }
 0x56b   : > { %v3868_v32 = vsel %vm3038_vm0, %v11803_v19, -inf }
 0x57b   : > { %4017 = vrot.lane.b32.xlu0 %v11270_v48, %s10597_s21  ;;  %v3874_v48 = vsel %vm3038_vm0, %v11797_v20, -inf }
 0x58c   : > { %3863 = vmax.xlane.f32.xlu1 %v3862_v42 }
 0x590   : > { %3857 = vmax.xlane.f32.xlu1 %v3856_v18 }
 0x594   : > { %3875 = vmax.xlane.f32.xlu1 %v3874_v48 }
 0x598   : > { %3869 = vmax.xlane.f32.xlu1 %v3868_v32 }
 0x59a   : > { %3872 = vmax.xlane.f32.xlu0 %v3871_v17 }
 0x59e   : > { %3866 = vmax.xlane.f32.xlu0 %v3865_v28 }
 0x5a7   : > { %v3837_v26 = vpop.xlane.xlu0 %3836 }
 0x5a8   : > { %v3879_v21 = vsub.f32 %v11701_v33, %v3837_v26 }
 0x5aa   : > { %v3897_v24 = vmul.f32 1.442695, %v3879_v21  ;;  %v3834_v8 = vpop.xlane.xlu1 %3833 }
 0x5ab   : > { %v3831_v22 = vpop.xlane.xlu0 %3830  ;;  %v3878_v5 = vsub.f32 %v11711_v31, %v3834_v8 }
 0x5ac   : > { %10087 = vpow2.f32 %v3897_v24  ;;  %v3877_v7 = vsub.f32 %v11707_v49, %v3831_v22 }
 0x5ad   : > { %v3895_v48 = vmul.f32 1.442695, %v3878_v5 }
 0x5ae   : > { %v3893_v42 = vmul.f32 1.442695, %v3877_v7 }
 0x5af   : > { %v3840_v18 = vpop.xlane.xlu0 %3839 }
 0x5b0   : > { %10089 = vpow2.f32 %v3893_v42  ;;  %v3880_v40 = vsub.f32 %v11725_v56, %v3840_v18 }
 0x5b2   : > { %v3899_v32 = vmul.f32 1.442695, %v3880_v40 }
 0x5b4   : > { %10091 = vpow2.f32 %v3899_v32 }
 0x5b5   : > { %10093 = vpow2.f32 %v3895_v48 }
 0x5b6   : > { %v11823_v17 = vpop.eup %10087 }
 0x5b7   : > { %v3931_v33 = vsel %vm3038_vm0, %v11823_v17, 0.0 }
 0x5b8   : > { %3932 = vadd.xlane.f32.xlu0 %v3931_v33 }
 0x5ba   : > { %v11827_v28 = vpop.eup %10089 }
 0x5bb   : > { %v3925_v49 = vsel %vm3038_vm0, %v11827_v28, 0.0 }
 0x5bc   : > { %3926 = vadd.xlane.f32.xlu0 %v3925_v49 }
 0x5be   : > { %v11831_v31 = vpop.eup %10091 }
 0x5bf   : > { %v3934_v56 = vsel %vm3038_vm0, %v11831_v31, 0.0  ;;  %v11835_v26 = vpop.eup %10093 }
 0x5c0   : > { %3935 = vadd.xlane.f32.xlu1 %v3934_v56  ;;  %v3928_v21 = vsel %vm3038_vm0, %v11835_v26, 0.0 }
 0x5c4   : > { %3929 = vadd.xlane.f32.xlu1 %v3928_v21 }
 0x5d6   : > { %v3849_v24 = vpop.xlane.xlu0 %3848 }
 0x5d7   : > { %v3883_v8 = vsub.f32 %v11733_v30, %v3849_v24 }
 0x5d8   : > { %v3852_v22 = vpop.xlane.xlu1 %3851 }
 0x5d9   : > { %v3905_v7 = vmul.f32 1.442695, %v3883_v8  ;;  %v3884_v5 = vsub.f32 %v11743_v62, %v3852_v22 }
 0x5da   : > { %v3843_v42 = vpop.xlane.xlu0 %3842 }
 0x5db   : > { %10095 = vpow2.f32 %v3905_v7  ;;  %v3881_v18 = vsub.f32 %v11739_v35, %v3843_v42  ;;  %v3907_v40 = vmul.f32 1.442695, %v3884_v5 }
 0x5dc   : > { %v3846_v48 = vpop.xlane.xlu1 %3845 }
 0x5dd   : > { %v3901_v32 = vmul.f32 1.442695, %v3881_v18  ;;  %v3882_v33 = vsub.f32 %v11749_v38, %v3846_v48 }
 0x5df   : > { %10097 = vpow2.f32 %v3901_v32  ;;  %v3903_v49 = vmul.f32 1.442695, %v3882_v33 }
 0x5e0   : > { %10099 = vpow2.f32 %v3907_v40  ;;  %v4020_v40 = vpop.permute.xlu1 %4019 }
 0x5e1   : > { %10101 = vpow2.f32 %v3903_v49 }
 0x5e4   : > { %v4022_v33 = vpop.permute.xlu1 %4021 }
 0x5e5   : > { %v11843_v56 = vpop.eup %10095 }
 0x5e6   : > { %v3943_v30 = vsel %vm3038_vm0, %v11843_v56, 0.0 }
 0x5e7   : > { %3944 = vadd.xlane.f32.xlu0 %v3943_v30 }
 0x5e9   : > { %v11847_v62 = vpop.eup %10097 }
 0x5ea   : > { %v11849_v21 = vpop.eup %10099  ;;  %v3937_v35 = vsel %vm3038_vm0, %v11847_v62, 0.0 }
 0x5eb   : > { %v11853_v24 = vpop.eup %10101  ;;  %3938 = vadd.xlane.f32.xlu0 %v3937_v35  ;;  %v3946_v22 = vsel %vm3038_vm0, %v11849_v21, 0.0 }
 0x5ec   : > { %v3940_v38 = vsel %vm3038_vm0, %v11853_v24, 0.0 }
 0x5ed   : > { %3941 = vadd.xlane.f32.xlu1 %v3940_v38 }
 0x5ee   : > { %v3861_v8 = vpop.xlane.xlu0 %3860 }
 0x5ef   : > { %v3887_v7 = vsub.f32 %v11765_v53, %v3861_v8  ;;  %3947 = vadd.xlane.f32.xlu0 %v3946_v22 }
 0x5f1   : > { %v3913_v5 = vmul.f32 1.442695, %v3887_v7 }
 0x5f2   : > { %v3855_v42 = vpop.xlane.xlu0 %3854 }
 0x5f3   : > { %10103 = vpow2.f32 %v3913_v5  ;;  %v3885_v18 = vsub.f32 %v11773_v27, %v3855_v42  ;;  %v4024_v27 = vpop.permute.xlu1 %4023 }
 0x5f5   : > { %v3909_v48 = vmul.f32 1.442695, %v3885_v18 }
 0x5f6   : > { %v4018_v32 = vpop.permute.xlu0 %4017 }
 0x5f7   : > { %10105 = vpow2.f32 %v3909_v48  ;;  %8823 = vmatprep.subr.bf16.mxu0 %v4018_v32 }
 0x5f8   : > { %8824 = vmatpush3.bf16.msra.mxu0 %v4018_v32 }
 0x5f9   : > { %8825 = vmatprep.subr.bf16.mxu0 %v4020_v40 }
 0x5fc   : > { %8826 = vmatpush3.bf16.msra.mxu0 %v4020_v40 }
 0x5fd   : > { %v11861_v49 = vpop.eup %10103  ;;  %8827 = vmatprep.subr.bf16.mxu0 %v4022_v33 }
 0x5fe   : > { %4112 = vrot.lane.b32.xlu1 %v11320_v4, %s10597_s21  ;;  %v3955_v53 = vsel %vm3038_vm0, %v11861_v49, 0.0 }
 0x5ff   : > { %3956 = vadd.xlane.f32.xlu0 %v3955_v53 }
 0x600   : > { %8828 = vmatpush3.bf16.msra.mxu0 %v4022_v33 }
 0x601   : > { %v11867_v30 = vpop.eup %10105  ;;  %8829 = vmatprep.subr.bf16.mxu0 %v4024_v27 }
 0x602   : > { %4114 = vrot.lane.b32.xlu1 %v11326_v9, %s10597_s21  ;;  %v3949_v35 = vsel %vm3038_vm0, %v11867_v30, 0.0 }
 0x603   : > { %3950 = vadd.xlane.f32.xlu0 %v3949_v35 }
 0x604   : > { %8830 = vmatpush3.bf16.msra.mxu0 %v4024_v27 }
 0x605   : > { %9351 = vmatprep.subr.msk.bf16.mxu0 %vm3038_vm0, %v11180_v54 }
 0x619   : > { %4110 = vrot.lane.b32.xlu0 %v11314_v39, %s10597_s21  ;;  %v3864_v4 = vpop.xlane.xlu1 %3863 }
 0x61a   : > { %v3888_v38 = vsub.f32 %v11785_v13, %v3864_v4 }
 0x61c   : > { %v3915_v8 = vmul.f32 1.442695, %v3888_v38 }
 0x61d   : > { %v3858_v22 = vpop.xlane.xlu1 %3857 }
 0x61e   : > { %10107 = vpow2.f32 %v3915_v8  ;;  %v3886_v7 = vsub.f32 %v11791_v57, %v3858_v22 }
 0x620   : > { %v3911_v9 = vmul.f32 1.442695, %v3886_v7 }
 0x621   : > { %v3876_v39 = vpop.xlane.xlu1 %3875 }
 0x622   : > { %10109 = vpow2.f32 %v3911_v9  ;;  %v3892_v33 = vsub.f32 %v11797_v20, %v3876_v39 }
 0x624   : > { %v3923_v35 = vmul.f32 1.442695, %v3892_v33 }
 0x625   : > { %v3870_v7 = vpop.xlane.xlu1 %3869 }
 0x626   : > { %v3890_v9 = vsub.f32 %v11803_v19, %v3870_v7 }
 0x627   : > { %v3873_v5 = vpop.xlane.xlu0 %3872 }
 0x628   : > { %v11879_v42 = vpop.eup %10107  ;;  %v3891_v40 = vsub.f32 %v11807_v14, %v3873_v5 }
 0x629   : > { %v3958_v18 = vsel %vm3038_vm0, %v11879_v42, 0.0 }
 0x62a   : > { %3959 = vadd.xlane.f32.xlu1 %v3958_v18  ;;  %v3921_v53 = vmul.f32 1.442695, %v3891_v40  ;;  %v3919_v40 = vmul.f32 1.442695, %v3890_v9 }
 0x62b   : > { %v3867_v48 = vpop.xlane.xlu0 %3866 }
 0x62c   : > { %v11884_v32 = vpop.eup %10109  ;;  %v3889_v13 = vsub.f32 %v11815_v61, %v3867_v48 }
 0x62d   : > { %v3952_v57 = vsel %vm3038_vm0, %v11884_v32, 0.0 }
 0x62e   : > { %v3917_v27 = vmul.f32 1.442695, %v3889_v13  ;;  %3953 = vadd.xlane.f32.xlu1 %v3952_v57 }
 0x630   : > { %10111 = vpow2.f32 %v3917_v27 }
 0x631   : > { %10113 = vpow2.f32 %v3921_v53 }
 0x632   : > { %10115 = vpow2.f32 %v3923_v35 }
 0x63a   : > { %v11890_v14 = vpop.eup %10111 }
 0x63b   : > { %v3961_v4 = vsel %vm3038_vm0, %v11890_v14, 0.0  ;;  %v11894_v38 = vpop.eup %10113 }
 0x63c   : > { %3962 = vadd.xlane.f32.xlu0 %v3961_v4  ;;  %v3967_v20 = vsel %vm3038_vm0, %v11894_v38, 0.0  ;;  %v11900_v61 = vpop.eup %10115 }
 0x63d   : > { %v3970_v8 = vsel %vm3038_vm0, %v11900_v61, 0.0 }
 0x63f   : > { %4116 = vrot.lane.b32.xlu1 %v11332_v41, %s10597_s21 }
 0x640   : > { %3968 = vadd.xlane.f32.xlu0 %v3967_v20 }
 0x644   : > { %3971 = vadd.xlane.f32.xlu0 %v3970_v8 }
 0x645   : > { %v3933_v22 = vpop.xlane.xlu0 %3932 }
 0x649   : > { %v3927_v5 = vpop.xlane.xlu0 %3926 }
 0x64d   : > { %v3936_v18 = vpop.xlane.xlu1 %3935 }
 0x64e   : > { %10117 = vrcp.f32 %v3936_v18 }
 0x64f   : > { %10119 = vrcp.f32 %v3927_v5 }
 0x650   : > { %10121 = vrcp.f32 %v3933_v22  ;;  %v4341_v22 = vsel %vm3038_vm0, %v11222_v47, 0 }
 0x651   : > { %v3930_v41 = vpop.xlane.xlu1 %3929 }
 0x652   : > { %10123 = vrcp.f32 %v3930_v41 }
 0x653   : > { %10125 = vpow2.f32 %v3919_v40 }
 0x658   : > { %v10118_v39 = vpop.eup %10117 }
 0x659   : > { %v10120_v48 = vpop.eup %10119  ;;  %v3992_v33 = vmul.f32 %v10118_v39, %v11831_v31  ;;  %v4332_v31 = vsel %vm3038_vm0, %v11180_v54, 0 }
 0x65a   : > { %4867 = vrot.lane.b32.xlu0 %v11180_v54, %s10597_s21  ;;  %v10122_v13 = vpop.eup %10121  ;;  %v3989_v19 = vmul.f32 %v10120_v48, %v11827_v28  ;;  %v4335_v28 = vsel %vm3038_vm0, %v11196_v43, 0  ;;  %v4338_v54 = vsel %vm3038_vm0, %v11210_v55, 0 }
 0x65b   : > { %v3991_v27 = vmul.f32 %v10122_v13, %v11823_v17 }
 0x65c   : > { %v10124_v57 = vpop.eup %10123 }
 0x65d   : > { %v3990_v53 = vmul.f32 %v10124_v57, %v11835_v26  ;;  %v11913_v35 = vpop.eup %10125  ;;  %v4006_v20 = vpack.c.bf16 %v3992_v33, %v3991_v27 }
 0x65e   : > { %4871 = vrot.lane.b32.xlu0 %v11210_v55, %s10597_s21  ;;  %v3964_v17 = vsel %vm3038_vm0, %v11913_v35, 0.0 }
 0x65f   : > { %v4005_v4 = vpack.c.bf16 %v3990_v53, %v3989_v19  ;;  %v13828_v53 = vld [vmem:[#allocation42_spill] sm:$0xff] }
 0x661   : > { %8831 = vmatprep.mubr.msk.bf16.mxu0 %vm3038_vm0, %v4005_v4  ;;  %v13829_v4 = vld [vmem:[#allocation16_spill] sm:$0xff] }
 0x662   : > { %8832 = vmatmul.mubr.msk.bf16.vlgmr.msra.gmra.mrb[120].mxu0 %vm3038_vm0, %v4006_v20  ;;  %4873 = vrot.lane.b32.xlu0 %v11222_v47, %s10597_s21  ;;  %v13830_v20 = vld [vmem:[#allocation43_spill] sm:$0xff] }
 0x663   : > { %8856 = vmatpush3.bf16.xpose.msra.mxu0 %v4332_v31  ;;  %3965 = vadd.xlane.f32.xlu1 %v3964_v17 }
 0x664   : > { %9352 = vmatprep.subr.msk.bf16.mxu0 %vm3038_vm0, %v11196_v43 }
 0x66b   : > { %8858 = vmatpush3.bf16.xpose.msra.mxu0 %v4335_v28 }
 0x66c   : > { %9353 = vmatprep.subr.msk.bf16.mxu0 %vm3038_vm0, %v11210_v55 }
 0x673   : > { %8860 = vmatpush3.bf16.xpose.msra.mxu0 %v4338_v54  ;;  %v13831_v54 = vld [vmem:[#allocation33_spill] sm:$0xff] }
 0x674   : > { %9354 = vmatprep.subr.msk.bf16.mxu0 %vm3038_vm0, %v11222_v47  ;;  %v3945_v26 = vpop.xlane.xlu0 %3944  ;;  %4869 = vrot.lane.b32.xlu1 %v11196_v43, %s10597_s21 }
 0x678   : > { %v3939_v8 = vpop.xlane.xlu0 %3938 }
 0x679   : > { %10127 = vrcp.f32 %v3939_v8 }
 0x67a   : > { %10129 = vrcp.f32 %v3945_v26  ;;  %v3942_v7 = vpop.xlane.xlu1 %3941 }
 0x67b   : > { %8862 = vmatpush3.bf16.xpose.msra.mxu0 %v4341_v22  ;;  %10131 = vrcp.f32 %v3942_v7 }
 0x67c   : > { %8887 = vmatprep.subr.bf16.mxu0 %v11274_v46  ;;  %v3948_v55 = vpop.xlane.xlu0 %3947 }
 0x67d   : > { %10133 = vrcp.f32 %v3948_v55 }
 0x683   : > { %v10128_v9 = vpop.eup %10127 }
 0x684   : > { %v10130_v5 = vpop.eup %10129  ;;  %v3993_v40 = vmul.f32 %v10128_v9, %v11847_v62  ;;  %v13825_v62 = vld [vmem:[#allocation14_spill] sm:$0xff] }
 0x685   : > { %v10132_v18 = vpop.eup %10131  ;;  %v3995_v48 = vmul.f32 %v10130_v5, %v11843_v56  ;;  %v13826_v56 = vld [vmem:[#allocation15_spill] sm:$0xff] }
 0x686   : > { %v3994_v43 = vmul.f32 %v10132_v18, %v11853_v24  ;;  %v4113_v24 = vpop.permute.xlu1 %4112 }
 0x687   : > { %v10134_v41 = vpop.eup %10133 }
 0x688   : > { %v4007_v39 = vpack.c.bf16 %v3994_v43, %v3993_v40  ;;  %v3996_v47 = vmul.f32 %v10134_v41, %v11849_v21  ;;  %v13827_v21 = vld [vmem:[#allocation41_spill] sm:$0xff] }
 0x68a   : > { %8835 = vmatprep.mubr.msk.bf16.mxu0 %vm3038_vm0, %v4007_v39  ;;  %v4008_v13 = vpack.c.bf16 %v3996_v47, %v3995_v48  ;;  %v4115_v27 = vpop.permute.xlu1 %4114  ;;  %v4421_v39 = vsel %vm3038_vm0, %v13831_v54, 0  ;;  %v13832_v47 = vld [vmem:[#allocation35_spill] sm:$0xff] }
 0x68c   : > { %v3957_v57 = vpop.xlane.xlu0 %3956  ;;  %8836 = vmatmul.mubr.msk.bf16.gmra.mrb[124].mxu0 %vm3038_vm0, %v4008_v13 }
 0x68d   : > { %8863 = vmatprep.mubr.msk.bf16.mxu0 %vm3038_vm0, %v11048_v12 }
 0x690   : > { %v3951_v33 = vpop.xlane.xlu0 %3950 }
 0x694   : > { %v4111_v19 = vpop.permute.xlu0 %4110  ;;  %8864 = vmatmul.mubr.msk.bf16.vlgmr.msra.gmra.mrb[128].mxu0 %vm3038_vm0, %v13825_v62 }
 0x695   : > { %8888 = vmatpush3.bf16.msra.mxu0 %v11274_v46  ;;  %8839 = vmatprep.subr.bf16.mxu1 %v4111_v19 }
 0x696   : > { %8867 = vmatprep.mubr.msk.bf16.mxu0 %vm3038_vm0, %v13826_v56  ;;  %8889 = vmatprep.subr.bf16.mxu0 %v13827_v21 }
 0x697   : > { %8840 = vmatpush3.bf16.msra.mxu1 %v4111_v19  ;;  %v13835_v19 = vld [vmem:[#allocation44_spill] sm:$0xff] }
 0x698   : > { %8841 = vmatprep.subr.bf16.mxu1 %v4113_v24 }
 0x699   : > { %8890 = vmatpush3.bf16.msra.mxu0 %v13827_v21 }
 0x69a   : > { %8891 = vmatprep.subr.bf16.mxu0 %v13828_v53 }
 0x69b   : > { %8842 = vmatpush3.bf16.msra.mxu1 %v4113_v24 }
 0x69c   : > { %8843 = vmatprep.subr.bf16.mxu1 %v4115_v27  ;;  %8868 = vmatmul.mubr.msk.bf16.gmra.mrb[132].mxu0 %vm3038_vm0, %v13829_v4 }
 0x69d   : > { %8892 = vmatpush3.bf16.msra.mxu0 %v13828_v53 }
 0x69e   : > { %8893 = vmatprep.subr.bf16.mxu0 %v13830_v20 }
 0x69f   : > { %8844 = vmatpush3.bf16.msra.mxu1 %v4115_v27 }
 0x6a1   : > { %8894 = vmatpush3.bf16.msra.mxu0 %v13830_v20 }
 0x6b7   : > { %v3960_v31 = vpop.xlane.xlu1 %3959 }
 0x6b8   : > { %10135 = vrcp.f32 %v3960_v31 }
 0x6b9   : > { %10137 = vrcp.f32 %v3951_v33 }
 0x6ba   : > { %10139 = vrcp.f32 %v3957_v57  ;;  %v13834_v57 = vld [vmem:[#allocation39_spill] sm:$0xff] }
 0x6bb   : > { %v3954_v17 = vpop.xlane.xlu1 %3953  ;;  %v4430_v33 = vsel %vm3038_vm0, %v13834_v57, 0 }
 0x6bc   : > { %10141 = vrcp.f32 %v3954_v17 }
 0x6bf   : > { %v4117_v28 = vpop.permute.xlu1 %4116 }
 0x6c0   : > { %8845 = vmatprep.subr.bf16.mxu1 %v4117_v28 }
 0x6c1   : > { %8846 = vmatpush3.bf16.msra.mxu1 %v4117_v28 }
 0x6c2   : > { %9355 = vmatprep.subr.msk.bf16.mxu1 %vm3038_vm0, %v13831_v54  ;;  %v10136_v26 = vpop.eup %10135 }
 0x6c3   : > { %v10138_v8 = vpop.eup %10137  ;;  %v4000_v55 = vmul.f32 %v10136_v26, %v11879_v42  ;;  %v4424_v42 = vsel %vm3038_vm0, %v13832_v47, 0 }
 0x6c4   : > { %v10140_v22 = vpop.eup %10139  ;;  %v3997_v9 = vmul.f32 %v10138_v8, %v11867_v30 }
 0x6c5   : > { %v3999_v18 = vmul.f32 %v10140_v22, %v11861_v49 }
 0x6c6   : > { %v10142_v7 = vpop.eup %10141 }
 0x6c7   : > { %v3998_v5 = vmul.f32 %v10142_v7, %v11884_v32  ;;  %v4010_v41 = vpack.c.bf16 %v4000_v55, %v3999_v18  ;;  %v13833_v32 = vld [vmem:[#allocation37_spill] sm:$0xff]  ;;  %v13837_v18 = vld [vmem:[#allocation18_spill] sm:$0xff] }
 0x6c8   : > { %v4427_v13 = vsel %vm3038_vm0, %v13833_v32, 0 }
 0x6c9   : > { %v3963_v40 = vpop.xlane.xlu0 %3962  ;;  %v4009_v43 = vpack.c.bf16 %v3998_v5, %v3997_v9  ;;  %v13836_v5 = vld [vmem:[#allocation17_spill] sm:$0xff] }
 0x6cb   : > { %8847 = vmatprep.mubr.msk.bf16.mxu1 %vm3038_vm0, %v4009_v43 }
 0x6cc   : > { %8848 = vmatmul.mubr.msk.bf16.vlgmr.msra.gmra.mrb[136].mxu1 %vm3038_vm0, %v4010_v41 }
 0x6cd   : > { %8872 = vmatpush3.bf16.xpose.msra.mxu1 %v4421_v39  ;;  %v3969_v48 = vpop.xlane.xlu0 %3968 }
 0x6ce   : > { %9356 = vmatprep.subr.msk.bf16.mxu1 %vm3038_vm0, %v13832_v47 }
 0x6d1   : > { %v3972_v30 = vpop.xlane.xlu0 %3971 }
 0x6d2   : > { %10143 = vrcp.f32 %v3972_v30 }
 0x6d3   : > { %10145 = vrcp.f32 %v3963_v40  ;;  %v13842_v40 = vld [vmem:[#allocation47_spill] sm:$0xff] }
 0x6d4   : > { %10147 = vrcp.f32 %v3969_v48 }
 0x6d5   : > { %8874 = vmatpush3.bf16.xpose.msra.mxu1 %v4424_v42  ;;  %v11973_v49 = vpop.permute.xlu0 %4867 }
 0x6d6   : > { %9357 = vmatprep.subr.msk.bf16.mxu1 %vm3038_vm0, %v13833_v32  ;;  %9359 = vmatprep.subr.msk.bf16.mxu0 %vm3038_vm0, %v11973_v49 }
 0x6dc   : > { %v10144_v27 = vpop.eup %10143 }
 0x6dd   : > { %8876 = vmatpush3.bf16.xpose.msra.mxu1 %v4427_v13  ;;  %v10146_v31 = vpop.eup %10145  ;;  %v4004_v26 = vmul.f32 %v10144_v27, %v11900_v61  ;;  %v13838_v61 = vld [vmem:[#allocation19_spill] sm:$0xff] }
 0x6de   : > { %9358 = vmatprep.subr.msk.bf16.mxu1 %vm3038_vm0, %v13834_v57  ;;  %v10148_v17 = vpop.eup %10147  ;;  %v4001_v8 = vmul.f32 %v10146_v31, %v11890_v14  ;;  %v13839_v14 = vld [vmem:[#allocation45_spill] sm:$0xff] }
 0x6df   : > { %v4003_v7 = vmul.f32 %v10148_v17, %v11894_v38  ;;  %v13840_v38 = vld [vmem:[#allocation46_spill] sm:$0xff] }
 0x6e1   : > { %v4012_v9 = vpack.c.bf16 %v4004_v26, %v4003_v7 }
 0x6e5   : > { %8878 = vmatpush3.bf16.xpose.msra.mxu1 %v4430_v33 }
 0x6e6   : > { %8903 = vmatprep.subr.bf16.mxu1 %v13835_v19 }
 0x6f0   : > { %v3966_v24 = vpop.xlane.xlu1 %3965 }
 0x6f1   : > { %10149 = vrcp.f32 %v3966_v24 }
 0x6fb   : > { %v10150_v28 = vpop.eup %10149 }
 0x6fc   : > { %v4002_v22 = vmul.f32 %v10150_v28, %v11913_v35  ;;  %v13841_v35 = vld [vmem:[#allocation20_spill] sm:$0xff] }
 0x6fe   : > { %v4011_v55 = vpack.c.bf16 %v4002_v22, %v4001_v8 }
 0x700   : > { %8851 = vmatprep.mubr.msk.bf16.mxu1 %vm3038_vm0, %v4011_v55 }
 0x701   : > { %8852 = vmatmul.mubr.msk.bf16.gmra.mrb[140].mxu1 %vm3038_vm0, %v4012_v9 }
 0x702   : > { %8879 = vmatprep.mubr.msk.bf16.mxu1 %vm3038_vm0, %v13836_v5 }
 0x709   : > { %8880 = vmatmul.mubr.msk.bf16.vlgmr.msra.gmra.mrb[144].mxu1 %vm3038_vm0, %v13837_v18 }
 0x70a   : > { %8904 = vmatpush3.bf16.msra.mxu1 %v13835_v19  ;;  %8883 = vmatprep.mubr.msk.bf16.mxu1 %vm3038_vm0, %v13838_v61 }
 0x70b   : > { %8905 = vmatprep.subr.bf16.mxu1 %v13839_v14 }
 0x70e   : > { %8906 = vmatpush3.bf16.msra.mxu1 %v13839_v14 }
 0x70f   : > { %8907 = vmatprep.subr.bf16.mxu1 %v13840_v38 }
 0x711   : > { %8884 = vmatmul.mubr.msk.bf16.gmra.mrb[148].mxu1 %vm3038_vm0, %v13841_v35 }
 0x712   : > { %8908 = vmatpush3.bf16.msra.mxu1 %v13840_v38 }
 0x713   : > { %8909 = vmatprep.subr.bf16.mxu1 %v13842_v40 }
 0x716   : > { %8910 = vmatpush3.bf16.msra.mxu1 %v13842_v40 }
 0x735   : > { %v12007_v43 = vpop.f32.mrb[120].mxu0 }
 0x736   : > { %13843 = vst [vmem:[#allocation14_spill] sm:$0xff] %v12007_v43  ;;  %v12009_v41 = vpop.f32.mrb[121].mxu0 }
 0x737   : > { %13844 = vst [vmem:[#allocation15_spill] sm:$0xff] %v12009_v41  ;;  %v12011_v39 = vpop.f32.mrb[122].mxu0 }
 0x738   : > { %13845 = vst [vmem:[#allocation41_spill] sm:$0xff] %v12011_v39  ;;  %v12015_v30 = vpop.f32.mrb[123].mxu0 }
 0x739   : > { %13846 = vst [vmem:[#allocation42_spill] sm:$0xff] %v12015_v30 }
 0x75f   : > { %v12019_v13 = vpop.f32.mrb[124].mxu0 }
 0x760   : > { %13847 = vst [vmem:[#allocation16_spill] sm:$0xff] %v12019_v13  ;;  %v12021_v33 = vpop.f32.mrb[125].mxu0 }
 0x761   : > { %13848 = vst [vmem:[#allocation43_spill] sm:$0xff] %v12021_v33  ;;  %v12023_v24 = vpop.f32.mrb[126].mxu0 }
 0x762   : > { %13849 = vst [vmem:[#allocation33_spill] sm:$0xff] %v12023_v24  ;;  %v12027_v31 = vpop.f32.mrb[127].mxu0 }
 0x763   : > { %13850 = vst [vmem:[#allocation35_spill] sm:$0xff] %v12027_v31 }
 0x767   : > { %v8865_v28 = vpop.f32.mrb[128].mxu0 }
 0x768   : > { %v12033_v26 = vsel %vm11375_vm1, %v8865_v28, -inf  ;;  %v4377_v8 = vpop.f32.mrb[129].mxu0 }
 0x769   : > { %v8866_v22 = vpop.f32.mrb[130].mxu0  ;;  %v4519_v7 = vsel %vm3038_vm0, %v12033_v26, -inf  ;;  %v12039_v55 = vsel %vm11380_vm2, %v4377_v8, -inf }
 0x76a   : > { %v12043_v9 = vsel %vm11384_vm3, %v8866_v22, -inf  ;;  %4520 = vmax.xlane.f32.xlu0 %v4519_v7  ;;  %v4380_v27 = vpop.f32.mrb[131].mxu0  ;;  %v4513_v48 = vsel %vm3038_vm0, %v12039_v55, -inf }
 0x76b   : > { %v4522_v17 = vsel %vm3038_vm0, %v12043_v9, -inf  ;;  %v12049_v28 = vsel %vm11392_vm4, %v4380_v27, -inf }
 0x76c   : > { %4523 = vmax.xlane.f32.xlu1 %v4522_v17  ;;  %v4516_v42 = vsel %vm3038_vm0, %v12049_v28, -inf }
 0x76e   : > { %4514 = vmax.xlane.f32.xlu0 %v4513_v48 }
 0x76f   : > { %v8869_v8 = vpop.f32.mrb[132].mxu0 }
 0x770   : > { %v12057_v22 = vsel %vm11417_vm5, %v8869_v8, -inf  ;;  %4517 = vmax.xlane.f32.xlu1 %v4516_v42  ;;  %v4393_v7 = vpop.f32.mrb[133].mxu0 }
 0x771   : > { %v4531_v6 = vsel %vm3038_vm0, %v12057_v22, -inf  ;;  %v8870_v27 = vpop.f32.mrb[134].mxu0  ;;  %v12063_v17 = vsel %vm11432_vm7, %v4393_v7, -inf }
 0x772   : > { %v12067_v48 = vsel %vm11424_vm6, %v8870_v27, -inf  ;;  %4532 = vmax.xlane.f32.xlu0 %v4531_v6  ;;  %v4396_v36 = vpop.f32.mrb[135].mxu0  ;;  %v4525_v58 = vsel %vm3038_vm0, %v12063_v17, -inf }
 0x773   : > { %v4534_v8 = vsel %vm3038_vm0, %v12067_v48, -inf  ;;  %v12073_v42 = vsel %vm11436_vm8, %v4396_v36, -inf }
 0x774   : > { %4535 = vmax.xlane.f32.xlu1 %v4534_v8  ;;  %v4528_v7 = vsel %vm3038_vm0, %v12073_v42, -inf }
 0x776   : > { %4526 = vmax.xlane.f32.xlu0 %v4525_v58 }
 0x778   : > { %4529 = vmax.xlane.f32.xlu1 %v4528_v7 }
 0x79f   : > { %v12079_v27 = vpop.f32.mrb[136].mxu1 }
 0x7a0   : > { %13851 = vst [vmem:[#allocation37_spill] sm:$0xff] %v12079_v27  ;;  %v12081_v6 = vpop.f32.mrb[137].mxu1 }
 0x7a1   : > { %13852 = vst [vmem:[#allocation39_spill] sm:$0xff] %v12081_v6  ;;  %v12083_v3 = vpop.f32.mrb[138].mxu1 }
 0x7a2   : > { %13853 = vst [vmem:[#allocation44_spill] sm:$0xff] %v12083_v3  ;;  %v12087_v36 = vpop.f32.mrb[139].mxu1 }
 0x7a3   : > { %13854 = vst [vmem:[#allocation17_spill] sm:$0xff] %v12087_v36 }
 0x7d4   : > { %v12091_v44 = vpop.f32.mrb[140].mxu1 }
 0x7d5   : > { %13855 = vst [vmem:[#allocation18_spill] sm:$0xff] %v12091_v44  ;;  %v12093_v58 = vpop.f32.mrb[141].mxu1 }
 0x7d6   : > { %13856 = vst [vmem:[#allocation19_spill] sm:$0xff] %v12093_v58  ;;  %v12095_v59 = vpop.f32.mrb[142].mxu1 }
 0x7d7   : > { %13857 = vst [vmem:[#allocation45_spill] sm:$0xff] %v12095_v59  ;;  %v12099_v34 = vpop.f32.mrb[143].mxu1 }
 0x7d8   : > { %13858 = vst [vmem:[#allocation46_spill] sm:$0xff] %v12099_v34 }
 0x7dc   : > { %v8881_v45 = vpop.f32.mrb[144].mxu1 }
 0x7dd   : > { %v12105_v2 = vsel %vm11375_vm1, %v8881_v45, -inf  ;;  %v4466_v8 = vpop.f32.mrb[145].mxu1 }
 0x7de   : > { %v4543_v37 = vsel %vm3038_vm0, %v12105_v2, -inf  ;;  %v8882_v50 = vpop.f32.mrb[146].mxu1  ;;  %v12111_v0 = vsel %vm11380_vm2, %v4466_v8, -inf }
 0x7df   : > { %v12115_v7 = vsel %vm11384_vm3, %v8882_v50, -inf  ;;  %4544 = vmax.xlane.f32.xlu0 %v4543_v37  ;;  %v4469_v60 = vpop.f32.mrb[147].mxu1  ;;  %v4537_v10 = vsel %vm3038_vm0, %v12111_v0, -inf }
 0x7e0   : > { %v4546_v25 = vsel %vm3038_vm0, %v12115_v7, -inf  ;;  %v12121_v45 = vsel %vm11392_vm4, %v4469_v60, -inf }
 0x7e1   : > { %4547 = vmax.xlane.f32.xlu1 %v4546_v25  ;;  %v4540_v8 = vsel %vm3038_vm0, %v12121_v45, -inf }
 0x7e3   : > { %4538 = vmax.xlane.f32.xlu0 %v4537_v10 }
 0x7e4   : > { %v8885_v51 = vpop.f32.mrb[148].mxu1 }
 0x7e5   : > { %v12129_v50 = vsel %vm11417_vm5, %v8885_v51, -inf  ;;  %4541 = vmax.xlane.f32.xlu1 %v4540_v8  ;;  %v4482_v37 = vpop.f32.mrb[149].mxu1  ;;  %v12141_v51 = vpop.permute.xlu0 %4871 }
 0x7e6   : > { %v4555_v44 = vsel %vm3038_vm0, %v12129_v50, -inf  ;;  %v8886_v60 = vpop.f32.mrb[150].mxu1  ;;  %v12135_v25 = vsel %vm11432_vm7, %v4482_v37, -inf }
 0x7e7   : > { %4556 = vmax.xlane.f32.xlu0 %v4555_v44  ;;  %v4485_v10 = vpop.f32.mrb[151].mxu1  ;;  %v4549_v59 = vsel %vm3038_vm0, %v12135_v25, -inf  ;;  %v12151_v44 = vpop.permute.xlu1 %4869 }
 0x7e9   : > { %v12145_v8 = vpop.permute.xlu0 %4873 }
 0x7eb   : > { %4550 = vmax.xlane.f32.xlu0 %v4549_v59 }
 0x7f6   : > { %4857 = vrot.lane.b32.xlu1 %v13825_v62, %s10597_s21 }
 0x7f7   : > { %v4521_v37 = vpop.xlane.xlu0 %4520 }
 0x7f8   : > { %v4563_v58 = vsub.f32 %v12033_v26, %v4521_v37 }
 0x7f9   : > { %v4524_v62 = vpop.xlane.xlu1 %4523 }
 0x7fa   : > { %4980 = vrot.lane.b32.xlu1 %v13831_v54, %s10597_s21  ;;  %v4581_v27 = vmul.f32 1.442695, %v4563_v58  ;;  %v4564_v13 = vsub.f32 %v12043_v9, %v4524_v62  ;;  %v12164_v9 = vsel %vm11424_vm6, %v8886_v60, -inf }
 0x7fb   : > { %v4515_v59 = vpop.xlane.xlu0 %4514 }
 0x7fc   : > { %v4561_v3 = vsub.f32 %v12039_v55, %v4515_v59  ;;  %10151 = vpow2.f32 %v4581_v27  ;;  %v4583_v31 = vmul.f32 1.442695, %v4564_v13 }
 0x7fd   : > { %v4518_v54 = vpop.xlane.xlu1 %4517 }
 0x7fe   : > { %4982 = vrot.lane.b32.xlu1 %v13832_v47, %s10597_s21  ;;  %v4577_v6 = vmul.f32 1.442695, %v4561_v3  ;;  %v4562_v26 = vsub.f32 %v12049_v28, %v4518_v54 }
 0x7ff   : > { %v4533_v34 = vpop.xlane.xlu0 %4532 }
 0x800   : > { %v4567_v36 = vsub.f32 %v12057_v22, %v4533_v34  ;;  %10153 = vpow2.f32 %v4577_v6  ;;  %v4579_v55 = vmul.f32 1.442695, %v4562_v26 }
 0x801   : > { %4855 = vrot.lane.b32.xlu0 %v11048_v12, %s10597_s21  ;;  %v4536_v33 = vpop.xlane.xlu1 %4535 }
 0x802   : > { %v4589_v12 = vmul.f32 1.442695, %v4567_v36  ;;  %v4568_v3 = vsub.f32 %v12067_v48, %v4536_v33  ;;  %v12175_v33 = vsel %vm11436_vm8, %v4485_v10, -inf }
 0x803   : > { %v4527_v47 = vpop.xlane.xlu0 %4526 }
 0x804   : > { %v4565_v24 = vsub.f32 %v12063_v17, %v4527_v47  ;;  %10155 = vpow2.f32 %v4589_v12  ;;  %v4591_v28 = vmul.f32 1.442695, %v4568_v3 }
 0x805   : > { %10157 = vpow2.f32 %v4583_v31  ;;  %v4530_v34 = vpop.xlane.xlu1 %4529  ;;  %v4558_v31 = vsel %vm3038_vm0, %v12164_v9, -inf }
 0x806   : > { %v4585_v58 = vmul.f32 1.442695, %v4565_v24  ;;  %v12159_v37 = vpop.eup %10151  ;;  %v4566_v24 = vsub.f32 %v12073_v42, %v4530_v34  ;;  %v4552_v42 = vsel %vm3038_vm0, %v12175_v33, -inf }
 0x807   : > { %v4615_v22 = vsel %vm3038_vm0, %v12159_v37, 0.0 }
 0x808   : > { %10159 = vpow2.f32 %v4585_v58  ;;  %v4587_v27 = vmul.f32 1.442695, %v4566_v24 }
 0x809   : > { %10161 = vpow2.f32 %v4579_v55 }
 0x80a   : > { %v12168_v13 = vpop.eup %10153  ;;  %10163 = vpow2.f32 %v4591_v28 }
 0x80b   : > { %v4609_v17 = vsel %vm3038_vm0, %v12168_v13, 0.0  ;;  %10165 = vpow2.f32 %v4587_v27 }
 0x80e   : > { %v12179_v48 = vpop.eup %10155 }
 0x80f   : > { %v12183_v6 = vpop.eup %10157  ;;  %v4627_v36 = vsel %vm3038_vm0, %v12179_v48, 0.0 }
 0x810   : > { %v4618_v10 = vsel %vm3038_vm0, %v12183_v6, 0.0 }
 0x812   : > { %v12187_v60 = vpop.eup %10159 }
 0x813   : > { %v12191_v59 = vpop.eup %10161  ;;  %v4621_v62 = vsel %vm3038_vm0, %v12187_v60, 0.0 }
 0x814   : > { %v4612_v54 = vsel %vm3038_vm0, %v12191_v59, 0.0  ;;  %v12197_v47 = vpop.eup %10163 }
 0x815   : > { %v4630_v12 = vsel %vm3038_vm0, %v12197_v47, 0.0  ;;  %v12201_v26 = vpop.eup %10165 }
 0x816   : > { %v4624_v58 = vsel %vm3038_vm0, %v12201_v26, 0.0 }
 0x820   : > { %4616 = vadd.xlane.f32.xlu0 %v4615_v22 }
 0x822   : > { %4559 = vmax.xlane.f32.xlu1 %v4558_v31 }
 0x824   : > { %4610 = vadd.xlane.f32.xlu0 %v4609_v17 }
 0x826   : > { %4553 = vmax.xlane.f32.xlu1 %v4552_v42 }
 0x828   : > { %4628 = vadd.xlane.f32.xlu0 %v4627_v36 }
 0x82a   : > { %4619 = vadd.xlane.f32.xlu1 %v4618_v10 }
 0x82c   : > { %4622 = vadd.xlane.f32.xlu0 %v4621_v62 }
 0x82e   : > { %4613 = vadd.xlane.f32.xlu1 %v4612_v54 }
 0x832   : > { %4631 = vadd.xlane.f32.xlu1 %v4630_v12 }
 0x836   : > { %4625 = vadd.xlane.f32.xlu1 %v4624_v58 }
 0x842   : > { %4984 = vrot.lane.b32.xlu0 %v13833_v32, %s10597_s21 }
 0x86c   : > { %v4545_v55 = vpop.xlane.xlu0 %4544 }
 0x86d   : > { %v4571_v3 = vsub.f32 %v12105_v2, %v4545_v55 }
 0x86e   : > { %v4548_v34 = vpop.xlane.xlu1 %4547 }
 0x86f   : > { %v4597_v22 = vmul.f32 1.442695, %v4571_v3  ;;  %v4572_v28 = vsub.f32 %v12115_v7, %v4548_v34 }
 0x870   : > { %v4539_v24 = vpop.xlane.xlu0 %4538 }
 0x871   : > { %10167 = vpow2.f32 %v4597_v22  ;;  %v4569_v31 = vsub.f32 %v12111_v0, %v4539_v24  ;;  %v4599_v27 = vmul.f32 1.442695, %v4572_v28 }
 0x872   : > { %v4542_v17 = vpop.xlane.xlu1 %4541 }
 0x873   : > { %v4593_v42 = vmul.f32 1.442695, %v4569_v31  ;;  %v4570_v36 = vsub.f32 %v12121_v45, %v4542_v17 }
 0x874   : > { %v4557_v10 = vpop.xlane.xlu0 %4556 }
 0x875   : > { %10169 = vpow2.f32 %v4593_v42  ;;  %v4575_v32 = vsub.f32 %v12129_v50, %v4557_v10  ;;  %v4595_v2 = vmul.f32 1.442695, %v4570_v36 }
 0x876   : > { %v12212_v62 = vpop.permute.xlu1 %4857  ;;  %10171 = vpow2.f32 %v4599_v27 }
 0x877   : > { %v4605_v54 = vmul.f32 1.442695, %v4575_v32 }
 0x878   : > { %v4551_v12 = vpop.xlane.xlu0 %4550 }
 0x879   : > { %10173 = vpow2.f32 %v4605_v54  ;;  %v4573_v7 = vsub.f32 %v12135_v25, %v4551_v12 }
 0x87a   : > { %v12215_v58 = vpop.permute.xlu1 %4980  ;;  %10175 = vpow2.f32 %v4595_v2 }
 0x87b   : > { %v12217_v0 = vpop.eup %10167  ;;  %v4601_v55 = vmul.f32 1.442695, %v4573_v7  ;;  %9363 = vmatprep.subr.msk.bf16.mxu1 %vm3038_vm0, %v12215_v58 }
 0x87c   : > { %v4639_v45 = vsel %vm3038_vm0, %v12217_v0, 0.0  ;;  %v12245_v42 = vpop.permute.xlu0 %4855 }
 0x87d   : > { %10177 = vpow2.f32 %v4601_v55  ;;  %4640 = vadd.xlane.f32.xlu1 %v4639_v45 }
 0x87e   : > { %v12247_v36 = vpop.permute.xlu1 %4982 }
 0x87f   : > { %v12223_v50 = vpop.eup %10169 }
 0x880   : > { %v4633_v3 = vsel %vm3038_vm0, %v12223_v50, 0.0  ;;  %v12227_v25 = vpop.eup %10171 }
 0x881   : > { %4634 = vadd.xlane.f32.xlu1 %v4633_v3  ;;  %v4642_v28 = vsel %vm3038_vm0, %v12227_v25, 0.0 }
 0x883   : > { %v12229_v34 = vpop.eup %10173 }
 0x884   : > { %v4651_v22 = vsel %vm3038_vm0, %v12229_v34, 0.0  ;;  %v12235_v24 = vpop.eup %10175 }
 0x885   : > { %4652 = vadd.xlane.f32.xlu0 %v4651_v22  ;;  %4643 = vadd.xlane.f32.xlu1 %v4642_v28  ;;  %v4636_v27 = vsel %vm3038_vm0, %v12235_v24, 0.0 }
 0x887   : > { %v12237_v31 = vpop.eup %10177 }
 0x888   : > { %v4645_v17 = vsel %vm3038_vm0, %v12237_v31, 0.0 }
 0x889   : > { %4646 = vadd.xlane.f32.xlu0 %v4645_v17  ;;  %4637 = vadd.xlane.f32.xlu1 %v4636_v27 }
 0x89a   : > { %4859 = vrot.lane.b32.xlu1 %v13826_v56, %s10597_s21 }
 0x8ad   : > { %v4617_v10 = vpop.xlane.xlu0 %4616 }
 0x8af   : > { %v4560_v32 = vpop.xlane.xlu1 %4559 }
 0x8b0   : > { %v4576_v2 = vsub.f32 %v12164_v9, %v4560_v32 }
 0x8b1   : > { %v4611_v12 = vpop.xlane.xlu0 %4610 }
 0x8b2   : > { %v4607_v54 = vmul.f32 1.442695, %v4576_v2 }
 0x8b3   : > { %v4554_v7 = vpop.xlane.xlu1 %4553 }
 0x8b4   : > { %10179 = vpow2.f32 %v4607_v54  ;;  %v4574_v55 = vsub.f32 %v12175_v33, %v4554_v7 }
 0x8b5   : > { %v4629_v22 = vpop.xlane.xlu0 %4628 }
 0x8b6   : > { %v4603_v45 = vmul.f32 1.442695, %v4574_v55 }
 0x8b7   : > { %v4620_v3 = vpop.xlane.xlu1 %4619 }
 0x8b8   : > { %10181 = vpow2.f32 %v4603_v45 }
 0x8b9   : > { %10183 = vrcp.f32 %v4620_v3  ;;  %v4623_v17 = vpop.xlane.xlu0 %4622 }
 0x8ba   : > { %10185 = vrcp.f32 %v4611_v12 }
 0x8bb   : > { %10187 = vrcp.f32 %v4617_v10  ;;  %v4614_v56 = vpop.xlane.xlu1 %4613 }
 0x8bc   : > { %10189 = vrcp.f32 %v4614_v56 }
 0x8be   : > { %v12251_v28 = vpop.eup %10179 }
 0x8bf   : > { %v4632_v27 = vpop.xlane.xlu1 %4631  ;;  %v4654_v9 = vsel %vm3038_vm0, %v12251_v28, 0.0 }
 0x8c0   : > { %4655 = vadd.xlane.f32.xlu0 %v4654_v9  ;;  %10191 = vrcp.f32 %v4632_v27 }
 0x8c1   : > { %10193 = vrcp.f32 %v4623_v17 }
 0x8c2   : > { %v12255_v32 = vpop.eup %10181  ;;  %10195 = vrcp.f32 %v4629_v22 }
 0x8c3   : > { %v10184_v33 = vpop.eup %10183  ;;  %v4626_v2 = vpop.xlane.xlu1 %4625  ;;  %v4648_v10 = vsel %vm3038_vm0, %v12255_v32, 0.0 }
 0x8c4   : > { %v10186_v54 = vpop.eup %10185  ;;  %10197 = vrcp.f32 %v4626_v2  ;;  %4649 = vadd.xlane.f32.xlu1 %v4648_v10  ;;  %v4676_v55 = vmul.f32 %v10184_v33, %v12183_v6  ;;  %v4888_v2 = vsel %vm3038_vm0, %v11973_v49, 0  ;;  %v4891_v49 = vsel %vm3038_vm0, %v12151_v44, 0 }
 0x8c5   : > { %v10188_v12 = vpop.eup %10187  ;;  %v4673_v45 = vmul.f32 %v10186_v54, %v12168_v13 }
 0x8c6   : > { %v10190_v7 = vpop.eup %10189  ;;  %v4675_v56 = vmul.f32 %v10188_v12, %v12159_v37 }
 0x8c7   : > { %v4674_v3 = vmul.f32 %v10190_v7, %v12191_v59 }
 0x8c8   : > { %v4690_v27 = vpack.c.bf16 %v4676_v55, %v4675_v56 }
 0x8c9   : > { %v4689_v17 = vpack.c.bf16 %v4674_v3, %v4673_v45  ;;  %v5001_v45 = vsel %vm3038_vm0, %v12215_v58, 0 }
 0x8ca   : > { %v10192_v22 = vpop.eup %10191 }
 0x8cb   : > { %8895 = vmatprep.mubr.msk.bf16.mxu0 %vm3038_vm0, %v4689_v17  ;;  %v10194_v9 = vpop.eup %10193  ;;  %v4680_v13 = vmul.f32 %v10192_v22, %v12197_v47 }
 0x8cc   : > { %8896 = vmatmul.mubr.msk.bf16.vlgmr.msra.gmra.mrb[136].mxu0 %vm3038_vm0, %v4690_v27  ;;  %v10196_v10 = vpop.eup %10195  ;;  %v4677_v37 = vmul.f32 %v10194_v9, %v12187_v60 }
 0x8cd   : > { %8920 = vmatpush3.bf16.xpose.msra.mxu0 %v4888_v2  ;;  %v4679_v33 = vmul.f32 %v10196_v10, %v12179_v48 }
 0x8ce   : > { %v10198_v6 = vpop.eup %10197  ;;  %9360 = vmatprep.subr.msk.bf16.mxu0 %vm3038_vm0, %v12151_v44  ;;  %v4894_v44 = vsel %vm3038_vm0, %v12141_v51, 0 }
 0x8cf   : > { %v4678_v59 = vmul.f32 %v10198_v6, %v12201_v26  ;;  %v4692_v12 = vpack.c.bf16 %v4680_v13, %v4679_v33 }
 0x8d1   : > { %v4691_v54 = vpack.c.bf16 %v4678_v59, %v4677_v37 }
 0x8d3   : > { %8899 = vmatprep.mubr.msk.bf16.mxu0 %vm3038_vm0, %v4691_v54 }
 0x8d4   : > { %8900 = vmatmul.mubr.msk.bf16.gmra.mrb[140].mxu0 %vm3038_vm0, %v4692_v12 }
 0x8d5   : > { %8922 = vmatpush3.bf16.xpose.msra.mxu0 %v4891_v49  ;;  %4986 = vrot.lane.b32.xlu1 %v13834_v57, %s10597_s21 }
 0x8d6   : > { %9361 = vmatprep.subr.msk.bf16.mxu0 %vm3038_vm0, %v12141_v51  ;;  %8927 = vmatprep.mubr.msk.bf16.mxu0 %vm3038_vm0, %v12245_v42 }
 0x8d7   : > { %4861 = vrot.lane.b32.xlu0 %v13829_v4, %s10597_s21  ;;  %v4897_v4 = vsel %vm3038_vm0, %v12145_v8, 0 }
 0x8d9   : > { %4970 = vrot.lane.b32.xlu1 %v13837_v18, %s10597_s21 }
 0x8db   : > { %4968 = vrot.lane.b32.xlu0 %v13836_v5, %s10597_s21 }
 0x8dd   : > { %8924 = vmatpush3.bf16.xpose.msra.mxu0 %v4894_v44  ;;  %4974 = vrot.lane.b32.xlu1 %v13841_v35, %s10597_s21 }
 0x8de   : > { %9362 = vmatprep.subr.msk.bf16.mxu0 %vm3038_vm0, %v12145_v8 }
 0x8df   : > { %4972 = vrot.lane.b32.xlu0 %v13838_v61, %s10597_s21 }
 0x8e5   : > { %8926 = vmatpush3.bf16.xpose.msra.mxu0 %v4897_v4 }
 0x8ec   : > { %8928 = vmatmul.mubr.msk.bf16.vlgmr.msra.gmra.mrb[144].mxu0 %vm3038_vm0, %v12212_v62 }
 0x90a   : > { %v4641_v57 = vpop.xlane.xlu1 %4640 }
 0x90e   : > { %v4635_v5 = vpop.xlane.xlu1 %4634 }
 0x912   : > { %v4644_v18 = vpop.xlane.xlu1 %4643 }
 0x913   : > { %10199 = vrcp.f32 %v4644_v18 }
 0x914   : > { %10201 = vrcp.f32 %v4635_v5 }
 0x915   : > { %10203 = vrcp.f32 %v4641_v57 }
 0x916   : > { %v4638_v51 = vpop.xlane.xlu1 %4637 }
 0x917   : > { %10205 = vrcp.f32 %v4638_v51 }
 0x91a   : > { %v4860_v35 = vpop.permute.xlu1 %4859 }
 0x91b   : > { %8931 = vmatprep.mubr.msk.bf16.mxu0 %vm3038_vm0, %v4860_v35 }
 0x91d   : > { %v10200_v48 = vpop.eup %10199 }
 0x91e   : > { %v10202_v61 = vpop.eup %10201  ;;  %v4684_v8 = vmul.f32 %v10200_v48, %v12227_v25  ;;  %v4985_v25 = vpop.permute.xlu0 %4984 }
 0x91f   : > { %v10204_v60 = vpop.eup %10203  ;;  %v4681_v26 = vmul.f32 %v10202_v61, %v12223_v50  ;;  %v5004_v50 = vsel %vm3038_vm0, %v12247_v36, 0 }
 0x920   : > { %v4683_v42 = vmul.f32 %v10204_v60, %v12217_v0  ;;  %v5007_v0 = vsel %vm3038_vm0, %v4985_v25, 0 }
 0x921   : > { %v10206_v47 = vpop.eup %10205 }
 0x922   : > { %v4682_v62 = vmul.f32 %v10206_v47, %v12235_v24  ;;  %v4694_v55 = vpack.c.bf16 %v4684_v8, %v4683_v42  ;;  %v4653_v24 = vpop.xlane.xlu0 %4652 }
 0x924   : > { %v4693_v7 = vpack.c.bf16 %v4682_v62, %v4681_v26 }
 0x926   : > { %8911 = vmatprep.mubr.msk.bf16.mxu1 %vm3038_vm0, %v4693_v7  ;;  %v4647_v3 = vpop.xlane.xlu0 %4646 }
 0x927   : > { %8912 = vmatmul.mubr.msk.bf16.vlgmr.msra.gmra.mrb[152].mxu1 %vm3038_vm0, %v4694_v55 }
 0x928   : > { %8936 = vmatpush3.bf16.xpose.msra.mxu1 %v5001_v45 }
 0x929   : > { %9364 = vmatprep.subr.msk.bf16.mxu1 %vm3038_vm0, %v12247_v36 }
 0x930   : > { %8938 = vmatpush3.bf16.xpose.msra.mxu1 %v5004_v50 }
 0x931   : > { %9365 = vmatprep.subr.msk.bf16.mxu1 %vm3038_vm0, %v4985_v25 }
 0x938   : > { %8940 = vmatpush3.bf16.xpose.msra.mxu1 %v5007_v0 }
 0x94d   : > { %v4656_v56 = vpop.xlane.xlu0 %4655 }
 0x94e   : > { %10207 = vrcp.f32 %v4656_v56 }
 0x94f   : > { %10209 = vrcp.f32 %v4647_v3 }
 0x950   : > { %10211 = vrcp.f32 %v4653_v24 }
 0x951   : > { %v4862_v58 = vpop.permute.xlu0 %4861  ;;  %v4650_v17 = vpop.xlane.xlu1 %4649 }
 0x952   : > { %10213 = vrcp.f32 %v4650_v17  ;;  %8932 = vmatmul.mubr.msk.bf16.gmra.mrb[148].mxu0 %vm3038_vm0, %v4862_v58 }
 0x955   : > { %v4987_v27 = vpop.permute.xlu1 %4986  ;;  %v4969_v12 = vpop.permute.xlu0 %4968 }
 0x956   : > { %9366 = vmatprep.subr.msk.bf16.mxu1 %vm3038_vm0, %v4987_v27  ;;  %v5010_v36 = vsel %vm3038_vm0, %v4987_v27, 0 }
 0x957   : > { %8942 = vmatpush3.bf16.xpose.msra.mxu1 %v5010_v36 }
 0x958   : > { %v10208_v22 = vpop.eup %10207 }
 0x959   : > { %v10210_v9 = vpop.eup %10209  ;;  %v4688_v6 = vmul.f32 %v10208_v22, %v12251_v28  ;;  %v4971_v49 = vpop.permute.xlu1 %4970 }
 0x95a   : > { %v10212_v2 = vpop.eup %10211  ;;  %v4685_v13 = vmul.f32 %v10210_v9, %v12237_v31  ;;  %v4973_v44 = vpop.permute.xlu0 %4972 }
 0x95b   : > { %v4687_v59 = vmul.f32 %v10212_v2, %v12229_v34 }
 0x95c   : > { %v10214_v10 = vpop.eup %10213 }
 0x95d   : > { %v4686_v37 = vmul.f32 %v10214_v10, %v12255_v32  ;;  %v4696_v54 = vpack.c.bf16 %v4688_v6, %v4687_v59  ;;  %v4975_v31 = vpop.permute.xlu1 %4974 }
 0x95f   : > { %v4695_v33 = vpack.c.bf16 %v4686_v37, %v4685_v13 }
 0x961   : > { %8915 = vmatprep.mubr.msk.bf16.mxu1 %vm3038_vm0, %v4695_v33 }
 0x962   : > { %8916 = vmatmul.mubr.msk.bf16.gmra.mrb[156].mxu1 %vm3038_vm0, %v4696_v54 }
 0x963   : > { %8943 = vmatprep.mubr.msk.bf16.mxu1 %vm3038_vm0, %v4969_v12 }
 0x96a   : > { %8944 = vmatmul.mubr.msk.bf16.vlgmr.msra.gmra.mrb[160].mxu1 %vm3038_vm0, %v4971_v49 }
 0x96b   : > { %8947 = vmatprep.mubr.msk.bf16.mxu1 %vm3038_vm0, %v4973_v44 }
 0x972   : > { %8948 = vmatmul.mubr.msk.bf16.gmra.mrb[164].mxu1 %vm3038_vm0, %v4975_v31 }
 0x99f   : > { %v12329_v28 = vpop.f32.mrb[136].mxu0 }
 0x9a0   : > { %13859 = vst [vmem:[#allocation20_spill] sm:$0xff] %v12329_v28  ;;  %v12331_v34 = vpop.f32.mrb[137].mxu0 }
 0x9a1   : > { %13860 = vst [vmem:[#allocation47_spill] sm:$0xff] %v12331_v34  ;;  %v12333_v32 = vpop.f32.mrb[138].mxu0 }
 0x9a2   : > { %13861 = vst [vmem:[#allocation73_spill] sm:$0xff] %v12333_v32  ;;  %v12335_v4 = vpop.f32.mrb[139].mxu0 }
 0x9a3   : > { %13862 = vst [vmem:[#allocation74_spill] sm:$0xff] %v12335_v4 }
 0x9a7   : > { %v12337_v57 = vpop.f32.mrb[140].mxu0 }
 0x9a8   : > { %13863 = vst [vmem:[#allocation75_spill] sm:$0xff] %v12337_v57  ;;  %v12339_v5 = vpop.f32.mrb[141].mxu0 }
 0x9a9   : > { %13864 = vst [vmem:[#allocation76_spill] sm:$0xff] %v12339_v5  ;;  %v12341_v18 = vpop.f32.mrb[142].mxu0 }
 0x9aa   : > { %13865 = vst [vmem:[#allocation77_spill] sm:$0xff] %v12341_v18  ;;  %v12343_v51 = vpop.f32.mrb[143].mxu0 }
 0x9ab   : > { %13866 = vst [vmem:[#allocation78_spill] sm:$0xff] %v12343_v51 }
 0x9bf   : > { %v8929_v35 = vpop.f32.mrb[144].mxu0 }
 0x9c0   : > { %v12347_v48 = vsel %vm11375_vm1, %v8929_v35, -inf  ;;  %v4933_v61 = vpop.f32.mrb[145].mxu0 }
 0x9c1   : > { %v5099_v60 = vsel %vm3038_vm0, %v12347_v48, -inf  ;;  %v8930_v47 = vpop.f32.mrb[146].mxu0  ;;  %v12353_v8 = vsel %vm11380_vm2, %v4933_v61, -inf }
 0x9c2   : > { %5100 = vmax.xlane.f32.xlu0 %v5099_v60  ;;  %v4936_v26 = vpop.f32.mrb[147].mxu0  ;;  %v5093_v7 = vsel %vm3038_vm0, %v12353_v8, -inf  ;;  %v5080_v55 = vsel %vm11384_vm3, %v8930_v47, -inf }
 0x9c3   : > { %v5078_v62 = vsel %vm11392_vm4, %v4936_v26, -inf  ;;  %v5102_v45 = vsel %vm3038_vm0, %v5080_v55, -inf }
 0x9c4   : > { %v5096_v42 = vsel %vm3038_vm0, %v5078_v62, -inf }
 0x9c5   : > { %5097 = vmax.xlane.f32.xlu1 %v5096_v42 }
 0x9c6   : > { %5094 = vmax.xlane.f32.xlu0 %v5093_v7 }
 0x9ca   : > { %5103 = vmax.xlane.f32.xlu0 %v5102_v45 }
 0x9fa   : > { %v12363_v50 = vpop.f32.mrb[152].mxu1 }
 0x9fb   : > { %13867 = vst [vmem:[#allocation79_spill] sm:$0xff] %v12363_v50  ;;  %v12365_v25 = vpop.f32.mrb[153].mxu1 }
 0x9fc   : > { %13868 = vst [vmem:[#allocation80_spill] sm:$0xff] %v12365_v25  ;;  %v12367_v0 = vpop.f32.mrb[154].mxu1 }
 0x9fd   : > { %13869 = vst [vmem:[#allocation81_spill] sm:$0xff] %v12367_v0  ;;  %v12369_v24 = vpop.f32.mrb[155].mxu1 }
 0x9fe   : > { %13870 = vst [vmem:[#allocation82_spill] sm:$0xff] %v12369_v24 }
 0xa25   : > { %v8933_v3 = vpop.f32.mrb[148].mxu0 }
 0xa26   : > { %v12373_v56 = vsel %vm11417_vm5, %v8933_v3, -inf  ;;  %v4949_v58 = vpop.f32.mrb[149].mxu0 }
 0xa27   : > { %v5111_v17 = vsel %vm3038_vm0, %v12373_v56, -inf  ;;  %v8934_v27 = vpop.f32.mrb[150].mxu0  ;;  %v12379_v36 = vsel %vm11432_vm7, %v4949_v58, -inf }
 0xa28   : > { %v12383_v22 = vsel %vm11424_vm6, %v8934_v27, -inf  ;;  %5112 = vmax.xlane.f32.xlu0 %v5111_v17  ;;  %v4952_v9 = vpop.f32.mrb[151].mxu0  ;;  %v5105_v6 = vsel %vm3038_vm0, %v12379_v36, -inf }
 0xa29   : > { %v5114_v2 = vsel %vm3038_vm0, %v12383_v22, -inf  ;;  %v12389_v10 = vsel %vm11436_vm8, %v4952_v9, -inf }
 0xa2a   : > { %5115 = vmax.xlane.f32.xlu1 %v5114_v2  ;;  %v5108_v13 = vsel %vm3038_vm0, %v12389_v10, -inf }
 0xa2c   : > { %5106 = vmax.xlane.f32.xlu0 %v5105_v6 }
 0xa2e   : > { %5109 = vmax.xlane.f32.xlu1 %v5108_v13 }
 0xa35   : > { %v12395_v37 = vpop.f32.mrb[156].mxu1 }
 0xa36   : > { %13871 = vst [vmem:[#allocation83_spill] sm:$0xff] %v12395_v37  ;;  %v12397_v59 = vpop.f32.mrb[157].mxu1 }
 0xa37   : > { %13872 = vst [vmem:[#allocation84_spill] sm:$0xff] %v12397_v59  ;;  %v12399_v33 = vpop.f32.mrb[158].mxu1 }
 0xa38   : > { %13873 = vst [vmem:[#allocation85_spill] sm:$0xff] %v12399_v33  ;;  %v12401_v54 = vpop.f32.mrb[159].mxu1 }
 0xa39   : > { %13874 = vst [vmem:[#allocation86_spill] sm:$0xff] %v12401_v54 }
 0xa3d   : > { %v8945_v12 = vpop.f32.mrb[160].mxu1 }
 0xa3e   : > { %v12405_v49 = vsel %vm11375_vm1, %v8945_v12, -inf  ;;  %v5046_v44 = vpop.f32.mrb[161].mxu1 }
 0xa3f   : > { %v5123_v31 = vsel %vm3038_vm0, %v12405_v49, -inf  ;;  %5283 = vrot.lane.b32.xlu1 %v13827_v21, %s10597_s21  ;;  %v8946_v35 = vpop.f32.mrb[162].mxu1  ;;  %v12413_v61 = vsel %vm11380_vm2, %v5046_v44, -inf }
 0xa40   : > { %5124 = vmax.xlane.f32.xlu0 %v5123_v31  ;;  %v5049_v60 = vpop.f32.mrb[163].mxu1  ;;  %v5117_v47 = vsel %vm3038_vm0, %v12413_v61, -inf  ;;  %v12425_v9 = vsel %vm11384_vm3, %v8946_v35, -inf }
 0xa41   : > { %v5126_v6 = vsel %vm3038_vm0, %v12425_v9, -inf }
 0xa43   : > { %5285 = vrot.lane.b32.xlu1 %v13828_v53, %s10597_s21 }
 0xa44   : > { %5118 = vmax.xlane.f32.xlu0 %v5117_v47 }
 0xa45   : > { %v8949_v26 = vpop.f32.mrb[164].mxu1 }
 0xa46   : > { %v5062_v42 = vpop.f32.mrb[165].mxu1 }
 0xa47   : > { %5287 = vrot.lane.b32.xlu1 %v13830_v20, %s10597_s21  ;;  %v8950_v21 = vpop.f32.mrb[166].mxu1  ;;  %v12431_v20 = vsel %vm11392_vm4, %v5049_v60, -inf  ;;  %v12449_v60 = vsel %vm11417_vm5, %v8949_v26, -inf }
 0xa48   : > { %v5065_v7 = vpop.f32.mrb[167].mxu1  ;;  %v12438_v12 = vsel %vm11424_vm6, %v8950_v21, -inf  ;;  %v5135_v21 = vsel %vm3038_vm0, %v12449_v60, -inf }
 0xa49   : > { %v5138_v31 = vsel %vm3038_vm0, %v12438_v12, -inf }
 0xa4f   : > { %v5101_v45 = vpop.xlane.xlu0 %5100 }
 0xa50   : > { %v5143_v13 = vsub.f32 %v12347_v48, %v5101_v45  ;;  %v12445_v48 = vsel %vm11436_vm8, %v5065_v7, -inf  ;;  %v12459_v7 = vsel %vm11432_vm7, %v5062_v42, -inf }
 0xa51   : > { %v5132_v47 = vsel %vm3038_vm0, %v12445_v48, -inf }
 0xa52   : > { %v5098_v27 = vpop.xlane.xlu1 %5097 }
 0xa53   : > { %v5095_v3 = vpop.xlane.xlu0 %5094  ;;  %v5142_v53 = vsub.f32 %v5078_v62, %v5098_v27  ;;  %v5161_v62 = vmul.f32 1.442695, %v5143_v13 }
 0xa54   : > { %v5141_v44 = vsub.f32 %v12353_v8, %v5095_v3  ;;  %v5129_v3 = vsel %vm3038_vm0, %v12459_v7, -inf }
 0xa56   : > { %v5157_v35 = vmul.f32 1.442695, %v5141_v44 }
 0xa57   : > { %v5104_v58 = vpop.xlane.xlu0 %5103 }
 0xa58   : > { %v5144_v17 = vsub.f32 %v5080_v55, %v5104_v58  ;;  %v5120_v55 = vsel %vm3038_vm0, %v12431_v20, -inf }
 0xa5a   : > { %5281 = vrot.lane.b32.xlu0 %v11274_v46, %s10597_s21  ;;  %v5163_v2 = vmul.f32 1.442695, %v5144_v17  ;;  %v5159_v46 = vmul.f32 1.442695, %v5142_v53 }
 0xa5c   : > { %10215 = vpow2.f32 %v5163_v2 }
 0xa5d   : > { %10217 = vpow2.f32 %v5159_v46 }
 0xa5e   : > { %10219 = vpow2.f32 %v5161_v62 }
 0xa5f   : > { %10221 = vpow2.f32 %v5157_v35 }
 0xa66   : > { %v12453_v8 = vpop.eup %10215 }
 0xa67   : > { %v5198_v45 = vsel %vm3038_vm0, %v12453_v8, 0.0  ;;  %v12463_v26 = vpop.eup %10217 }
 0xa68   : > { %v12467_v58 = vpop.eup %10219  ;;  %v5192_v17 = vsel %vm3038_vm0, %v12463_v26, 0.0 }
 0xa69   : > { %v5195_v42 = vsel %vm3038_vm0, %v12467_v58, 0.0  ;;  %v12473_v27 = vpop.eup %10221 }
 0xa6a   : > { %v5189_v53 = vsel %vm3038_vm0, %v12473_v27, 0.0 }
 0xa6b   : > { %5127 = vmax.xlane.f32.xlu1 %v5126_v6 }
 0xa6f   : > { %5121 = vmax.xlane.f32.xlu1 %v5120_v55 }
 0xa73   : > { %5139 = vmax.xlane.f32.xlu1 %v5138_v31 }
 0xa77   : > { %5133 = vmax.xlane.f32.xlu1 %v5132_v47 }
 0xa79   : > { %5136 = vmax.xlane.f32.xlu0 %v5135_v21 }
 0xa7b   : > { %5199 = vadd.xlane.f32.xlu1 %v5198_v45 }
 0xa7d   : > { %5130 = vmax.xlane.f32.xlu0 %v5129_v3 }
 0xa7f   : > { %5193 = vadd.xlane.f32.xlu1 %v5192_v17 }
 0xa81   : > { %5196 = vadd.xlane.f32.xlu0 %v5195_v42 }
 0xa85   : > { %5190 = vadd.xlane.f32.xlu0 %v5189_v53 }
 0xab5   : > { %v5113_v2 = vpop.xlane.xlu0 %5112 }
 0xab6   : > { %v5147_v6 = vsub.f32 %v12373_v56, %v5113_v2 }
 0xab7   : > { %v5116_v13 = vpop.xlane.xlu1 %5115 }
 0xab8   : > { %v5169_v46 = vmul.f32 1.442695, %v5147_v6  ;;  %v5148_v55 = vsub.f32 %v12383_v22, %v5116_v13 }
 0xab9   : > { %v5107_v62 = vpop.xlane.xlu0 %5106 }
 0xaba   : > { %10223 = vpow2.f32 %v5169_v46  ;;  %v5145_v44 = vsub.f32 %v12379_v36, %v5107_v62  ;;  %v5171_v31 = vmul.f32 1.442695, %v5148_v55 }
 0xabb   : > { %v5110_v35 = vpop.xlane.xlu1 %5109 }
 0xabc   : > { %v5165_v47 = vmul.f32 1.442695, %v5145_v44  ;;  %v5146_v21 = vsub.f32 %v12389_v10, %v5110_v35 }
 0xabe   : > { %10225 = vpow2.f32 %v5165_v47  ;;  %v5167_v45 = vmul.f32 1.442695, %v5146_v21 }
 0xabf   : > { %10227 = vpow2.f32 %v5171_v31  ;;  %v5284_v62 = vpop.permute.xlu1 %5283 }
 0xac0   : > { %10229 = vpow2.f32 %v5167_v45 }
 0xac3   : > { %v5286_v35 = vpop.permute.xlu1 %5285 }
 0xac4   : > { %v12481_v3 = vpop.eup %10223 }
 0xac5   : > { %v5207_v56 = vsel %vm3038_vm0, %v12481_v3, 0.0 }
 0xac6   : > { %5208 = vadd.xlane.f32.xlu0 %v5207_v56  ;;  %v13875_v56 = vld [vmem:[#allocation26_spill] sm:$0xff] }
 0xac8   : > { %v12485_v22 = vpop.eup %10225 }
 0xac9   : > { %v12487_v17 = vpop.eup %10227  ;;  %v5201_v36 = vsel %vm3038_vm0, %v12485_v22, 0.0 }
 0xaca   : > { %v12491_v42 = vpop.eup %10229  ;;  %5202 = vadd.xlane.f32.xlu0 %v5201_v36  ;;  %v5210_v2 = vsel %vm3038_vm0, %v12487_v17, 0.0 }
 0xacb   : > { %v5204_v10 = vsel %vm3038_vm0, %v12491_v42, 0.0 }
 0xacc   : > { %5205 = vadd.xlane.f32.xlu1 %v5204_v10 }
 0xacd   : > { %v5125_v53 = vpop.xlane.xlu0 %5124 }
 0xace   : > { %v5151_v6 = vsub.f32 %v12405_v49, %v5125_v53  ;;  %5211 = vadd.xlane.f32.xlu0 %v5210_v2 }
 0xad0   : > { %v5177_v13 = vmul.f32 1.442695, %v5151_v6 }
 0xad1   : > { %v5119_v46 = vpop.xlane.xlu0 %5118 }
 0xad2   : > { %10231 = vpow2.f32 %v5177_v13  ;;  %v5149_v55 = vsub.f32 %v12413_v61, %v5119_v46  ;;  %v5288_v61 = vpop.permute.xlu1 %5287 }
 0xad4   : > { %v5173_v44 = vmul.f32 1.442695, %v5149_v55 }
 0xad5   : > { %v5282_v31 = vpop.permute.xlu0 %5281 }
 0xad6   : > { %10233 = vpow2.f32 %v5173_v44  ;;  %8951 = vmatprep.subr.bf16.mxu0 %v5282_v31 }
 0xad7   : > { %8952 = vmatpush3.bf16.msra.mxu0 %v5282_v31 }
 0xad8   : > { %8953 = vmatprep.subr.bf16.mxu0 %v5284_v62 }
 0xadb   : > { %8954 = vmatpush3.bf16.msra.mxu0 %v5284_v62 }
 0xadc   : > { %v12499_v47 = vpop.eup %10231  ;;  %8955 = vmatprep.subr.bf16.mxu0 %v5286_v35 }
 0xadd   : > { %5376 = vrot.lane.b32.xlu1 %v13839_v14, %s10597_s21  ;;  %v5219_v49 = vsel %vm3038_vm0, %v12499_v47, 0.0 }
 0xade   : > { %5220 = vadd.xlane.f32.xlu0 %v5219_v49 }
 0xadf   : > { %8956 = vmatpush3.bf16.msra.mxu0 %v5286_v35 }
 0xae0   : > { %v12505_v21 = vpop.eup %10233  ;;  %8957 = vmatprep.subr.bf16.mxu0 %v5288_v61 }
 0xae1   : > { %5378 = vrot.lane.b32.xlu1 %v13840_v38, %s10597_s21  ;;  %v5213_v45 = vsel %vm3038_vm0, %v12505_v21, 0.0 }
 0xae2   : > { %5214 = vadd.xlane.f32.xlu0 %v5213_v45 }
 0xae3   : > { %8958 = vmatpush3.bf16.msra.mxu0 %v5288_v61 }
 0xae4   : > { %9367 = vmatprep.subr.msk.bf16.mxu0 %vm3038_vm0, %v13875_v56 }
 0xaf8   : > { %5374 = vrot.lane.b32.xlu0 %v13835_v19, %s10597_s21  ;;  %v5128_v14 = vpop.xlane.xlu1 %5127 }
 0xaf9   : > { %v5152_v36 = vsub.f32 %v12425_v9, %v5128_v14 }
 0xafb   : > { %v5179_v10 = vmul.f32 1.442695, %v5152_v36 }
 0xafc   : > { %v5122_v53 = vpop.xlane.xlu1 %5121 }
 0xafd   : > { %10235 = vpow2.f32 %v5179_v10  ;;  %v5150_v2 = vsub.f32 %v12431_v20, %v5122_v53 }
 0xaff   : > { %v5175_v38 = vmul.f32 1.442695, %v5150_v2 }
 0xb00   : > { %v5140_v6 = vpop.xlane.xlu1 %5139 }
 0xb01   : > { %10237 = vpow2.f32 %v5175_v38  ;;  %v5156_v61 = vsub.f32 %v12438_v12, %v5140_v6 }
 0xb03   : > { %v5187_v36 = vmul.f32 1.442695, %v5156_v61 }
 0xb04   : > { %v5134_v13 = vpop.xlane.xlu1 %5133 }
 0xb06   : > { %v5137_v46 = vpop.xlane.xlu0 %5136 }
 0xb07   : > { %v12517_v55 = vpop.eup %10235  ;;  %v5155_v62 = vsub.f32 %v12449_v60, %v5137_v46 }
 0xb08   : > { %v5200_v44 = vpop.xlane.xlu1 %5199  ;;  %v5222_v19 = vsel %vm3038_vm0, %v12517_v55, 0.0 }
 0xb09   : > { %5223 = vadd.xlane.f32.xlu1 %v5222_v19  ;;  %v5185_v9 = vmul.f32 1.442695, %v5155_v62 }
 0xb0a   : > { %v5131_v31 = vpop.xlane.xlu0 %5130 }
 0xb0b   : > { %v12522_v35 = vpop.eup %10237  ;;  %v5153_v20 = vsub.f32 %v12459_v7, %v5131_v31  ;;  %10239 = vpow2.f32 %v5185_v9 }
 0xb0c   : > { %v5216_v49 = vsel %vm3038_vm0, %v12522_v35, 0.0  ;;  %v5194_v60 = vpop.xlane.xlu1 %5193 }
 0xb0d   : > { %v5181_v45 = vmul.f32 1.442695, %v5153_v20  ;;  %5217 = vadd.xlane.f32.xlu1 %v5216_v49 }
 0xb0e   : > { %v5197_v14 = vpop.xlane.xlu0 %5196 }
 0xb0f   : > { %10241 = vpow2.f32 %v5181_v45  ;;  %v13877_v45 = vld [vmem:[#allocation30_spill] sm:$0xff] }
 0xb10   : > { %10243 = vrcp.f32 %v5197_v14  ;;  %v5602_v14 = vsel %vm3038_vm0, %v13877_v45, 0 }
 0xb11   : > { %10245 = vrcp.f32 %v5194_v60 }
 0xb12   : > { %10247 = vrcp.f32 %v5200_v44  ;;  %v5191_v10 = vpop.xlane.xlu0 %5190 }
 0xb13   : > { %10249 = vrcp.f32 %v5191_v10 }
 0xb14   : > { %10251 = vpow2.f32 %v5187_v36  ;;  %v13878_v36 = vld [vmem:[#allocation32_spill] sm:$0xff] }
 0xb15   : > { %v12528_v53 = vpop.eup %10239  ;;  %v5605_v10 = vsel %vm3038_vm0, %v13878_v36, 0 }
 0xb16   : > { %v5231_v44 = vsel %vm3038_vm0, %v12528_v53, 0.0 }
 0xb19   : > { %v12530_v7 = vpop.eup %10241 }
 0xb1a   : > { %v10244_v2 = vpop.eup %10243  ;;  %v5225_v12 = vsel %vm3038_vm0, %v12530_v7, 0.0 }
 0xb1b   : > { %v10246_v38 = vpop.eup %10245  ;;  %5226 = vadd.xlane.f32.xlu0 %v5225_v12  ;;  %v5255_v62 = vmul.f32 %v10244_v2, %v12467_v58 }
 0xb1c   : > { %v10248_v6 = vpop.eup %10247  ;;  %v5254_v9 = vmul.f32 %v10246_v38, %v12463_v26  ;;  %v13876_v26 = vld [vmem:[#allocation28_spill] sm:$0xff] }
 0xb1d   : > { %v10250_v46 = vpop.eup %10249  ;;  %v5256_v20 = vmul.f32 %v10248_v6, %v12453_v8  ;;  %v5599_v8 = vsel %vm3038_vm0, %v13876_v26, 0 }
 0xb1e   : > { %5380 = vrot.lane.b32.xlu1 %v13842_v40, %s10597_s21  ;;  %v5253_v19 = vmul.f32 %v10250_v46, %v12473_v27  ;;  %v12541_v31 = vpop.eup %10251  ;;  %v5596_v40 = vsel %vm3038_vm0, %v13875_v56, 0  ;;  %v5154_v27 = vsub.f32 %v12445_v48, %v5134_v13  ;;  %v13879_v48 = vld [vmem:[#allocation49_spill] sm:$0xff] }
 0xb1f   : > { %5232 = vadd.xlane.f32.xlu0 %v5231_v44  ;;  %v5270_v61 = vpack.c.bf16 %v5256_v20, %v5255_v62  ;;  %v5234_v58 = vsel %vm3038_vm0, %v12541_v31, 0.0 }
 0xb20   : > { %v5269_v49 = vpack.c.bf16 %v5254_v9, %v5253_v19  ;;  %v5183_v60 = vmul.f32 1.442695, %v5154_v27 }
 0xb22   : > { %8959 = vmatprep.mubr.msk.bf16.mxu0 %vm3038_vm0, %v5269_v49  ;;  %10253 = vpow2.f32 %v5183_v60  ;;  %v13884_v60 = vld [vmem:[#allocation51_spill] sm:$0xff] }
 0xb23   : > { %5235 = vadd.xlane.f32.xlu0 %v5234_v58  ;;  %8960 = vmatmul.mubr.msk.bf16.vlgmr.msra.gmra.mrb[152].mxu0 %vm3038_vm0, %v5270_v61 }
 0xb24   : > { %8984 = vmatpush3.bf16.xpose.msra.mxu0 %v5596_v40 }
 0xb25   : > { %9368 = vmatprep.subr.msk.bf16.mxu0 %vm3038_vm0, %v13876_v26 }
 0xb2c   : > { %8986 = vmatpush3.bf16.xpose.msra.mxu0 %v5599_v8  ;;  %v12568_v13 = vpop.eup %10253  ;;  %v13880_v8 = vld [vmem:[#allocation21_spill] sm:$0xff] }
 0xb2d   : > { %9369 = vmatprep.subr.msk.bf16.mxu0 %vm3038_vm0, %v13877_v45  ;;  %v5228_v2 = vsel %vm3038_vm0, %v12568_v13, 0.0 }
 0xb34   : > { %8988 = vmatpush3.bf16.xpose.msra.mxu0 %v5602_v14 }
 0xb35   : > { %9370 = vmatprep.subr.msk.bf16.mxu0 %vm3038_vm0, %v13878_v36 }
 0xb39   : > { %6131 = vrot.lane.b32.xlu0 %v13875_v56, %s10597_s21 }
 0xb3c   : > { %8990 = vmatpush3.bf16.xpose.msra.mxu0 %v5605_v10  ;;  %v13886_v10 = vld [vmem:[#allocation50_spill] sm:$0xff] }
 0xb3d   : > { %9015 = vmatprep.subr.bf16.mxu0 %v13879_v48  ;;  %6135 = vrot.lane.b32.xlu0 %v13877_v45, %s10597_s21 }
 0xb41   : > { %6137 = vrot.lane.b32.xlu0 %v13878_v36, %s10597_s21  ;;  %v13885_v36 = vld [vmem:[#allocation24_spill] sm:$0xff] }
 0xb42   : > { %5229 = vadd.xlane.f32.xlu1 %v5228_v2 }
 0xb53   : > { %v5209_v12 = vpop.xlane.xlu0 %5208  ;;  %6133 = vrot.lane.b32.xlu1 %v13876_v26, %s10597_s21 }
 0xb57   : > { %v5203_v56 = vpop.xlane.xlu0 %5202 }
 0xb58   : > { %10255 = vrcp.f32 %v5203_v56 }
 0xb59   : > { %10257 = vrcp.f32 %v5209_v12  ;;  %v5206_v38 = vpop.xlane.xlu1 %5205 }
 0xb5a   : > { %10259 = vrcp.f32 %v5206_v38  ;;  %v13887_v38 = vld [vmem:[#allocation34_spill] sm:$0xff] }
 0xb5b   : > { %v5212_v6 = vpop.xlane.xlu0 %5211 }
 0xb5c   : > { %10261 = vrcp.f32 %v5212_v6 }
 0xb62   : > { %v10256_v46 = vpop.eup %10255 }
 0xb63   : > { %v10258_v62 = vpop.eup %10257  ;;  %v5257_v19 = vmul.f32 %v10256_v46, %v12485_v22  ;;  %v13881_v22 = vld [vmem:[#allocation22_spill] sm:$0xff] }
 0xb64   : > { %v10260_v44 = vpop.eup %10259  ;;  %v5259_v61 = vmul.f32 %v10258_v62, %v12481_v3  ;;  %v13882_v3 = vld [vmem:[#allocation23_spill] sm:$0xff] }
 0xb65   : > { %v5258_v9 = vmul.f32 %v10260_v44, %v12491_v42  ;;  %v5377_v42 = vpop.permute.xlu1 %5376 }
 0xb66   : > { %v10262_v20 = vpop.eup %10261 }
 0xb67   : > { %v5271_v49 = vpack.c.bf16 %v5258_v9, %v5257_v19  ;;  %v5260_v58 = vmul.f32 %v10262_v20, %v12487_v17  ;;  %v13883_v17 = vld [vmem:[#allocation48_spill] sm:$0xff] }
 0xb69   : > { %8963 = vmatprep.mubr.msk.bf16.mxu0 %vm3038_vm0, %v5271_v49  ;;  %v5272_v40 = vpack.c.bf16 %v5260_v58, %v5259_v61  ;;  %v5379_v14 = vpop.permute.xlu1 %5378 }
 0xb6b   : > { %v5221_v26 = vpop.xlane.xlu0 %5220  ;;  %8964 = vmatmul.mubr.msk.bf16.gmra.mrb[156].mxu0 %vm3038_vm0, %v5272_v40 }
 0xb6c   : > { %8991 = vmatprep.mubr.msk.bf16.mxu0 %vm3038_vm0, %v13880_v8 }
 0xb6f   : > { %v5215_v27 = vpop.xlane.xlu0 %5214 }
 0xb73   : > { %v5375_v45 = vpop.permute.xlu0 %5374  ;;  %8992 = vmatmul.mubr.msk.bf16.vlgmr.msra.gmra.mrb[160].mxu0 %vm3038_vm0, %v13881_v22 }
 0xb74   : > { %9016 = vmatpush3.bf16.msra.mxu0 %v13879_v48  ;;  %8967 = vmatprep.subr.bf16.mxu1 %v5375_v45 }
 0xb75   : > { %8995 = vmatprep.mubr.msk.bf16.mxu0 %vm3038_vm0, %v13882_v3  ;;  %9017 = vmatprep.subr.bf16.mxu0 %v13883_v17 }
 0xb76   : > { %8968 = vmatpush3.bf16.msra.mxu1 %v5375_v45  ;;  %v13888_v45 = vld [vmem:[#allocation36_spill] sm:$0xff] }
 0xb77   : > { %8969 = vmatprep.subr.bf16.mxu1 %v5377_v42 }
 0xb78   : > { %9018 = vmatpush3.bf16.msra.mxu0 %v13883_v17 }
 0xb79   : > { %9019 = vmatprep.subr.bf16.mxu0 %v13884_v60 }
 0xb7a   : > { %8970 = vmatpush3.bf16.msra.mxu1 %v5377_v42 }
 0xb7b   : > { %8971 = vmatprep.subr.bf16.mxu1 %v5379_v14  ;;  %8996 = vmatmul.mubr.msk.bf16.gmra.mrb[164].mxu0 %vm3038_vm0, %v13885_v36 }
 0xb7c   : > { %9020 = vmatpush3.bf16.msra.mxu0 %v13884_v60 }
 0xb7d   : > { %9021 = vmatprep.subr.bf16.mxu0 %v13886_v10 }
 0xb7e   : > { %8972 = vmatpush3.bf16.msra.mxu1 %v5379_v14  ;;  %v13890_v14 = vld [vmem:[#allocation40_spill] sm:$0xff] }
 0xb80   : > { %9022 = vmatpush3.bf16.msra.mxu0 %v13886_v10 }
 0xb96   : > { %v5224_v2 = vpop.xlane.xlu1 %5223 }
 0xb97   : > { %10263 = vrcp.f32 %v5224_v2  ;;  %v5694_v2 = vsel %vm3038_vm0, %v13890_v14, 0 }
 0xb98   : > { %10265 = vrcp.f32 %v5215_v27 }
 0xb99   : > { %10267 = vrcp.f32 %v5221_v26  ;;  %v5685_v26 = vsel %vm3038_vm0, %v13887_v38, 0 }
 0xb9a   : > { %v5218_v12 = vpop.xlane.xlu1 %5217 }
 0xb9b   : > { %10269 = vrcp.f32 %v5218_v12  ;;  %v13891_v12 = vld [vmem:[#allocation53_spill] sm:$0xff] }
 0xb9e   : > { %v5381_v56 = vpop.permute.xlu1 %5380 }
 0xb9f   : > { %8973 = vmatprep.subr.bf16.mxu1 %v5381_v56 }
 0xba0   : > { %8974 = vmatpush3.bf16.msra.mxu1 %v5381_v56 }
 0xba1   : > { %9371 = vmatprep.subr.msk.bf16.mxu1 %vm3038_vm0, %v13887_v38  ;;  %v10264_v6 = vpop.eup %10263 }
 0xba2   : > { %v10266_v46 = vpop.eup %10265  ;;  %v5264_v19 = vmul.f32 %v10264_v6, %v12517_v55  ;;  %v5688_v55 = vsel %vm3038_vm0, %v13888_v45, 0 }
 0xba3   : > { %v10268_v62 = vpop.eup %10267  ;;  %v5261_v9 = vmul.f32 %v10266_v46, %v12505_v21 }
 0xba4   : > { %v5263_v49 = vmul.f32 %v10268_v62, %v12499_v47 }
 0xba5   : > { %v10270_v44 = vpop.eup %10269 }
 0xba6   : > { %v5262_v20 = vmul.f32 %v10270_v44, %v12522_v35  ;;  %v5274_v40 = vpack.c.bf16 %v5264_v19, %v5263_v49  ;;  %v13889_v35 = vld [vmem:[#allocation38_spill] sm:$0xff] }
 0xba7   : > { %v5691_v42 = vsel %vm3038_vm0, %v13889_v35, 0 }
 0xba8   : > { %v5227_v61 = vpop.xlane.xlu0 %5226  ;;  %v5273_v58 = vpack.c.bf16 %v5262_v20, %v5261_v9 }
 0xbaa   : > { %8975 = vmatprep.mubr.msk.bf16.mxu1 %vm3038_vm0, %v5273_v58 }
 0xbab   : > { %8976 = vmatmul.mubr.msk.bf16.vlgmr.msra.gmra.mrb[168].mxu1 %vm3038_vm0, %v5274_v40 }
 0xbac   : > { %9000 = vmatpush3.bf16.xpose.msra.mxu1 %v5685_v26  ;;  %v5233_v27 = vpop.xlane.xlu0 %5232  ;;  %v13893_v26 = vld [vmem:[#allocation27_spill] sm:$0xff] }
 0xbad   : > { %9372 = vmatprep.subr.msk.bf16.mxu1 %vm3038_vm0, %v13888_v45 }
 0xbb0   : > { %v5236_v21 = vpop.xlane.xlu0 %5235 }
 0xbb1   : > { %10271 = vrcp.f32 %v5236_v21 }
 0xbb2   : > { %10273 = vrcp.f32 %v5227_v61  ;;  %v13892_v61 = vld [vmem:[#allocation25_spill] sm:$0xff] }
 0xbb3   : > { %10275 = vrcp.f32 %v5233_v27  ;;  %v13898_v27 = vld [vmem:[#allocation54_spill] sm:$0xff] }
 0xbb4   : > { %9002 = vmatpush3.bf16.xpose.msra.mxu1 %v5688_v55  ;;  %v12611_v47 = vpop.permute.xlu0 %6131 }
 0xbb5   : > { %9373 = vmatprep.subr.msk.bf16.mxu1 %vm3038_vm0, %v13889_v35  ;;  %9375 = vmatprep.subr.msk.bf16.mxu0 %vm3038_vm0, %v12611_v47 }
 0xbbb   : > { %v10272_v6 = vpop.eup %10271 }
 0xbbc   : > { %9004 = vmatpush3.bf16.xpose.msra.mxu1 %v5691_v42  ;;  %v10274_v46 = vpop.eup %10273  ;;  %v5268_v19 = vmul.f32 %v10272_v6, %v12541_v31  ;;  %v13894_v31 = vld [vmem:[#allocation29_spill] sm:$0xff] }
 0xbbd   : > { %9374 = vmatprep.subr.msk.bf16.mxu1 %vm3038_vm0, %v13890_v14  ;;  %v10276_v62 = vpop.eup %10275  ;;  %v5265_v9 = vmul.f32 %v10274_v46, %v12530_v7  ;;  %v13895_v7 = vld [vmem:[#allocation52_spill] sm:$0xff] }
 0xbbe   : > { %v5267_v49 = vmul.f32 %v10276_v62, %v12528_v53  ;;  %v13896_v53 = vld [vmem:[#allocation55_spill] sm:$0xff] }
 0xbc0   : > { %v5276_v40 = vpack.c.bf16 %v5268_v19, %v5267_v49 }
 0xbc4   : > { %9006 = vmatpush3.bf16.xpose.msra.mxu1 %v5694_v2 }
 0xbc5   : > { %9031 = vmatprep.subr.bf16.mxu1 %v13891_v12 }
 0xbcf   : > { %v5230_v56 = vpop.xlane.xlu1 %5229 }
 0xbd0   : > { %10277 = vrcp.f32 %v5230_v56 }
 0xbda   : > { %v10278_v44 = vpop.eup %10277 }
 0xbdb   : > { %v5266_v20 = vmul.f32 %v10278_v44, %v12568_v13  ;;  %v13897_v13 = vld [vmem:[#allocation31_spill] sm:$0xff] }
 0xbdd   : > { %v5275_v58 = vpack.c.bf16 %v5266_v20, %v5265_v9 }
 0xbdf   : > { %8979 = vmatprep.mubr.msk.bf16.mxu1 %vm3038_vm0, %v5275_v58 }
 0xbe0   : > { %8980 = vmatmul.mubr.msk.bf16.gmra.mrb[172].mxu1 %vm3038_vm0, %v5276_v40 }
 0xbe1   : > { %9007 = vmatprep.mubr.msk.bf16.mxu1 %vm3038_vm0, %v13892_v61 }
 0xbe8   : > { %9008 = vmatmul.mubr.msk.bf16.vlgmr.msra.gmra.mrb[176].mxu1 %vm3038_vm0, %v13893_v26 }
 0xbe9   : > { %9032 = vmatpush3.bf16.msra.mxu1 %v13891_v12  ;;  %9011 = vmatprep.mubr.msk.bf16.mxu1 %vm3038_vm0, %v13894_v31 }
 0xbea   : > { %9033 = vmatprep.subr.bf16.mxu1 %v13895_v7 }
 0xbed   : > { %9034 = vmatpush3.bf16.msra.mxu1 %v13895_v7 }
 0xbee   : > { %9035 = vmatprep.subr.bf16.mxu1 %v13896_v53 }
 0xbf0   : > { %9012 = vmatmul.mubr.msk.bf16.gmra.mrb[180].mxu1 %vm3038_vm0, %v13897_v13 }
 0xbf1   : > { %9036 = vmatpush3.bf16.msra.mxu1 %v13896_v53 }
 0xbf2   : > { %9037 = vmatprep.subr.bf16.mxu1 %v13898_v27 }
 0xbf5   : > { %9038 = vmatpush3.bf16.msra.mxu1 %v13898_v27 }
 0xbf6   : > { %v12645_v21 = vpop.f32.mrb[152].mxu0 }
 0xbf7   : > { %v12647_v55 = vpop.f32.mrb[153].mxu0 }
 0xbf8   : > { %v12649_v42 = vpop.f32.mrb[154].mxu0 }
 0xbf9   : > { %v12653_v56 = vpop.f32.mrb[155].mxu0 }
 0xc3e   : > { %v12657_v46 = vpop.f32.mrb[156].mxu0 }
 0xc3f   : > { %13899 = vst [vmem:[#allocation26_spill] sm:$0xff] %v12657_v46  ;;  %v12659_v62 = vpop.f32.mrb[157].mxu0 }
 0xc40   : > { %13900 = vst [vmem:[#allocation28_spill] sm:$0xff] %v12659_v62  ;;  %v12661_v44 = vpop.f32.mrb[158].mxu0 }
 0xc41   : > { %13901 = vst [vmem:[#allocation30_spill] sm:$0xff] %v12661_v44  ;;  %v12665_v9 = vpop.f32.mrb[159].mxu0 }
 0xc42   : > { %13902 = vst [vmem:[#allocation32_spill] sm:$0xff] %v12665_v9 }
 0xc46   : > { %v8993_v49 = vpop.f32.mrb[160].mxu0 }
 0xc47   : > { %v12671_v58 = vsel %vm11375_vm1, %v8993_v49, -inf  ;;  %v5641_v40 = vpop.f32.mrb[161].mxu0 }
 0xc48   : > { %v5783_v2 = vsel %vm3038_vm0, %v12671_v58, -inf  ;;  %v8994_v6 = vpop.f32.mrb[162].mxu0  ;;  %v12677_v33 = vsel %vm11380_vm2, %v5641_v40, -inf }
 0xc49   : > { %v12681_v19 = vsel %vm11384_vm3, %v8994_v6, -inf  ;;  %5784 = vmax.xlane.f32.xlu0 %v5783_v2  ;;  %v5644_v20 = vpop.f32.mrb[163].mxu0  ;;  %v5777_v54 = vsel %vm3038_vm0, %v12677_v33, -inf }
 0xc4a   : > { %v5786_v37 = vsel %vm3038_vm0, %v12681_v19, -inf  ;;  %v12687_v49 = vsel %vm11392_vm4, %v5644_v20, -inf }
 0xc4b   : > { %5787 = vmax.xlane.f32.xlu1 %v5786_v37  ;;  %v5780_v40 = vsel %vm3038_vm0, %v12687_v49, -inf }
 0xc4d   : > { %5778 = vmax.xlane.f32.xlu0 %v5777_v54 }
 0xc4e   : > { %v8997_v59 = vpop.f32.mrb[164].mxu0 }
 0xc4f   : > { %v12695_v2 = vsel %vm11417_vm5, %v8997_v59, -inf  ;;  %5781 = vmax.xlane.f32.xlu1 %v5780_v40  ;;  %v5657_v6 = vpop.f32.mrb[165].mxu0 }
 0xc50   : > { %v5795_v0 = vsel %vm3038_vm0, %v12695_v2, -inf  ;;  %v8998_v20 = vpop.f32.mrb[166].mxu0  ;;  %v12701_v37 = vsel %vm11432_vm7, %v5657_v6, -inf }
 0xc51   : > { %v12705_v54 = vsel %vm11424_vm6, %v8998_v20, -inf  ;;  %5796 = vmax.xlane.f32.xlu0 %v5795_v0  ;;  %v5660_v50 = vpop.f32.mrb[167].mxu0  ;;  %v5789_v24 = vsel %vm3038_vm0, %v12701_v37, -inf }
 0xc52   : > { %v5798_v59 = vsel %vm3038_vm0, %v12705_v54, -inf  ;;  %v12711_v40 = vsel %vm11436_vm8, %v5660_v50, -inf }
 0xc53   : > { %5799 = vmax.xlane.f32.xlu1 %v5798_v59  ;;  %v5792_v6 = vsel %vm3038_vm0, %v12711_v40, -inf }
 0xc55   : > { %5790 = vmax.xlane.f32.xlu0 %v5789_v24 }
 0xc57   : > { %5793 = vmax.xlane.f32.xlu1 %v5792_v6 }
 0xc7e   : > { %v12717_v20 = vpop.f32.mrb[168].mxu1 }
 0xc7f   : > { %13903 = vst [vmem:[#allocation49_spill] sm:$0xff] %v12717_v20  ;;  %v12719_v0 = vpop.f32.mrb[169].mxu1 }
 0xc80   : > { %13904 = vst [vmem:[#allocation21_spill] sm:$0xff] %v12719_v0  ;;  %v12721_v25 = vpop.f32.mrb[170].mxu1 }
 0xc81   : > { %13905 = vst [vmem:[#allocation22_spill] sm:$0xff] %v12721_v25  ;;  %v12725_v50 = vpop.f32.mrb[171].mxu1 }
 0xc82   : > { %13906 = vst [vmem:[#allocation23_spill] sm:$0xff] %v12725_v50 }
 0xcb3   : > { %v12729_v57 = vpop.f32.mrb[172].mxu1 }
 0xcb4   : > { %13907 = vst [vmem:[#allocation48_spill] sm:$0xff] %v12729_v57  ;;  %v12731_v24 = vpop.f32.mrb[173].mxu1 }
 0xcb5   : > { %13908 = vst [vmem:[#allocation51_spill] sm:$0xff] %v12731_v24  ;;  %v12733_v51 = vpop.f32.mrb[174].mxu1 }
 0xcb6   : > { %13909 = vst [vmem:[#allocation24_spill] sm:$0xff] %v12733_v51  ;;  %v12737_v5 = vpop.f32.mrb[175].mxu1 }
 0xcb7   : > { %13910 = vst [vmem:[#allocation50_spill] sm:$0xff] %v12737_v5 }
 0xcbb   : > { %v9009_v18 = vpop.f32.mrb[176].mxu1 }
 0xcbc   : > { %v12743_v28 = vsel %vm11375_vm1, %v9009_v18, -inf  ;;  %v5730_v59 = vpop.f32.mrb[177].mxu1 }
 0xcbd   : > { %v5807_v4 = vsel %vm3038_vm0, %v12743_v28, -inf  ;;  %v9010_v34 = vpop.f32.mrb[178].mxu1  ;;  %v12749_v20 = vsel %vm11380_vm2, %v5730_v59, -inf }
 0xcbe   : > { %v12753_v6 = vsel %vm11384_vm3, %v9010_v34, -inf  ;;  %5808 = vmax.xlane.f32.xlu0 %v5807_v4  ;;  %v5733_v32 = vpop.f32.mrb[179].mxu1  ;;  %v5801_v51 = vsel %vm3038_vm0, %v12749_v20, -inf }
 0xcbf   : > { %v5810_v57 = vsel %vm3038_vm0, %v12753_v6, -inf  ;;  %v12759_v18 = vsel %vm11392_vm4, %v5733_v32, -inf }
 0xcc0   : > { %5811 = vmax.xlane.f32.xlu1 %v5810_v57  ;;  %v5804_v59 = vsel %vm3038_vm0, %v12759_v18, -inf }
 0xcc2   : > { %5802 = vmax.xlane.f32.xlu0 %v5801_v51 }
 0xcc3   : > { %v9013_v24 = vpop.f32.mrb[180].mxu1 }
 0xcc4   : > { %v12767_v34 = vsel %vm11417_vm5, %v9013_v24, -inf  ;;  %5805 = vmax.xlane.f32.xlu1 %v5804_v59  ;;  %v5746_v4 = vpop.f32.mrb[181].mxu1  ;;  %v12779_v24 = vpop.permute.xlu0 %6135 }
 0xcc5   : > { %v5819_v5 = vsel %vm3038_vm0, %v12767_v34, -inf  ;;  %v9014_v32 = vpop.f32.mrb[182].mxu1  ;;  %v12773_v57 = vsel %vm11432_vm7, %v5746_v4, -inf }
 0xcc6   : > { %5820 = vmax.xlane.f32.xlu0 %v5819_v5  ;;  %v5749_v51 = vpop.f32.mrb[183].mxu1  ;;  %v5813_v25 = vsel %vm3038_vm0, %v12773_v57, -inf  ;;  %v12789_v5 = vpop.permute.xlu1 %6133 }
 0xcc8   : > { %v12783_v59 = vpop.permute.xlu0 %6137 }
 0xcca   : > { %5814 = vmax.xlane.f32.xlu0 %v5813_v25 }
 0xcd5   : > { %6121 = vrot.lane.b32.xlu1 %v13881_v22, %s10597_s21 }
 0xcd6   : > { %v5785_v4 = vpop.xlane.xlu0 %5784 }
 0xcd7   : > { %v5827_v0 = vsub.f32 %v12671_v58, %v5785_v4 }
 0xcd8   : > { %v5788_v22 = vpop.xlane.xlu1 %5787 }
 0xcd9   : > { %6244 = vrot.lane.b32.xlu1 %v13887_v38, %s10597_s21  ;;  %v5845_v46 = vmul.f32 1.442695, %v5827_v0  ;;  %v5828_v62 = vsub.f32 %v12681_v19, %v5788_v22  ;;  %v12802_v19 = vsel %vm11424_vm6, %v9014_v32, -inf }
 0xcda   : > { %v5779_v25 = vpop.xlane.xlu0 %5778 }
 0xcdb   : > { %v5825_v44 = vsub.f32 %v12677_v33, %v5779_v25  ;;  %10279 = vpow2.f32 %v5845_v46  ;;  %v5847_v30 = vmul.f32 1.442695, %v5828_v62 }
 0xcdc   : > { %v5782_v38 = vpop.xlane.xlu1 %5781 }
 0xcdd   : > { %6246 = vrot.lane.b32.xlu1 %v13888_v45, %s10597_s21  ;;  %v5841_v43 = vmul.f32 1.442695, %v5825_v44  ;;  %v5826_v58 = vsub.f32 %v12687_v49, %v5782_v38 }
 0xcde   : > { %v5797_v50 = vpop.xlane.xlu0 %5796 }
 0xcdf   : > { %v5831_v39 = vsub.f32 %v12695_v2, %v5797_v50  ;;  %10281 = vpow2.f32 %v5841_v43  ;;  %v5843_v33 = vmul.f32 1.442695, %v5826_v58 }
 0xce0   : > { %6119 = vrot.lane.b32.xlu0 %v13880_v8, %s10597_s21  ;;  %v5800_v41 = vpop.xlane.xlu1 %5799 }
 0xce1   : > { %v5853_v8 = vmul.f32 1.442695, %v5831_v39  ;;  %v5832_v46 = vsub.f32 %v12705_v54, %v5800_v41  ;;  %v12813_v41 = vsel %vm11436_vm8, %v5749_v51, -inf }
 0xce2   : > { %v5791_v45 = vpop.xlane.xlu0 %5790  ;;  %v5816_v54 = vsel %vm3038_vm0, %v12813_v41, -inf }
 0xce3   : > { %v5829_v9 = vsub.f32 %v12701_v37, %v5791_v45  ;;  %10283 = vpow2.f32 %v5853_v8  ;;  %v5855_v62 = vmul.f32 1.442695, %v5832_v46 }
 0xce4   : > { %10285 = vpow2.f32 %v5847_v30  ;;  %v5794_v44 = vpop.xlane.xlu1 %5793  ;;  %v5822_v30 = vsel %vm3038_vm0, %v12802_v19, -inf }
 0xce5   : > { %v5849_v0 = vmul.f32 1.442695, %v5829_v9  ;;  %v12797_v4 = vpop.eup %10279  ;;  %v5830_v9 = vsub.f32 %v12711_v40, %v5794_v44 }
 0xce6   : > { %v5879_v43 = vsel %vm3038_vm0, %v12797_v4, 0.0 }
 0xce7   : > { %10287 = vpow2.f32 %v5849_v0  ;;  %v5851_v37 = vmul.f32 1.442695, %v5830_v9 }
 0xce8   : > { %10289 = vpow2.f32 %v5843_v33 }
 0xce9   : > { %v12806_v39 = vpop.eup %10281  ;;  %10291 = vpow2.f32 %v5855_v62 }
 0xcea   : > { %v5873_v49 = vsel %vm3038_vm0, %v12806_v39, 0.0  ;;  %10293 = vpow2.f32 %v5851_v37 }
 0xced   : > { %v12817_v2 = vpop.eup %10283 }
 0xcee   : > { %v12821_v40 = vpop.eup %10285  ;;  %v5891_v50 = vsel %vm3038_vm0, %v12817_v2, 0.0 }
 0xcef   : > { %v5882_v51 = vsel %vm3038_vm0, %v12821_v40, 0.0 }
 0xcf1   : > { %v12825_v32 = vpop.eup %10287 }
 0xcf2   : > { %v12829_v25 = vpop.eup %10289  ;;  %v5885_v22 = vsel %vm3038_vm0, %v12825_v32, 0.0 }
 0xcf3   : > { %v5876_v38 = vsel %vm3038_vm0, %v12829_v25, 0.0  ;;  %v12835_v45 = vpop.eup %10291 }
 0xcf4   : > { %v5894_v8 = vsel %vm3038_vm0, %v12835_v45, 0.0  ;;  %v12839_v58 = vpop.eup %10293 }
 0xcf5   : > { %v5888_v0 = vsel %vm3038_vm0, %v12839_v58, 0.0 }
 0xcff   : > { %5880 = vadd.xlane.f32.xlu0 %v5879_v43 }
 0xd01   : > { %5823 = vmax.xlane.f32.xlu1 %v5822_v30 }
 0xd03   : > { %5874 = vadd.xlane.f32.xlu0 %v5873_v49 }
 0xd05   : > { %5817 = vmax.xlane.f32.xlu1 %v5816_v54 }
 0xd07   : > { %5892 = vadd.xlane.f32.xlu0 %v5891_v50 }
 0xd09   : > { %5883 = vadd.xlane.f32.xlu1 %v5882_v51 }
 0xd0b   : > { %5886 = vadd.xlane.f32.xlu0 %v5885_v22 }
 0xd0d   : > { %5877 = vadd.xlane.f32.xlu1 %v5876_v38 }
 0xd11   : > { %5895 = vadd.xlane.f32.xlu1 %v5894_v8 }
 0xd15   : > { %5889 = vadd.xlane.f32.xlu1 %v5888_v0 }
 0xd21   : > { %6123 = vrot.lane.b32.xlu0 %v13882_v3, %s10597_s21 }
 0xd4b   : > { %v5809_v33 = vpop.xlane.xlu0 %5808 }
 0xd4c   : > { %v5835_v46 = vsub.f32 %v12743_v28, %v5809_v33 }
 0xd4d   : > { %v5812_v44 = vpop.xlane.xlu1 %5811 }
 0xd4e   : > { %v5861_v43 = vmul.f32 1.442695, %v5835_v46  ;;  %v5836_v62 = vsub.f32 %v12753_v6, %v5812_v44 }
 0xd4f   : > { %v5803_v9 = vpop.xlane.xlu0 %5802 }
 0xd50   : > { %10295 = vpow2.f32 %v5861_v43  ;;  %v5833_v30 = vsub.f32 %v12749_v20, %v5803_v9  ;;  %v5863_v37 = vmul.f32 1.442695, %v5836_v62 }
 0xd51   : > { %v5806_v49 = vpop.xlane.xlu1 %5805 }
 0xd52   : > { %v5857_v54 = vmul.f32 1.442695, %v5833_v30  ;;  %v5834_v50 = vsub.f32 %v12759_v18, %v5806_v49 }
 0xd53   : > { %v5821_v51 = vpop.xlane.xlu0 %5820 }
 0xd54   : > { %10297 = vpow2.f32 %v5857_v54  ;;  %v5839_v3 = vsub.f32 %v12767_v34, %v5821_v51  ;;  %v5859_v28 = vmul.f32 1.442695, %v5834_v50 }
 0xd55   : > { %v12850_v22 = vpop.permute.xlu1 %6121  ;;  %10299 = vpow2.f32 %v5863_v37 }
 0xd56   : > { %v5869_v38 = vmul.f32 1.442695, %v5839_v3 }
 0xd57   : > { %v5815_v8 = vpop.xlane.xlu0 %5814 }
 0xd58   : > { %10301 = vpow2.f32 %v5869_v38  ;;  %v5837_v6 = vsub.f32 %v12773_v57, %v5815_v8 }
 0xd59   : > { %v12853_v0 = vpop.permute.xlu1 %6244  ;;  %10303 = vpow2.f32 %v5859_v28 }
 0xd5a   : > { %v12855_v20 = vpop.eup %10295  ;;  %v5865_v33 = vmul.f32 1.442695, %v5837_v6  ;;  %9379 = vmatprep.subr.msk.bf16.mxu1 %vm3038_vm0, %v12853_v0 }
 0xd5b   : > { %v5903_v18 = vsel %vm3038_vm0, %v12855_v20, 0.0  ;;  %v12883_v54 = vpop.permute.xlu0 %6119 }
 0xd5c   : > { %10305 = vpow2.f32 %v5865_v33  ;;  %5904 = vadd.xlane.f32.xlu1 %v5903_v18 }
 0xd5d   : > { %v12885_v50 = vpop.permute.xlu1 %6246 }
 0xd5e   : > { %v12861_v34 = vpop.eup %10297 }
 0xd5f   : > { %v5897_v46 = vsel %vm3038_vm0, %v12861_v34, 0.0  ;;  %v12865_v57 = vpop.eup %10299 }
 0xd60   : > { %5898 = vadd.xlane.f32.xlu1 %v5897_v46  ;;  %v5906_v62 = vsel %vm3038_vm0, %v12865_v57, 0.0 }
 0xd62   : > { %v12867_v44 = vpop.eup %10301 }
 0xd63   : > { %v5915_v43 = vsel %vm3038_vm0, %v12867_v44, 0.0  ;;  %v12873_v9 = vpop.eup %10303 }
 0xd64   : > { %5916 = vadd.xlane.f32.xlu0 %v5915_v43  ;;  %5907 = vadd.xlane.f32.xlu1 %v5906_v62  ;;  %v5900_v37 = vsel %vm3038_vm0, %v12873_v9, 0.0 }
 0xd66   : > { %v12875_v30 = vpop.eup %10305 }
 0xd67   : > { %v5909_v49 = vsel %vm3038_vm0, %v12875_v30, 0.0 }
 0xd68   : > { %5910 = vadd.xlane.f32.xlu0 %v5909_v49  ;;  %5901 = vadd.xlane.f32.xlu1 %v5900_v37 }
 0xd79   : > { %6125 = vrot.lane.b32.xlu1 %v13885_v36, %s10597_s21 }
 0xd8c   : > { %v5881_v51 = vpop.xlane.xlu0 %5880 }
 0xd8e   : > { %v5824_v3 = vpop.xlane.xlu1 %5823 }
 0xd8f   : > { %v5840_v28 = vsub.f32 %v12802_v19, %v5824_v3 }
 0xd90   : > { %v5875_v8 = vpop.xlane.xlu0 %5874 }
 0xd91   : > { %v5871_v38 = vmul.f32 1.442695, %v5840_v28 }
 0xd92   : > { %v5818_v6 = vpop.xlane.xlu1 %5817 }
 0xd93   : > { %10307 = vpow2.f32 %v5871_v38  ;;  %v5838_v33 = vsub.f32 %v12813_v41, %v5818_v6 }
 0xd94   : > { %v5893_v43 = vpop.xlane.xlu0 %5892 }
 0xd95   : > { %v5867_v18 = vmul.f32 1.442695, %v5838_v33 }
 0xd96   : > { %v5884_v46 = vpop.xlane.xlu1 %5883 }
 0xd97   : > { %10309 = vpow2.f32 %v5867_v18 }
 0xd98   : > { %10311 = vrcp.f32 %v5884_v46  ;;  %v5887_v49 = vpop.xlane.xlu0 %5886 }
 0xd99   : > { %10313 = vrcp.f32 %v5875_v8 }
 0xd9a   : > { %10315 = vrcp.f32 %v5881_v51  ;;  %v5878_v36 = vpop.xlane.xlu1 %5877 }
 0xd9b   : > { %10317 = vrcp.f32 %v5878_v36 }
 0xd9d   : > { %v12889_v62 = vpop.eup %10307 }
 0xd9e   : > { %v5896_v37 = vpop.xlane.xlu1 %5895  ;;  %v5918_v19 = vsel %vm3038_vm0, %v12889_v62, 0.0 }
 0xd9f   : > { %5919 = vadd.xlane.f32.xlu0 %v5918_v19  ;;  %10319 = vrcp.f32 %v5896_v37 }
 0xda0   : > { %10321 = vrcp.f32 %v5887_v49 }
 0xda1   : > { %v12893_v3 = vpop.eup %10309  ;;  %10323 = vrcp.f32 %v5893_v43 }
 0xda2   : > { %v10312_v41 = vpop.eup %10311  ;;  %v5890_v28 = vpop.xlane.xlu1 %5889  ;;  %v5912_v51 = vsel %vm3038_vm0, %v12893_v3, 0.0 }
 0xda3   : > { %v10314_v38 = vpop.eup %10313  ;;  %10325 = vrcp.f32 %v5890_v28  ;;  %5913 = vadd.xlane.f32.xlu1 %v5912_v51  ;;  %v5940_v33 = vmul.f32 %v10312_v41, %v12821_v40  ;;  %v6152_v28 = vsel %vm3038_vm0, %v12611_v47, 0  ;;  %v6155_v47 = vsel %vm3038_vm0, %v12789_v5, 0 }
 0xda4   : > { %v10316_v8 = vpop.eup %10315  ;;  %v5937_v18 = vmul.f32 %v10314_v38, %v12806_v39 }
 0xda5   : > { %v10318_v6 = vpop.eup %10317  ;;  %v5939_v36 = vmul.f32 %v10316_v8, %v12797_v4 }
 0xda6   : > { %v5938_v46 = vmul.f32 %v10318_v6, %v12829_v25 }
 0xda7   : > { %v5954_v37 = vpack.c.bf16 %v5940_v33, %v5939_v36 }
 0xda8   : > { %v5953_v49 = vpack.c.bf16 %v5938_v46, %v5937_v18  ;;  %v6265_v18 = vsel %vm3038_vm0, %v12853_v0, 0 }
 0xda9   : > { %v10320_v43 = vpop.eup %10319 }
 0xdaa   : > { %9023 = vmatprep.mubr.msk.bf16.mxu0 %vm3038_vm0, %v5953_v49  ;;  %v10322_v19 = vpop.eup %10321  ;;  %v5944_v39 = vmul.f32 %v10320_v43, %v12835_v45 }
 0xdab   : > { %9024 = vmatmul.mubr.msk.bf16.vlgmr.msra.gmra.mrb[168].mxu0 %vm3038_vm0, %v5954_v37  ;;  %v10324_v51 = vpop.eup %10323  ;;  %v5941_v4 = vmul.f32 %v10322_v19, %v12825_v32 }
 0xdac   : > { %9048 = vmatpush3.bf16.xpose.msra.mxu0 %v6152_v28  ;;  %v5943_v41 = vmul.f32 %v10324_v51, %v12817_v2 }
 0xdad   : > { %v10326_v40 = vpop.eup %10325  ;;  %9376 = vmatprep.subr.msk.bf16.mxu0 %vm3038_vm0, %v12789_v5  ;;  %v6158_v5 = vsel %vm3038_vm0, %v12779_v24, 0 }
 0xdae   : > { %v5942_v25 = vmul.f32 %v10326_v40, %v12839_v58  ;;  %v5956_v8 = vpack.c.bf16 %v5944_v39, %v5943_v41 }
 0xdb0   : > { %v5955_v38 = vpack.c.bf16 %v5942_v25, %v5941_v4 }
 0xdb2   : > { %9027 = vmatprep.mubr.msk.bf16.mxu0 %vm3038_vm0, %v5955_v38 }
 0xdb3   : > { %9028 = vmatmul.mubr.msk.bf16.gmra.mrb[172].mxu0 %vm3038_vm0, %v5956_v8 }
 0xdb4   : > { %9050 = vmatpush3.bf16.xpose.msra.mxu0 %v6155_v47  ;;  %6250 = vrot.lane.b32.xlu1 %v13890_v14, %s10597_s21  ;;  %v6124_v14 = vpop.permute.xlu0 %6123 }
 0xdb5   : > { %9377 = vmatprep.subr.msk.bf16.mxu0 %vm3038_vm0, %v12779_v24  ;;  %9055 = vmatprep.mubr.msk.bf16.mxu0 %vm3038_vm0, %v12883_v54 }
 0xdb6   : > { %6248 = vrot.lane.b32.xlu0 %v13889_v35, %s10597_s21  ;;  %v6161_v35 = vsel %vm3038_vm0, %v12783_v59, 0 }
 0xdb8   : > { %6234 = vrot.lane.b32.xlu1 %v13893_v26, %s10597_s21 }
 0xdba   : > { %6232 = vrot.lane.b32.xlu0 %v13892_v61, %s10597_s21 }
 0xdbc   : > { %9052 = vmatpush3.bf16.xpose.msra.mxu0 %v6158_v5  ;;  %6238 = vrot.lane.b32.xlu1 %v13897_v13, %s10597_s21 }
 0xdbd   : > { %9378 = vmatprep.subr.msk.bf16.mxu0 %vm3038_vm0, %v12783_v59 }
 0xdbe   : > { %6236 = vrot.lane.b32.xlu0 %v13894_v31, %s10597_s21 }
 0xdc2   : > { %6545 = vrot.lane.b32.xlu0 %v13879_v48, %s10597_s21 }
 0xdc4   : > { %9054 = vmatpush3.bf16.xpose.msra.mxu0 %v6161_v35 }
 0xdcb   : > { %9056 = vmatmul.mubr.msk.bf16.vlgmr.msra.gmra.mrb[176].mxu0 %vm3038_vm0, %v12850_v22 }
 0xdcc   : > { %9059 = vmatprep.mubr.msk.bf16.mxu0 %vm3038_vm0, %v6124_v14 }
 0xde9   : > { %v5905_v61 = vpop.xlane.xlu1 %5904 }
 0xded   : > { %v5899_v26 = vpop.xlane.xlu1 %5898 }
 0xdf1   : > { %v5908_v13 = vpop.xlane.xlu1 %5907 }
 0xdf2   : > { %10327 = vrcp.f32 %v5908_v13 }
 0xdf3   : > { %10329 = vrcp.f32 %v5899_v26 }
 0xdf4   : > { %10331 = vrcp.f32 %v5905_v61 }
 0xdf5   : > { %v5902_v24 = vpop.xlane.xlu1 %5901 }
 0xdf6   : > { %10333 = vrcp.f32 %v5902_v24 }
 0xdf9   : > { %v6126_v31 = vpop.permute.xlu1 %6125 }
 0xdfa   : > { %9060 = vmatmul.mubr.msk.bf16.gmra.mrb[180].mxu0 %vm3038_vm0, %v6126_v31 }
 0xdfc   : > { %v10328_v48 = vpop.eup %10327 }
 0xdfd   : > { %v10330_v59 = vpop.eup %10329  ;;  %v5948_v45 = vmul.f32 %v10328_v48, %v12865_v57  ;;  %v5917_v57 = vpop.xlane.xlu0 %5916 }
 0xdfe   : > { %v10332_v2 = vpop.eup %10331  ;;  %v5945_v58 = vmul.f32 %v10330_v59, %v12861_v34  ;;  %v6268_v34 = vsel %vm3038_vm0, %v12885_v50, 0 }
 0xdff   : > { %v5947_v54 = vmul.f32 %v10332_v2, %v12855_v20 }
 0xe00   : > { %v10334_v32 = vpop.eup %10333 }
 0xe01   : > { %v5946_v22 = vmul.f32 %v10334_v32, %v12873_v9  ;;  %v5958_v33 = vpack.c.bf16 %v5948_v45, %v5947_v54  ;;  %v5911_v9 = vpop.xlane.xlu0 %5910 }
 0xe03   : > { %v5957_v6 = vpack.c.bf16 %v5946_v22, %v5945_v58 }
 0xe05   : > { %9039 = vmatprep.mubr.msk.bf16.mxu1 %vm3038_vm0, %v5957_v6 }
 0xe06   : > { %9040 = vmatmul.mubr.msk.bf16.vlgmr.msra.gmra.mrb[184].mxu1 %vm3038_vm0, %v5958_v33 }
 0xe07   : > { %9064 = vmatpush3.bf16.xpose.msra.mxu1 %v6265_v18 }
 0xe08   : > { %9380 = vmatprep.subr.msk.bf16.mxu1 %vm3038_vm0, %v12885_v50 }
 0xe0f   : > { %9066 = vmatpush3.bf16.xpose.msra.mxu1 %v6268_v34 }
 0xe2c   : > { %v5920_v20 = vpop.xlane.xlu0 %5919 }
 0xe2d   : > { %10335 = vrcp.f32 %v5920_v20 }
 0xe2e   : > { %10337 = vrcp.f32 %v5911_v9 }
 0xe2f   : > { %10339 = vrcp.f32 %v5917_v57 }
 0xe30   : > { %v6249_v46 = vpop.permute.xlu0 %6248  ;;  %v5914_v36 = vpop.xlane.xlu1 %5913 }
 0xe31   : > { %v6271_v0 = vsel %vm3038_vm0, %v6249_v46, 0  ;;  %10341 = vrcp.f32 %v5914_v36  ;;  %9381 = vmatprep.subr.msk.bf16.mxu1 %vm3038_vm0, %v6249_v46 }
 0xe32   : > { %9068 = vmatpush3.bf16.xpose.msra.mxu1 %v6271_v0 }
 0xe34   : > { %v6233_v49 = vpop.permute.xlu0 %6232  ;;  %v6251_v37 = vpop.permute.xlu1 %6250 }
 0xe35   : > { %9382 = vmatprep.subr.msk.bf16.mxu1 %vm3038_vm0, %v6251_v37  ;;  %v6274_v28 = vsel %vm3038_vm0, %v6251_v37, 0 }
 0xe37   : > { %v10336_v50 = vpop.eup %10335 }
 0xe38   : > { %v6237_v43 = vpop.permute.xlu0 %6236  ;;  %v10338_v19 = vpop.eup %10337  ;;  %v5952_v39 = vmul.f32 %v10336_v50, %v12889_v62 }
 0xe39   : > { %v10340_v51 = vpop.eup %10339  ;;  %v5949_v25 = vmul.f32 %v10338_v19, %v12875_v30  ;;  %v6235_v5 = vpop.permute.xlu1 %6234 }
 0xe3a   : > { %9070 = vmatpush3.bf16.xpose.msra.mxu1 %v6274_v28  ;;  %v5951_v38 = vmul.f32 %v10340_v51, %v12867_v44 }
 0xe3b   : > { %v10342_v40 = vpop.eup %10341 }
 0xe3c   : > { %v6546_v4 = vpop.permute.xlu0 %6545  ;;  %v5950_v41 = vmul.f32 %v10342_v40, %v12893_v3  ;;  %v5960_v47 = vpack.c.bf16 %v5952_v39, %v5951_v38 }
 0xe3d   : > { %9079 = vmatprep.subr.bf16.mxu0 %v6546_v4  ;;  %v6239_v30 = vpop.permute.xlu1 %6238 }
 0xe3e   : > { %9080 = vmatpush3.bf16.msra.mxu0 %v6546_v4  ;;  %v5959_v8 = vpack.c.bf16 %v5950_v41, %v5949_v25 }
 0xe40   : > { %9043 = vmatprep.mubr.msk.bf16.mxu1 %vm3038_vm0, %v5959_v8 }
 0xe41   : > { %9044 = vmatmul.mubr.msk.bf16.gmra.mrb[188].mxu1 %vm3038_vm0, %v5960_v47 }
 0xe42   : > { %9071 = vmatprep.mubr.msk.bf16.mxu1 %vm3038_vm0, %v6233_v49 }
 0xe49   : > { %9072 = vmatmul.mubr.msk.bf16.vlgmr.msra.gmra.mrb[192].mxu1 %vm3038_vm0, %v6235_v5 }
 0xe4a   : > { %9075 = vmatprep.mubr.msk.bf16.mxu1 %vm3038_vm0, %v6237_v43 }
 0xe51   : > { %9076 = vmatmul.mubr.msk.bf16.gmra.mrb[196].mxu1 %vm3038_vm0, %v6239_v30 }
 0xe7e   : > { %v12969_v62 = vpop.f32.mrb[168].mxu0 }
 0xe7f   : > { %v12971_v44 = vpop.f32.mrb[169].mxu0 }
 0xe80   : > { %v12973_v3 = vpop.f32.mrb[170].mxu0 }
 0xe81   : > { %v12975_v35 = vpop.f32.mrb[171].mxu0 }
 0xe86   : > { %v12977_v14 = vpop.f32.mrb[172].mxu0 }
 0xe87   : > { %v12979_v61 = vpop.f32.mrb[173].mxu0 }
 0xe88   : > { %v12981_v26 = vpop.f32.mrb[174].mxu0 }
 0xe89   : > { %v12983_v13 = vpop.f32.mrb[175].mxu0 }
 0xe9e   : > { %v9057_v24 = vpop.f32.mrb[176].mxu0 }
 0xe9f   : > { %v12987_v31 = vsel %vm11375_vm1, %v9057_v24, -inf  ;;  %v6197_v48 = vpop.f32.mrb[177].mxu0 }
 0xea0   : > { %v6363_v59 = vsel %vm3038_vm0, %v12987_v31, -inf  ;;  %v9058_v2 = vpop.f32.mrb[178].mxu0  ;;  %v12993_v32 = vsel %vm11380_vm2, %v6197_v48, -inf }
 0xea1   : > { %6364 = vmax.xlane.f32.xlu0 %v6363_v59  ;;  %v6200_v45 = vpop.f32.mrb[179].mxu0  ;;  %v6357_v54 = vsel %vm3038_vm0, %v12993_v32, -inf  ;;  %v13005_v6 = vsel %vm11384_vm3, %v9058_v2, -inf }
 0xea2   : > { %v12997_v58 = vsel %vm11392_vm4, %v6200_v45, -inf  ;;  %v6366_v33 = vsel %vm3038_vm0, %v13005_v6, -inf }
 0xea3   : > { %v6360_v22 = vsel %vm3038_vm0, %v12997_v58, -inf }
 0xea4   : > { %6361 = vmax.xlane.f32.xlu1 %v6360_v22 }
 0xea5   : > { %6358 = vmax.xlane.f32.xlu0 %v6357_v54 }
 0xea9   : > { %6367 = vmax.xlane.f32.xlu0 %v6366_v33 }
 0xecd   : > { %v9061_v18 = vpop.f32.mrb[180].mxu0 }
 0xece   : > { %v13011_v34 = vsel %vm11417_vm5, %v9061_v18, -inf  ;;  %v6213_v57 = vpop.f32.mrb[181].mxu0 }
 0xecf   : > { %v6375_v9 = vsel %vm3038_vm0, %v13011_v34, -inf  ;;  %v9062_v20 = vpop.f32.mrb[182].mxu0  ;;  %v13017_v46 = vsel %vm11432_vm7, %v6213_v57, -inf }
 0xed0   : > { %v13021_v36 = vsel %vm11424_vm6, %v9062_v20, -inf  ;;  %6376 = vmax.xlane.f32.xlu0 %v6375_v9  ;;  %v6216_v0 = vpop.f32.mrb[183].mxu0  ;;  %v6369_v50 = vsel %vm3038_vm0, %v13017_v46, -inf }
 0xed1   : > { %v6378_v49 = vsel %vm3038_vm0, %v13021_v36, -inf  ;;  %v13027_v37 = vsel %vm11436_vm8, %v6216_v0, -inf }
 0xed2   : > { %6379 = vmax.xlane.f32.xlu1 %v6378_v49  ;;  %v6372_v43 = vsel %vm3038_vm0, %v13027_v37, -inf }
 0xed4   : > { %6370 = vmax.xlane.f32.xlu0 %v6369_v50 }
 0xed6   : > { %6373 = vmax.xlane.f32.xlu1 %v6372_v43 }
 0xed9   : > { %v13033_v19 = vpop.f32.mrb[184].mxu1 }
 0xeda   : > { %v13035_v28 = vpop.f32.mrb[185].mxu1 }
 0xedb   : > { %v13037_v51 = vpop.f32.mrb[186].mxu1 }
 0xedc   : > { %v13039_v40 = vpop.f32.mrb[187].mxu1 }
 0xf14   : > { %v13041_v39 = vpop.f32.mrb[188].mxu1 }
 0xf15   : > { %v13043_v4 = vpop.f32.mrb[189].mxu1 }
 0xf16   : > { %v13045_v25 = vpop.f32.mrb[190].mxu1 }
 0xf17   : > { %v13047_v41 = vpop.f32.mrb[191].mxu1 }
 0xf1c   : > { %v9073_v38 = vpop.f32.mrb[192].mxu1 }
 0xf1d   : > { %v13051_v8 = vsel %vm11375_vm1, %v9073_v38, -inf  ;;  %v6310_v47 = vpop.f32.mrb[193].mxu1 }
 0xf1e   : > { %v6387_v5 = vsel %vm3038_vm0, %v13051_v8, -inf  ;;  %v9074_v30 = vpop.f32.mrb[194].mxu1  ;;  %v13057_v24 = vsel %vm11380_vm2, %v6310_v47, -inf }
 0xf1f   : > { %v13061_v48 = vsel %vm11384_vm3, %v9074_v30, -inf  ;;  %6388 = vmax.xlane.f32.xlu0 %v6387_v5  ;;  %v6313_v59 = vpop.f32.mrb[195].mxu1  ;;  %v6381_v45 = vsel %vm3038_vm0, %v13057_v24, -inf }
 0xf20   : > { %v6390_v16 = vsel %vm3038_vm0, %v13061_v48, -inf  ;;  %v13067_v2 = vsel %vm11392_vm4, %v6313_v59, -inf }
 0xf21   : > { %6391 = vmax.xlane.f32.xlu1 %v6390_v16  ;;  %v6384_v63 = vsel %vm3038_vm0, %v13067_v2, -inf }
 0xf23   : > { %6382 = vmax.xlane.f32.xlu0 %v6381_v45 }
 0xf24   : > { %v9077_v23 = vpop.f32.mrb[196].mxu1 }
 0xf25   : > { %v13075_v22 = vsel %vm11417_vm5, %v9077_v23, -inf  ;;  %6385 = vmax.xlane.f32.xlu1 %v6384_v63  ;;  %v6326_v54 = vpop.f32.mrb[197].mxu1 }
 0xf26   : > { %v6399_v29 = vsel %vm3038_vm0, %v13075_v22, -inf  ;;  %v9078_v33 = vpop.f32.mrb[198].mxu1  ;;  %v13081_v18 = vsel %vm11432_vm7, %v6326_v54, -inf }
 0xf27   : > { %v13085_v57 = vsel %vm11424_vm6, %v9078_v33, -inf  ;;  %6400 = vmax.xlane.f32.xlu0 %v6399_v29  ;;  %v6329_v9 = vpop.f32.mrb[199].mxu1  ;;  %v6393_v0 = vsel %vm3038_vm0, %v13081_v18, -inf }
 0xf28   : > { %v6402_v1 = vsel %vm3038_vm0, %v13085_v57, -inf  ;;  %v13091_v20 = vsel %vm11436_vm8, %v6329_v9, -inf }
 0xf29   : > { %6403 = vmax.xlane.f32.xlu1 %v6402_v1  ;;  %v6396_v52 = vsel %vm3038_vm0, %v13091_v20, -inf }
 0xf2b   : > { %6394 = vmax.xlane.f32.xlu0 %v6393_v0 }
 0xf2d   : > { %6397 = vmax.xlane.f32.xlu1 %v6396_v52 }
 0xf2e   : > { %v6365_v15 = vpop.xlane.xlu0 %6364 }
 0xf2f   : > { %v6407_v38 = vsub.f32 %v12987_v31, %v6365_v15 }
 0xf31   : > { %v6362_v43 = vpop.xlane.xlu1 %6361  ;;  %v6425_v30 = vmul.f32 1.442695, %v6407_v38 }
 0xf32   : > { %v6359_v49 = vpop.xlane.xlu0 %6358  ;;  %v6406_v47 = vsub.f32 %v12997_v58, %v6362_v43 }
 0xf33   : > { %v6405_v59 = vsub.f32 %v12993_v32, %v6359_v49 }
 0xf36   : > { %v6368_v11 = vpop.xlane.xlu0 %6367 }
 0xf37   : > { %v6408_v50 = vsub.f32 %v13005_v6, %v6368_v11 }
 0xf39   : > { %v6427_v5 = vmul.f32 1.442695, %v6408_v50 }
 0xf3b   : > { %10343 = vpow2.f32 %v6427_v5 }
 0xf3c   : > { %10345 = vpow2.f32 %v6425_v30 }
 0xf3e   : > { %6547 = vrot.lane.b32.xlu1 %v13883_v17, %s10597_s21  ;;  %v6423_v17 = vmul.f32 1.442695, %v6406_v47 }
 0xf40   : > { %10347 = vpow2.f32 %v6423_v17 }
 0xf41   : > { %6549 = vrot.lane.b32.xlu0 %v13884_v60, %s10597_s21  ;;  %v6421_v60 = vmul.f32 1.442695, %v6405_v59 }
 0xf43   : > { %10349 = vpow2.f32 %v6421_v60 }
 0xf45   : > { %6551 = vrot.lane.b32.xlu0 %v13886_v10, %s10597_s21  ;;  %v13107_v10 = vpop.eup %10343 }
 0xf46   : > { %v13110_v63 = vpop.eup %10345  ;;  %v6462_v32 = vsel %vm3038_vm0, %v13107_v10, 0.0 }
 0xf4a   : > { %v13115_v54 = vpop.eup %10347 }
 0xf4b   : > { %v6456_v52 = vsel %vm3038_vm0, %v13115_v54, 0.0 }
 0xf4d   : > { %v13120_v9 = vpop.eup %10349 }
 0xf5d   : > { %v6377_v16 = vpop.xlane.xlu0 %6376 }
 0xf5e   : > { %v6411_v6 = vsub.f32 %v13011_v34, %v6377_v16  ;;  %v6459_v34 = vsel %vm3038_vm0, %v13110_v63, 0.0 }
 0xf5f   : > { %v6380_v45 = vpop.xlane.xlu1 %6379 }
 0xf60   : > { %v6433_v31 = vmul.f32 1.442695, %v6411_v6  ;;  %v6412_v58 = vsub.f32 %v13021_v36, %v6380_v45 }
 0xf61   : > { %v6371_v23 = vpop.xlane.xlu0 %6370 }
 0xf62   : > { %10351 = vpow2.f32 %v6433_v31  ;;  %v6409_v29 = vsub.f32 %v13017_v46, %v6371_v23  ;;  %6463 = vadd.xlane.f32.xlu1 %v6462_v32  ;;  %v6435_v1 = vmul.f32 1.442695, %v6412_v58  ;;  %v6453_v46 = vsel %vm3038_vm0, %v13120_v9, 0.0 }
 0xf63   : > { %v6374_v33 = vpop.xlane.xlu1 %6373 }
 0xf64   : > { %v6429_v0 = vmul.f32 1.442695, %v6409_v29  ;;  %v6410_v36 = vsub.f32 %v13027_v37, %v6374_v33  ;;  %6460 = vadd.xlane.f32.xlu0 %v6459_v34 }
 0xf66   : > { %10353 = vpow2.f32 %v6429_v0  ;;  %6457 = vadd.xlane.f32.xlu1 %v6456_v52  ;;  %v6431_v15 = vmul.f32 1.442695, %v6410_v36 }
 0xf67   : > { %10355 = vpow2.f32 %v6435_v1 }
 0xf68   : > { %6454 = vadd.xlane.f32.xlu0 %v6453_v46  ;;  %10357 = vpow2.f32 %v6431_v15 }
 0xf6c   : > { %v13127_v49 = vpop.eup %10351 }
 0xf6d   : > { %v6471_v11 = vsel %vm3038_vm0, %v13127_v49, 0.0 }
 0xf6e   : > { %6472 = vadd.xlane.f32.xlu1 %v6471_v11 }
 0xf70   : > { %v13131_v37 = vpop.eup %10353 }
 0xf71   : > { %v6465_v50 = vsel %vm3038_vm0, %v13131_v37, 0.0  ;;  %v13135_v43 = vpop.eup %10355 }
 0xf72   : > { %6466 = vadd.xlane.f32.xlu1 %v6465_v50  ;;  %v6474_v38 = vsel %vm3038_vm0, %v13135_v43, 0.0  ;;  %v13139_v47 = vpop.eup %10357 }
 0xf73   : > { %v6468_v5 = vsel %vm3038_vm0, %v13139_v47, 0.0 }
 0xf76   : > { %6475 = vadd.xlane.f32.xlu1 %v6474_v38 }
 0xf7a   : > { %6469 = vadd.xlane.f32.xlu1 %v6468_v5 }
 0xf7e   : > { %6638 = vrot.lane.b32.xlu0 %v13891_v12, %s10597_s21 }
 0xfac   : > { %v6389_v30 = vpop.xlane.xlu0 %6388 }
 0xfad   : > { %v6415_v59 = vsub.f32 %v13051_v8, %v6389_v30 }
 0xfae   : > { %v6392_v17 = vpop.xlane.xlu1 %6391 }
 0xfaf   : > { %v6441_v60 = vmul.f32 1.442695, %v6415_v59  ;;  %v6416_v16 = vsub.f32 %v13061_v48, %v6392_v17 }
 0xfb0   : > { %v6383_v6 = vpop.xlane.xlu0 %6382 }
 0xfb1   : > { %10359 = vpow2.f32 %v6441_v60  ;;  %v6413_v45 = vsub.f32 %v13057_v24, %v6383_v6  ;;  %v6443_v31 = vmul.f32 1.442695, %v6416_v16  ;;  %v9929_v60 = vld [vmem:[#allocation9 + $0x4] ss:$12 sps:$4 sm:$0xff]  }
 0xfb2   : > { %v6386_v58 = vpop.xlane.xlu1 %6385 }
 0xfb3   : > { %v6437_v23 = vmul.f32 1.442695, %v6413_v45  ;;  %v6414_v32 = vsub.f32 %v13067_v2, %v6386_v58 }
 0xfb4   : > { %v6401_v29 = vpop.xlane.xlu0 %6400 }
 0xfb5   : > { %10361 = vpow2.f32 %v6437_v23  ;;  %v6439_v33 = vmul.f32 1.442695, %v6414_v32  ;;  %v6419_v12 = vsub.f32 %v13075_v22, %v6401_v29  ;;  %v13911_v29 = vpack.i.bf16 %v12653_v56, %v12647_v55  ;;  %v13919_v55 = vld [vmem:[#allocation41_spill] sm:$0xff]  ;;  %v13920_v56 = vld [vmem:[#allocation14_spill] sm:$0xff] }
 0xfb6   : > { %10363 = vpow2.f32 %v6443_v31  ;;  %v6404_v8 = vpop.xlane.xlu1 %6403 }
 0xfb7   : > { %10365 = vpow2.f32 %v6439_v33  ;;  %v6449_v34 = vmul.f32 1.442695, %v6419_v12  ;;  %v6420_v48 = vsub.f32 %v13085_v57, %v6404_v8  ;;  %v13912_v33 = vpack.i.bf16 %v12649_v42, %v12645_v21  ;;  %v13913_v12 = vld [vmem:[#allocation42_spill] sm:$0xff]  ;;  %v13914_v8 = vld [vmem:[#allocation15_spill] sm:$0xff] }
 0xfb8   : > { %v6395_v1 = vpop.xlane.xlu0 %6394 }
 0xfb9   : > { %10367 = vpow2.f32 %v6449_v34  ;;  %v6417_v24 = vsub.f32 %v13081_v18, %v6395_v1  ;;  %v6451_v46 = vmul.f32 1.442695, %v6420_v48  ;;  %v13917_v34 = vld [vmem:[#allocation28_spill] sm:$0xff]  ;;  %v13921_v48 = vpack.i.bf16 %v13919_v55, %v13920_v56 }
 0xfba   : > { %v6398_v0 = vpop.xlane.xlu1 %6397 }
 0xfbb   : > { %v13152_v36 = vpop.eup %10359  ;;  %v6445_v52 = vmul.f32 1.442695, %v6417_v24  ;;  %v6418_v22 = vsub.f32 %v13091_v20, %v6398_v0  ;;  %v13923_v24 = vld [vmem:[#allocation26_spill] sm:$0xff]  ;;  %v13925_v0 = vld [vmem:[#allocation35_spill] sm:$0xff] }
 0xfbc   : > { %v6483_v2 = vsel %vm3038_vm0, %v13152_v36, 0.0  ;;  %v6550_v15 = vpop.permute.xlu0 %6549 }
 0xfbd   : > { %10369 = vpow2.f32 %v6445_v52  ;;  %6484 = vadd.xlane.f32.xlu0 %v6483_v2  ;;  %v6447_v5 = vmul.f32 1.442695, %v6418_v22  ;;  %v13926_v52 = vld [vmem:[#allocation43_spill] sm:$0xff] }
 0xfbe   : > { %v6548_v11 = vpop.permute.xlu1 %6547  ;;  %10371 = vpow2.f32 %v6451_v46  ;;  %v13927_v2 = vpack.i.bf16 %v13925_v0, %v13926_v52  ;;  %v13928_v22 = vld [vmem:[#allocation23_spill] sm:$0xff] }
 0xfbf   : > { %v13157_v50 = vpop.eup %10361  ;;  %9081 = vmatprep.subr.bf16.mxu0 %v6548_v11  ;;  %10373 = vpow2.f32 %v6447_v5  ;;  %v13931_v5 = vld [vmem:[#allocation33_spill] sm:$0xff] }
 0xfc0   : > { %v13159_v57 = vpop.eup %10363  ;;  %9082 = vmatpush3.bf16.msra.mxu0 %v6548_v11  ;;  %v6477_v18 = vsel %vm3038_vm0, %v13157_v50, 0.0  ;;  %v6552_v59 = vpop.permute.xlu0 %6551 }
 0xfc1   : > { %v13163_v38 = vpop.eup %10365  ;;  %6478 = vadd.xlane.f32.xlu0 %v6477_v18  ;;  %9083 = vmatprep.subr.bf16.mxu0 %v6550_v15  ;;  %v6486_v17 = vsel %vm3038_vm0, %v13159_v57, 0.0 }
 0xfc2   : > { %v6480_v20 = vsel %vm3038_vm0, %v13163_v38, 0.0 }
 0xfc3   : > { %v13167_v30 = vpop.eup %10367  ;;  %6481 = vadd.xlane.f32.xlu1 %v6480_v20  ;;  %v13932_v20 = vld [vmem:[#allocation16_spill] sm:$0xff] }
 0xfc4   : > { %9084 = vmatpush3.bf16.msra.mxu0 %v6550_v15  ;;  %v6495_v16 = vsel %vm3038_vm0, %v13167_v30, 0.0  ;;  %v13929_v15 = vld [vmem:[#allocation21_spill] sm:$0xff] }
 0xfc5   : > { %6487 = vadd.xlane.f32.xlu0 %v6486_v17  ;;  %9085 = vmatprep.subr.bf16.mxu0 %v6552_v59  ;;  %v13930_v11 = vpack.i.bf16 %v13928_v22, %v13929_v15  ;;  %v13950_v22 = vld [vmem:[#allocation19_spill] sm:$0xff] }
 0xfc7   : > { %v13173_v6 = vpop.eup %10369  ;;  %6496 = vadd.xlane.f32.xlu1 %v6495_v16  ;;  %v13935_v16 = vld [vmem:[#allocation49_spill] sm:$0xff] }
 0xfc8   : > { %9086 = vmatpush3.bf16.msra.mxu0 %v6552_v59  ;;  %v6489_v45 = vsel %vm3038_vm0, %v13173_v6, 0.0  ;;  %v13177_v31 = vpop.eup %10371  ;;  %v13933_v59 = vpack.i.bf16 %v13931_v5, %v13932_v20 }
 0xfc9   : > { %7344 = vmatprep.subr.bf16.mxu0 %v9929_v60  ;;  %v6498_v58 = vsel %vm3038_vm0, %v13177_v31, 0.0  ;;  %v13181_v23 = vpop.eup %10373  ;;  %v13934_v60 = vld [vmem:[#allocation22_spill] sm:$0xff] }
 0xfca   : > { %v6492_v32 = vsel %vm3038_vm0, %v13181_v23, 0.0 }
 0xfcb   : > { %6490 = vadd.xlane.f32.xlu1 %v6489_v45  ;;  %v13936_v45 = vpack.i.bf16 %v13934_v60, %v13935_v16  ;;  %v13952_v16 = vld [vmem:[#allocation45_spill] sm:$0xff] }
 0xfcf   : > { %6499 = vadd.xlane.f32.xlu1 %v6498_v58  ;;  %v13937_v58 = vld [vmem:[#allocation17_spill] sm:$0xff] }
 0xfd3   : > { %6493 = vadd.xlane.f32.xlu1 %v6492_v32  ;;  %v13938_v32 = vld [vmem:[#allocation39_spill] sm:$0xff] }
 0xfdb   : > { %6642 = vrot.lane.b32.xlu0 %v13896_v53, %s10597_s21  ;;  %v13915_v53 = vpack.i.bf16 %v13913_v12, %v13914_v8  ;;  %v13940_v12 = vld [vmem:[#allocation50_spill] sm:$0xff]  ;;  %v13941_v8 = vld [vmem:[#allocation51_spill] sm:$0xff] }
 0xfdf   : > { %6644 = vrot.lane.b32.xlu0 %v13898_v27, %s10597_s21  ;;  %v13916_v27 = vld [vmem:[#allocation32_spill] sm:$0xff] }
 0xfe0   : > { %v13918_v1 = vpack.i.bf16 %v13916_v27, %v13917_v34  ;;  %v13943_v34 = vld [vmem:[#allocation44_spill] sm:$0xff] }
 0xfe3   : > { %9464 = vrot.lane.b32.xlu0 %v13911_v29, %s10597_s21  ;;  %v13939_v29 = vpack.i.bf16 %v13937_v58, %v13938_v32  ;;  %v9933_v32 = vld [vmem:[#allocation9 + $0x30] ss:$12 sps:$4 sm:$0xff]  }
 0xfe4   : > { %6640 = vrot.lane.b32.xlu1 %v13895_v7, %s10597_s21  ;;  %v13922_v7 = vld [vmem:[#allocation30_spill] sm:$0xff] }
 0xfe5   : > { %v13924_v21 = vpack.i.bf16 %v13922_v7, %v13923_v24  ;;  %v13946_v24 = vld [vmem:[#allocation24_spill] sm:$0xff] }
 0xfe7   : > { %9474 = vrot.lane.b32.xlu0 %v13912_v33, %s10597_s21 }
 0xfe8   : > { %9469 = vrot.lane.b32.xlu1 %v13915_v53, %s10597_s21  ;;  %v13942_v53 = vpack.i.bf16 %v13940_v12, %v13941_v8  ;;  %v9936_v12 = vld [vmem:[#allocation9 + $0x48] ss:$12 sps:$4 sm:$0xff]  }
 0xfeb   : > { %9484 = vrot.lane.b32.xlu0 %v13918_v1, %s10597_s21  ;;  %v13944_v1 = vld [vmem:[#allocation37_spill] sm:$0xff] }
 0xfec   : > { %9479 = vrot.lane.b32.xlu1 %v13921_v48, %s10597_s21  ;;  %v13945_v55 = vpack.i.bf16 %v13943_v34, %v13944_v1 }
 0xfef   : > { %9494 = vrot.lane.b32.xlu0 %v13924_v21, %s10597_s21  ;;  %v6464_v42 = vpop.xlane.xlu1 %6463  ;;  %v13947_v21 = vld [vmem:[#allocation48_spill] sm:$0xff] }
 0xff0   : > { %9489 = vrot.lane.b32.xlu1 %v13927_v2, %s10597_s21 }
 0xff1   : > { %v6461_v46 = vpop.xlane.xlu0 %6460 }
 0xff2   : > { %10375 = vrcp.f32 %v6461_v46  ;;  %v13949_v46 = vld [vmem:[#allocation46_spill] sm:$0xff] }
 0xff3   : > { %9504 = vrot.lane.b32.xlu0 %v13930_v11, %s10597_s21  ;;  %v6458_v18 = vpop.xlane.xlu1 %6457  ;;  %v13951_v15 = vpack.i.bf16 %v13949_v46, %v13950_v22  ;;  %v9956_v46 = vld [vmem:[#allocation9 + $0xdc] ss:$12 sps:$4 sm:$0xff]   ;;  %v9954_v22 = vld [vmem:[#allocation9 + $0xd8] ss:$12 sps:$4 sm:$0xff]  }
 0xff4   : > { %10377 = vrcp.f32 %v6458_v18  ;;  %9499 = vrot.lane.b32.xlu1 %v13933_v59, %s10597_s21 }
 0xff5   : > { %10379 = vrcp.f32 %v6464_v42  ;;  %v6455_v17 = vpop.xlane.xlu0 %6454  ;;  %v13948_v42 = vpack.i.bf16 %v13946_v24, %v13947_v21  ;;  %v9944_v24 = vld [vmem:[#allocation9 + $0x7c] ss:$12 sps:$4 sm:$0xff]  }
 0xff6   : > { %10381 = vrcp.f32 %v6455_v17  ;;  %v9927_v17 = vld [vmem:[#allocation9] ss:$12 sps:$4 sm:$0xff]  }
 0xff7   : > { %9514 = vrot.lane.b32.xlu0 %v13936_v45, %s10597_s21  ;;  %v13953_v45 = vld [vmem:[#allocation18_spill] sm:$0xff] }
 0xff8   : > { %9509 = vrot.lane.b32.xlu1 %v13939_v29, %s10597_s21  ;;  %v13954_v58 = vpack.i.bf16 %v13952_v16, %v13953_v45  ;;  %v9938_v29 = vld [vmem:[#allocation9 + $0x4c] ss:$12 sps:$4 sm:$0xff]   ;;  %v9971_v16 = vld [vmem:[#allocation9 + $0x154] ss:$12 sps:$4 sm:$0xff]   ;;  %v9969_v45 = vld [vmem:[#allocation9 + $0x150] ss:$12 sps:$4 sm:$0xff]  }
 0xff9   : > { %v6639_v33 = vpop.permute.xlu0 %6638 }
 0xffa   : > { %9095 = vmatprep.subr.bf16.mxu1 %v6639_v33 }
 0xffb   : > { %9096 = vmatpush3.bf16.msra.mxu1 %v6639_v33  ;;  %9524 = vrot.lane.b32.xlu0 %v13942_v53, %s10597_s21  ;;  %v6473_v27 = vpop.xlane.xlu1 %6472  ;;  %v9941_v53 = vld [vmem:[#allocation9 + $0x64] ss:$12 sps:$4 sm:$0xff]  }
 0xffc   : > { %9519 = vrot.lane.b32.xlu1 %v13945_v55, %s10597_s21  ;;  %v10376_v56 = vpop.eup %10375 }
 0xffd   : > { %v6519_v2 = vmul.f32 %v10376_v56, %v13110_v63  ;;  %v9932_v63 = vld [vmem:[#allocation9 + $0x1c] ss:$12 sps:$4 sm:$0xff]  }
 0xffe   : > { %v10378_v48 = vpop.eup %10377 }
 0xfff   : > { %v10380_v7 = vpop.eup %10379  ;;  %9534 = vrot.lane.b32.xlu0 %v13948_v42, %s10597_s21  ;;  %v6467_v0 = vpop.xlane.xlu1 %6466  ;;  %v6518_v18 = vmul.f32 %v10378_v48, %v13115_v54  ;;  %v9939_v48 = vld [vmem:[#allocation9 + $0x60] ss:$12 sps:$4 sm:$0xff]  }
0x1000   : > { %v10382_v52 = vpop.eup %10381  ;;  %9529 = vrot.lane.b32.xlu1 %v13951_v15, %s10597_s21  ;;  %v6520_v5 = vmul.f32 %v10380_v7, %v13107_v10  ;;  %v9930_v10 = vld [vmem:[#allocation9 + $0x18] ss:$12 sps:$4 sm:$0xff]   ;;  %v9959_v15 = vld [vmem:[#allocation9 + $0xf4] ss:$12 sps:$4 sm:$0xff]  }
0x1001   : > { %v6517_v11 = vmul.f32 %v10382_v52, %v13120_v9  ;;  %v9935_v9 = vld [vmem:[#allocation9 + $0x34] ss:$12 sps:$4 sm:$0xff]  }
0x1002   : > { %v6534_v60 = vpack.c.bf16 %v6520_v5, %v6519_v2  ;;  %v9948_v52 = vld [vmem:[#allocation9 + $0xa8] ss:$12 sps:$4 sm:$0xff]   ;;  %v9951_v2 = vld [vmem:[#allocation9 + $0xc0] ss:$12 sps:$4 sm:$0xff]  }
0x1003   : > { %v6476_v20 = vpop.xlane.xlu1 %6475  ;;  %v6533_v59 = vpack.c.bf16 %v6518_v18, %v6517_v11  ;;  %v9957_v11 = vld [vmem:[#allocation9 + $0xf0] ss:$12 sps:$4 sm:$0xff]   ;;  %v9962_v18 = vld [vmem:[#allocation9 + $0x10c] ss:$12 sps:$4 sm:$0xff]   ;;  %v9960_v5 = vld [vmem:[#allocation9 + $0x108] ss:$12 sps:$4 sm:$0xff]  }
0x1004   : > { %9539 = vrot.lane.b32.xlu1 %v13954_v58, %s10597_s21  ;;  %10383 = vrcp.f32 %v6476_v20  ;;  %v9965_v20 = vld [vmem:[#allocation9 + $0x124] ss:$12 sps:$4 sm:$0xff]   ;;  %v9974_v58 = vld [vmem:[#allocation9 + $0x16c] ss:$12 sps:$4 sm:$0xff]  }
0x1005   : > { %9087 = vmatprep.mubr.msk.bf16.mxu0 %vm3038_vm0, %v6533_v59  ;;  %10385 = vrcp.f32 %v6467_v0  ;;  %v9942_v0 = vld [vmem:[#allocation9 + $0x78] ss:$12 sps:$4 sm:$0xff]   ;;  %v9963_v59 = vld [vmem:[#allocation9 + $0x120] ss:$12 sps:$4 sm:$0xff]  }
0x1006   : > { %9088 = vmatmul.mubr.msk.bf16.vlgmr.msra.gmra.mrb[184].mxu0 %vm3038_vm0, %v6534_v60  ;;  %10387 = vrcp.f32 %v6473_v27  ;;  %v9966_v60 = vld [vmem:[#allocation9 + $0x138] ss:$12 sps:$4 sm:$0xff]  }
0x1007   : > { %v6470_v54 = vpop.xlane.xlu1 %6469  ;;  %7345 = vmatpush1.bf16.msra.mxu0 %v9927_v17  ;;  %v9968_v17 = vld [vmem:[#allocation9 + $0x13c] ss:$12 sps:$4 sm:$0xff]  }
0x1008   : > { %10389 = vrcp.f32 %v6470_v54  ;;  %7346 = vmatprep.subr.bf16.mxu0 %v9932_v63  ;;  %v9972_v63 = vld [vmem:[#allocation9 + $0x168] ss:$12 sps:$4 sm:$0xff]  }
0x100b   : > { %7347 = vmatpush1.bf16.msra.mxu0 %v9930_v10 }
0x100c   : > { %7348 = vmatprep.subr.bf16.mxu0 %v9935_v9 }
0x100e   : > { %v10384_v33 = vpop.eup %10383 }
0x100f   : > { %7349 = vmatpush1.bf16.msra.mxu0 %v9933_v32  ;;  %v10386_v8 = vpop.eup %10385  ;;  %v6524_v27 = vmul.f32 %v10384_v33, %v13135_v43  ;;  %v9947_v43 = vld [vmem:[#allocation9 + $0x94] ss:$12 sps:$4 sm:$0xff]  }
0x1010   : > { %7350 = vmatprep.subr.bf16.mxu0 %v9938_v29  ;;  %v10388_v34 = vpop.eup %10387  ;;  %v6521_v55 = vmul.f32 %v10386_v8, %v13131_v37  ;;  %v9945_v37 = vld [vmem:[#allocation9 + $0x90] ss:$12 sps:$4 sm:$0xff]  }
0x1011   : > { %v6523_v7 = vmul.f32 %v10388_v34, %v13127_v49  ;;  %v9953_v49 = vld [vmem:[#allocation9 + $0xc4] ss:$12 sps:$4 sm:$0xff]  }
0x1012   : > { %v10390_v1 = vpop.eup %10389 }
0x1013   : > { %v6522_v56 = vmul.f32 %v10390_v1, %v13139_v47  ;;  %7351 = vmatpush1.bf16.msra.mxu0 %v9936_v12  ;;  %v6536_v42 = vpack.c.bf16 %v6524_v27, %v6523_v7  ;;  %v9950_v47 = vld [vmem:[#allocation9 + $0xac] ss:$12 sps:$4 sm:$0xff]  }
0x1014   : > { %7352 = vmatprep.subr.bf16.mxu0 %v9941_v53 }
0x1015   : > { %v6535_v21 = vpack.c.bf16 %v6522_v56, %v6521_v55 }
0x1017   : > { %9091 = vmatprep.mubr.msk.bf16.mxu0 %vm3038_vm0, %v6535_v21  ;;  %7353 = vmatpush1.bf16.msra.mxu0 %v9939_v48 }
0x1018   : > { %9092 = vmatmul.mubr.msk.bf16.gmra.mrb[188].mxu0 %vm3038_vm0, %v6536_v42  ;;  %7354 = vmatprep.subr.bf16.mxu0 %v9944_v24  ;;  %v13955_v42 = vld [vmem:[#allocation47_spill] sm:$0xff] }
0x101b   : > { %7355 = vmatpush1.bf16.msra.mxu0 %v9942_v0 }
0x101c   : > { %7356 = vmatprep.subr.bf16.mxu0 %v9947_v43  ;;  %v13956_v43 = vld [vmem:[#allocation74_spill] sm:$0xff] }
0x101f   : > { %7357 = vmatpush1.bf16.msra.mxu0 %v9945_v37 }
0x1020   : > { %7358 = vmatprep.subr.bf16.mxu0 %v9950_v47 }
0x1023   : > { %7359 = vmatpush1.bf16.msra.mxu0 %v9948_v52 }
0x1024   : > { %7360 = vmatprep.subr.bf16.mxu0 %v9953_v49 }
0x1027   : > { %7361 = vmatpush1.bf16.msra.mxu0 %v9951_v2  ;;  %v13957_v2 = vld [vmem:[#allocation20_spill] sm:$0xff] }
0x1028   : > { %7362 = vmatprep.subr.bf16.mxu0 %v9956_v46 }
0x102b   : > { %7363 = vmatpush1.bf16.msra.mxu0 %v9954_v22  ;;  %v13958_v22 = vld [vmem:[#allocation73_spill] sm:$0xff] }
0x102c   : > { %7364 = vmatprep.subr.bf16.mxu0 %v9959_v15 }
0x102f   : > { %7365 = vmatpush1.bf16.msra.mxu0 %v9957_v11 }
0x1030   : > { %7366 = vmatprep.subr.bf16.mxu0 %v9962_v18 }
0x1033   : > { %7367 = vmatpush1.bf16.msra.mxu0 %v9960_v5 }
0x1034   : > { %7368 = vmatprep.subr.bf16.mxu0 %v9965_v20 }
0x1037   : > { %7369 = vmatpush1.bf16.msra.mxu0 %v9963_v59 }
0x1038   : > { %7370 = vmatprep.subr.bf16.mxu0 %v9968_v17 }
0x103b   : > { %7371 = vmatpush1.bf16.msra.mxu0 %v9966_v60 }
0x103c   : > { %7372 = vmatprep.subr.bf16.mxu0 %v9971_v16 }
0x103f   : > { %7373 = vmatpush1.bf16.msra.mxu0 %v9969_v45 }
0x1040   : > { %7374 = vmatprep.subr.bf16.mxu0 %v9974_v58  ;;  %v13959_v58 = vld [vmem:[#allocation76_spill] sm:$0xff] }
0x1043   : > { %7375 = vmatpush1.bf16.msra.mxu0 %v9972_v63 }
0x104a   : > { %v6485_v54 = vpop.xlane.xlu0 %6484 }
0x104e   : > { %v6479_v10 = vpop.xlane.xlu0 %6478 }
0x104f   : > { %10391 = vrcp.f32 %v6479_v10 }
0x1050   : > { %v6482_v9 = vpop.xlane.xlu1 %6481 }
0x1051   : > { %10393 = vrcp.f32 %v6482_v9 }
0x1052   : > { %v6488_v32 = vpop.xlane.xlu0 %6487 }
0x1053   : > { %10395 = vrcp.f32 %v6488_v32 }
0x1054   : > { %v6497_v29 = vpop.xlane.xlu1 %6496  ;;  %10397 = vrcp.f32 %v6485_v54  ;;  %v13960_v54 = vld [vmem:[#allocation78_spill] sm:$0xff] }
0x1056   : > { %v6643_v33 = vpop.permute.xlu0 %6642 }
0x1058   : > { %v6491_v12 = vpop.xlane.xlu1 %6490 }
0x1059   : > { %v10392_v8 = vpop.eup %10391  ;;  %10399 = vrcp.f32 %v6491_v12 }
0x105a   : > { %v6645_v53 = vpop.permute.xlu0 %6644  ;;  %v6525_v27 = vmul.f32 %v10392_v8, %v13157_v50 }
0x105b   : > { %v10394_v34 = vpop.eup %10393 }
0x105c   : > { %v6500_v1 = vpop.xlane.xlu1 %6499  ;;  %v6526_v55 = vmul.f32 %v10394_v34, %v13163_v38  ;;  %v13961_v34 = vld [vmem:[#allocation60_spill] sm:$0xff] }
0x105d   : > { %v10396_v5 = vpop.eup %10395 }
0x105e   : > { %v9465_v56 = vpop.permute.xlu0 %9464  ;;  %v6537_v48 = vpack.c.bf16 %v6526_v55, %v6525_v27  ;;  %v10398_v60 = vpop.eup %10397  ;;  %v6528_v32 = vmul.f32 %v10396_v5, %v13159_v57  ;;  %v13962_v27 = vld [vmem:[#allocation58_spill] sm:$0xff]  ;;  %v13965_v5 = vld [vmem:[#allocation57_spill] sm:$0xff] }
0x105f   : > { %v9467_v7 = vunpack.i.h.bf16 %v9465_v56  ;;  %v9466_v24 = vunpack.i.l.bf16 %v9465_v56 }
0x1060   : > { %9103 = vmatprep.mubr.msk.bf16.mxu1 %vm3038_vm0, %v6537_v48  ;;  %v6494_v21 = vpop.xlane.xlu1 %6493 }
0x1061   : > { %10401 = vrcp.f32 %v6494_v21  ;;  %v5527_v0 = vsel %vm3038_vm0, %v13955_v42, %v9466_v24  ;;  %v5528_v37 = vsel %vm3038_vm0, %v13956_v43, %v9467_v7  ;;  %v9975_v7 = vld [vmem:[#allocation9 + $0xc8] ss:$12 sps:$4 sm:$0xff]   ;;  %v6527_v24 = vmul.f32 %v10398_v60, %v13152_v36 }
0x1062   : > { %v9475_v50 = vpop.permute.xlu0 %9474  ;;  %v13274_v47 = vpack.c.bf16 %v5528_v37, %v5527_v0  ;;  %10403 = vrcp.f32 %v6500_v1  ;;  %v13963_v43 = vld [vmem:[#allocation75_spill] sm:$0xff] }
0x1063   : > { %v9477_v38 = vunpack.i.h.bf16 %v9475_v50  ;;  %v9476_v52 = vunpack.i.l.bf16 %v9475_v50  ;;  %10405 = vrcp.f32 %v6497_v29  ;;  %v10400_v9 = vpop.eup %10399  ;;  %v13964_v50 = vld [vmem:[#allocation77_spill] sm:$0xff] }
0x1064   : > { %7376 = vmatprep.mubr.bf16.mxu0 %v13274_v47  ;;  %v6641_v49 = vpop.permute.xlu1 %6640  ;;  %v6529_v36 = vmul.f32 %v10400_v9, %v13173_v6 }
0x1065   : > { %9097 = vmatprep.subr.bf16.mxu1 %v6641_v49  ;;  %v5529_v46 = vsel %vm3038_vm0, %v13957_v2, %v9476_v52  ;;  %v5530_v15 = vsel %vm3038_vm0, %v13958_v22, %v9477_v38  ;;  %v6538_v52 = vpack.c.bf16 %v6528_v32, %v6527_v24  ;;  %v9976_v2 = vld [vmem:[#allocation9 + $0x8] ss:$12 sps:$4 sm:$0xff]   ;;  %v9991_v32 = vld [vmem:[#allocation9 + $0x180] ss:$12 sps:$4 sm:$0xff]  }
0x1066   : > { %v9485_v11 = vpop.permute.xlu0 %9484  ;;  %9098 = vmatpush3.bf16.msra.mxu1 %v6641_v49  ;;  %v13281_v18 = vpack.c.bf16 %v5530_v15, %v5529_v46  ;;  %v13969_v24 = vld [vmem:[#allocation62_spill] sm:$0xff] }
0x1067   : > { %v9487_v20 = vunpack.i.h.bf16 %v9485_v11  ;;  %v9486_v59 = vunpack.i.l.bf16 %v9485_v11  ;;  %9099 = vmatprep.subr.bf16.mxu1 %v6643_v33  ;;  %v9977_v11 = vld [vmem:[#allocation9 + $0xe0] ss:$12 sps:$4 sm:$0xff]  }
0x1068   : > { %v9470_v17 = vpop.permute.xlu1 %9469 }
0x1069   : > { %v9472_v16 = vunpack.i.h.bf16 %v9470_v17  ;;  %v9471_v45 = vunpack.i.l.bf16 %v9470_v17  ;;  %v5531_v63 = vsel %vm3038_vm0, %v13959_v58, %v9486_v59  ;;  %v5532_v10 = vsel %vm3038_vm0, %v13960_v54, %v9487_v20  ;;  %v13966_v59 = vld [vmem:[#allocation59_spill] sm:$0xff] }
0x106a   : > { %v9495_v12 = vpop.permute.xlu0 %9494  ;;  %9100 = vmatpush3.bf16.msra.mxu1 %v6643_v33  ;;  %v13288_v8 = vpack.c.bf16 %v5532_v10, %v5531_v63  ;;  %v13967_v63 = vld [vmem:[#allocation80_spill] sm:$0xff]  ;;  %v13968_v10 = vld [vmem:[#allocation82_spill] sm:$0xff] }
0x106b   : > { %v10402_v29 = vpop.eup %10401  ;;  %v4264_v1 = vsel %vm3038_vm0, %v13961_v34, %v9472_v16  ;;  %v4263_v55 = vsel %vm3038_vm0, %v13962_v27, %v9471_v45  ;;  %v9497_v56 = vunpack.i.h.bf16 %v9495_v12  ;;  %v9496_v48 = vunpack.i.l.bf16 %v9495_v12  ;;  %9101 = vmatprep.subr.bf16.mxu1 %v6645_v53  ;;  %v9993_v12 = vld [vmem:[#allocation9 + $0x184] ss:$12 sps:$4 sm:$0xff]   ;;  %v9978_v34 = vld [vmem:[#allocation9 + $0x20] ss:$12 sps:$4 sm:$0xff]  }
0x106c   : > { %v13295_v21 = vpack.c.bf16 %v4264_v1, %v4263_v55  ;;  %v9480_v57 = vpop.permute.xlu1 %9479  ;;  %v6530_v33 = vmul.f32 %v10402_v29, %v13181_v23  ;;  %v10404_v22 = vpop.eup %10403  ;;  %v9997_v55 = vld [vmem:[#allocation9 + $0x19c] ss:$12 sps:$4 sm:$0xff]   ;;  %7457 = vmatprep.subr.bf16.mxu0 %v9993_v12  ;;  %v13976_v12 = vld [vmem:[#allocation86_spill] sm:$0xff] }
0x106d   : > { %v9482_v42 = vunpack.i.h.bf16 %v9480_v57  ;;  %v9481_v0 = vunpack.i.l.bf16 %v9480_v57  ;;  %v5533_v37 = vsel %vm3038_vm0, %v13963_v43, %v9496_v48  ;;  %v5534_v38 = vsel %vm3038_vm0, %v13964_v50, %v9497_v56  ;;  %v10406_v6 = vpop.eup %10405 }
0x106e   : > { %v9505_v49 = vpop.permute.xlu0 %9504  ;;  %9102 = vmatpush3.bf16.msra.mxu1 %v6645_v53  ;;  %7377 = vmatmul.mubr.bf16.vlgmr.msra.gmra.mrb[192].mxu0 %v13295_v21  ;;  %v13304_v46 = vpack.c.bf16 %v5534_v38, %v5533_v37  ;;  %v6539_v60 = vpack.c.bf16 %v6530_v33, %v6529_v36  ;;  %v6532_v1 = vmul.f32 %v10404_v22, %v13177_v31  ;;  %v13970_v33 = vld [vmem:[#allocation64_spill] sm:$0xff]  ;;  %v9995_v31 = vld [vmem:[#allocation9 + $0x198] ss:$12 sps:$4 sm:$0xff]  }
0x106f   : > { %v9507_v23 = vunpack.i.h.bf16 %v9505_v49  ;;  %v9506_v15 = vunpack.i.l.bf16 %v9505_v49  ;;  %7386 = vmatprep.mubr.bf16.mxu0 %v13281_v18  ;;  %8615 = vmatprep.subr.bf16.mxu1 %v9975_v7  ;;  %v4265_v20 = vsel %vm3038_vm0, %v13965_v5, %v9481_v0  ;;  %v4266_v53 = vsel %vm3038_vm0, %v13966_v59, %v9482_v42  ;;  %v9979_v7 = vld [vmem:[#allocation9 + $0xf8] ss:$12 sps:$4 sm:$0xff]   ;;  %v10001_v22 = vld [vmem:[#allocation9 + $0x1b4] ss:$12 sps:$4 sm:$0xff]   ;;  %v9981_v59 = vld [vmem:[#allocation9 + $0x110] ss:$12 sps:$4 sm:$0xff]  }
0x1070   : > { %v9490_v17 = vpop.permute.xlu1 %9489  ;;  %v13311_v16 = vpack.c.bf16 %v4266_v53, %v4265_v20  ;;  %v6531_v43 = vmul.f32 %v10406_v6, %v13167_v30  ;;  %7458 = vmatpush1.bf16.msra.mxu0 %v9991_v32  ;;  %v13972_v36 = vld [vmem:[#allocation81_spill] sm:$0xff] }
0x1071   : > { %v9492_v45 = vunpack.i.h.bf16 %v9490_v17  ;;  %v9491_v58 = vunpack.i.l.bf16 %v9490_v17  ;;  %9104 = vmatmul.mubr.msk.bf16.vlgmr.msra.gmra.mrb[200].mxu1 %vm3038_vm0, %v6538_v52  ;;  %v5535_v54 = vsel %vm3038_vm0, %v13967_v63, %v9506_v15  ;;  %v5536_v9 = vsel %vm3038_vm0, %v13968_v10, %v9507_v23  ;;  %v13971_v52 = vld [vmem:[#allocation79_spill] sm:$0xff]  ;;  %7459 = vmatprep.subr.bf16.mxu0 %v9997_v55  ;;  %v9980_v30 = vld [vmem:[#allocation9 + $0x38] ss:$12 sps:$4 sm:$0xff]   ;;  %v9999_v63 = vld [vmem:[#allocation9 + $0x1b0] ss:$12 sps:$4 sm:$0xff]  }
0x1072   : > { %v9515_v29 = vpop.permute.xlu0 %9514  ;;  %9107 = vmatprep.mubr.msk.bf16.mxu1 %vm3038_vm0, %v6539_v60  ;;  %8616 = vmatpush3.bf16.msra.mxu1 %v9976_v2  ;;  %v13320_v27 = vpack.c.bf16 %v5536_v9, %v5535_v54  ;;  %v6540_v15 = vpack.c.bf16 %v6532_v1, %v6531_v43  ;;  %v13973_v53 = vld [vmem:[#allocation61_spill] sm:$0xff]  ;;  %v13974_v60 = vld [vmem:[#allocation63_spill] sm:$0xff]  ;;  %v13975_v9 = vld [vmem:[#allocation84_spill] sm:$0xff] }
0x1073   : > { %v9517_v56 = vunpack.i.h.bf16 %v9515_v29  ;;  %v9516_v48 = vunpack.i.l.bf16 %v9515_v29  ;;  %8617 = vmatprep.subr.bf16.mxu1 %v9977_v11  ;;  %v4267_v57 = vsel %vm3038_vm0, %v13969_v24, %v9491_v58  ;;  %v4268_v42 = vsel %vm3038_vm0, %v13970_v33, %v9492_v45  ;;  %v9982_v55 = vld [vmem:[#allocation9 + $0x50] ss:$12 sps:$4 sm:$0xff]   ;;  %v9983_v24 = vld [vmem:[#allocation9 + $0x128] ss:$12 sps:$4 sm:$0xff]  }
0x1074   : > { %v9500_v0 = vpop.permute.xlu1 %9499  ;;  %v13327_v37 = vpack.c.bf16 %v4268_v42, %v4267_v57  ;;  %7460 = vmatpush1.bf16.msra.mxu0 %v9995_v31  ;;  %v13977_v57 = vld [vmem:[#allocation66_spill] sm:$0xff]  ;;  %v13978_v42 = vld [vmem:[#allocation68_spill] sm:$0xff] }
0x1075   : > { %v9502_v50 = vunpack.i.h.bf16 %v9500_v0  ;;  %v9501_v38 = vunpack.i.l.bf16 %v9500_v0  ;;  %v5537_v49 = vsel %vm3038_vm0, %v13971_v52, %v9516_v48  ;;  %v5538_v2 = vsel %vm3038_vm0, %v13972_v36, %v9517_v56  ;;  %7461 = vmatprep.subr.bf16.mxu0 %v10001_v22  ;;  %v13979_v52 = vld [vmem:[#allocation83_spill] sm:$0xff]  ;;  %v13980_v36 = vld [vmem:[#allocation85_spill] sm:$0xff] }
0x1076   : > { %v9525_v23 = vpop.permute.xlu0 %9524  ;;  %7387 = vmatmul.mubr.bf16.gmra.mrb[196].mxu0 %v13311_v16  ;;  %8618 = vmatpush3.bf16.msra.mxu1 %v9978_v34  ;;  %v13334_v11 = vpack.c.bf16 %v5538_v2, %v5537_v49  ;;  %v10005_v34 = vld [vmem:[#allocation9 + $0x1cc] ss:$12 sps:$4 sm:$0xff]   ;;  %v9984_v22 = vld [vmem:[#allocation9 + $0x68] ss:$12 sps:$4 sm:$0xff]  }
0x1077   : > { %v9527_v5 = vunpack.i.h.bf16 %v9525_v23  ;;  %v9526_v20 = vunpack.i.l.bf16 %v9525_v23  ;;  %7396 = vmatprep.mubr.bf16.mxu0 %v13288_v8  ;;  %8619 = vmatprep.subr.bf16.mxu1 %v9979_v7  ;;  %v4269_v17 = vsel %vm3038_vm0, %v13973_v53, %v9501_v38  ;;  %v4270_v6 = vsel %vm3038_vm0, %v13974_v60, %v9502_v50  ;;  %v10003_v50 = vld [vmem:[#allocation9 + $0x1c8] ss:$12 sps:$4 sm:$0xff]  }
0x1078   : > { %v9510_v45 = vpop.permute.xlu1 %9509  ;;  %v13341_v58 = vpack.c.bf16 %v4270_v6, %v4269_v17  ;;  %7462 = vmatpush1.bf16.msra.mxu0 %v9999_v63  ;;  %v9987_v63 = vld [vmem:[#allocation9 + $0x158] ss:$12 sps:$4 sm:$0xff]  }
0x1079   : > { %v9512_v54 = vunpack.i.h.bf16 %v9510_v45  ;;  %v9511_v10 = vunpack.i.l.bf16 %v9510_v45  ;;  %9108 = vmatmul.mubr.msk.bf16.gmra.mrb[204].mxu1 %vm3038_vm0, %v6540_v15  ;;  %v5539_v32 = vsel %vm3038_vm0, %v13975_v9, %v9526_v20  ;;  %v5540_v29 = vsel %vm3038_vm0, %v13976_v12, %v9527_v5  ;;  %7463 = vmatprep.subr.bf16.mxu0 %v10005_v34  ;;  %v9985_v15 = vld [vmem:[#allocation9 + $0x140] ss:$12 sps:$4 sm:$0xff]   ;;  %v13984_v9 = vld [vmem:[#allocation72_spill] sm:$0xff] }
0x107a   : > { %v9535_v1 = vpop.permute.xlu0 %9534  ;;  %8620 = vmatpush3.bf16.msra.mxu1 %v9980_v30  ;;  %7602 = vmatprep.mubr.bf16.mxu1 %v13274_v47  ;;  %v13349_v56 = vpack.c.bf16 %v5540_v29, %v5539_v32  ;;  %v13981_v30 = vld [vmem:[#allocation65_spill] sm:$0xff]  ;;  %v13982_v20 = vld [vmem:[#allocation67_spill] sm:$0xff] }
0x107b   : > { %v9537_v48 = vunpack.i.h.bf16 %v9535_v1  ;;  %v9536_v7 = vunpack.i.l.bf16 %v9535_v1  ;;  %8621 = vmatprep.subr.bf16.mxu1 %v9981_v59  ;;  %v4271_v33 = vsel %vm3038_vm0, %v13977_v57, %v9511_v10  ;;  %v4272_v0 = vsel %vm3038_vm0, %v13978_v42, %v9512_v54  ;;  %v9986_v45 = vld [vmem:[#allocation9 + $0x80] ss:$12 sps:$4 sm:$0xff]  }
0x107c   : > { %v9520_v43 = vpop.permute.xlu1 %9519  ;;  %v13355_v31 = vpack.c.bf16 %v4272_v0, %v4271_v33  ;;  %7464 = vmatpush1.bf16.msra.mxu0 %v10003_v50  ;;  %v13983_v54 = vld [vmem:[#allocation70_spill] sm:$0xff]  ;;  %v13986_v57 = vld [vmem:[#allocation71_spill] sm:$0xff]  ;;  %v9990_v0 = vld [vmem:[#allocation9 + $0xb0] ss:$12 sps:$4 sm:$0xff]  }
0x107d   : > { %v9522_v38 = vunpack.i.h.bf16 %v9520_v43  ;;  %v9521_v47 = vunpack.i.l.bf16 %v9520_v43  ;;  %v5541_v49 = vsel %vm3038_vm0, %v13979_v52, %v9536_v7  ;;  %v5542_v2 = vsel %vm3038_vm0, %v13980_v36, %v9537_v48  ;;  %v9989_v48 = vld [vmem:[#allocation9 + $0x170] ss:$12 sps:$4 sm:$0xff]   ;;  %v9994_v43 = vld [vmem:[#allocation9 + $0x188] ss:$12 sps:$4 sm:$0xff]   ;;  %v9998_v50 = vld [vmem:[#allocation9 + $0x1a0] ss:$12 sps:$4 sm:$0xff]  }
0x107e   : > { %7397 = vmatmul.mubr.bf16.gmra.mrb[200].mxu0 %v13327_v37  ;;  %8622 = vmatpush3.bf16.msra.mxu1 %v9982_v55  ;;  %v13362_v23 = vpack.c.bf16 %v5542_v2, %v5541_v49  ;;  %v9988_v55 = vld [vmem:[#allocation9 + $0x98] ss:$12 sps:$4 sm:$0xff]   ;;  %v10019_v52 = vld [vmem:[#allocation9 + $0x228] ss:$12 sps:$4 sm:$0xff]   ;;  %v10022_v49 = vld [vmem:[#allocation9 + $0x230] ss:$12 sps:$4 sm:$0xff]  }
0x107f   : > { %7406 = vmatprep.mubr.bf16.mxu0 %v13304_v46  ;;  %8623 = vmatprep.subr.bf16.mxu1 %v9983_v24  ;;  %v4273_v5 = vsel %vm3038_vm0, %v13981_v30, %v9521_v47  ;;  %v4274_v59 = vsel %vm3038_vm0, %v13982_v20, %v9522_v38  ;;  %v13985_v7 = vld [vmem:[#allocation69_spill] sm:$0xff] }
0x1080   : > { %v9530_v53 = vpop.permute.xlu1 %9529  ;;  %v4284_v17 = vpack.c.bf16 %v4274_v59, %v4273_v5  ;;  %v10002_v38 = vld [vmem:[#allocation9 + $0x1b8] ss:$12 sps:$4 sm:$0xff]  }
0x1081   : > { %v9532_v60 = vunpack.i.h.bf16 %v9530_v53  ;;  %v9531_v6 = vunpack.i.l.bf16 %v9530_v53  ;;  %v10021_v47 = vld [vmem:[#allocation9 + $0x22c] ss:$12 sps:$4 sm:$0xff]  }
0x1082   : > { %8624 = vmatpush3.bf16.msra.mxu1 %v9984_v22 }
0x1083   : > { %8625 = vmatprep.subr.bf16.mxu1 %v9985_v15  ;;  %v4275_v10 = vsel %vm3038_vm0, %v13983_v54, %v9531_v6  ;;  %v4276_v32 = vsel %vm3038_vm0, %v13984_v9, %v9532_v60 }
0x1084   : > { %v9540_v12 = vpop.permute.xlu1 %9539  ;;  %v4285_v29 = vpack.c.bf16 %v4276_v32, %v4275_v10 }
0x1085   : > { %v9542_v34 = vunpack.i.h.bf16 %v9540_v12  ;;  %v9541_v1 = vunpack.i.l.bf16 %v9540_v12 }
0x1086   : > { %7407 = vmatmul.mubr.bf16.gmra.mrb[204].mxu0 %v13341_v58  ;;  %8626 = vmatpush3.bf16.msra.mxu1 %v9986_v45 }
0x1087   : > { %7416 = vmatprep.mubr.bf16.mxu0 %v13320_v27  ;;  %8627 = vmatprep.subr.bf16.mxu1 %v9987_v63  ;;  %v4277_v24 = vsel %vm3038_vm0, %v13985_v7, %v9541_v1  ;;  %v4278_v33 = vsel %vm3038_vm0, %v13986_v57, %v9542_v34 }
0x1088   : > { %v4286_v42 = vpack.c.bf16 %v4278_v33, %v4277_v24 }
0x108a   : > { %8628 = vmatpush3.bf16.msra.mxu1 %v9988_v55 }
0x108b   : > { %8629 = vmatprep.subr.bf16.mxu1 %v9989_v48 }
0x108e   : > { %7417 = vmatmul.mubr.bf16.gmra.mrb[208].mxu0 %v13355_v31  ;;  %8630 = vmatpush3.bf16.msra.mxu1 %v9990_v0 }
0x108f   : > { %7426 = vmatprep.mubr.bf16.mxu0 %v13334_v11  ;;  %9111 = vmatprep.subr.bf16.mxu1 %v9994_v43 }
0x1091   : > { %7603 = vmatmul.mubr.bf16.vlgmr.msra.gmra.mrb[208].mxu1 %v13295_v21  ;;  %v10009_v21 = vld [vmem:[#allocation9 + $0x1e4] ss:$12 sps:$4 sm:$0xff]  }
0x1092   : > { %7610 = vmatprep.mubr.bf16.mxu1 %v13281_v18  ;;  %9112 = vmatpush3.bf16.msra.mxu1 %v9994_v43  ;;  %v13987_v18 = vmov 0  }
0x1093   : > { %9113 = vmatprep.subr.bf16.mxu1 %v9998_v50  ;;  %7465 = vmatprep.subr.bf16.mxu0 %v10009_v21 }
0x1096   : > { %7427 = vmatmul.mubr.bf16.gmra.mrb[212].mxu0 %v4284_v17  ;;  %9114 = vmatpush3.bf16.msra.mxu1 %v9998_v50 }
0x1097   : > { %7436 = vmatprep.mubr.bf16.mxu0 %v13349_v56  ;;  %9115 = vmatprep.subr.bf16.mxu1 %v10002_v38 }
0x1099   : > { %7611 = vmatmul.mubr.bf16.gmra.mrb[212].mxu1 %v13311_v16  ;;  %v10010_v16 = vld [vmem:[#allocation9 + $0x1e8] ss:$12 sps:$4 sm:$0xff]  }
0x109a   : > { %7618 = vmatprep.mubr.bf16.mxu1 %v13288_v8  ;;  %9116 = vmatpush3.bf16.msra.mxu1 %v10002_v38  ;;  %v10006_v8 = vld [vmem:[#allocation9 + $0x1d0] ss:$12 sps:$4 sm:$0xff]  }
0x109b   : > { %9117 = vmatprep.subr.bf16.mxu1 %v10006_v8 }
0x109e   : > { %7437 = vmatmul.mubr.bf16.gmra.mrb[216].mxu0 %v4285_v29  ;;  %9118 = vmatpush3.bf16.msra.mxu1 %v10006_v8 }
0x109f   : > { %7446 = vmatprep.mubr.bf16.mxu0 %v13362_v23  ;;  %9119 = vmatprep.subr.bf16.mxu1 %v10010_v16 }
0x10a1   : > { %7619 = vmatmul.mubr.bf16.gmra.mrb[216].mxu1 %v13327_v37  ;;  %v10013_v37 = vld [vmem:[#allocation9 + $0x1fc] ss:$12 sps:$4 sm:$0xff]  }
0x10a2   : > { %7626 = vmatprep.mubr.bf16.mxu1 %v13304_v46  ;;  %v10007_v46 = vld [vmem:[#allocation9 + $0x1e0] ss:$12 sps:$4 sm:$0xff]   ;;  %9120 = vmatpush3.bf16.msra.mxu1 %v10010_v16 }
0x10a3   : > { %7466 = vmatpush1.bf16.msra.mxu0 %v10007_v46 }
0x10a4   : > { %7467 = vmatprep.subr.bf16.mxu0 %v10013_v37 }
0x10a6   : > { %7447 = vmatmul.mubr.bf16.gmra.mrb[220].mxu0 %v4286_v42 }
0x10a7   : > { %7489 = vmatprep.mubr.bf16.mxu0 %v13987_v18 }
0x10a9   : > { %7627 = vmatmul.mubr.bf16.gmra.mrb[220].mxu1 %v13341_v58  ;;  %v10017_v58 = vld [vmem:[#allocation9 + $0x214] ss:$12 sps:$4 sm:$0xff]  }
0x10aa   : > { %7634 = vmatprep.mubr.bf16.mxu1 %v13320_v27  ;;  %v10011_v27 = vld [vmem:[#allocation9 + $0x1f8] ss:$12 sps:$4 sm:$0xff]  }
0x10ab   : > { %7468 = vmatpush1.bf16.msra.mxu0 %v10011_v27 }
0x10ac   : > { %7469 = vmatprep.subr.bf16.mxu0 %v10017_v58 }
0x10b1   : > { %7635 = vmatmul.mubr.bf16.gmra.mrb[224].mxu1 %v13355_v31  ;;  %v10018_v31 = vld [vmem:[#allocation9 + $0x218] ss:$12 sps:$4 sm:$0xff]  }
0x10b2   : > { %7642 = vmatprep.mubr.bf16.mxu1 %v13334_v11  ;;  %v10014_v11 = vld [vmem:[#allocation9 + $0x200] ss:$12 sps:$4 sm:$0xff]  }
0x10b3   : > { %9121 = vmatprep.subr.bf16.mxu1 %v10014_v11 }
0x10b4   : > { %9122 = vmatpush3.bf16.msra.mxu1 %v10014_v11 }
0x10b5   : > { %9123 = vmatprep.subr.bf16.mxu1 %v10018_v31 }
0x10b8   : > { %9124 = vmatpush3.bf16.msra.mxu1 %v10018_v31 }
0x10b9   : > { %7643 = vmatmul.mubr.bf16.gmra.mrb[228].mxu1 %v4284_v17  ;;  %9125 = vmatprep.subr.bf16.mxu1 %v10022_v49 }
0x10ba   : > { %7650 = vmatprep.mubr.bf16.mxu1 %v13349_v56  ;;  %v10015_v56 = vld [vmem:[#allocation9 + $0x210] ss:$12 sps:$4 sm:$0xff]  }
0x10bb   : > { %7470 = vmatpush1.bf16.msra.mxu0 %v10015_v56 }
0x10bc   : > { %7471 = vmatprep.subr.bf16.mxu0 %v10021_v47  ;;  %9126 = vmatpush3.bf16.msra.mxu1 %v10022_v49 }
0x10bf   : > { %7472 = vmatpush1.bf16.msra.mxu0 %v10019_v52 }
0x10c1   : > { %7651 = vmatmul.mubr.bf16.gmra.mrb[232].mxu1 %v4285_v29 }
0x10c2   : > { %7658 = vmatprep.mubr.bf16.mxu1 %v13362_v23 }
0x10c9   : > { %7659 = vmatmul.mubr.bf16.gmra.mrb[236].mxu1 %v4286_v42 }
0x10d9   : > { %v9089_v36 = vpop.f32.mrb[184].mxu0 }
0x10da   : > { %v6603_v2 = vpop.f32.mrb[185].mxu0 }
0x10db   : > { %v9090_v22 = vpop.f32.mrb[186].mxu0 }
0x10dc   : > { %v9548_v23 = vpack.i.bf16 %v9090_v22, %v9089_v36  ;;  %v6606_v15 = vpop.f32.mrb[187].mxu0 }
0x10dd   : > { %v9543_v30 = vpack.i.bf16 %v6606_v15, %v6603_v2 }
0x10de   : > { %9549 = vrot.lane.b32.xlu1 %v9548_v23, %s10597_s21 }
0x10df   : > { %9544 = vrot.lane.b32.xlu0 %v9543_v30, %s10597_s21 }
0x10eb   : > { %v9093_v5 = vpop.f32.mrb[188].mxu0 }
0x10ec   : > { %v6619_v20 = vpop.f32.mrb[189].mxu0 }
0x10ed   : > { %v9094_v59 = vpop.f32.mrb[190].mxu0 }
0x10ee   : > { %v9558_v53 = vpack.i.bf16 %v9094_v59, %v9093_v5  ;;  %v6622_v17 = vpop.f32.mrb[191].mxu0 }
0x10ef   : > { %v9553_v60 = vpack.i.bf16 %v6622_v17, %v6619_v20 }
0x10f0   : > { %9559 = vrot.lane.b32.xlu1 %v9558_v53, %s10597_s21 }
0x10f1   : > { %9554 = vrot.lane.b32.xlu0 %v9553_v60, %s10597_s21 }
0x1144   : > { %v9105_v6 = vpop.f32.mrb[200].mxu1 }
0x1145   : > { %v6696_v45 = vpop.f32.mrb[201].mxu1 }
0x1146   : > { %v9106_v63 = vpop.f32.mrb[202].mxu1 }
0x1147   : > { %v9568_v54 = vpack.i.bf16 %v9106_v63, %v9105_v6  ;;  %v6699_v10 = vpop.f32.mrb[203].mxu1 }
0x1148   : > { %v9563_v9 = vpack.i.bf16 %v6699_v10, %v6696_v45 }
0x1149   : > { %9569 = vrot.lane.b32.xlu1 %v9568_v54, %s10597_s21 }
0x114a   : > { %9564 = vrot.lane.b32.xlu0 %v9563_v9, %s10597_s21  ;;  %v13988_v9 = vld [vmem:[#allocation56_spill] sm:$0xff] }
0x114c   : > { %v9109_v32 = vpop.f32.mrb[204].mxu1 }
0x114d   : > { %v6712_v12 = vpop.f32.mrb[205].mxu1 }
0x114e   : > { %v9110_v29 = vpop.f32.mrb[206].mxu1 }
0x114f   : > { %v9578_v34 = vpack.i.bf16 %v9110_v29, %v9109_v32  ;;  %v6715_v1 = vpop.f32.mrb[207].mxu1  ;;  %v6955_v32 = vsub.s32 2, %v13988_v9 }
0x1150   : > { %v9573_v55 = vpack.i.bf16 %v6715_v1, %v6712_v12  ;;  %v9550_v48 = vpop.permute.xlu1 %9549  ;;  %v13444_v12 = vld [vmem:[%s13661_s3] sm:$0x7] }
0x1151   : > { %v9552_v7 = vunpack.i.h.bf16 %v9550_v48  ;;  %v9551_v24 = vunpack.i.l.bf16 %v9550_v48  ;;  %v9545_v57 = vpop.permute.xlu0 %9544  ;;  %9579 = vrot.lane.b32.xlu1 %v9578_v34, %s10597_s21  ;;  %v13447_v48 = vrot.slane %v13444_v12, %v6955_v32 }
0x1152   : > { %v9547_v33 = vunpack.i.h.bf16 %v9545_v57  ;;  %v9546_v42 = vunpack.i.l.bf16 %v9545_v57  ;;  %9574 = vrot.lane.b32.xlu0 %v9573_v55, %s10597_s21 }
0x1153   : > { %v6794_v0 = vsel %vm3038_vm0, %v12973_v3, %v9552_v7  ;;  %v6793_v43 = vsel %vm3038_vm0, %v12969_v62, %v9551_v24 }
0x1154   : > { %v6808_v50 = vpack.c.bf16 %v6794_v0, %v6793_v43  ;;  %v6792_v38 = vsel %vm3038_vm0, %v12975_v35, %v9547_v33  ;;  %v6791_v8 = vsel %vm3038_vm0, %v12971_v44, %v9546_v42 }
0x1155   : > { %v6807_v21 = vpack.c.bf16 %v6792_v38, %v6791_v8 }
0x1157   : > { %7490 = vmatmul.mubr.bf16.vlgmr.msra.gmra.mrb[192].mxu0 %v6807_v21  ;;  %9127 = vmatprep.mubr.bf16.mxu1 %v6807_v21 }
0x1158   : > { %9128 = vmatmul.mubr.bf16.vlgmr.msra.gmra.mrb[240].mxu1 %v6808_v50  ;;  %7499 = vmatprep.mubr.bf16.mxu0 %v13987_v18 }
0x115f   : > { %7500 = vmatmul.mubr.bf16.gmra.mrb[196].mxu0 %v6808_v50 }
0x1160   : > { %7509 = vmatprep.mubr.bf16.mxu0 %v13987_v18 }
0x1162   : > { %v9560_v3 = vpop.permute.xlu1 %9559 }
0x1163   : > { %v9562_v46 = vunpack.i.h.bf16 %v9560_v3  ;;  %v9561_v16 = vunpack.i.l.bf16 %v9560_v3  ;;  %v9555_v62 = vpop.permute.xlu0 %9554 }
0x1164   : > { %v9557_v27 = vunpack.i.h.bf16 %v9555_v62  ;;  %v9556_v37 = vunpack.i.l.bf16 %v9555_v62  ;;  %v8631_v11 = vpop.f32.mrb[208].mxu1 }
0x1165   : > { %v8632_v35 = vpop.f32.mrb[209].mxu1  ;;  %v6797_v44 = vsel %vm3038_vm0, %v12977_v14, %v9561_v16  ;;  %v6798_v58 = vsel %vm3038_vm0, %v12981_v26, %v9562_v46 }
0x1166   : > { %v13418_v56 = vadd.f32 %v8632_v35, %v8631_v11  ;;  %v8634_v31 = vpop.f32.mrb[210].mxu1  ;;  %v6795_v47 = vsel %vm3038_vm0, %v12979_v61, %v9556_v37  ;;  %v6796_v52 = vsel %vm3038_vm0, %v12983_v13, %v9557_v27  ;;  %v6810_v49 = vpack.c.bf16 %v6798_v58, %v6797_v44 }
0x1167   : > { %v8635_v36 = vpop.f32.mrb[211].mxu1  ;;  %v6809_v2 = vpack.c.bf16 %v6796_v52, %v6795_v47 }
0x1168   : > { %v13424_v22 = vadd.f32 %v8635_v36, %v8634_v31 }
0x1169   : > { %7510 = vmatmul.mubr.bf16.gmra.mrb[200].mxu0 %v6809_v2  ;;  %9131 = vmatprep.mubr.bf16.mxu1 %v6809_v2 }
0x116a   : > { %9132 = vmatmul.mubr.bf16.gmra.mrb[244].mxu1 %v6810_v49  ;;  %7519 = vmatprep.mubr.bf16.mxu0 %v13987_v18 }
0x116c   : > { %v8637_v14 = vpop.f32.mrb[212].mxu1 }
0x116d   : > { %v8638_v26 = vpop.f32.mrb[213].mxu1 }
0x116e   : > { %v13427_v23 = vadd.f32 %v8638_v26, %v8637_v14  ;;  %v8640_v15 = vpop.f32.mrb[214].mxu1 }
0x116f   : > { %v8641_v30 = vpop.f32.mrb[215].mxu1 }
0x1170   : > { %v13429_v61 = vadd.f32 %v8641_v30, %v8640_v15 }
0x1171   : > { %7520 = vmatmul.mubr.bf16.gmra.mrb[204].mxu0 %v6810_v49 }
0x1172   : > { %7529 = vmatprep.mubr.bf16.mxu0 %v13987_v18 }
0x1174   : > { %v8643_v13 = vpop.f32.mrb[216].mxu1 }
0x1175   : > { %v8644_v5 = vpop.f32.mrb[217].mxu1 }
0x1176   : > { %v13432_v20 = vadd.f32 %v8644_v5, %v8643_v13  ;;  %v8646_v59 = vpop.f32.mrb[218].mxu1 }
0x1177   : > { %v8647_v53 = vpop.f32.mrb[219].mxu1 }
0x1178   : > { %v13434_v17 = vadd.f32 %v8647_v53, %v8646_v59 }
0x117c   : > { %v8649_v60 = vpop.f32.mrb[220].mxu1 }
0x117d   : > { %v8650_v6 = vpop.f32.mrb[221].mxu1 }
0x117e   : > { %v13436_v45 = vadd.f32 %v8650_v6, %v8649_v60  ;;  %v8652_v63 = vpop.f32.mrb[222].mxu1 }
0x117f   : > { %v8653_v54 = vpop.f32.mrb[223].mxu1 }
0x1180   : > { %v13438_v10 = vadd.f32 %v8653_v54, %v8652_v63 }
0x1184   : > { %v8655_v29 = vpop.f32.mrb[224].mxu1 }
0x1185   : > { %v8656_v34 = vpop.f32.mrb[225].mxu1 }
0x1186   : > { %v8657_v1 = vadd.f32 %v8656_v34, %v8655_v29  ;;  %v8658_v55 = vpop.f32.mrb[226].mxu1 }
0x1187   : > { %v8659_v7 = vpop.f32.mrb[227].mxu1 }
0x1188   : > { %v8660_v24 = vadd.f32 %v8659_v7, %v8658_v55  ;;  %v13450_v57 = vadd.f32 %v8657_v1, %v13447_v48 }
0x118a   : > { %v13453_v33 = vadd.f32 %v8660_v24, %v13447_v48 }
0x118c   : > { %v8661_v42 = vpop.f32.mrb[228].mxu1 }
0x118d   : > { %v8662_v0 = vpop.f32.mrb[229].mxu1 }
0x118e   : > { %v8663_v43 = vadd.f32 %v8662_v0, %v8661_v42  ;;  %v8664_v50 = vpop.f32.mrb[230].mxu1 }
0x118f   : > { %v8665_v38 = vpop.f32.mrb[231].mxu1 }
0x1190   : > { %v8666_v8 = vadd.f32 %v8665_v38, %v8664_v50  ;;  %v13456_v21 = vadd.f32 %v8663_v43, %v13447_v48  ;;  %v7613_v50 = vadd.f32 %v13427_v23, %v13447_v48 }
0x1192   : > { %v13459_v3 = vadd.f32 %v8666_v8, %v13447_v48 }
0x1194   : > { %v8667_v46 = vpop.f32.mrb[232].mxu1 }
0x1195   : > { %v8668_v16 = vpop.f32.mrb[233].mxu1 }
0x1196   : > { %v8669_v62 = vadd.f32 %v8668_v16, %v8667_v46  ;;  %v8670_v27 = vpop.f32.mrb[234].mxu1  ;;  %v7605_v46 = vadd.f32 %v13418_v56, %v13447_v48 }
0x1197   : > { %v8671_v37 = vpop.f32.mrb[235].mxu1 }
0x1198   : > { %v8672_v11 = vadd.f32 %v8671_v37, %v8670_v27  ;;  %v13462_v35 = vadd.f32 %v8669_v62, %v13447_v48 }
0x119a   : > { %v13465_v44 = vadd.f32 %v8672_v11, %v13447_v48 }
0x119c   : > { %v8673_v58 = vpop.f32.mrb[236].mxu1 }
0x119d   : > { %v8674_v31 = vpop.f32.mrb[237].mxu1 }
0x119e   : > { %v8675_v47 = vadd.f32 %v8674_v31, %v8673_v58  ;;  %v8676_v52 = vpop.f32.mrb[238].mxu1  ;;  %v7608_v58 = vadd.f32 %v13424_v22, %v13447_v48 }
0x119f   : > { %v8677_v49 = vpop.f32.mrb[239].mxu1 }
0x11a0   : > { %v8678_v36 = vadd.f32 %v8677_v49, %v8676_v52  ;;  %v13468_v2 = vadd.f32 %v8675_v47, %v13447_v48 }
0x11a2   : > { %v13471_v14 = vadd.f32 %v8678_v36, %v13447_v48 }
0x11bb   : > { %v9570_v26 = vpop.permute.xlu1 %9569 }
0x11bc   : > { %v9572_v15 = vunpack.i.h.bf16 %v9570_v26  ;;  %v9571_v30 = vunpack.i.l.bf16 %v9570_v26  ;;  %v9565_v13 = vpop.permute.xlu0 %9564 }
0x11bd   : > { %v9567_v5 = vunpack.i.h.bf16 %v9565_v13  ;;  %v9566_v59 = vunpack.i.l.bf16 %v9565_v13 }
0x11be   : > { %v6801_v53 = vsel %vm3038_vm0, %v13033_v19, %v9571_v30  ;;  %v6802_v60 = vsel %vm3038_vm0, %v13037_v51, %v9572_v15 }
0x11bf   : > { %v6799_v6 = vsel %vm3038_vm0, %v13035_v28, %v9566_v59  ;;  %v6800_v63 = vsel %vm3038_vm0, %v13039_v40, %v9567_v5  ;;  %v6812_v54 = vpack.c.bf16 %v6802_v60, %v6801_v53  ;;  %v7629_v53 = vadd.f32 %v13436_v45, %v13447_v48 }
0x11c0   : > { %v6811_v32 = vpack.c.bf16 %v6800_v63, %v6799_v6  ;;  %v7632_v45 = vadd.f32 %v13438_v10, %v13447_v48 }
0x11c2   : > { %7530 = vmatmul.mubr.bf16.gmra.mrb[208].mxu0 %v6811_v32  ;;  %9135 = vmatprep.mubr.bf16.mxu1 %v6811_v32 }
0x11c3   : > { %v9580_v29 = vpop.permute.xlu1 %9579  ;;  %9136 = vmatmul.mubr.bf16.gmra.mrb[248].mxu1 %v6812_v54  ;;  %7539 = vmatprep.mubr.bf16.mxu0 %v13987_v18 }
0x11c4   : > { %v9582_v34 = vunpack.i.h.bf16 %v9580_v29  ;;  %v9581_v1 = vunpack.i.l.bf16 %v9580_v29  ;;  %v9575_v19 = vpop.permute.xlu0 %9574 }
0x11c5   : > { %v9577_v55 = vunpack.i.h.bf16 %v9575_v19  ;;  %v9576_v7 = vunpack.i.l.bf16 %v9575_v19 }
0x11c6   : > { %v6805_v28 = vsel %vm3038_vm0, %v13041_v39, %v9581_v1  ;;  %v6806_v51 = vsel %vm3038_vm0, %v13045_v25, %v9582_v34  ;;  %v6947_v39 = vsub.s32 0, %v13988_v9  ;;  %v6951_v25 = vsub.s32 1, %v13988_v9 }
0x11c7   : > { %v6803_v40 = vsel %vm3038_vm0, %v13043_v4, %v9576_v7  ;;  %v6804_v24 = vsel %vm3038_vm0, %v13047_v41, %v9577_v55  ;;  %v6814_v42 = vpack.c.bf16 %v6806_v51, %v6805_v28 }
0x11c8   : > { %v6813_v0 = vpack.c.bf16 %v6804_v24, %v6803_v40  ;;  %v13496_v4 = vrot.slane %v13444_v12, %v6947_v39  ;;  %v13499_v41 = vrot.slane %v13444_v12, %v6951_v25  ;;  %v7616_v12 = vadd.f32 %v13429_v61, %v13447_v48 }
0x11ca   : > { %7540 = vmatmul.mubr.bf16.gmra.mrb[212].mxu0 %v6812_v54  ;;  %9139 = vmatprep.mubr.bf16.mxu1 %v6813_v0  ;;  %v7621_v54 = vadd.f32 %v13432_v20, %v13447_v48  ;;  %v7624_v20 = vadd.f32 %v13434_v17, %v13447_v48 }
0x11cb   : > { %9140 = vmatmul.mubr.bf16.gmra.mrb[252].mxu1 %v6814_v42  ;;  %7549 = vmatprep.mubr.bf16.mxu0 %v13987_v18 }
0x11d2   : > { %7550 = vmatmul.mubr.bf16.gmra.mrb[216].mxu0 %v6813_v0 }
0x11d3   : > { %7559 = vmatprep.mubr.bf16.mxu0 %v13987_v18 }
0x11da   : > { %7560 = vmatmul.mubr.bf16.gmra.mrb[220].mxu0 %v6814_v42 }
0x122a   : > { %v7491_v43 = vpop.f32.mrb[192].mxu0 }
0x122b   : > { %v9175_v38 = vadd.f32 %v7491_v43, %v13496_v4  ;;  %v7493_v8 = vpop.f32.mrb[193].mxu0  ;;  %v9129_v18 = vpop.f32.mrb[240].mxu1 }
0x122c   : > { %v9176_v9 = vadd.f32 %v7493_v8, %v13499_v41  ;;  %v7710_v16 = vadd.f32 %v9129_v18, %v7613_v50  ;;  %v7495_v62 = vpop.f32.mrb[194].mxu0  ;;  %v7701_v27 = vpop.f32.mrb[241].mxu1 }
0x122d   : > { %7764 = vst [vmem:[%s13509_s27] sm:$0xff] %v9175_v38  ;;  %v9177_v56 = vadd.f32 %v7495_v62, %v13496_v4  ;;  %v7702_v23 = vadd.f32 %v7701_v27, %v7605_v46  ;;  %v7497_v37 = vpop.f32.mrb[195].mxu0  ;;  %v9130_v11 = vpop.f32.mrb[242].mxu1 }
0x122e   : > { %7765 = vst [vmem:[%s13509_s27 + $0x8] sm:$0xff] %v9176_v9  ;;  %7772 = vst [vmem:[%s13509_s27 + $0x40] sm:$0xff] %v7710_v16  ;;  %v9178_v61 = vadd.f32 %v7497_v37, %v13499_v41  ;;  %v7713_v31 = vadd.f32 %v9130_v11, %v7616_v12  ;;  %v7704_v47 = vpop.f32.mrb[243].mxu1 }
0x122f   : > { %7767 = vst [vmem:[%s13509_s27 + $0x18] sm:$0xff] %v9177_v56  ;;  %7766 = vst [vmem:[%s13509_s27 + $0x10] sm:$0xff] %v7702_v23  ;;  %v7705_v52 = vadd.f32 %v7704_v47, %v7608_v58 }
0x1230   : > { %7768 = vst [vmem:[%s13509_s27 + $0x20] sm:$0xff] %v9178_v61  ;;  %7775 = vst [vmem:[%s13509_s27 + $0x58] sm:$0xff] %v7713_v31 }
0x1231   : > { %7769 = vst [vmem:[%s13509_s27 + $0x28] sm:$0xff] %v7705_v52 }
0x1232   : > { %v7501_v49 = vpop.f32.mrb[196].mxu0 }
0x1233   : > { %v9179_v36 = vadd.f32 %v7501_v49, %v13496_v4  ;;  %v7503_v22 = vpop.f32.mrb[197].mxu0 }
0x1234   : > { %v9180_v26 = vadd.f32 %v7503_v22, %v13499_v41  ;;  %v7505_v15 = vpop.f32.mrb[198].mxu0 }
0x1235   : > { %7770 = vst [vmem:[%s13509_s27 + $0x30] sm:$0xff] %v9179_v36  ;;  %v9181_v30 = vadd.f32 %v7505_v15, %v13496_v4  ;;  %v7507_v13 = vpop.f32.mrb[199].mxu0 }
0x1236   : > { %7771 = vst [vmem:[%s13509_s27 + $0x38] sm:$0xff] %v9180_v26  ;;  %v9182_v5 = vadd.f32 %v7507_v13, %v13499_v41 }
0x1237   : > { %7773 = vst [vmem:[%s13509_s27 + $0x48] sm:$0xff] %v9181_v30 }
0x1238   : > { %7774 = vst [vmem:[%s13509_s27 + $0x50] sm:$0xff] %v9182_v5 }
0x123c   : > { %v7511_v59 = vpop.f32.mrb[200].mxu0 }
0x123d   : > { %v9183_v60 = vadd.f32 %v7511_v59, %v13496_v4  ;;  %v7513_v6 = vpop.f32.mrb[201].mxu0  ;;  %v9133_v63 = vpop.f32.mrb[244].mxu1 }
0x123e   : > { %v9184_v32 = vadd.f32 %v7513_v6, %v13499_v41  ;;  %v7726_v29 = vadd.f32 %v9133_v63, %v7629_v53  ;;  %v7515_v34 = vpop.f32.mrb[202].mxu0  ;;  %v7717_v1 = vpop.f32.mrb[245].mxu1 }
0x123f   : > { %7776 = vst [vmem:[%s13509_s27 + $0x60] sm:$0xff] %v9183_v60  ;;  %v9185_v19 = vadd.f32 %v7515_v34, %v13496_v4  ;;  %v7718_v55 = vadd.f32 %v7717_v1, %v7621_v54  ;;  %v7517_v7 = vpop.f32.mrb[203].mxu0  ;;  %v9134_v28 = vpop.f32.mrb[246].mxu1 }
0x1240   : > { %7777 = vst [vmem:[%s13509_s27 + $0x68] sm:$0xff] %v9184_v32  ;;  %7784 = vst [vmem:[%s13509_s27 + $0xa0] sm:$0xff] %v7726_v29  ;;  %v9186_v51 = vadd.f32 %v7517_v7, %v13499_v41  ;;  %v7729_v40 = vadd.f32 %v9134_v28, %v7632_v45  ;;  %v7720_v24 = vpop.f32.mrb[247].mxu1 }
0x1241   : > { %7779 = vst [vmem:[%s13509_s27 + $0x78] sm:$0xff] %v9185_v19  ;;  %7778 = vst [vmem:[%s13509_s27 + $0x70] sm:$0xff] %v7718_v55  ;;  %v7721_v10 = vadd.f32 %v7720_v24, %v7624_v20 }
0x1242   : > { %7780 = vst [vmem:[%s13509_s27 + $0x80] sm:$0xff] %v9186_v51  ;;  %7787 = vst [vmem:[%s13509_s27 + $0xb8] sm:$0xff] %v7729_v40 }
0x1243   : > { %7781 = vst [vmem:[%s13509_s27 + $0x88] sm:$0xff] %v7721_v10 }
0x1244   : > { %v7521_v42 = vpop.f32.mrb[204].mxu0 }
0x1245   : > { %v9187_v0 = vadd.f32 %v7521_v42, %v13496_v4  ;;  %v7523_v17 = vpop.f32.mrb[205].mxu0 }
0x1246   : > { %v9188_v48 = vadd.f32 %v7523_v17, %v13499_v41  ;;  %v7525_v39 = vpop.f32.mrb[206].mxu0 }
0x1247   : > { %7782 = vst [vmem:[%s13509_s27 + $0x90] sm:$0xff] %v9187_v0  ;;  %v9189_v25 = vadd.f32 %v7525_v39, %v13496_v4  ;;  %v7527_v43 = vpop.f32.mrb[207].mxu0 }
0x1248   : > { %7783 = vst [vmem:[%s13509_s27 + $0x98] sm:$0xff] %v9188_v48  ;;  %v9190_v50 = vadd.f32 %v7527_v43, %v13499_v41 }
0x1249   : > { %7785 = vst [vmem:[%s13509_s27 + $0xa8] sm:$0xff] %v9189_v25 }
0x124a   : > { %7786 = vst [vmem:[%s13509_s27 + $0xb0] sm:$0xff] %v9190_v50 }
0x1295   : > { %v7531_v38 = vpop.f32.mrb[208].mxu0 }
0x1296   : > { %v9191_v8 = vadd.f32 %v7531_v38, %v13496_v4  ;;  %v7533_v18 = vpop.f32.mrb[209].mxu0  ;;  %v9137_v46 = vpop.f32.mrb[248].mxu1 }
0x1297   : > { %v9192_v9 = vadd.f32 %v7533_v18, %v13499_v41  ;;  %v7742_v16 = vadd.f32 %v9137_v46, %v13456_v21  ;;  %v7535_v62 = vpop.f32.mrb[210].mxu0  ;;  %v7733_v27 = vpop.f32.mrb[249].mxu1 }
0x1298   : > { %7788 = vst [vmem:[%s13509_s27 + $0xc0] sm:$0xff] %v9191_v8  ;;  %v9193_v12 = vadd.f32 %v7535_v62, %v13496_v4  ;;  %v7734_v56 = vadd.f32 %v7733_v27, %v13450_v57  ;;  %v7537_v23 = vpop.f32.mrb[211].mxu0  ;;  %v9138_v37 = vpop.f32.mrb[250].mxu1 }
0x1299   : > { %7789 = vst [vmem:[%s13509_s27 + $0xc8] sm:$0xff] %v9192_v9  ;;  %7796 = vst [vmem:[%s13509_s27 + $0x100] sm:$0xff] %v7742_v16  ;;  %v9194_v11 = vadd.f32 %v7537_v23, %v13499_v41  ;;  %v7745_v58 = vadd.f32 %v9138_v37, %v13459_v3  ;;  %v7736_v21 = vpop.f32.mrb[251].mxu1 }
0x129a   : > { %7791 = vst [vmem:[%s13509_s27 + $0xd8] sm:$0xff] %v9193_v12  ;;  %7790 = vst [vmem:[%s13509_s27 + $0xd0] sm:$0xff] %v7734_v56  ;;  %v7737_v61 = vadd.f32 %v7736_v21, %v13453_v33 }
0x129b   : > { %7792 = vst [vmem:[%s13509_s27 + $0xe0] sm:$0xff] %v9194_v11  ;;  %7799 = vst [vmem:[%s13509_s27 + $0x118] sm:$0xff] %v7745_v58 }
0x129c   : > { %7793 = vst [vmem:[%s13509_s27 + $0xe8] sm:$0xff] %v7737_v61 }
0x129d   : > { %v7541_v57 = vpop.f32.mrb[212].mxu0 }
0x129e   : > { %v9195_v31 = vadd.f32 %v7541_v57, %v13496_v4  ;;  %v7543_v47 = vpop.f32.mrb[213].mxu0  ;;  %v9141_v52 = vpop.f32.mrb[252].mxu1 }
0x129f   : > { %v9196_v3 = vadd.f32 %v7543_v47, %v13499_v41  ;;  %v7758_v49 = vadd.f32 %v9141_v52, %v13468_v2  ;;  %v7545_v36 = vpop.f32.mrb[214].mxu0  ;;  %v7749_v33 = vpop.f32.mrb[253].mxu1 }
0x12a0   : > { %7794 = vst [vmem:[%s13509_s27 + $0xf0] sm:$0xff] %v9195_v31  ;;  %v9197_v22 = vadd.f32 %v7545_v36, %v13496_v4  ;;  %v7750_v26 = vadd.f32 %v7749_v33, %v13462_v35  ;;  %v7547_v15 = vpop.f32.mrb[215].mxu0  ;;  %v9142_v30 = vpop.f32.mrb[254].mxu1 }
0x12a1   : > { %7795 = vst [vmem:[%s13509_s27 + $0xf8] sm:$0xff] %v9196_v3  ;;  %7808 = vst [vmem:[%s13509_s27 + $0x160] sm:$0xff] %v7758_v49  ;;  %v9198_v13 = vadd.f32 %v7547_v15, %v13499_v41  ;;  %v7761_v5 = vadd.f32 %v9142_v30, %v13471_v14  ;;  %v7752_v2 = vpop.f32.mrb[255].mxu1 }
0x12a2   : > { %7797 = vst [vmem:[%s13509_s27 + $0x108] sm:$0xff] %v9197_v22  ;;  %7802 = vst [vmem:[%s13509_s27 + $0x130] sm:$0xff] %v7750_v26  ;;  %v7753_v59 = vadd.f32 %v7752_v2, %v13465_v44 }
0x12a3   : > { %7798 = vst [vmem:[%s13509_s27 + $0x110] sm:$0xff] %v9198_v13  ;;  %7811 = vst [vmem:[%s13509_s27 + $0x178] sm:$0xff] %v7761_v5 }
0x12a4   : > { %7805 = vst [vmem:[%s13509_s27 + $0x148] sm:$0xff] %v7753_v59 }
0x12a5   : > { %v7551_v35 = vpop.f32.mrb[216].mxu0 }
0x12a6   : > { %v9199_v53 = vadd.f32 %v7551_v35, %v13496_v4  ;;  %v7553_v60 = vpop.f32.mrb[217].mxu0 }
0x12a7   : > { %v9200_v6 = vadd.f32 %v7553_v60, %v13499_v41  ;;  %v7555_v14 = vpop.f32.mrb[218].mxu0 }
0x12a8   : > { %7800 = vst [vmem:[%s13509_s27 + $0x120] sm:$0xff] %v9199_v53  ;;  %v9201_v63 = vadd.f32 %v7555_v14, %v13496_v4  ;;  %v7557_v54 = vpop.f32.mrb[219].mxu0 }
0x12a9   : > { %7801 = vst [vmem:[%s13509_s27 + $0x128] sm:$0xff] %v9200_v6  ;;  %v9202_v44 = vadd.f32 %v7557_v54, %v13499_v41 }
0x12aa   : > { %7803 = vst [vmem:[%s13509_s27 + $0x138] sm:$0xff] %v9201_v63 }
0x12ab   : > { %7804 = vst [vmem:[%s13509_s27 + $0x140] sm:$0xff] %v9202_v44 }
0x12ad   : > { %v7561_v32 = vpop.f32.mrb[220].mxu0 }
0x12ae   : > { %v9203_v29 = vadd.f32 %v7561_v32, %v13496_v4  ;;  %v7563_v34 = vpop.f32.mrb[221].mxu0 }
0x12af   : > { %v9204_v1 = vadd.f32 %v7563_v34, %v13499_v41  ;;  %v7565_v45 = vpop.f32.mrb[222].mxu0 }
0x12b0   : > { %7806 = vst [vmem:[%s13509_s27 + $0x150] sm:$0xff] %v9203_v29  ;;  %v9205_v19 = vadd.f32 %v7565_v45, %v13496_v4  ;;  %v7567_v55 = vpop.f32.mrb[223].mxu0 }
0x12b1   : > { %7807 = vst [vmem:[%s13509_s27 + $0x158] sm:$0xff] %v9204_v1  ;;  %v9206_v7 = vadd.f32 %v7567_v55, %v13499_v41 }
0x12b2   : > { %7809 = vst [vmem:[%s13509_s27 + $0x168] sm:$0xff] %v9205_v19 }
0x12b3   : > { %7810 = vst [vmem:[%s13509_s27 + $0x170] sm:$0xff] %v9206_v7 }
0x12b4   : > { %10530 = shalt.err (!%p10527_p2)
}
0x12b5   : > { %s10531_s28 = scalar_lea.hbm %s13608_s20, 6144  ;;  %s10535_s23 = scalar_lea.hbm %s13662_s4, 12288 }
0x12b6   : > { %p10532_p13 = scmp.ne.s32.totalorder %s13608_s20, %s10531_s28  ;;  %p10536_p4 = scmp.lt.u32.totalorder %s13608_s20, %s13662_s4 }
0x12b7   : > { %p10537_p7 = scmp.lt.u32.totalorder %s10535_s23, %s10531_s28  ;;  %p10539_p11 = scmp.lt.u32.totalorder %s10531_s28, %s13608_s20 }
0x12b8   : > { %p10533_p6 = pnand %p10532_p13, %p13989_p0 }
0x12b9   : > { %p10538_p8 = por %p10537_p7, %p10536_p4 }
0x12ba   : > { %p10534_p10 = pneg %p10533_p6 }
0x12bb   : > { %p10540_p1 = por %p10539_p11, %p10538_p8 }
0x12bd   : > { %p10541_p3 = pnand %p10540_p1, %p10534_p10 }
0x12bf   : > { %10544 = shalt.err (!%p10541_p3)
}
0x12c0   : > { %s10599_s27 = smov 384   ;;  %s10600_s5 = smov 24  }
0x12c1   : > { %9398 = dma.vmem_to_hbm [thread:$0]  (%p13989_p0), %s13612_s25, 6144, %s13608_s20, %s7813_s19, %s10599_s27, %s10599_s27, %s10600_s5  }
0x12c2 PF: > { %s7842_s9 = sand.u32 1, %s10575_s15   ;;  %p13990_p5 = scmp.ne.s32.totalorder %s13741_s22, 0 }
0x12c3   : > { %p13991_p9 = scmp.ge.s32.totalorder %s10587_s18, 2  ;;  %s7843_s30 = scalar_lea.sflag [#allocation6], %s7842_s9 }
0x12c5   : > { %p9412_p12 = pnand %p13991_p9, %p13990_p5 }
0x12c7   : > { %10570 = dma.done.wait (!%p9412_p12), %s7843_s30, 6144  }
0x12c8   : > { %10572 = vsyncadd (!%p9412_p12), %s7843_s30, 4294961152  ;;  %p18_p2 = scmp.ge.s32.totalorder %s10739_s11, 4   ;;  %s13992_s15 = smov %s10579_s16 }
0x12c9   : > { %s13993_s16 = smov %s10583_s17  ;;  %s13994_s17 = smov %s10748_s14 }
0x12ca   : > { %s13995_s18 = smov %s10739_s11  ;;  %20 = sbr.rel (!%p18_p2) target bundleno = 6 (0x6), region = 89 }
0x12d1   :  { %7848 = vsyncpa [#allocation5], 1 }
0x12d2   :  { %7850 = vsyncpa [#allocation5 + $0x1], 1 }
0x12d3   :  { %7851 = vsyncpa [#allocation8], 1 }
0x12d4   :  { %7852 = vsyncpa [#allocation6], 1 }
0x12d5   :  { %7854 = vsyncpa [#allocation6 + $0x1], 1 }

</bundles_post_ra>
